<compile_context>
chip_gen: v5e
topology: v5e:2x2
jax: 0.10.0
libtpu: 0.0.40
codegen_flags: <defaults>
</compile_context>

<pallas_src>
import functools

import jax
import jax.numpy as jnp
from jax.experimental import pallas as pl
from jax.experimental.pallas import tpu as pltpu


def _round_up(x, m):
    return (x + m - 1) // m * m


# ----------------------------- Pallas kernels -------------------------------

def _matmul_bias_act_kernel(a_ref, b_ref, bias_ref, o_ref, *, relu):
    # Single-K-block matmul: bf16 x bf16 -> f32 accumulation on the MXU,
    # bias + (optional) ReLU fused, bf16 store.
    r = jnp.dot(a_ref[...], b_ref[...], preferred_element_type=jnp.float32)
    r = r + bias_ref[...]
    if relu:
        r = jnp.maximum(r, 0.0)
    o_ref[...] = r.astype(o_ref.dtype)


def pallas_matmul_bias(a, b, bias, relu=True):
    """out = a @ b + bias (optionally fused ReLU).  a, b are bf16; bias f32."""
    M, K = a.shape
    _, N = b.shape
    # Tile only along M.  For small M use the full dim (always a legal block
    # shape); otherwise 256-row tiles with a tiny zero pad of A (K and N are
    # never padded; B and bias are fetched once because their block index is
    # constant across the grid).
    tm = M if M <= 256 else 256
    Mp = _round_up(M, tm)
    if Mp != M:
        a = jnp.pad(a, ((0, Mp - M), (0, 0)))
    out = pl.pallas_call(
        functools.partial(_matmul_bias_act_kernel, relu=relu),
        out_shape=jax.ShapeDtypeStruct((Mp, N), jnp.bfloat16),
        grid_spec=pltpu.PrefetchScalarGridSpec(
            num_scalar_prefetch=0,
            grid=(Mp // tm,),
            in_specs=[
                pl.BlockSpec((tm, K), lambda i: (i, 0)),   # A tile
                pl.BlockSpec((K, N), lambda i: (0, 0)),    # whole B (once)
                pl.BlockSpec((1, N), lambda i: (0, 0)),    # bias (once)
            ],
            out_specs=pl.BlockSpec((tm, N), lambda i: (i, 0)),
        ),
        compiler_params=pltpu.CompilerParams(
            dimension_semantics=("parallel",)),
    )(a, b, bias.reshape(1, N))
    return out[:M] if Mp != M else out


def _maxpool_combine_kernel(ee_ref, eo_ref, oe_ref, oo_ref, o_ref, *, oh, ow):
    # Phase arrays: xx[n, r, c, :] = x[n, 2r + a, 2c + b, :] for phase (a, b).
    # A 3x3 stride-2 window at output (r, c) is the max of 9 shifted views.
    ee = ee_ref[...]
    eo = eo_ref[...]
    oe = oe_ref[...]
    oo = oo_ref[...]
    m = ee[:, :oh, :ow, :]
    for t in (ee[:, :oh, 1:ow + 1, :],
              ee[:, 1:oh + 1, :ow, :],
              ee[:, 1:oh + 1, 1:ow + 1, :],
              eo[:, :oh, :ow, :],
              eo[:, 1:oh + 1, :ow, :],
              oe[:, :oh, :ow, :],
              oe[:, :oh, 1:ow + 1, :],
              oo[:, :oh, :ow, :]):
        m = jnp.maximum(m, t)
    o_ref[...] = m


def _pool_head_kernel(x_ref, w_ref, b_ref, o_ref):
    # AdaptiveAvgPool2d((1,1)) + flatten + F.relu + Linear(1000,1) + softmax(dim=1)
    x = x_ref[...].astype(jnp.float32)                 # (N, H*W, F)
    feat = jnp.mean(x, axis=1)                         # global average pool
    feat = jnp.maximum(feat, 0.0)                      # F.relu
    z = jnp.sum(feat * w_ref[...], axis=1, keepdims=True) + b_ref[...]
    zmax = jnp.max(z, axis=1, keepdims=True)           # softmax over dim=1
    e = jnp.exp(z - zmax)
    o_ref[...] = e / jnp.sum(e, axis=1, keepdims=True)


# ----------------------------- layer wrappers --------------------------------

def conv2d(x, B, bias, kh, kw, stride=1, padding=0, relu=True):
    """NHWC conv (PyTorch semantics) lowered to im2col + Pallas matmul.

    B is the pre-transformed weight matrix of shape (kh*kw*C, O); bias is f32.
    """
    N, H, W, C = x.shape
    O = B.shape[1]
    if padding:
        x = jnp.pad(x, ((0, 0), (padding, padding), (padding, padding), (0, 0)))
        H += 2 * padding
        W += 2 * padding
    oh = (H - kh) // stride + 1
    ow = (W - kw) // stride + 1
    if kh == 1 and kw == 1 and stride == 1:
        A = x.reshape(N * H * W, C)          # im2col is the identity for 1x1/s1
    else:
        pats = [x[:, i:i + stride * oh:stride, j:j + stride * ow:stride, :]
                for i in range(kh) for j in range(kw)]
        A = jnp.concatenate(pats, axis=-1).reshape(N * oh * ow, kh * kw * C)
    out = pallas_matmul_bias(A, B, bias, relu)
    return out.reshape(N, oh, ow, O)


def maxpool_3x3_s2_ceil(x):
    """MaxPool2d(kernel=3, stride=2, ceil_mode=True) on NHWC input."""
    N, H, W, C = x.shape
    oh = -(-(H - 3) // 2) + 1
    ow = -(-(W - 3) // 2) + 1
    Hp, Wp = 2 * (oh + 1), 2 * (ow + 1)
    neg = jnp.finfo(x.dtype).min
    xp = jnp.pad(x, ((0, 0), (0, Hp - H), (0, Wp - W), (0, 0)),
                 constant_values=neg)
    # Even/odd phase decomposition (plain reshape + slices; each phase is
    # (N, oh+1, ow+1, C), together exactly one copy of the padded input).
    xr = xp.reshape(N, oh + 1, 2, ow + 1, 2, C)
    ee = xr[:, :, 0, :, 0, :]
    eo = xr[:, :, 0, :, 1, :]
    oe = xr[:, :, 1, :, 0, :]
    oo = xr[:, :, 1, :, 1, :]
    in_spec = pl.BlockSpec((1, oh + 1, ow + 1, C), lambda n: (n, 0, 0, 0))
    return pl.pallas_call(
        functools.partial(_maxpool_combine_kernel, oh=oh, ow=ow),
        out_shape=jax.ShapeDtypeStruct((N, oh, ow, C), x.dtype),
        grid_spec=pltpu.PrefetchScalarGridSpec(
            num_scalar_prefetch=0,
            grid=(N,),
            in_specs=[in_spec, in_spec, in_spec, in_spec],
            out_specs=pl.BlockSpec((1, oh, ow, C), lambda n: (n, 0, 0, 0)),
        ),
        compiler_params=pltpu.CompilerParams(
            dimension_semantics=("parallel",)),
    )(ee, eo, oe, oo)


def fire(x, p):
    s = conv2d(x, p["sq_B"], p["sq_b"], kh=1, kw=1)
    # expand1x1 and expand3x3 fused into a single 3x3 conv (1x1 weights live at
    # the centre tap); output channels are [expand1x1 ; expand3x3] as torch.cat.
    return conv2d(s, p["ex_B"], p["ex_b"], kh=3, kw=3, padding=1)


def pool_and_head(x, w_lin, b_lin):
    # Fused: global avg pool + flatten + relu + linear(1000,1) + softmax(dim=1)
    N, H, W, F = x.shape
    return pl.pallas_call(
        _pool_head_kernel,
        out_shape=jax.ShapeDtypeStruct((N, 1), jnp.float32),
    )(x.reshape(N, H * W, F), w_lin, b_lin.reshape(1, 1))


# ----------------------------- parameters ------------------------------------

FIRE_CFG = [  # (in_ch, squeeze, expand1x1, expand3x3) -- SqueezeNet 1.1
    (64, 16, 64, 64), (128, 16, 64, 64),
    (128, 32, 128, 128), (256, 32, 128, 128),
    (256, 48, 192, 192), (384, 48, 192, 192),
    (384, 64, 256, 256), (512, 64, 256, 256),
]


def _to_matrix(w):
    # PyTorch conv weight (O, C, kh, kw) -> im2col matmul matrix (kh*kw*C, O)
    o = w.shape[0]
    return jnp.transpose(w, (2, 3, 1, 0)).reshape(-1, o)


def init_params(key):
    def nxt():
        nonlocal key
        key, sub = jax.random.split(key)
        return sub

    def conv_w(o, c, k):
        std = (2.0 / (c * k * k)) ** 0.5
        w = jax.random.normal(nxt(), (o, c, k, k), jnp.float32) * std
        b = jax.random.normal(nxt(), (o,), jnp.float32) * 0.01
        return w, b

    params = {}
    w, b = conv_w(64, 3, 3)
    params["conv1_B"] = _to_matrix(w).astype(jnp.bfloat16)
    params["conv1_b"] = b

    fires = []
    for cin, sq, e1, e3 in FIRE_CFG:
        sw, sb = conv_w(sq, cin, 1)
        e1w, e1b = conv_w(e1, sq, 1)
        e3w, e3b = conv_w(e3, sq, 3)
        # Fuse expand1x1 + expand3x3: embed the 1x1 weights at the centre tap of
        # a zero 3x3 kernel, concatenate along output channels (torch.cat order).
        e1w3 = jnp.zeros((e1, sq, 3, 3), jnp.float32).at[:, :, 1, 1].set(e1w[:, :, 0, 0])
        exw = jnp.concatenate([e1w3, e3w], axis=0)
        exb = jnp.concatenate([e1b, e3b], axis=0)
        fires.append(dict(sq_B=_to_matrix(sw).astype(jnp.bfloat16), sq_b=sb,
                          ex_B=_to_matrix(exw).astype(jnp.bfloat16), ex_b=exb))
    params["fire"] = fires

    w, b = conv_w(1000, 512, 1)
    params["cls_B"] = _to_matrix(w).astype(jnp.bfloat16)
    params["cls_b"] = b

    params["lin_w"] = jax.random.normal(nxt(), (1, 1000), jnp.float32) * 0.03
    params["lin_b"] = jax.random.normal(nxt(), (1,), jnp.float32) * 0.01
    return params


# ----------------------------- forward ----------------------------------------

def regressor_forward(x, params):
    # One-time layout change NCHW -> NHWC and cast to bf16 for the whole net.
    x = jnp.transpose(x, (0, 2, 3, 1)).astype(jnp.bfloat16)

    # SqueezeNet 1.1 features
    x = conv2d(x, params["conv1_B"], params["conv1_b"], kh=3, kw=3, stride=2)
    x = maxpool_3x3_s2_ceil(x)
    x = fire(x, params["fire"][0])
    x = fire(x, params["fire"][1])
    x = maxpool_3x3_s2_ceil(x)
    x = fire(x, params["fire"][2])
    x = fire(x, params["fire"][3])
    x = maxpool_3x3_s2_ceil(x)
    x = fire(x, params["fire"][4])
    x = fire(x, params["fire"][5])
    x = fire(x, params["fire"][6])
    x = fire(x, params["fire"][7])

    # SqueezeNet classifier: Dropout (identity in eval mode), 1x1 conv, ReLU,
    # then (fused) global average pool + flatten + Regressor head
    # (relu -> linear(1000, 1) -> softmax(dim=1)).
    x = conv2d(x, params["cls_B"], params["cls_b"], kh=1, kw=1)
    return pool_and_head(x, params["lin_w"], params["lin_b"])


if __name__ == "__main__":
    key = jax.random.PRNGKey(0)
    pkey, xkey = jax.random.split(key)
    params = init_params(pkey)
    # Smallest comfortable input surviving SqueezeNet 1.1 downsampling.
    x = jax.random.normal(xkey, (2, 3, 64, 64), jnp.float32)

    fwd = jax.jit(regressor_forward)
    out = jax.block_until_ready(fwd(x, params))

    assert out.shape == (2, 1), out.shape
    assert bool(jnp.all(jnp.isfinite(out)))
    # softmax over a length-1 dim is identically 1.0
    assert bool(jnp.allclose(out, 1.0))
    print("KERNEL_OK")
</pallas_src>

<mosaic_0001>
module attributes {stable_mosaic.version = 11 : i64} {
  func.func @_matmul_bias_act_kernel(%arg0: i32, %arg1: memref<256x27xbf16, #tpu.memory_space<vmem>>, %arg2: memref<27x64xbf16, #tpu.memory_space<vmem>>, %arg3: memref<1x64xf32, #tpu.memory_space<vmem>>, %arg4: memref<256x64xbf16, #tpu.memory_space<vmem>>) attributes {dimension_semantics = [#tpu.dimension_semantics<parallel>], iteration_bounds = array<i64: 8>, scalar_prefetch = 0 : i64, scratch_operands = 0 : i64, tpu.core_type = #tpu.core_type<tc>, window_params = [{transform_indices = @transform_0, window_bounds = array<i64: 256, 27>}, {pipeline_mode = #tpu.pipeline_mode<synchronous>, transform_indices = @transform_1, window_bounds = array<i64: 27, 64>}, {pipeline_mode = #tpu.pipeline_mode<synchronous>, transform_indices = @transform_2, window_bounds = array<i64: 1, 64>}, {transform_indices = @transform_3, window_bounds = array<i64: 256, 64>}]} {
    %c0 = arith.constant 0 : index
    %c0_0 = arith.constant 0 : index
    %0 = vector.load %arg1[%c0, %c0_0] : memref<256x27xbf16, #tpu.memory_space<vmem>>, vector<256x27xbf16>
    %c0_1 = arith.constant 0 : index
    %c0_2 = arith.constant 0 : index
    %1 = vector.load %arg2[%c0_1, %c0_2] : memref<27x64xbf16, #tpu.memory_space<vmem>>, vector<27x64xbf16>
    %cst = arith.constant dense<0.000000e+00> : vector<256x64xf32>
    %2 = tpu.matmul %0, %1, %cst {dimension_numbers = #tpu.dot_dimension_numbers<[1], [0], [0], [1], [0, 0, 1, 1], [], []>} : vector<256x27xbf16>, vector<27x64xbf16>, vector<256x64xf32> -> vector<256x64xf32>
    %c0_3 = arith.constant 0 : index
    %c0_4 = arith.constant 0 : index
    %3 = vector.load %arg3[%c0_3, %c0_4] : memref<1x64xf32, #tpu.memory_space<vmem>>, vector<1x64xf32>
    %4 = vector.broadcast %3 : vector<1x64xf32> to vector<256x64xf32>
    %5 = arith.addf %2, %4 : vector<256x64xf32>
    %cst_5 = arith.constant 0.000000e+00 : f32
    %6 = vector.broadcast %cst_5 : f32 to vector<256x64xf32>
    %7 = arith.maximumf %5, %6 : vector<256x64xf32>
    %8 = arith.truncf %7 : vector<256x64xf32> to vector<256x64xbf16>
    %c0_6 = arith.constant 0 : index
    %c0_7 = arith.constant 0 : index
    %9 = vector.load %arg4[%c0_6, %c0_7] : memref<256x64xbf16, #tpu.memory_space<vmem>>, vector<256x64xbf16>
    tpu.vector_store %arg4[%c0_6, %c0_7], %8 {strides = array<i32>} : memref<256x64xbf16, #tpu.memory_space<vmem>>, vector<256x64xbf16>,
    return
  }
  func.func @transform_0(%arg0: i32) -> (i32, i32) {
    %c0_i32 = arith.constant 0 : i32
    %c0_i32_0 = arith.constant 0 : i32
    return %arg0, %c0_i32 : i32, i32
  }
  func.func @transform_1(%arg0: i32) -> (i32, i32) {
    %c0_i32 = arith.constant 0 : i32
    %c0_i32_0 = arith.constant 0 : i32
    %c0_i32_1 = arith.constant 0 : i32
    return %c0_i32, %c0_i32_0 : i32, i32
  }
  func.func @transform_2(%arg0: i32) -> (i32, i32) {
    %c0_i32 = arith.constant 0 : i32
    %c0_i32_0 = arith.constant 0 : i32
    %c0_i32_1 = arith.constant 0 : i32
    return %c0_i32, %c0_i32_0 : i32, i32
  }
  func.func @transform_3(%arg0: i32) -> (i32, i32) {
    %c0_i32 = arith.constant 0 : i32
    %c0_i32_0 = arith.constant 0 : i32
    return %arg0, %c0_i32 : i32, i32
  }
}

module attributes {stable_mosaic.version = 11 : i64} {
  func.func @_maxpool_combine_kernel(%arg0: i32, %arg1: memref<1x16x16x64xbf16, #tpu.memory_space<vmem>>, %arg2: memref<1x16x16x64xbf16, #tpu.memory_space<vmem>>, %arg3: memref<1x16x16x64xbf16, #tpu.memory_space<vmem>>, %arg4: memref<1x16x16x64xbf16, #tpu.memory_space<vmem>>, %arg5: memref<1x15x15x64xbf16, #tpu.memory_space<vmem>>) attributes {dimension_semantics = [#tpu.dimension_semantics<parallel>], iteration_bounds = array<i64: 2>, scalar_prefetch = 0 : i64, scratch_operands = 0 : i64, tpu.core_type = #tpu.core_type<tc>, window_params = [{transform_indices = @transform_0, window_bounds = array<i64: 1, 16, 16, 64>}, {transform_indices = @transform_1, window_bounds = array<i64: 1, 16, 16, 64>}, {transform_indices = @transform_2, window_bounds = array<i64: 1, 16, 16, 64>}, {transform_indices = @transform_3, window_bounds = array<i64: 1, 16, 16, 64>}, {transform_indices = @transform_4, window_bounds = array<i64: 1, 15, 15, 64>}]} {
    %c0 = arith.constant 0 : index
    %c0_0 = arith.constant 0 : index
    %c0_1 = arith.constant 0 : index
    %c0_2 = arith.constant 0 : index
    %0 = vector.load %arg1[%c0, %c0_0, %c0_1, %c0_2] : memref<1x16x16x64xbf16, #tpu.memory_space<vmem>>, vector<1x16x16x64xbf16>
    %c0_3 = arith.constant 0 : index
    %c0_4 = arith.constant 0 : index
    %c0_5 = arith.constant 0 : index
    %c0_6 = arith.constant 0 : index
    %1 = vector.load %arg2[%c0_3, %c0_4, %c0_5, %c0_6] : memref<1x16x16x64xbf16, #tpu.memory_space<vmem>>, vector<1x16x16x64xbf16>
    %c0_7 = arith.constant 0 : index
    %c0_8 = arith.constant 0 : index
    %c0_9 = arith.constant 0 : index
    %c0_10 = arith.constant 0 : index
    %2 = vector.load %arg3[%c0_7, %c0_8, %c0_9, %c0_10] : memref<1x16x16x64xbf16, #tpu.memory_space<vmem>>, vector<1x16x16x64xbf16>
    %c0_11 = arith.constant 0 : index
    %c0_12 = arith.constant 0 : index
    %c0_13 = arith.constant 0 : index
    %c0_14 = arith.constant 0 : index
    %3 = vector.load %arg4[%c0_11, %c0_12, %c0_13, %c0_14] : memref<1x16x16x64xbf16, #tpu.memory_space<vmem>>, vector<1x16x16x64xbf16>
    %4 = vector.extract_strided_slice %0 {offsets = [0, 0, 0, 0], sizes = [1, 15, 15, 64], strides = [1, 1, 1, 1]} : vector<1x16x16x64xbf16> to vector<1x15x15x64xbf16>
    %5 = vector.extract_strided_slice %0 {offsets = [0, 0, 1, 0], sizes = [1, 15, 15, 64], strides = [1, 1, 1, 1]} : vector<1x16x16x64xbf16> to vector<1x15x15x64xbf16>
    %6 = vector.extract_strided_slice %0 {offsets = [0, 1, 0, 0], sizes = [1, 15, 15, 64], strides = [1, 1, 1, 1]} : vector<1x16x16x64xbf16> to vector<1x15x15x64xbf16>
    %7 = vector.extract_strided_slice %0 {offsets = [0, 1, 1, 0], sizes = [1, 15, 15, 64], strides = [1, 1, 1, 1]} : vector<1x16x16x64xbf16> to vector<1x15x15x64xbf16>
    %8 = vector.extract_strided_slice %1 {offsets = [0, 0, 0, 0], sizes = [1, 15, 15, 64], strides = [1, 1, 1, 1]} : vector<1x16x16x64xbf16> to vector<1x15x15x64xbf16>
    %9 = vector.extract_strided_slice %1 {offsets = [0, 1, 0, 0], sizes = [1, 15, 15, 64], strides = [1, 1, 1, 1]} : vector<1x16x16x64xbf16> to vector<1x15x15x64xbf16>
    %10 = vector.extract_strided_slice %2 {offsets = [0, 0, 0, 0], sizes = [1, 15, 15, 64], strides = [1, 1, 1, 1]} : vector<1x16x16x64xbf16> to vector<1x15x15x64xbf16>
    %11 = vector.extract_strided_slice %2 {offsets = [0, 0, 1, 0], sizes = [1, 15, 15, 64], strides = [1, 1, 1, 1]} : vector<1x16x16x64xbf16> to vector<1x15x15x64xbf16>
    %12 = vector.extract_strided_slice %3 {offsets = [0, 0, 0, 0], sizes = [1, 15, 15, 64], strides = [1, 1, 1, 1]} : vector<1x16x16x64xbf16> to vector<1x15x15x64xbf16>
    %13 = arith.maximumf %4, %5 : vector<1x15x15x64xbf16>
    %14 = arith.maximumf %13, %6 : vector<1x15x15x64xbf16>
    %15 = arith.maximumf %14, %7 : vector<1x15x15x64xbf16>
    %16 = arith.maximumf %15, %8 : vector<1x15x15x64xbf16>
    %17 = arith.maximumf %16, %9 : vector<1x15x15x64xbf16>
    %18 = arith.maximumf %17, %10 : vector<1x15x15x64xbf16>
    %19 = arith.maximumf %18, %11 : vector<1x15x15x64xbf16>
    %20 = arith.maximumf %19, %12 : vector<1x15x15x64xbf16>
    %c0_15 = arith.constant 0 : index
    %c0_16 = arith.constant 0 : index
    %c0_17 = arith.constant 0 : index
    %c0_18 = arith.constant 0 : index
    %21 = vector.load %arg5[%c0_15, %c0_16, %c0_17, %c0_18] : memref<1x15x15x64xbf16, #tpu.memory_space<vmem>>, vector<1x15x15x64xbf16>
    tpu.vector_store %arg5[%c0_15, %c0_16, %c0_17, %c0_18], %20 {strides = array<i32>} : memref<1x15x15x64xbf16, #tpu.memory_space<vmem>>, vector<1x15x15x64xbf16>,
    return
  }
  func.func @transform_0(%arg0: i32) -> (i32, i32, i32, i32) {
    %c0_i32 = arith.constant 0 : i32
    %c0_i32_0 = arith.constant 0 : i32
    %c0_i32_1 = arith.constant 0 : i32
    %c0_i32_2 = arith.constant 0 : i32
    return %arg0, %c0_i32, %c0_i32_0, %c0_i32_1 : i32, i32, i32, i32
  }
  func.func @transform_1(%arg0: i32) -> (i32, i32, i32, i32) {
    %c0_i32 = arith.constant 0 : i32
    %c0_i32_0 = arith.constant 0 : i32
    %c0_i32_1 = arith.constant 0 : i32
    %c0_i32_2 = arith.constant 0 : i32
    return %arg0, %c0_i32, %c0_i32_0, %c0_i32_1 : i32, i32, i32, i32
  }
  func.func @transform_2(%arg0: i32) -> (i32, i32, i32, i32) {
    %c0_i32 = arith.constant 0 : i32
    %c0_i32_0 = arith.constant 0 : i32
    %c0_i32_1 = arith.constant 0 : i32
    %c0_i32_2 = arith.constant 0 : i32
    return %arg0, %c0_i32, %c0_i32_0, %c0_i32_1 : i32, i32, i32, i32
  }
  func.func @transform_3(%arg0: i32) -> (i32, i32, i32, i32) {
    %c0_i32 = arith.constant 0 : i32
    %c0_i32_0 = arith.constant 0 : i32
    %c0_i32_1 = arith.constant 0 : i32
    %c0_i32_2 = arith.constant 0 : i32
    return %arg0, %c0_i32, %c0_i32_0, %c0_i32_1 : i32, i32, i32, i32
  }
  func.func @transform_4(%arg0: i32) -> (i32, i32, i32, i32) {
    %c0_i32 = arith.constant 0 : i32
    %c0_i32_0 = arith.constant 0 : i32
    %c0_i32_1 = arith.constant 0 : i32
    %c0_i32_2 = arith.constant 0 : i32
    return %arg0, %c0_i32, %c0_i32_0, %c0_i32_1 : i32, i32, i32, i32
  }
}

module attributes {stable_mosaic.version = 11 : i64} {
  func.func @_matmul_bias_act_kernel(%arg0: i32, %arg1: memref<256x64xbf16, #tpu.memory_space<vmem>>, %arg2: memref<64x16xbf16, #tpu.memory_space<vmem>>, %arg3: memref<1x16xf32, #tpu.memory_space<vmem>>, %arg4: memref<256x16xbf16, #tpu.memory_space<vmem>>) attributes {dimension_semantics = [#tpu.dimension_semantics<parallel>], iteration_bounds = array<i64: 2>, scalar_prefetch = 0 : i64, scratch_operands = 0 : i64, tpu.core_type = #tpu.core_type<tc>, window_params = [{transform_indices = @transform_0, window_bounds = array<i64: 256, 64>}, {pipeline_mode = #tpu.pipeline_mode<synchronous>, transform_indices = @transform_1, window_bounds = array<i64: 64, 16>}, {pipeline_mode = #tpu.pipeline_mode<synchronous>, transform_indices = @transform_2, window_bounds = array<i64: 1, 16>}, {transform_indices = @transform_3, window_bounds = array<i64: 256, 16>}]} {
    %c0 = arith.constant 0 : index
    %c0_0 = arith.constant 0 : index
    %0 = vector.load %arg1[%c0, %c0_0] : memref<256x64xbf16, #tpu.memory_space<vmem>>, vector<256x64xbf16>
    %c0_1 = arith.constant 0 : index
    %c0_2 = arith.constant 0 : index
    %1 = vector.load %arg2[%c0_1, %c0_2] : memref<64x16xbf16, #tpu.memory_space<vmem>>, vector<64x16xbf16>
    %cst = arith.constant dense<0.000000e+00> : vector<256x16xf32>
    %2 = tpu.matmul %0, %1, %cst {dimension_numbers = #tpu.dot_dimension_numbers<[1], [0], [0], [1], [0, 0, 1, 1], [], []>} : vector<256x64xbf16>, vector<64x16xbf16>, vector<256x16xf32> -> vector<256x16xf32>
    %c0_3 = arith.constant 0 : index
    %c0_4 = arith.constant 0 : index
    %3 = vector.load %arg3[%c0_3, %c0_4] : memref<1x16xf32, #tpu.memory_space<vmem>>, vector<1x16xf32>
    %4 = vector.broadcast %3 : vector<1x16xf32> to vector<256x16xf32>
    %5 = arith.addf %2, %4 : vector<256x16xf32>
    %cst_5 = arith.constant 0.000000e+00 : f32
    %6 = vector.broadcast %cst_5 : f32 to vector<256x16xf32>
    %7 = arith.maximumf %5, %6 : vector<256x16xf32>
    %8 = arith.truncf %7 : vector<256x16xf32> to vector<256x16xbf16>
    %c0_6 = arith.constant 0 : index
    %c0_7 = arith.constant 0 : index
    %9 = vector.load %arg4[%c0_6, %c0_7] : memref<256x16xbf16, #tpu.memory_space<vmem>>, vector<256x16xbf16>
    tpu.vector_store %arg4[%c0_6, %c0_7], %8 {strides = array<i32>} : memref<256x16xbf16, #tpu.memory_space<vmem>>, vector<256x16xbf16>,
    return
  }
  func.func @transform_0(%arg0: i32) -> (i32, i32) {
    %c0_i32 = arith.constant 0 : i32
    %c0_i32_0 = arith.constant 0 : i32
    return %arg0, %c0_i32 : i32, i32
  }
  func.func @transform_1(%arg0: i32) -> (i32, i32) {
    %c0_i32 = arith.constant 0 : i32
    %c0_i32_0 = arith.constant 0 : i32
    %c0_i32_1 = arith.constant 0 : i32
    return %c0_i32, %c0_i32_0 : i32, i32
  }
  func.func @transform_2(%arg0: i32) -> (i32, i32) {
    %c0_i32 = arith.constant 0 : i32
    %c0_i32_0 = arith.constant 0 : i32
    %c0_i32_1 = arith.constant 0 : i32
    return %c0_i32, %c0_i32_0 : i32, i32
  }
  func.func @transform_3(%arg0: i32) -> (i32, i32) {
    %c0_i32 = arith.constant 0 : i32
    %c0_i32_0 = arith.constant 0 : i32
    return %arg0, %c0_i32 : i32, i32
  }
}

module attributes {stable_mosaic.version = 11 : i64} {
  func.func @_matmul_bias_act_kernel(%arg0: i32, %arg1: memref<256x144xbf16, #tpu.memory_space<vmem>>, %arg2: memref<144x128xbf16, #tpu.memory_space<vmem>>, %arg3: memref<1x128xf32, #tpu.memory_space<vmem>>, %arg4: memref<256x128xbf16, #tpu.memory_space<vmem>>) attributes {dimension_semantics = [#tpu.dimension_semantics<parallel>], iteration_bounds = array<i64: 2>, scalar_prefetch = 0 : i64, scratch_operands = 0 : i64, tpu.core_type = #tpu.core_type<tc>, window_params = [{transform_indices = @transform_0, window_bounds = array<i64: 256, 144>}, {pipeline_mode = #tpu.pipeline_mode<synchronous>, transform_indices = @transform_1, window_bounds = array<i64: 144, 128>}, {pipeline_mode = #tpu.pipeline_mode<synchronous>, transform_indices = @transform_2, window_bounds = array<i64: 1, 128>}, {transform_indices = @transform_3, window_bounds = array<i64: 256, 128>}]} {
    %c0 = arith.constant 0 : index
    %c0_0 = arith.constant 0 : index
    %0 = vector.load %arg1[%c0, %c0_0] : memref<256x144xbf16, #tpu.memory_space<vmem>>, vector<256x144xbf16>
    %c0_1 = arith.constant 0 : index
    %c0_2 = arith.constant 0 : index
    %1 = vector.load %arg2[%c0_1, %c0_2] : memref<144x128xbf16, #tpu.memory_space<vmem>>, vector<144x128xbf16>
    %cst = arith.constant dense<0.000000e+00> : vector<256x128xf32>
    %2 = tpu.matmul %0, %1, %cst {dimension_numbers = #tpu.dot_dimension_numbers<[1], [0], [0], [1], [0, 0, 1, 1], [], []>} : vector<256x144xbf16>, vector<144x128xbf16>, vector<256x128xf32> -> vector<256x128xf32>
    %c0_3 = arith.constant 0 : index
    %c0_4 = arith.constant 0 : index
    %3 = vector.load %arg3[%c0_3, %c0_4] : memref<1x128xf32, #tpu.memory_space<vmem>>, vector<1x128xf32>
    %4 = vector.broadcast %3 : vector<1x128xf32> to vector<256x128xf32>
    %5 = arith.addf %2, %4 : vector<256x128xf32>
    %cst_5 = arith.constant 0.000000e+00 : f32
    %6 = vector.broadcast %cst_5 : f32 to vector<256x128xf32>
    %7 = arith.maximumf %5, %6 : vector<256x128xf32>
    %8 = arith.truncf %7 : vector<256x128xf32> to vector<256x128xbf16>
    %c0_6 = arith.constant 0 : index
    %c0_7 = arith.constant 0 : index
    %9 = vector.load %arg4[%c0_6, %c0_7] : memref<256x128xbf16, #tpu.memory_space<vmem>>, vector<256x128xbf16>
    tpu.vector_store %arg4[%c0_6, %c0_7], %8 {strides = array<i32>} : memref<256x128xbf16, #tpu.memory_space<vmem>>, vector<256x128xbf16>,
    return
  }
  func.func @transform_0(%arg0: i32) -> (i32, i32) {
    %c0_i32 = arith.constant 0 : i32
    %c0_i32_0 = arith.constant 0 : i32
    return %arg0, %c0_i32 : i32, i32
  }
  func.func @transform_1(%arg0: i32) -> (i32, i32) {
    %c0_i32 = arith.constant 0 : i32
    %c0_i32_0 = arith.constant 0 : i32
    %c0_i32_1 = arith.constant 0 : i32
    return %c0_i32, %c0_i32_0 : i32, i32
  }
  func.func @transform_2(%arg0: i32) -> (i32, i32) {
    %c0_i32 = arith.constant 0 : i32
    %c0_i32_0 = arith.constant 0 : i32
    %c0_i32_1 = arith.constant 0 : i32
    return %c0_i32, %c0_i32_0 : i32, i32
  }
  func.func @transform_3(%arg0: i32) -> (i32, i32) {
    %c0_i32 = arith.constant 0 : i32
    %c0_i32_0 = arith.constant 0 : i32
    return %arg0, %c0_i32 : i32, i32
  }
}

module attributes {stable_mosaic.version = 11 : i64} {
  func.func @_matmul_bias_act_kernel(%arg0: i32, %arg1: memref<256x128xbf16, #tpu.memory_space<vmem>>, %arg2: memref<128x16xbf16, #tpu.memory_space<vmem>>, %arg3: memref<1x16xf32, #tpu.memory_space<vmem>>, %arg4: memref<256x16xbf16, #tpu.memory_space<vmem>>) attributes {dimension_semantics = [#tpu.dimension_semantics<parallel>], iteration_bounds = array<i64: 2>, scalar_prefetch = 0 : i64, scratch_operands = 0 : i64, tpu.core_type = #tpu.core_type<tc>, window_params = [{transform_indices = @transform_0, window_bounds = array<i64: 256, 128>}, {pipeline_mode = #tpu.pipeline_mode<synchronous>, transform_indices = @transform_1, window_bounds = array<i64: 128, 16>}, {pipeline_mode = #tpu.pipeline_mode<synchronous>, transform_indices = @transform_2, window_bounds = array<i64: 1, 16>}, {transform_indices = @transform_3, window_bounds = array<i64: 256, 16>}]} {
    %c0 = arith.constant 0 : index
    %c0_0 = arith.constant 0 : index
    %0 = vector.load %arg1[%c0, %c0_0] : memref<256x128xbf16, #tpu.memory_space<vmem>>, vector<256x128xbf16>
    %c0_1 = arith.constant 0 : index
    %c0_2 = arith.constant 0 : index
    %1 = vector.load %arg2[%c0_1, %c0_2] : memref<128x16xbf16, #tpu.memory_space<vmem>>, vector<128x16xbf16>
    %cst = arith.constant dense<0.000000e+00> : vector<256x16xf32>
    %2 = tpu.matmul %0, %1, %cst {dimension_numbers = #tpu.dot_dimension_numbers<[1], [0], [0], [1], [0, 0, 1, 1], [], []>} : vector<256x128xbf16>, vector<128x16xbf16>, vector<256x16xf32> -> vector<256x16xf32>
    %c0_3 = arith.constant 0 : index
    %c0_4 = arith.constant 0 : index
    %3 = vector.load %arg3[%c0_3, %c0_4] : memref<1x16xf32, #tpu.memory_space<vmem>>, vector<1x16xf32>
    %4 = vector.broadcast %3 : vector<1x16xf32> to vector<256x16xf32>
    %5 = arith.addf %2, %4 : vector<256x16xf32>
    %cst_5 = arith.constant 0.000000e+00 : f32
    %6 = vector.broadcast %cst_5 : f32 to vector<256x16xf32>
    %7 = arith.maximumf %5, %6 : vector<256x16xf32>
    %8 = arith.truncf %7 : vector<256x16xf32> to vector<256x16xbf16>
    %c0_6 = arith.constant 0 : index
    %c0_7 = arith.constant 0 : index
    %9 = vector.load %arg4[%c0_6, %c0_7] : memref<256x16xbf16, #tpu.memory_space<vmem>>, vector<256x16xbf16>
    tpu.vector_store %arg4[%c0_6, %c0_7], %8 {strides = array<i32>} : memref<256x16xbf16, #tpu.memory_space<vmem>>, vector<256x16xbf16>,
    return
  }
  func.func @transform_0(%arg0: i32) -> (i32, i32) {
    %c0_i32 = arith.constant 0 : i32
    %c0_i32_0 = arith.constant 0 : i32
    return %arg0, %c0_i32 : i32, i32
  }
  func.func @transform_1(%arg0: i32) -> (i32, i32) {
    %c0_i32 = arith.constant 0 : i32
    %c0_i32_0 = arith.constant 0 : i32
    %c0_i32_1 = arith.constant 0 : i32
    return %c0_i32, %c0_i32_0 : i32, i32
  }
  func.func @transform_2(%arg0: i32) -> (i32, i32) {
    %c0_i32 = arith.constant 0 : i32
    %c0_i32_0 = arith.constant 0 : i32
    %c0_i32_1 = arith.constant 0 : i32
    return %c0_i32, %c0_i32_0 : i32, i32
  }
  func.func @transform_3(%arg0: i32) -> (i32, i32) {
    %c0_i32 = arith.constant 0 : i32
    %c0_i32_0 = arith.constant 0 : i32
    return %arg0, %c0_i32 : i32, i32
  }
}

module attributes {stable_mosaic.version = 11 : i64} {
  func.func @_maxpool_combine_kernel(%arg0: i32, %arg1: memref<1x8x8x128xbf16, #tpu.memory_space<vmem>>, %arg2: memref<1x8x8x128xbf16, #tpu.memory_space<vmem>>, %arg3: memref<1x8x8x128xbf16, #tpu.memory_space<vmem>>, %arg4: memref<1x8x8x128xbf16, #tpu.memory_space<vmem>>, %arg5: memref<1x7x7x128xbf16, #tpu.memory_space<vmem>>) attributes {dimension_semantics = [#tpu.dimension_semantics<parallel>], iteration_bounds = array<i64: 2>, scalar_prefetch = 0 : i64, scratch_operands = 0 : i64, tpu.core_type = #tpu.core_type<tc>, window_params = [{transform_indices = @transform_0, window_bounds = array<i64: 1, 8, 8, 128>}, {transform_indices = @transform_1, window_bounds = array<i64: 1, 8, 8, 128>}, {transform_indices = @transform_2, window_bounds = array<i64: 1, 8, 8, 128>}, {transform_indices = @transform_3, window_bounds = array<i64: 1, 8, 8, 128>}, {transform_indices = @transform_4, window_bounds = array<i64: 1, 7, 7, 128>}]} {
    %c0 = arith.constant 0 : index
    %c0_0 = arith.constant 0 : index
    %c0_1 = arith.constant 0 : index
    %c0_2 = arith.constant 0 : index
    %0 = vector.load %arg1[%c0, %c0_0, %c0_1, %c0_2] : memref<1x8x8x128xbf16, #tpu.memory_space<vmem>>, vector<1x8x8x128xbf16>
    %c0_3 = arith.constant 0 : index
    %c0_4 = arith.constant 0 : index
    %c0_5 = arith.constant 0 : index
    %c0_6 = arith.constant 0 : index
    %1 = vector.load %arg2[%c0_3, %c0_4, %c0_5, %c0_6] : memref<1x8x8x128xbf16, #tpu.memory_space<vmem>>, vector<1x8x8x128xbf16>
    %c0_7 = arith.constant 0 : index
    %c0_8 = arith.constant 0 : index
    %c0_9 = arith.constant 0 : index
    %c0_10 = arith.constant 0 : index
    %2 = vector.load %arg3[%c0_7, %c0_8, %c0_9, %c0_10] : memref<1x8x8x128xbf16, #tpu.memory_space<vmem>>, vector<1x8x8x128xbf16>
    %c0_11 = arith.constant 0 : index
    %c0_12 = arith.constant 0 : index
    %c0_13 = arith.constant 0 : index
    %c0_14 = arith.constant 0 : index
    %3 = vector.load %arg4[%c0_11, %c0_12, %c0_13, %c0_14] : memref<1x8x8x128xbf16, #tpu.memory_space<vmem>>, vector<1x8x8x128xbf16>
    %4 = vector.extract_strided_slice %0 {offsets = [0, 0, 0, 0], sizes = [1, 7, 7, 128], strides = [1, 1, 1, 1]} : vector<1x8x8x128xbf16> to vector<1x7x7x128xbf16>
    %5 = vector.extract_strided_slice %0 {offsets = [0, 0, 1, 0], sizes = [1, 7, 7, 128], strides = [1, 1, 1, 1]} : vector<1x8x8x128xbf16> to vector<1x7x7x128xbf16>
    %6 = vector.extract_strided_slice %0 {offsets = [0, 1, 0, 0], sizes = [1, 7, 7, 128], strides = [1, 1, 1, 1]} : vector<1x8x8x128xbf16> to vector<1x7x7x128xbf16>
    %7 = vector.extract_strided_slice %0 {offsets = [0, 1, 1, 0], sizes = [1, 7, 7, 128], strides = [1, 1, 1, 1]} : vector<1x8x8x128xbf16> to vector<1x7x7x128xbf16>
    %8 = vector.extract_strided_slice %1 {offsets = [0, 0, 0, 0], sizes = [1, 7, 7, 128], strides = [1, 1, 1, 1]} : vector<1x8x8x128xbf16> to vector<1x7x7x128xbf16>
    %9 = vector.extract_strided_slice %1 {offsets = [0, 1, 0, 0], sizes = [1, 7, 7, 128], strides = [1, 1, 1, 1]} : vector<1x8x8x128xbf16> to vector<1x7x7x128xbf16>
    %10 = vector.extract_strided_slice %2 {offsets = [0, 0, 0, 0], sizes = [1, 7, 7, 128], strides = [1, 1, 1, 1]} : vector<1x8x8x128xbf16> to vector<1x7x7x128xbf16>
    %11 = vector.extract_strided_slice %2 {offsets = [0, 0, 1, 0], sizes = [1, 7, 7, 128], strides = [1, 1, 1, 1]} : vector<1x8x8x128xbf16> to vector<1x7x7x128xbf16>
    %12 = vector.extract_strided_slice %3 {offsets = [0, 0, 0, 0], sizes = [1, 7, 7, 128], strides = [1, 1, 1, 1]} : vector<1x8x8x128xbf16> to vector<1x7x7x128xbf16>
    %13 = arith.maximumf %4, %5 : vector<1x7x7x128xbf16>
    %14 = arith.maximumf %13, %6 : vector<1x7x7x128xbf16>
    %15 = arith.maximumf %14, %7 : vector<1x7x7x128xbf16>
    %16 = arith.maximumf %15, %8 : vector<1x7x7x128xbf16>
    %17 = arith.maximumf %16, %9 : vector<1x7x7x128xbf16>
    %18 = arith.maximumf %17, %10 : vector<1x7x7x128xbf16>
    %19 = arith.maximumf %18, %11 : vector<1x7x7x128xbf16>
    %20 = arith.maximumf %19, %12 : vector<1x7x7x128xbf16>
    %c0_15 = arith.constant 0 : index
    %c0_16 = arith.constant 0 : index
    %c0_17 = arith.constant 0 : index
    %c0_18 = arith.constant 0 : index
    %21 = vector.load %arg5[%c0_15, %c0_16, %c0_17, %c0_18] : memref<1x7x7x128xbf16, #tpu.memory_space<vmem>>, vector<1x7x7x128xbf16>
    tpu.vector_store %arg5[%c0_15, %c0_16, %c0_17, %c0_18], %20 {strides = array<i32>} : memref<1x7x7x128xbf16, #tpu.memory_space<vmem>>, vector<1x7x7x128xbf16>,
    return
  }
  func.func @transform_0(%arg0: i32) -> (i32, i32, i32, i32) {
    %c0_i32 = arith.constant 0 : i32
    %c0_i32_0 = arith.constant 0 : i32
    %c0_i32_1 = arith.constant 0 : i32
    %c0_i32_2 = arith.constant 0 : i32
    return %arg0, %c0_i32, %c0_i32_0, %c0_i32_1 : i32, i32, i32, i32
  }
  func.func @transform_1(%arg0: i32) -> (i32, i32, i32, i32) {
    %c0_i32 = arith.constant 0 : i32
    %c0_i32_0 = arith.constant 0 : i32
    %c0_i32_1 = arith.constant 0 : i32
    %c0_i32_2 = arith.constant 0 : i32
    return %arg0, %c0_i32, %c0_i32_0, %c0_i32_1 : i32, i32, i32, i32
  }
  func.func @transform_2(%arg0: i32) -> (i32, i32, i32, i32) {
    %c0_i32 = arith.constant 0 : i32
    %c0_i32_0 = arith.constant 0 : i32
    %c0_i32_1 = arith.constant 0 : i32
    %c0_i32_2 = arith.constant 0 : i32
    return %arg0, %c0_i32, %c0_i32_0, %c0_i32_1 : i32, i32, i32, i32
  }
  func.func @transform_3(%arg0: i32) -> (i32, i32, i32, i32) {
    %c0_i32 = arith.constant 0 : i32
    %c0_i32_0 = arith.constant 0 : i32
    %c0_i32_1 = arith.constant 0 : i32
    %c0_i32_2 = arith.constant 0 : i32
    return %arg0, %c0_i32, %c0_i32_0, %c0_i32_1 : i32, i32, i32, i32
  }
  func.func @transform_4(%arg0: i32) -> (i32, i32, i32, i32) {
    %c0_i32 = arith.constant 0 : i32
    %c0_i32_0 = arith.constant 0 : i32
    %c0_i32_1 = arith.constant 0 : i32
    %c0_i32_2 = arith.constant 0 : i32
    return %arg0, %c0_i32, %c0_i32_0, %c0_i32_1 : i32, i32, i32, i32
  }
}

module attributes {stable_mosaic.version = 11 : i64} {
  func.func @_matmul_bias_act_kernel(%arg0: i32, %arg1: memref<98x128xbf16, #tpu.memory_space<vmem>>, %arg2: memref<128x32xbf16, #tpu.memory_space<vmem>>, %arg3: memref<1x32xf32, #tpu.memory_space<vmem>>, %arg4: memref<98x32xbf16, #tpu.memory_space<vmem>>) attributes {dimension_semantics = [#tpu.dimension_semantics<parallel>], iteration_bounds = array<i64: 1>, scalar_prefetch = 0 : i64, scratch_operands = 0 : i64, tpu.core_type = #tpu.core_type<tc>, window_params = [{transform_indices = @transform_0, window_bounds = array<i64: 98, 128>}, {pipeline_mode = #tpu.pipeline_mode<synchronous>, transform_indices = @transform_1, window_bounds = array<i64: 128, 32>}, {pipeline_mode = #tpu.pipeline_mode<synchronous>, transform_indices = @transform_2, window_bounds = array<i64: 1, 32>}, {transform_indices = @transform_3, window_bounds = array<i64: 98, 32>}]} {
    %c0 = arith.constant 0 : index
    %c0_0 = arith.constant 0 : index
    %0 = vector.load %arg1[%c0, %c0_0] : memref<98x128xbf16, #tpu.memory_space<vmem>>, vector<98x128xbf16>
    %c0_1 = arith.constant 0 : index
    %c0_2 = arith.constant 0 : index
    %1 = vector.load %arg2[%c0_1, %c0_2] : memref<128x32xbf16, #tpu.memory_space<vmem>>, vector<128x32xbf16>
    %cst = arith.constant dense<0.000000e+00> : vector<98x32xf32>
    %2 = tpu.matmul %0, %1, %cst {dimension_numbers = #tpu.dot_dimension_numbers<[1], [0], [0], [1], [0, 0, 1, 1], [], []>} : vector<98x128xbf16>, vector<128x32xbf16>, vector<98x32xf32> -> vector<98x32xf32>
    %c0_3 = arith.constant 0 : index
    %c0_4 = arith.constant 0 : index
    %3 = vector.load %arg3[%c0_3, %c0_4] : memref<1x32xf32, #tpu.memory_space<vmem>>, vector<1x32xf32>
    %4 = vector.broadcast %3 : vector<1x32xf32> to vector<98x32xf32>
    %5 = arith.addf %2, %4 : vector<98x32xf32>
    %cst_5 = arith.constant 0.000000e+00 : f32
    %6 = vector.broadcast %cst_5 : f32 to vector<98x32xf32>
    %7 = arith.maximumf %5, %6 : vector<98x32xf32>
    %8 = arith.truncf %7 : vector<98x32xf32> to vector<98x32xbf16>
    %c0_6 = arith.constant 0 : index
    %c0_7 = arith.constant 0 : index
    %9 = vector.load %arg4[%c0_6, %c0_7] : memref<98x32xbf16, #tpu.memory_space<vmem>>, vector<98x32xbf16>
    tpu.vector_store %arg4[%c0_6, %c0_7], %8 {strides = array<i32>} : memref<98x32xbf16, #tpu.memory_space<vmem>>, vector<98x32xbf16>,
    return
  }
  func.func @transform_0(%arg0: i32) -> (i32, i32) {
    %c0_i32 = arith.constant 0 : i32
    %c0_i32_0 = arith.constant 0 : i32
    return %arg0, %c0_i32 : i32, i32
  }
  func.func @transform_1(%arg0: i32) -> (i32, i32) {
    %c0_i32 = arith.constant 0 : i32
    %c0_i32_0 = arith.constant 0 : i32
    %c0_i32_1 = arith.constant 0 : i32
    return %c0_i32, %c0_i32_0 : i32, i32
  }
  func.func @transform_2(%arg0: i32) -> (i32, i32) {
    %c0_i32 = arith.constant 0 : i32
    %c0_i32_0 = arith.constant 0 : i32
    %c0_i32_1 = arith.constant 0 : i32
    return %c0_i32, %c0_i32_0 : i32, i32
  }
  func.func @transform_3(%arg0: i32) -> (i32, i32) {
    %c0_i32 = arith.constant 0 : i32
    %c0_i32_0 = arith.constant 0 : i32
    return %arg0, %c0_i32 : i32, i32
  }
}

module attributes {stable_mosaic.version = 11 : i64} {
  func.func @_matmul_bias_act_kernel(%arg0: i32, %arg1: memref<98x288xbf16, #tpu.memory_space<vmem>>, %arg2: memref<288x256xbf16, #tpu.memory_space<vmem>>, %arg3: memref<1x256xf32, #tpu.memory_space<vmem>>, %arg4: memref<98x256xbf16, #tpu.memory_space<vmem>>) attributes {dimension_semantics = [#tpu.dimension_semantics<parallel>], iteration_bounds = array<i64: 1>, scalar_prefetch = 0 : i64, scratch_operands = 0 : i64, tpu.core_type = #tpu.core_type<tc>, window_params = [{transform_indices = @transform_0, window_bounds = array<i64: 98, 288>}, {pipeline_mode = #tpu.pipeline_mode<synchronous>, transform_indices = @transform_1, window_bounds = array<i64: 288, 256>}, {pipeline_mode = #tpu.pipeline_mode<synchronous>, transform_indices = @transform_2, window_bounds = array<i64: 1, 256>}, {transform_indices = @transform_3, window_bounds = array<i64: 98, 256>}]} {
    %c0 = arith.constant 0 : index
    %c0_0 = arith.constant 0 : index
    %0 = vector.load %arg1[%c0, %c0_0] : memref<98x288xbf16, #tpu.memory_space<vmem>>, vector<98x288xbf16>
    %c0_1 = arith.constant 0 : index
    %c0_2 = arith.constant 0 : index
    %1 = vector.load %arg2[%c0_1, %c0_2] : memref<288x256xbf16, #tpu.memory_space<vmem>>, vector<288x256xbf16>
    %cst = arith.constant dense<0.000000e+00> : vector<98x256xf32>
    %2 = tpu.matmul %0, %1, %cst {dimension_numbers = #tpu.dot_dimension_numbers<[1], [0], [0], [1], [0, 0, 1, 1], [], []>} : vector<98x288xbf16>, vector<288x256xbf16>, vector<98x256xf32> -> vector<98x256xf32>
    %c0_3 = arith.constant 0 : index
    %c0_4 = arith.constant 0 : index
    %3 = vector.load %arg3[%c0_3, %c0_4] : memref<1x256xf32, #tpu.memory_space<vmem>>, vector<1x256xf32>
    %4 = vector.broadcast %3 : vector<1x256xf32> to vector<98x256xf32>
    %5 = arith.addf %2, %4 : vector<98x256xf32>
    %cst_5 = arith.constant 0.000000e+00 : f32
    %6 = vector.broadcast %cst_5 : f32 to vector<98x256xf32>
    %7 = arith.maximumf %5, %6 : vector<98x256xf32>
    %8 = arith.truncf %7 : vector<98x256xf32> to vector<98x256xbf16>
    %c0_6 = arith.constant 0 : index
    %c0_7 = arith.constant 0 : index
    %9 = vector.load %arg4[%c0_6, %c0_7] : memref<98x256xbf16, #tpu.memory_space<vmem>>, vector<98x256xbf16>
    tpu.vector_store %arg4[%c0_6, %c0_7], %8 {strides = array<i32>} : memref<98x256xbf16, #tpu.memory_space<vmem>>, vector<98x256xbf16>,
    return
  }
  func.func @transform_0(%arg0: i32) -> (i32, i32) {
    %c0_i32 = arith.constant 0 : i32
    %c0_i32_0 = arith.constant 0 : i32
    return %arg0, %c0_i32 : i32, i32
  }
  func.func @transform_1(%arg0: i32) -> (i32, i32) {
    %c0_i32 = arith.constant 0 : i32
    %c0_i32_0 = arith.constant 0 : i32
    %c0_i32_1 = arith.constant 0 : i32
    return %c0_i32, %c0_i32_0 : i32, i32
  }
  func.func @transform_2(%arg0: i32) -> (i32, i32) {
    %c0_i32 = arith.constant 0 : i32
    %c0_i32_0 = arith.constant 0 : i32
    %c0_i32_1 = arith.constant 0 : i32
    return %c0_i32, %c0_i32_0 : i32, i32
  }
  func.func @transform_3(%arg0: i32) -> (i32, i32) {
    %c0_i32 = arith.constant 0 : i32
    %c0_i32_0 = arith.constant 0 : i32
    return %arg0, %c0_i32 : i32, i32
  }
}

module attributes {stable_mosaic.version = 11 : i64} {
  func.func @_matmul_bias_act_kernel(%arg0: i32, %arg1: memref<98x256xbf16, #tpu.memory_space<vmem>>, %arg2: memref<256x32xbf16, #tpu.memory_space<vmem>>, %arg3: memref<1x32xf32, #tpu.memory_space<vmem>>, %arg4: memref<98x32xbf16, #tpu.memory_space<vmem>>) attributes {dimension_semantics = [#tpu.dimension_semantics<parallel>], iteration_bounds = array<i64: 1>, scalar_prefetch = 0 : i64, scratch_operands = 0 : i64, tpu.core_type = #tpu.core_type<tc>, window_params = [{transform_indices = @transform_0, window_bounds = array<i64: 98, 256>}, {pipeline_mode = #tpu.pipeline_mode<synchronous>, transform_indices = @transform_1, window_bounds = array<i64: 256, 32>}, {pipeline_mode = #tpu.pipeline_mode<synchronous>, transform_indices = @transform_2, window_bounds = array<i64: 1, 32>}, {transform_indices = @transform_3, window_bounds = array<i64: 98, 32>}]} {
    %c0 = arith.constant 0 : index
    %c0_0 = arith.constant 0 : index
    %0 = vector.load %arg1[%c0, %c0_0] : memref<98x256xbf16, #tpu.memory_space<vmem>>, vector<98x256xbf16>
    %c0_1 = arith.constant 0 : index
    %c0_2 = arith.constant 0 : index
    %1 = vector.load %arg2[%c0_1, %c0_2] : memref<256x32xbf16, #tpu.memory_space<vmem>>, vector<256x32xbf16>
    %cst = arith.constant dense<0.000000e+00> : vector<98x32xf32>
    %2 = tpu.matmul %0, %1, %cst {dimension_numbers = #tpu.dot_dimension_numbers<[1], [0], [0], [1], [0, 0, 1, 1], [], []>} : vector<98x256xbf16>, vector<256x32xbf16>, vector<98x32xf32> -> vector<98x32xf32>
    %c0_3 = arith.constant 0 : index
    %c0_4 = arith.constant 0 : index
    %3 = vector.load %arg3[%c0_3, %c0_4] : memref<1x32xf32, #tpu.memory_space<vmem>>, vector<1x32xf32>
    %4 = vector.broadcast %3 : vector<1x32xf32> to vector<98x32xf32>
    %5 = arith.addf %2, %4 : vector<98x32xf32>
    %cst_5 = arith.constant 0.000000e+00 : f32
    %6 = vector.broadcast %cst_5 : f32 to vector<98x32xf32>
    %7 = arith.maximumf %5, %6 : vector<98x32xf32>
    %8 = arith.truncf %7 : vector<98x32xf32> to vector<98x32xbf16>
    %c0_6 = arith.constant 0 : index
    %c0_7 = arith.constant 0 : index
    %9 = vector.load %arg4[%c0_6, %c0_7] : memref<98x32xbf16, #tpu.memory_space<vmem>>, vector<98x32xbf16>
    tpu.vector_store %arg4[%c0_6, %c0_7], %8 {strides = array<i32>} : memref<98x32xbf16, #tpu.memory_space<vmem>>, vector<98x32xbf16>,
    return
  }
  func.func @transform_0(%arg0: i32) -> (i32, i32) {
    %c0_i32 = arith.constant 0 : i32
    %c0_i32_0 = arith.constant 0 : i32
    return %arg0, %c0_i32 : i32, i32
  }
  func.func @transform_1(%arg0: i32) -> (i32, i32) {
    %c0_i32 = arith.constant 0 : i32
    %c0_i32_0 = arith.constant 0 : i32
    %c0_i32_1 = arith.constant 0 : i32
    return %c0_i32, %c0_i32_0 : i32, i32
  }
  func.func @transform_2(%arg0: i32) -> (i32, i32) {
    %c0_i32 = arith.constant 0 : i32
    %c0_i32_0 = arith.constant 0 : i32
    %c0_i32_1 = arith.constant 0 : i32
    return %c0_i32, %c0_i32_0 : i32, i32
  }
  func.func @transform_3(%arg0: i32) -> (i32, i32) {
    %c0_i32 = arith.constant 0 : i32
    %c0_i32_0 = arith.constant 0 : i32
    return %arg0, %c0_i32 : i32, i32
  }
}

module attributes {stable_mosaic.version = 11 : i64} {
  func.func @_maxpool_combine_kernel(%arg0: i32, %arg1: memref<1x4x4x256xbf16, #tpu.memory_space<vmem>>, %arg2: memref<1x4x4x256xbf16, #tpu.memory_space<vmem>>, %arg3: memref<1x4x4x256xbf16, #tpu.memory_space<vmem>>, %arg4: memref<1x4x4x256xbf16, #tpu.memory_space<vmem>>, %arg5: memref<1x3x3x256xbf16, #tpu.memory_space<vmem>>) attributes {dimension_semantics = [#tpu.dimension_semantics<parallel>], iteration_bounds = array<i64: 2>, scalar_prefetch = 0 : i64, scratch_operands = 0 : i64, tpu.core_type = #tpu.core_type<tc>, window_params = [{transform_indices = @transform_0, window_bounds = array<i64: 1, 4, 4, 256>}, {transform_indices = @transform_1, window_bounds = array<i64: 1, 4, 4, 256>}, {transform_indices = @transform_2, window_bounds = array<i64: 1, 4, 4, 256>}, {transform_indices = @transform_3, window_bounds = array<i64: 1, 4, 4, 256>}, {transform_indices = @transform_4, window_bounds = array<i64: 1, 3, 3, 256>}]} {
    %c0 = arith.constant 0 : index
    %c0_0 = arith.constant 0 : index
    %c0_1 = arith.constant 0 : index
    %c0_2 = arith.constant 0 : index
    %0 = vector.load %arg1[%c0, %c0_0, %c0_1, %c0_2] : memref<1x4x4x256xbf16, #tpu.memory_space<vmem>>, vector<1x4x4x256xbf16>
    %c0_3 = arith.constant 0 : index
    %c0_4 = arith.constant 0 : index
    %c0_5 = arith.constant 0 : index
    %c0_6 = arith.constant 0 : index
    %1 = vector.load %arg2[%c0_3, %c0_4, %c0_5, %c0_6] : memref<1x4x4x256xbf16, #tpu.memory_space<vmem>>, vector<1x4x4x256xbf16>
    %c0_7 = arith.constant 0 : index
    %c0_8 = arith.constant 0 : index
    %c0_9 = arith.constant 0 : index
    %c0_10 = arith.constant 0 : index
    %2 = vector.load %arg3[%c0_7, %c0_8, %c0_9, %c0_10] : memref<1x4x4x256xbf16, #tpu.memory_space<vmem>>, vector<1x4x4x256xbf16>
    %c0_11 = arith.constant 0 : index
    %c0_12 = arith.constant 0 : index
    %c0_13 = arith.constant 0 : index
    %c0_14 = arith.constant 0 : index
    %3 = vector.load %arg4[%c0_11, %c0_12, %c0_13, %c0_14] : memref<1x4x4x256xbf16, #tpu.memory_space<vmem>>, vector<1x4x4x256xbf16>
    %4 = vector.extract_strided_slice %0 {offsets = [0, 0, 0, 0], sizes = [1, 3, 3, 256], strides = [1, 1, 1, 1]} : vector<1x4x4x256xbf16> to vector<1x3x3x256xbf16>
    %5 = vector.extract_strided_slice %0 {offsets = [0, 0, 1, 0], sizes = [1, 3, 3, 256], strides = [1, 1, 1, 1]} : vector<1x4x4x256xbf16> to vector<1x3x3x256xbf16>
    %6 = vector.extract_strided_slice %0 {offsets = [0, 1, 0, 0], sizes = [1, 3, 3, 256], strides = [1, 1, 1, 1]} : vector<1x4x4x256xbf16> to vector<1x3x3x256xbf16>
    %7 = vector.extract_strided_slice %0 {offsets = [0, 1, 1, 0], sizes = [1, 3, 3, 256], strides = [1, 1, 1, 1]} : vector<1x4x4x256xbf16> to vector<1x3x3x256xbf16>
    %8 = vector.extract_strided_slice %1 {offsets = [0, 0, 0, 0], sizes = [1, 3, 3, 256], strides = [1, 1, 1, 1]} : vector<1x4x4x256xbf16> to vector<1x3x3x256xbf16>
    %9 = vector.extract_strided_slice %1 {offsets = [0, 1, 0, 0], sizes = [1, 3, 3, 256], strides = [1, 1, 1, 1]} : vector<1x4x4x256xbf16> to vector<1x3x3x256xbf16>
    %10 = vector.extract_strided_slice %2 {offsets = [0, 0, 0, 0], sizes = [1, 3, 3, 256], strides = [1, 1, 1, 1]} : vector<1x4x4x256xbf16> to vector<1x3x3x256xbf16>
    %11 = vector.extract_strided_slice %2 {offsets = [0, 0, 1, 0], sizes = [1, 3, 3, 256], strides = [1, 1, 1, 1]} : vector<1x4x4x256xbf16> to vector<1x3x3x256xbf16>
    %12 = vector.extract_strided_slice %3 {offsets = [0, 0, 0, 0], sizes = [1, 3, 3, 256], strides = [1, 1, 1, 1]} : vector<1x4x4x256xbf16> to vector<1x3x3x256xbf16>
    %13 = arith.maximumf %4, %5 : vector<1x3x3x256xbf16>
    %14 = arith.maximumf %13, %6 : vector<1x3x3x256xbf16>
    %15 = arith.maximumf %14, %7 : vector<1x3x3x256xbf16>
    %16 = arith.maximumf %15, %8 : vector<1x3x3x256xbf16>
    %17 = arith.maximumf %16, %9 : vector<1x3x3x256xbf16>
    %18 = arith.maximumf %17, %10 : vector<1x3x3x256xbf16>
    %19 = arith.maximumf %18, %11 : vector<1x3x3x256xbf16>
    %20 = arith.maximumf %19, %12 : vector<1x3x3x256xbf16>
    %c0_15 = arith.constant 0 : index
    %c0_16 = arith.constant 0 : index
    %c0_17 = arith.constant 0 : index
    %c0_18 = arith.constant 0 : index
    %21 = vector.load %arg5[%c0_15, %c0_16, %c0_17, %c0_18] : memref<1x3x3x256xbf16, #tpu.memory_space<vmem>>, vector<1x3x3x256xbf16>
    tpu.vector_store %arg5[%c0_15, %c0_16, %c0_17, %c0_18], %20 {strides = array<i32>} : memref<1x3x3x256xbf16, #tpu.memory_space<vmem>>, vector<1x3x3x256xbf16>,
    return
  }
  func.func @transform_0(%arg0: i32) -> (i32, i32, i32, i32) {
    %c0_i32 = arith.constant 0 : i32
    %c0_i32_0 = arith.constant 0 : i32
    %c0_i32_1 = arith.constant 0 : i32
    %c0_i32_2 = arith.constant 0 : i32
    return %arg0, %c0_i32, %c0_i32_0, %c0_i32_1 : i32, i32, i32, i32
  }
  func.func @transform_1(%arg0: i32) -> (i32, i32, i32, i32) {
    %c0_i32 = arith.constant 0 : i32
    %c0_i32_0 = arith.constant 0 : i32
    %c0_i32_1 = arith.constant 0 : i32
    %c0_i32_2 = arith.constant 0 : i32
    return %arg0, %c0_i32, %c0_i32_0, %c0_i32_1 : i32, i32, i32, i32
  }
  func.func @transform_2(%arg0: i32) -> (i32, i32, i32, i32) {
    %c0_i32 = arith.constant 0 : i32
    %c0_i32_0 = arith.constant 0 : i32
    %c0_i32_1 = arith.constant 0 : i32
    %c0_i32_2 = arith.constant 0 : i32
    return %arg0, %c0_i32, %c0_i32_0, %c0_i32_1 : i32, i32, i32, i32
  }
  func.func @transform_3(%arg0: i32) -> (i32, i32, i32, i32) {
    %c0_i32 = arith.constant 0 : i32
    %c0_i32_0 = arith.constant 0 : i32
    %c0_i32_1 = arith.constant 0 : i32
    %c0_i32_2 = arith.constant 0 : i32
    return %arg0, %c0_i32, %c0_i32_0, %c0_i32_1 : i32, i32, i32, i32
  }
  func.func @transform_4(%arg0: i32) -> (i32, i32, i32, i32) {
    %c0_i32 = arith.constant 0 : i32
    %c0_i32_0 = arith.constant 0 : i32
    %c0_i32_1 = arith.constant 0 : i32
    %c0_i32_2 = arith.constant 0 : i32
    return %arg0, %c0_i32, %c0_i32_0, %c0_i32_1 : i32, i32, i32, i32
  }
}

module attributes {stable_mosaic.version = 11 : i64} {
  func.func @_matmul_bias_act_kernel(%arg0: i32, %arg1: memref<18x256xbf16, #tpu.memory_space<vmem>>, %arg2: memref<256x48xbf16, #tpu.memory_space<vmem>>, %arg3: memref<1x48xf32, #tpu.memory_space<vmem>>, %arg4: memref<18x48xbf16, #tpu.memory_space<vmem>>) attributes {dimension_semantics = [#tpu.dimension_semantics<parallel>], iteration_bounds = array<i64: 1>, scalar_prefetch = 0 : i64, scratch_operands = 0 : i64, tpu.core_type = #tpu.core_type<tc>, window_params = [{transform_indices = @transform_0, window_bounds = array<i64: 18, 256>}, {pipeline_mode = #tpu.pipeline_mode<synchronous>, transform_indices = @transform_1, window_bounds = array<i64: 256, 48>}, {pipeline_mode = #tpu.pipeline_mode<synchronous>, transform_indices = @transform_2, window_bounds = array<i64: 1, 48>}, {transform_indices = @transform_3, window_bounds = array<i64: 18, 48>}]} {
    %c0 = arith.constant 0 : index
    %c0_0 = arith.constant 0 : index
    %0 = vector.load %arg1[%c0, %c0_0] : memref<18x256xbf16, #tpu.memory_space<vmem>>, vector<18x256xbf16>
    %c0_1 = arith.constant 0 : index
    %c0_2 = arith.constant 0 : index
    %1 = vector.load %arg2[%c0_1, %c0_2] : memref<256x48xbf16, #tpu.memory_space<vmem>>, vector<256x48xbf16>
    %cst = arith.constant dense<0.000000e+00> : vector<18x48xf32>
    %2 = tpu.matmul %0, %1, %cst {dimension_numbers = #tpu.dot_dimension_numbers<[1], [0], [0], [1], [0, 0, 1, 1], [], []>} : vector<18x256xbf16>, vector<256x48xbf16>, vector<18x48xf32> -> vector<18x48xf32>
    %c0_3 = arith.constant 0 : index
    %c0_4 = arith.constant 0 : index
    %3 = vector.load %arg3[%c0_3, %c0_4] : memref<1x48xf32, #tpu.memory_space<vmem>>, vector<1x48xf32>
    %4 = vector.broadcast %3 : vector<1x48xf32> to vector<18x48xf32>
    %5 = arith.addf %2, %4 : vector<18x48xf32>
    %cst_5 = arith.constant 0.000000e+00 : f32
    %6 = vector.broadcast %cst_5 : f32 to vector<18x48xf32>
    %7 = arith.maximumf %5, %6 : vector<18x48xf32>
    %8 = arith.truncf %7 : vector<18x48xf32> to vector<18x48xbf16>
    %c0_6 = arith.constant 0 : index
    %c0_7 = arith.constant 0 : index
    %9 = vector.load %arg4[%c0_6, %c0_7] : memref<18x48xbf16, #tpu.memory_space<vmem>>, vector<18x48xbf16>
    tpu.vector_store %arg4[%c0_6, %c0_7], %8 {strides = array<i32>} : memref<18x48xbf16, #tpu.memory_space<vmem>>, vector<18x48xbf16>,
    return
  }
  func.func @transform_0(%arg0: i32) -> (i32, i32) {
    %c0_i32 = arith.constant 0 : i32
    %c0_i32_0 = arith.constant 0 : i32
    return %arg0, %c0_i32 : i32, i32
  }
  func.func @transform_1(%arg0: i32) -> (i32, i32) {
    %c0_i32 = arith.constant 0 : i32
    %c0_i32_0 = arith.constant 0 : i32
    %c0_i32_1 = arith.constant 0 : i32
    return %c0_i32, %c0_i32_0 : i32, i32
  }
  func.func @transform_2(%arg0: i32) -> (i32, i32) {
    %c0_i32 = arith.constant 0 : i32
    %c0_i32_0 = arith.constant 0 : i32
    %c0_i32_1 = arith.constant 0 : i32
    return %c0_i32, %c0_i32_0 : i32, i32
  }
  func.func @transform_3(%arg0: i32) -> (i32, i32) {
    %c0_i32 = arith.constant 0 : i32
    %c0_i32_0 = arith.constant 0 : i32
    return %arg0, %c0_i32 : i32, i32
  }
}

module attributes {stable_mosaic.version = 11 : i64} {
  func.func @_matmul_bias_act_kernel(%arg0: i32, %arg1: memref<18x384xbf16, #tpu.memory_space<vmem>>, %arg2: memref<384x48xbf16, #tpu.memory_space<vmem>>, %arg3: memref<1x48xf32, #tpu.memory_space<vmem>>, %arg4: memref<18x48xbf16, #tpu.memory_space<vmem>>) attributes {dimension_semantics = [#tpu.dimension_semantics<parallel>], iteration_bounds = array<i64: 1>, scalar_prefetch = 0 : i64, scratch_operands = 0 : i64, tpu.core_type = #tpu.core_type<tc>, window_params = [{transform_indices = @transform_0, window_bounds = array<i64: 18, 384>}, {pipeline_mode = #tpu.pipeline_mode<synchronous>, transform_indices = @transform_1, window_bounds = array<i64: 384, 48>}, {pipeline_mode = #tpu.pipeline_mode<synchronous>, transform_indices = @transform_2, window_bounds = array<i64: 1, 48>}, {transform_indices = @transform_3, window_bounds = array<i64: 18, 48>}]} {
    %c0 = arith.constant 0 : index
    %c0_0 = arith.constant 0 : index
    %0 = vector.load %arg1[%c0, %c0_0] : memref<18x384xbf16, #tpu.memory_space<vmem>>, vector<18x384xbf16>
    %c0_1 = arith.constant 0 : index
    %c0_2 = arith.constant 0 : index
    %1 = vector.load %arg2[%c0_1, %c0_2] : memref<384x48xbf16, #tpu.memory_space<vmem>>, vector<384x48xbf16>
    %cst = arith.constant dense<0.000000e+00> : vector<18x48xf32>
    %2 = tpu.matmul %0, %1, %cst {dimension_numbers = #tpu.dot_dimension_numbers<[1], [0], [0], [1], [0, 0, 1, 1], [], []>} : vector<18x384xbf16>, vector<384x48xbf16>, vector<18x48xf32> -> vector<18x48xf32>
    %c0_3 = arith.constant 0 : index
    %c0_4 = arith.constant 0 : index
    %3 = vector.load %arg3[%c0_3, %c0_4] : memref<1x48xf32, #tpu.memory_space<vmem>>, vector<1x48xf32>
    %4 = vector.broadcast %3 : vector<1x48xf32> to vector<18x48xf32>
    %5 = arith.addf %2, %4 : vector<18x48xf32>
    %cst_5 = arith.constant 0.000000e+00 : f32
    %6 = vector.broadcast %cst_5 : f32 to vector<18x48xf32>
    %7 = arith.maximumf %5, %6 : vector<18x48xf32>
    %8 = arith.truncf %7 : vector<18x48xf32> to vector<18x48xbf16>
    %c0_6 = arith.constant 0 : index
    %c0_7 = arith.constant 0 : index
    %9 = vector.load %arg4[%c0_6, %c0_7] : memref<18x48xbf16, #tpu.memory_space<vmem>>, vector<18x48xbf16>
    tpu.vector_store %arg4[%c0_6, %c0_7], %8 {strides = array<i32>} : memref<18x48xbf16, #tpu.memory_space<vmem>>, vector<18x48xbf16>,
    return
  }
  func.func @transform_0(%arg0: i32) -> (i32, i32) {
    %c0_i32 = arith.constant 0 : i32
    %c0_i32_0 = arith.constant 0 : i32
    return %arg0, %c0_i32 : i32, i32
  }
  func.func @transform_1(%arg0: i32) -> (i32, i32) {
    %c0_i32 = arith.constant 0 : i32
    %c0_i32_0 = arith.constant 0 : i32
    %c0_i32_1 = arith.constant 0 : i32
    return %c0_i32, %c0_i32_0 : i32, i32
  }
  func.func @transform_2(%arg0: i32) -> (i32, i32) {
    %c0_i32 = arith.constant 0 : i32
    %c0_i32_0 = arith.constant 0 : i32
    %c0_i32_1 = arith.constant 0 : i32
    return %c0_i32, %c0_i32_0 : i32, i32
  }
  func.func @transform_3(%arg0: i32) -> (i32, i32) {
    %c0_i32 = arith.constant 0 : i32
    %c0_i32_0 = arith.constant 0 : i32
    return %arg0, %c0_i32 : i32, i32
  }
}

module attributes {stable_mosaic.version = 11 : i64} {
  func.func @_matmul_bias_act_kernel(%arg0: i32, %arg1: memref<18x384xbf16, #tpu.memory_space<vmem>>, %arg2: memref<384x64xbf16, #tpu.memory_space<vmem>>, %arg3: memref<1x64xf32, #tpu.memory_space<vmem>>, %arg4: memref<18x64xbf16, #tpu.memory_space<vmem>>) attributes {dimension_semantics = [#tpu.dimension_semantics<parallel>], iteration_bounds = array<i64: 1>, scalar_prefetch = 0 : i64, scratch_operands = 0 : i64, tpu.core_type = #tpu.core_type<tc>, window_params = [{transform_indices = @transform_0, window_bounds = array<i64: 18, 384>}, {pipeline_mode = #tpu.pipeline_mode<synchronous>, transform_indices = @transform_1, window_bounds = array<i64: 384, 64>}, {pipeline_mode = #tpu.pipeline_mode<synchronous>, transform_indices = @transform_2, window_bounds = array<i64: 1, 64>}, {transform_indices = @transform_3, window_bounds = array<i64: 18, 64>}]} {
    %c0 = arith.constant 0 : index
    %c0_0 = arith.constant 0 : index
    %0 = vector.load %arg1[%c0, %c0_0] : memref<18x384xbf16, #tpu.memory_space<vmem>>, vector<18x384xbf16>
    %c0_1 = arith.constant 0 : index
    %c0_2 = arith.constant 0 : index
    %1 = vector.load %arg2[%c0_1, %c0_2] : memref<384x64xbf16, #tpu.memory_space<vmem>>, vector<384x64xbf16>
    %cst = arith.constant dense<0.000000e+00> : vector<18x64xf32>
    %2 = tpu.matmul %0, %1, %cst {dimension_numbers = #tpu.dot_dimension_numbers<[1], [0], [0], [1], [0, 0, 1, 1], [], []>} : vector<18x384xbf16>, vector<384x64xbf16>, vector<18x64xf32> -> vector<18x64xf32>
    %c0_3 = arith.constant 0 : index
    %c0_4 = arith.constant 0 : index
    %3 = vector.load %arg3[%c0_3, %c0_4] : memref<1x64xf32, #tpu.memory_space<vmem>>, vector<1x64xf32>
    %4 = vector.broadcast %3 : vector<1x64xf32> to vector<18x64xf32>
    %5 = arith.addf %2, %4 : vector<18x64xf32>
    %cst_5 = arith.constant 0.000000e+00 : f32
    %6 = vector.broadcast %cst_5 : f32 to vector<18x64xf32>
    %7 = arith.maximumf %5, %6 : vector<18x64xf32>
    %8 = arith.truncf %7 : vector<18x64xf32> to vector<18x64xbf16>
    %c0_6 = arith.constant 0 : index
    %c0_7 = arith.constant 0 : index
    %9 = vector.load %arg4[%c0_6, %c0_7] : memref<18x64xbf16, #tpu.memory_space<vmem>>, vector<18x64xbf16>
    tpu.vector_store %arg4[%c0_6, %c0_7], %8 {strides = array<i32>} : memref<18x64xbf16, #tpu.memory_space<vmem>>, vector<18x64xbf16>,
    return
  }
  func.func @transform_0(%arg0: i32) -> (i32, i32) {
    %c0_i32 = arith.constant 0 : i32
    %c0_i32_0 = arith.constant 0 : i32
    return %arg0, %c0_i32 : i32, i32
  }
  func.func @transform_1(%arg0: i32) -> (i32, i32) {
    %c0_i32 = arith.constant 0 : i32
    %c0_i32_0 = arith.constant 0 : i32
    %c0_i32_1 = arith.constant 0 : i32
    return %c0_i32, %c0_i32_0 : i32, i32
  }
  func.func @transform_2(%arg0: i32) -> (i32, i32) {
    %c0_i32 = arith.constant 0 : i32
    %c0_i32_0 = arith.constant 0 : i32
    %c0_i32_1 = arith.constant 0 : i32
    return %c0_i32, %c0_i32_0 : i32, i32
  }
  func.func @transform_3(%arg0: i32) -> (i32, i32) {
    %c0_i32 = arith.constant 0 : i32
    %c0_i32_0 = arith.constant 0 : i32
    return %arg0, %c0_i32 : i32, i32
  }
}

module attributes {stable_mosaic.version = 11 : i64} {
  func.func @_matmul_bias_act_kernel(%arg0: i32, %arg1: memref<18x432xbf16, #tpu.memory_space<vmem>>, %arg2: memref<432x384xbf16, #tpu.memory_space<vmem>>, %arg3: memref<1x384xf32, #tpu.memory_space<vmem>>, %arg4: memref<18x384xbf16, #tpu.memory_space<vmem>>) attributes {dimension_semantics = [#tpu.dimension_semantics<parallel>], iteration_bounds = array<i64: 1>, scalar_prefetch = 0 : i64, scratch_operands = 0 : i64, tpu.core_type = #tpu.core_type<tc>, window_params = [{transform_indices = @transform_0, window_bounds = array<i64: 18, 432>}, {pipeline_mode = #tpu.pipeline_mode<synchronous>, transform_indices = @transform_1, window_bounds = array<i64: 432, 384>}, {pipeline_mode = #tpu.pipeline_mode<synchronous>, transform_indices = @transform_2, window_bounds = array<i64: 1, 384>}, {transform_indices = @transform_3, window_bounds = array<i64: 18, 384>}]} {
    %c0 = arith.constant 0 : index
    %c0_0 = arith.constant 0 : index
    %0 = vector.load %arg1[%c0, %c0_0] : memref<18x432xbf16, #tpu.memory_space<vmem>>, vector<18x432xbf16>
    %c0_1 = arith.constant 0 : index
    %c0_2 = arith.constant 0 : index
    %1 = vector.load %arg2[%c0_1, %c0_2] : memref<432x384xbf16, #tpu.memory_space<vmem>>, vector<432x384xbf16>
    %cst = arith.constant dense<0.000000e+00> : vector<18x384xf32>
    %2 = tpu.matmul %0, %1, %cst {dimension_numbers = #tpu.dot_dimension_numbers<[1], [0], [0], [1], [0, 0, 1, 1], [], []>} : vector<18x432xbf16>, vector<432x384xbf16>, vector<18x384xf32> -> vector<18x384xf32>
    %c0_3 = arith.constant 0 : index
    %c0_4 = arith.constant 0 : index
    %3 = vector.load %arg3[%c0_3, %c0_4] : memref<1x384xf32, #tpu.memory_space<vmem>>, vector<1x384xf32>
    %4 = vector.broadcast %3 : vector<1x384xf32> to vector<18x384xf32>
    %5 = arith.addf %2, %4 : vector<18x384xf32>
    %cst_5 = arith.constant 0.000000e+00 : f32
    %6 = vector.broadcast %cst_5 : f32 to vector<18x384xf32>
    %7 = arith.maximumf %5, %6 : vector<18x384xf32>
    %8 = arith.truncf %7 : vector<18x384xf32> to vector<18x384xbf16>
    %c0_6 = arith.constant 0 : index
    %c0_7 = arith.constant 0 : index
    %9 = vector.load %arg4[%c0_6, %c0_7] : memref<18x384xbf16, #tpu.memory_space<vmem>>, vector<18x384xbf16>
    tpu.vector_store %arg4[%c0_6, %c0_7], %8 {strides = array<i32>} : memref<18x384xbf16, #tpu.memory_space<vmem>>, vector<18x384xbf16>,
    return
  }
  func.func @transform_0(%arg0: i32) -> (i32, i32) {
    %c0_i32 = arith.constant 0 : i32
    %c0_i32_0 = arith.constant 0 : i32
    return %arg0, %c0_i32 : i32, i32
  }
  func.func @transform_1(%arg0: i32) -> (i32, i32) {
    %c0_i32 = arith.constant 0 : i32
    %c0_i32_0 = arith.constant 0 : i32
    %c0_i32_1 = arith.constant 0 : i32
    return %c0_i32, %c0_i32_0 : i32, i32
  }
  func.func @transform_2(%arg0: i32) -> (i32, i32) {
    %c0_i32 = arith.constant 0 : i32
    %c0_i32_0 = arith.constant 0 : i32
    %c0_i32_1 = arith.constant 0 : i32
    return %c0_i32, %c0_i32_0 : i32, i32
  }
  func.func @transform_3(%arg0: i32) -> (i32, i32) {
    %c0_i32 = arith.constant 0 : i32
    %c0_i32_0 = arith.constant 0 : i32
    return %arg0, %c0_i32 : i32, i32
  }
}

module attributes {stable_mosaic.version = 11 : i64} {
  func.func @_matmul_bias_act_kernel(%arg0: i32, %arg1: memref<18x576xbf16, #tpu.memory_space<vmem>>, %arg2: memref<576x512xbf16, #tpu.memory_space<vmem>>, %arg3: memref<1x512xf32, #tpu.memory_space<vmem>>, %arg4: memref<18x512xbf16, #tpu.memory_space<vmem>>) attributes {dimension_semantics = [#tpu.dimension_semantics<parallel>], iteration_bounds = array<i64: 1>, scalar_prefetch = 0 : i64, scratch_operands = 0 : i64, tpu.core_type = #tpu.core_type<tc>, window_params = [{transform_indices = @transform_0, window_bounds = array<i64: 18, 576>}, {pipeline_mode = #tpu.pipeline_mode<synchronous>, transform_indices = @transform_1, window_bounds = array<i64: 576, 512>}, {pipeline_mode = #tpu.pipeline_mode<synchronous>, transform_indices = @transform_2, window_bounds = array<i64: 1, 512>}, {transform_indices = @transform_3, window_bounds = array<i64: 18, 512>}]} {
    %c0 = arith.constant 0 : index
    %c0_0 = arith.constant 0 : index
    %0 = vector.load %arg1[%c0, %c0_0] : memref<18x576xbf16, #tpu.memory_space<vmem>>, vector<18x576xbf16>
    %c0_1 = arith.constant 0 : index
    %c0_2 = arith.constant 0 : index
    %1 = vector.load %arg2[%c0_1, %c0_2] : memref<576x512xbf16, #tpu.memory_space<vmem>>, vector<576x512xbf16>
    %cst = arith.constant dense<0.000000e+00> : vector<18x512xf32>
    %2 = tpu.matmul %0, %1, %cst {dimension_numbers = #tpu.dot_dimension_numbers<[1], [0], [0], [1], [0, 0, 1, 1], [], []>} : vector<18x576xbf16>, vector<576x512xbf16>, vector<18x512xf32> -> vector<18x512xf32>
    %c0_3 = arith.constant 0 : index
    %c0_4 = arith.constant 0 : index
    %3 = vector.load %arg3[%c0_3, %c0_4] : memref<1x512xf32, #tpu.memory_space<vmem>>, vector<1x512xf32>
    %4 = vector.broadcast %3 : vector<1x512xf32> to vector<18x512xf32>
    %5 = arith.addf %2, %4 : vector<18x512xf32>
    %cst_5 = arith.constant 0.000000e+00 : f32
    %6 = vector.broadcast %cst_5 : f32 to vector<18x512xf32>
    %7 = arith.maximumf %5, %6 : vector<18x512xf32>
    %8 = arith.truncf %7 : vector<18x512xf32> to vector<18x512xbf16>
    %c0_6 = arith.constant 0 : index
    %c0_7 = arith.constant 0 : index
    %9 = vector.load %arg4[%c0_6, %c0_7] : memref<18x512xbf16, #tpu.memory_space<vmem>>, vector<18x512xbf16>
    tpu.vector_store %arg4[%c0_6, %c0_7], %8 {strides = array<i32>} : memref<18x512xbf16, #tpu.memory_space<vmem>>, vector<18x512xbf16>,
    return
  }
  func.func @transform_0(%arg0: i32) -> (i32, i32) {
    %c0_i32 = arith.constant 0 : i32
    %c0_i32_0 = arith.constant 0 : i32
    return %arg0, %c0_i32 : i32, i32
  }
  func.func @transform_1(%arg0: i32) -> (i32, i32) {
    %c0_i32 = arith.constant 0 : i32
    %c0_i32_0 = arith.constant 0 : i32
    %c0_i32_1 = arith.constant 0 : i32
    return %c0_i32, %c0_i32_0 : i32, i32
  }
  func.func @transform_2(%arg0: i32) -> (i32, i32) {
    %c0_i32 = arith.constant 0 : i32
    %c0_i32_0 = arith.constant 0 : i32
    %c0_i32_1 = arith.constant 0 : i32
    return %c0_i32, %c0_i32_0 : i32, i32
  }
  func.func @transform_3(%arg0: i32) -> (i32, i32) {
    %c0_i32 = arith.constant 0 : i32
    %c0_i32_0 = arith.constant 0 : i32
    return %arg0, %c0_i32 : i32, i32
  }
}

module attributes {stable_mosaic.version = 11 : i64} {
  func.func @_matmul_bias_act_kernel(%arg0: i32, %arg1: memref<18x512xbf16, #tpu.memory_space<vmem>>, %arg2: memref<512x64xbf16, #tpu.memory_space<vmem>>, %arg3: memref<1x64xf32, #tpu.memory_space<vmem>>, %arg4: memref<18x64xbf16, #tpu.memory_space<vmem>>) attributes {dimension_semantics = [#tpu.dimension_semantics<parallel>], iteration_bounds = array<i64: 1>, scalar_prefetch = 0 : i64, scratch_operands = 0 : i64, tpu.core_type = #tpu.core_type<tc>, window_params = [{transform_indices = @transform_0, window_bounds = array<i64: 18, 512>}, {pipeline_mode = #tpu.pipeline_mode<synchronous>, transform_indices = @transform_1, window_bounds = array<i64: 512, 64>}, {pipeline_mode = #tpu.pipeline_mode<synchronous>, transform_indices = @transform_2, window_bounds = array<i64: 1, 64>}, {transform_indices = @transform_3, window_bounds = array<i64: 18, 64>}]} {
    %c0 = arith.constant 0 : index
    %c0_0 = arith.constant 0 : index
    %0 = vector.load %arg1[%c0, %c0_0] : memref<18x512xbf16, #tpu.memory_space<vmem>>, vector<18x512xbf16>
    %c0_1 = arith.constant 0 : index
    %c0_2 = arith.constant 0 : index
    %1 = vector.load %arg2[%c0_1, %c0_2] : memref<512x64xbf16, #tpu.memory_space<vmem>>, vector<512x64xbf16>
    %cst = arith.constant dense<0.000000e+00> : vector<18x64xf32>
    %2 = tpu.matmul %0, %1, %cst {dimension_numbers = #tpu.dot_dimension_numbers<[1], [0], [0], [1], [0, 0, 1, 1], [], []>} : vector<18x512xbf16>, vector<512x64xbf16>, vector<18x64xf32> -> vector<18x64xf32>
    %c0_3 = arith.constant 0 : index
    %c0_4 = arith.constant 0 : index
    %3 = vector.load %arg3[%c0_3, %c0_4] : memref<1x64xf32, #tpu.memory_space<vmem>>, vector<1x64xf32>
    %4 = vector.broadcast %3 : vector<1x64xf32> to vector<18x64xf32>
    %5 = arith.addf %2, %4 : vector<18x64xf32>
    %cst_5 = arith.constant 0.000000e+00 : f32
    %6 = vector.broadcast %cst_5 : f32 to vector<18x64xf32>
    %7 = arith.maximumf %5, %6 : vector<18x64xf32>
    %8 = arith.truncf %7 : vector<18x64xf32> to vector<18x64xbf16>
    %c0_6 = arith.constant 0 : index
    %c0_7 = arith.constant 0 : index
    %9 = vector.load %arg4[%c0_6, %c0_7] : memref<18x64xbf16, #tpu.memory_space<vmem>>, vector<18x64xbf16>
    tpu.vector_store %arg4[%c0_6, %c0_7], %8 {strides = array<i32>} : memref<18x64xbf16, #tpu.memory_space<vmem>>, vector<18x64xbf16>,
    return
  }
  func.func @transform_0(%arg0: i32) -> (i32, i32) {
    %c0_i32 = arith.constant 0 : i32
    %c0_i32_0 = arith.constant 0 : i32
    return %arg0, %c0_i32 : i32, i32
  }
  func.func @transform_1(%arg0: i32) -> (i32, i32) {
    %c0_i32 = arith.constant 0 : i32
    %c0_i32_0 = arith.constant 0 : i32
    %c0_i32_1 = arith.constant 0 : i32
    return %c0_i32, %c0_i32_0 : i32, i32
  }
  func.func @transform_2(%arg0: i32) -> (i32, i32) {
    %c0_i32 = arith.constant 0 : i32
    %c0_i32_0 = arith.constant 0 : i32
    %c0_i32_1 = arith.constant 0 : i32
    return %c0_i32, %c0_i32_0 : i32, i32
  }
  func.func @transform_3(%arg0: i32) -> (i32, i32) {
    %c0_i32 = arith.constant 0 : i32
    %c0_i32_0 = arith.constant 0 : i32
    return %arg0, %c0_i32 : i32, i32
  }
}

module attributes {stable_mosaic.version = 11 : i64} {
  func.func @_matmul_bias_act_kernel(%arg0: i32, %arg1: memref<18x512xbf16, #tpu.memory_space<vmem>>, %arg2: memref<512x1000xbf16, #tpu.memory_space<vmem>>, %arg3: memref<1x1000xf32, #tpu.memory_space<vmem>>, %arg4: memref<18x1000xbf16, #tpu.memory_space<vmem>>) attributes {dimension_semantics = [#tpu.dimension_semantics<parallel>], iteration_bounds = array<i64: 1>, scalar_prefetch = 0 : i64, scratch_operands = 0 : i64, tpu.core_type = #tpu.core_type<tc>, window_params = [{transform_indices = @transform_0, window_bounds = array<i64: 18, 512>}, {pipeline_mode = #tpu.pipeline_mode<synchronous>, transform_indices = @transform_1, window_bounds = array<i64: 512, 1000>}, {pipeline_mode = #tpu.pipeline_mode<synchronous>, transform_indices = @transform_2, window_bounds = array<i64: 1, 1000>}, {transform_indices = @transform_3, window_bounds = array<i64: 18, 1000>}]} {
    %c0 = arith.constant 0 : index
    %c0_0 = arith.constant 0 : index
    %0 = vector.load %arg1[%c0, %c0_0] : memref<18x512xbf16, #tpu.memory_space<vmem>>, vector<18x512xbf16>
    %c0_1 = arith.constant 0 : index
    %c0_2 = arith.constant 0 : index
    %1 = vector.load %arg2[%c0_1, %c0_2] : memref<512x1000xbf16, #tpu.memory_space<vmem>>, vector<512x1000xbf16>
    %cst = arith.constant dense<0.000000e+00> : vector<18x1000xf32>
    %2 = tpu.matmul %0, %1, %cst {dimension_numbers = #tpu.dot_dimension_numbers<[1], [0], [0], [1], [0, 0, 1, 1], [], []>} : vector<18x512xbf16>, vector<512x1000xbf16>, vector<18x1000xf32> -> vector<18x1000xf32>
    %c0_3 = arith.constant 0 : index
    %c0_4 = arith.constant 0 : index
    %3 = vector.load %arg3[%c0_3, %c0_4] : memref<1x1000xf32, #tpu.memory_space<vmem>>, vector<1x1000xf32>
    %4 = vector.broadcast %3 : vector<1x1000xf32> to vector<18x1000xf32>
    %5 = arith.addf %2, %4 : vector<18x1000xf32>
    %cst_5 = arith.constant 0.000000e+00 : f32
    %6 = vector.broadcast %cst_5 : f32 to vector<18x1000xf32>
    %7 = arith.maximumf %5, %6 : vector<18x1000xf32>
    %8 = arith.truncf %7 : vector<18x1000xf32> to vector<18x1000xbf16>
    %c0_6 = arith.constant 0 : index
    %c0_7 = arith.constant 0 : index
    %9 = vector.load %arg4[%c0_6, %c0_7] : memref<18x1000xbf16, #tpu.memory_space<vmem>>, vector<18x1000xbf16>
    tpu.vector_store %arg4[%c0_6, %c0_7], %8 {strides = array<i32>} : memref<18x1000xbf16, #tpu.memory_space<vmem>>, vector<18x1000xbf16>,
    return
  }
  func.func @transform_0(%arg0: i32) -> (i32, i32) {
    %c0_i32 = arith.constant 0 : i32
    %c0_i32_0 = arith.constant 0 : i32
    return %arg0, %c0_i32 : i32, i32
  }
  func.func @transform_1(%arg0: i32) -> (i32, i32) {
    %c0_i32 = arith.constant 0 : i32
    %c0_i32_0 = arith.constant 0 : i32
    %c0_i32_1 = arith.constant 0 : i32
    return %c0_i32, %c0_i32_0 : i32, i32
  }
  func.func @transform_2(%arg0: i32) -> (i32, i32) {
    %c0_i32 = arith.constant 0 : i32
    %c0_i32_0 = arith.constant 0 : i32
    %c0_i32_1 = arith.constant 0 : i32
    return %c0_i32, %c0_i32_0 : i32, i32
  }
  func.func @transform_3(%arg0: i32) -> (i32, i32) {
    %c0_i32 = arith.constant 0 : i32
    %c0_i32_0 = arith.constant 0 : i32
    return %arg0, %c0_i32 : i32, i32
  }
}

module attributes {stable_mosaic.version = 11 : i64} {
  func.func @_pool_head_kernel(%arg0: memref<2x9x1000xbf16, #tpu.memory_space<vmem>>, %arg1: memref<1x1000xf32, #tpu.memory_space<vmem>>, %arg2: memref<1x1xf32, #tpu.memory_space<vmem>>, %arg3: memref<2x1xf32, #tpu.memory_space<vmem>>) attributes {dimension_semantics = [], scalar_prefetch = 0 : i64, scratch_operands = 0 : i64, tpu.core_type = #tpu.core_type<tc>} {
    %c0 = arith.constant 0 : index
    %c0_0 = arith.constant 0 : index
    %c0_1 = arith.constant 0 : index
    %0 = vector.load %arg0[%c0, %c0_0, %c0_1] : memref<2x9x1000xbf16, #tpu.memory_space<vmem>>, vector<2x9x1000xbf16>
    %1 = arith.extf %0 : vector<2x9x1000xbf16> to vector<2x9x1000xf32>
    %cst = arith.constant dense<0.000000e+00> : vector<2x1000xf32>
    %2 = vector.multi_reduction <add>, %1, %cst [1] : vector<2x9x1000xf32> to vector<2x1000xf32>
    %cst_2 = arith.constant 9.000000e+00 : f32
    %3 = vector.broadcast %cst_2 : f32 to vector<2x1000xf32>
    %4 = arith.divf %2, %3 : vector<2x1000xf32>
    %cst_3 = arith.constant 0.000000e+00 : f32
    %5 = vector.broadcast %cst_3 : f32 to vector<2x1000xf32>
    %6 = arith.maximumf %4, %5 : vector<2x1000xf32>
    %c0_4 = arith.constant 0 : index
    %c0_5 = arith.constant 0 : index
    %7 = vector.load %arg1[%c0_4, %c0_5] : memref<1x1000xf32, #tpu.memory_space<vmem>>, vector<1x1000xf32>
    %8 = vector.broadcast %7 : vector<1x1000xf32> to vector<2x1000xf32>
    %9 = arith.mulf %6, %8 : vector<2x1000xf32>
    %cst_6 = arith.constant dense<0.000000e+00> : vector<2xf32>
    %10 = vector.multi_reduction <add>, %9, %cst_6 [1] : vector<2x1000xf32> to vector<2xf32>
    %11 = vector.shape_cast %10 : vector<2xf32> to vector<2x1xf32>
    %c0_7 = arith.constant 0 : index
    %c0_8 = arith.constant 0 : index
    %12 = vector.load %arg2[%c0_7, %c0_8] : memref<1x1xf32, #tpu.memory_space<vmem>>, vector<1x1xf32>
    %13 = vector.broadcast %12 : vector<1x1xf32> to vector<2x1xf32>
    %14 = arith.addf %11, %13 : vector<2x1xf32>
    %cst_9 = arith.constant dense<0xFF800000> : vector<2xf32>
    %15 = vector.multi_reduction <maximumf>, %14, %cst_9 [1] : vector<2x1xf32> to vector<2xf32>
    %16 = vector.shape_cast %15 : vector<2xf32> to vector<2x1xf32>
    %17 = arith.subf %14, %16 : vector<2x1xf32>
    %18 = math.exp %17 : vector<2x1xf32>
    %cst_10 = arith.constant dense<0.000000e+00> : vector<2xf32>
    %19 = vector.multi_reduction <add>, %18, %cst_10 [1] : vector<2x1xf32> to vector<2xf32>
    %20 = vector.shape_cast %19 : vector<2xf32> to vector<2x1xf32>
    %21 = arith.divf %18, %20 : vector<2x1xf32>
    %c0_11 = arith.constant 0 : index
    %c0_12 = arith.constant 0 : index
    %22 = vector.load %arg3[%c0_11, %c0_12] : memref<2x1xf32, #tpu.memory_space<vmem>>, vector<2x1xf32>
    tpu.vector_store %arg3[%c0_11, %c0_12], %21 {strides = array<i32>} : memref<2x1xf32, #tpu.memory_space<vmem>>, vector<2x1xf32>,
    return
  }
}

</mosaic_0001>

<bundles_post_ra>
// kernel: regressor_forward.22
= control target key start
LH: loop header
LB: loop body
LE: loop exit
PB: predicated region body
PF: predicated region fallthrough
CT: control target
= control target key end

     0   :  { %s766_s12 = smov 0   ;;  %s936_s0 = inlined_call_operand.vmem [shape: bf16[2048,27], index: 0, kind: input, shape index: {}]   ;;  %s937_s1 = inlined_call_operand.vmem [shape: bf16[27,64], index: 1, kind: input, shape index: {}]   ;;  %s938_s2 = inlined_call_operand.vmem [shape: f32[1,64], index: 2, kind: input, shape index: {}]   ;;  %s939_s3 = inlined_call_operand.vmem [shape: bf16[2048,64], index: 3, kind: output, shape index: {}]  }
   0x1 LB: > { %s604_s13 = sadd.s32 4294967295, %s743_s12   ;;  %p608_p0 = scmp.ge.s32.totalorder %s743_s12, 1  ;;  %s743_s12 = sphi %s766_s12, %s13_s12  }
   0x2   : > { %p138_p1 = scmp.lt.s32.totalorder %s743_s12, 9 }
   0x4   : > { %p139_p2 = pnand %p608_p0, %p138_p1 }
   0x5   : > { %s609_s18 = sshll.u32 (!%p139_p2), %s604_s13, 5 }
   0x6   : > { %142 = sbr.rel (%p139_p2) target bundleno = 221 (0xdd), region = 32  ;;  %p163_p3 = scmp.lt.s32.totalorder (!%p139_p2), %s609_s18, 255 }
   0xb   : > { %v683_v0 = vld [vmem:[%s937_s1 + $0x8] sm:$0xf]  ;;  %v720_v1 = vld [vmem:[%s937_s1 + $0x8] sm:$0x30]  ;;  %vm355_vm0 = vcmask 1044480   ;;  %vm356_vm1 = vcmask 1045504  }
   0xc   : > { %v684_v2 = vor.u32 %v720_v1, %v683_v0  ;;  %v745_v3 = vmov 65535   ;;  %s941_s18 = smov (!%p163_p3, %s609_s18), 255  ;;  %v719_v7 = vld [vmem:[%s937_s1] sm:$0xff]  ;;  %vm306_vm2 = vcmask 220160   ;;  %vm515_vm3 = vcmask 519168  }
   0xd   : > { %v357_v4 = vsel %vm355_vm0, 4294967295, %v745_v3  ;;  %s610_s21 = sshll.u32 %s941_s18, 2  ;;  %v828_v24 = vld [vmem:[%s938_s2] ss:$0 sm:$0xff] }
   0xe   : > { %v358_v5 = vsel %vm356_vm1, %v357_v4, 0  ;;  %s791_s24 = scalar_lea.vmem %s936_s0, %s610_s21  ;;  %s837_s29 = scalar_lea.vmem %s939_s3, %s610_s21 }
   0xf   : > { %v360_v6 = vand.u32 %v684_v2, %v358_v5  ;;  %v703_v8 = vld [vmem:[%s791_s24] sm:$0xff]  ;;  %v704_v12 = vld [vmem:[%s791_s24 + $0x8] sm:$0xff]  ;;  %v705_v16 = vld [vmem:[%s791_s24 + $0x10] sm:$0xff] }
  0x10   : > { %v707_v9 = vld [vmem:[%s791_s24 + $0x20] sm:$0xff]  ;;  %v708_v13 = vld [vmem:[%s791_s24 + $0x28] sm:$0xff]  ;;  %v709_v17 = vld [vmem:[%s791_s24 + $0x30] sm:$0xff] }
  0x11   : > { %368 = vmatpush.bf16.msra.mxu0 %v360_v6  ;;  %721 = vmatpush.bf16.msra.mxu1 %v360_v6  ;;  %v711_v10 = vld [vmem:[%s791_s24 + $0x40] sm:$0xff]  ;;  %v712_v14 = vld [vmem:[%s791_s24 + $0x48] sm:$0xff]  ;;  %v713_v18 = vld [vmem:[%s791_s24 + $0x50] sm:$0xff] }
  0x12   : > { %722 = vmatpush.bf16.msra.mxu2 %v360_v6  ;;  %723 = vmatpush.bf16.msra.mxu3 %v360_v6  ;;  %v715_v11 = vld [vmem:[%s791_s24 + $0x60] sm:$0xff]  ;;  %v716_v15 = vld [vmem:[%s791_s24 + $0x68] sm:$0xff]  ;;  %v717_v19 = vld [vmem:[%s791_s24 + $0x70] sm:$0xff] }
  0x13   : > { %v706_v20 = vld [vmem:[%s791_s24 + $0x18] sm:$0xff] }
  0x14   : > { %v710_v21 = vld [vmem:[%s791_s24 + $0x38] sm:$0xff] }
  0x15   : > { %369 = vmatpush.bf16.msra.mxu0 %v719_v7  ;;  %724 = vmatpush.bf16.msra.mxu1 %v719_v7  ;;  %v714_v22 = vld [vmem:[%s791_s24 + $0x58] sm:$0xff] }
  0x16   : > { %725 = vmatpush.bf16.msra.mxu2 %v719_v7  ;;  %726 = vmatpush.bf16.msra.mxu3 %v719_v7  ;;  %v718_v23 = vld [vmem:[%s791_s24 + $0x78] sm:$0xff] }
  0x18   : > { %685 = vmatmul.msk.bf16.vlgmr.msra.gmra.mxu0 %vm306_vm2, %v703_v8  ;;  %689 = vmatmul.msk.bf16.vlgmr.msra.gmra.mxu1 %vm306_vm2, %v707_v9 }
  0x19   : > { %693 = vmatmul.msk.bf16.vlgmr.msra.gmra.mxu2 %vm306_vm2, %v711_v10  ;;  %697 = vmatmul.msk.bf16.vlgmr.msra.gmra.mxu3 %vm306_vm2, %v715_v11 }
  0x28   : > { %686 = vmatmul.msk.bf16.gmra.mxu0 %vm306_vm2, %v704_v12  ;;  %690 = vmatmul.msk.bf16.gmra.mxu1 %vm306_vm2, %v708_v13 }
  0x29   : > { %694 = vmatmul.msk.bf16.gmra.mxu2 %vm306_vm2, %v712_v14  ;;  %698 = vmatmul.msk.bf16.gmra.mxu3 %vm306_vm2, %v716_v15 }
  0x38   : > { %687 = vmatmul.msk.bf16.gmra.mxu0 %vm306_vm2, %v705_v16  ;;  %691 = vmatmul.msk.bf16.gmra.mxu1 %vm306_vm2, %v709_v17 }
  0x39   : > { %695 = vmatmul.msk.bf16.gmra.mxu2 %vm306_vm2, %v713_v18  ;;  %699 = vmatmul.msk.bf16.gmra.mxu3 %vm306_vm2, %v717_v19 }
  0x48   : > { %688 = vmatmul.msk.bf16.gmra.mxu0 %vm306_vm2, %v706_v20  ;;  %692 = vmatmul.msk.bf16.gmra.mxu1 %vm306_vm2, %v710_v21 }
  0x49   : > { %696 = vmatmul.msk.bf16.gmra.mxu2 %vm306_vm2, %v714_v22  ;;  %700 = vmatmul.msk.bf16.gmra.mxu3 %vm306_vm2, %v718_v23 }
  0x95   : > { %v371_v25 = vpop.f32.mrf.mxu0  ;;  %v391_v26 = vpop.f32.mrf.mxu1 }
  0x96   : > { %v372_v27 = vadd.f32 %v828_v24, %v371_v25  ;;  %v392_v28 = vadd.f32 %v828_v24, %v391_v26 }
  0x98   : > { %v451_v29 = vmax.f32 %v372_v27, 0.0  ;;  %v459_v30 = vmax.f32 %v392_v28, 0.0 }
  0x9a   : > { %v483_v31 = vpack.c.bf16 %v451_v29, %v451_v29  ;;  %v491_v32 = vpack.c.bf16 %v459_v30, %v459_v30 }
  0x9c   : > { %516 = vst.msk [vmem:[%s837_s29] sm:$0xf] %vm515_vm3, %v483_v31  ;;  %v411_v33 = vpop.f32.mrf.mxu2  ;;  %v431_v34 = vpop.f32.mrf.mxu3 }
  0x9d   : > { %524 = vst.msk [vmem:[%s837_s29 + $0x20] sm:$0xf] %vm515_vm3, %v491_v32  ;;  %v412_v35 = vadd.f32 %v828_v24, %v411_v33  ;;  %v432_v36 = vadd.f32 %v828_v24, %v431_v34  ;;  %v373_v37 = vpop.f32.mrf.mxu0  ;;  %v393_v38 = vpop.f32.mrf.mxu1 }
  0x9e   : > { %v374_v39 = vadd.f32 %v828_v24, %v373_v37  ;;  %v394_v40 = vadd.f32 %v828_v24, %v393_v38 }
  0x9f   : > { %v467_v41 = vmax.f32 %v412_v35, 0.0  ;;  %v475_v42 = vmax.f32 %v432_v36, 0.0 }
  0xa0   : > { %v452_v43 = vmax.f32 %v374_v39, 0.0  ;;  %v460_v44 = vmax.f32 %v394_v40, 0.0 }
  0xa1   : > { %v499_v45 = vpack.c.bf16 %v467_v41, %v467_v41  ;;  %v507_v46 = vpack.c.bf16 %v475_v42, %v475_v42 }
  0xa2   : > { %v484_v47 = vpack.c.bf16 %v452_v43, %v452_v43  ;;  %v492_v48 = vpack.c.bf16 %v460_v44, %v460_v44 }
  0xa3   : > { %532 = vst.msk [vmem:[%s837_s29 + $0x40] sm:$0xf] %vm515_vm3, %v499_v45 }
  0xa4   : > { %540 = vst.msk [vmem:[%s837_s29 + $0x60] sm:$0xf] %vm515_vm3, %v507_v46  ;;  %v413_v49 = vpop.f32.mrf.mxu2  ;;  %v433_v50 = vpop.f32.mrf.mxu3 }
  0xa5   : > { %517 = vst.msk [vmem:[%s837_s29 + $0x4] sm:$0xf] %vm515_vm3, %v484_v47  ;;  %v414_v51 = vadd.f32 %v828_v24, %v413_v49  ;;  %v434_v52 = vadd.f32 %v828_v24, %v433_v50  ;;  %v376_v53 = vpop.f32.mrf.mxu0  ;;  %v396_v54 = vpop.f32.mrf.mxu1 }
  0xa6   : > { %525 = vst.msk [vmem:[%s837_s29 + $0x24] sm:$0xf] %vm515_vm3, %v492_v48  ;;  %v377_v55 = vadd.f32 %v828_v24, %v376_v53  ;;  %v397_v56 = vadd.f32 %v828_v24, %v396_v54 }
  0xa7   : > { %v468_v57 = vmax.f32 %v414_v51, 0.0  ;;  %v476_v58 = vmax.f32 %v434_v52, 0.0 }
  0xa8   : > { %v453_v59 = vmax.f32 %v377_v55, 0.0  ;;  %v461_v60 = vmax.f32 %v397_v56, 0.0 }
  0xa9   : > { %v500_v61 = vpack.c.bf16 %v468_v57, %v468_v57  ;;  %v508_v62 = vpack.c.bf16 %v476_v58, %v476_v58 }
  0xaa   : > { %v485_v63 = vpack.c.bf16 %v453_v59, %v453_v59  ;;  %v493_v0 = vpack.c.bf16 %v461_v60, %v461_v60 }
  0xab   : > { %533 = vst.msk [vmem:[%s837_s29 + $0x44] sm:$0xf] %vm515_vm3, %v500_v61 }
  0xac   : > { %541 = vst.msk [vmem:[%s837_s29 + $0x64] sm:$0xf] %vm515_vm3, %v508_v62  ;;  %v416_v1 = vpop.f32.mrf.mxu2  ;;  %v436_v2 = vpop.f32.mrf.mxu3 }
  0xad   : > { %518 = vst.msk [vmem:[%s837_s29 + $0x8] sm:$0xf] %vm515_vm3, %v485_v63  ;;  %v417_v3 = vadd.f32 %v828_v24, %v416_v1  ;;  %v437_v4 = vadd.f32 %v828_v24, %v436_v2  ;;  %v378_v5 = vpop.f32.mrf.mxu0  ;;  %v398_v6 = vpop.f32.mrf.mxu1 }
  0xae   : > { %526 = vst.msk [vmem:[%s837_s29 + $0x28] sm:$0xf] %vm515_vm3, %v493_v0  ;;  %v379_v7 = vadd.f32 %v828_v24, %v378_v5  ;;  %v399_v8 = vadd.f32 %v828_v24, %v398_v6 }
  0xaf   : > { %v469_v9 = vmax.f32 %v417_v3, 0.0  ;;  %v477_v10 = vmax.f32 %v437_v4, 0.0 }
  0xb0   : > { %v454_v11 = vmax.f32 %v379_v7, 0.0  ;;  %v462_v12 = vmax.f32 %v399_v8, 0.0 }
  0xb1   : > { %v501_v13 = vpack.c.bf16 %v469_v9, %v469_v9  ;;  %v509_v14 = vpack.c.bf16 %v477_v10, %v477_v10 }
  0xb2   : > { %v486_v15 = vpack.c.bf16 %v454_v11, %v454_v11  ;;  %v494_v16 = vpack.c.bf16 %v462_v12, %v462_v12 }
  0xb3   : > { %534 = vst.msk [vmem:[%s837_s29 + $0x48] sm:$0xf] %vm515_vm3, %v501_v13 }
  0xb4   : > { %542 = vst.msk [vmem:[%s837_s29 + $0x68] sm:$0xf] %vm515_vm3, %v509_v14  ;;  %v418_v17 = vpop.f32.mrf.mxu2  ;;  %v438_v18 = vpop.f32.mrf.mxu3 }
  0xb5   : > { %519 = vst.msk [vmem:[%s837_s29 + $0xc] sm:$0xf] %vm515_vm3, %v486_v15  ;;  %v419_v19 = vadd.f32 %v828_v24, %v418_v17  ;;  %v439_v20 = vadd.f32 %v828_v24, %v438_v18  ;;  %v381_v21 = vpop.f32.mrf.mxu0  ;;  %v401_v22 = vpop.f32.mrf.mxu1 }
  0xb6   : > { %527 = vst.msk [vmem:[%s837_s29 + $0x2c] sm:$0xf] %vm515_vm3, %v494_v16  ;;  %v382_v23 = vadd.f32 %v828_v24, %v381_v21  ;;  %v402_v25 = vadd.f32 %v828_v24, %v401_v22 }
  0xb7   : > { %v470_v26 = vmax.f32 %v419_v19, 0.0  ;;  %v478_v27 = vmax.f32 %v439_v20, 0.0 }
  0xb8   : > { %v455_v28 = vmax.f32 %v382_v23, 0.0  ;;  %v463_v29 = vmax.f32 %v402_v25, 0.0 }
  0xb9   : > { %v502_v30 = vpack.c.bf16 %v470_v26, %v470_v26  ;;  %v510_v31 = vpack.c.bf16 %v478_v27, %v478_v27 }
  0xba   : > { %v487_v32 = vpack.c.bf16 %v455_v28, %v455_v28  ;;  %v495_v33 = vpack.c.bf16 %v463_v29, %v463_v29 }
  0xbb   : > { %535 = vst.msk [vmem:[%s837_s29 + $0x4c] sm:$0xf] %vm515_vm3, %v502_v30 }
  0xbc   : > { %543 = vst.msk [vmem:[%s837_s29 + $0x6c] sm:$0xf] %vm515_vm3, %v510_v31  ;;  %v421_v34 = vpop.f32.mrf.mxu2  ;;  %v441_v35 = vpop.f32.mrf.mxu3 }
  0xbd   : > { %520 = vst.msk [vmem:[%s837_s29 + $0x10] sm:$0xf] %vm515_vm3, %v487_v32  ;;  %v422_v36 = vadd.f32 %v828_v24, %v421_v34  ;;  %v442_v37 = vadd.f32 %v828_v24, %v441_v35  ;;  %v383_v38 = vpop.f32.mrf.mxu0  ;;  %v403_v39 = vpop.f32.mrf.mxu1 }
  0xbe   : > { %528 = vst.msk [vmem:[%s837_s29 + $0x30] sm:$0xf] %vm515_vm3, %v495_v33  ;;  %v384_v40 = vadd.f32 %v828_v24, %v383_v38  ;;  %v404_v41 = vadd.f32 %v828_v24, %v403_v39 }
  0xbf   : > { %v471_v42 = vmax.f32 %v422_v36, 0.0  ;;  %v479_v43 = vmax.f32 %v442_v37, 0.0 }
  0xc0   : > { %v456_v44 = vmax.f32 %v384_v40, 0.0  ;;  %v464_v45 = vmax.f32 %v404_v41, 0.0 }
  0xc1   : > { %v503_v46 = vpack.c.bf16 %v471_v42, %v471_v42  ;;  %v511_v47 = vpack.c.bf16 %v479_v43, %v479_v43 }
  0xc2   : > { %v488_v48 = vpack.c.bf16 %v456_v44, %v456_v44  ;;  %v496_v49 = vpack.c.bf16 %v464_v45, %v464_v45 }
  0xc3   : > { %536 = vst.msk [vmem:[%s837_s29 + $0x50] sm:$0xf] %vm515_vm3, %v503_v46 }
  0xc4   : > { %544 = vst.msk [vmem:[%s837_s29 + $0x70] sm:$0xf] %vm515_vm3, %v511_v47  ;;  %v423_v50 = vpop.f32.mrf.mxu2  ;;  %v443_v51 = vpop.f32.mrf.mxu3 }
  0xc5   : > { %521 = vst.msk [vmem:[%s837_s29 + $0x14] sm:$0xf] %vm515_vm3, %v488_v48  ;;  %v424_v52 = vadd.f32 %v828_v24, %v423_v50  ;;  %v444_v53 = vadd.f32 %v828_v24, %v443_v51  ;;  %v386_v54 = vpop.f32.mrf.mxu0  ;;  %v406_v55 = vpop.f32.mrf.mxu1 }
  0xc6   : > { %529 = vst.msk [vmem:[%s837_s29 + $0x34] sm:$0xf] %vm515_vm3, %v496_v49  ;;  %v387_v56 = vadd.f32 %v828_v24, %v386_v54  ;;  %v407_v57 = vadd.f32 %v828_v24, %v406_v55 }
  0xc7   : > { %v472_v58 = vmax.f32 %v424_v52, 0.0  ;;  %v480_v59 = vmax.f32 %v444_v53, 0.0 }
  0xc8   : > { %v457_v60 = vmax.f32 %v387_v56, 0.0  ;;  %v465_v61 = vmax.f32 %v407_v57, 0.0 }
  0xc9   : > { %v504_v62 = vpack.c.bf16 %v472_v58, %v472_v58  ;;  %v512_v63 = vpack.c.bf16 %v480_v59, %v480_v59 }
  0xca   : > { %v489_v0 = vpack.c.bf16 %v457_v60, %v457_v60  ;;  %v497_v1 = vpack.c.bf16 %v465_v61, %v465_v61 }
  0xcb   : > { %537 = vst.msk [vmem:[%s837_s29 + $0x54] sm:$0xf] %vm515_vm3, %v504_v62 }
  0xcc   : > { %545 = vst.msk [vmem:[%s837_s29 + $0x74] sm:$0xf] %vm515_vm3, %v512_v63  ;;  %v426_v2 = vpop.f32.mrf.mxu2  ;;  %v446_v3 = vpop.f32.mrf.mxu3 }
  0xcd   : > { %522 = vst.msk [vmem:[%s837_s29 + $0x18] sm:$0xf] %vm515_vm3, %v489_v0  ;;  %v427_v4 = vadd.f32 %v828_v24, %v426_v2  ;;  %v447_v5 = vadd.f32 %v828_v24, %v446_v3  ;;  %v388_v6 = vpop.f32.mrf.mxu0  ;;  %v408_v7 = vpop.f32.mrf.mxu1 }
  0xce   : > { %530 = vst.msk [vmem:[%s837_s29 + $0x38] sm:$0xf] %vm515_vm3, %v497_v1  ;;  %v389_v8 = vadd.f32 %v828_v24, %v388_v6  ;;  %v409_v9 = vadd.f32 %v828_v24, %v408_v7 }
  0xcf   : > { %v473_v10 = vmax.f32 %v427_v4, 0.0  ;;  %v481_v11 = vmax.f32 %v447_v5, 0.0 }
  0xd0   : > { %v458_v12 = vmax.f32 %v389_v8, 0.0  ;;  %v466_v13 = vmax.f32 %v409_v9, 0.0 }
  0xd1   : > { %v505_v14 = vpack.c.bf16 %v473_v10, %v473_v10  ;;  %v513_v15 = vpack.c.bf16 %v481_v11, %v481_v11 }
  0xd2   : > { %v490_v16 = vpack.c.bf16 %v458_v12, %v458_v12  ;;  %v498_v17 = vpack.c.bf16 %v466_v13, %v466_v13 }
  0xd3   : > { %538 = vst.msk [vmem:[%s837_s29 + $0x58] sm:$0xf] %vm515_vm3, %v505_v14 }
  0xd4   : > { %546 = vst.msk [vmem:[%s837_s29 + $0x78] sm:$0xf] %vm515_vm3, %v513_v15  ;;  %v428_v18 = vpop.f32.mrf.mxu2  ;;  %v448_v19 = vpop.f32.mrf.mxu3 }
  0xd5   : > { %523 = vst.msk [vmem:[%s837_s29 + $0x1c] sm:$0xf] %vm515_vm3, %v490_v16  ;;  %v429_v20 = vadd.f32 %v828_v24, %v428_v18  ;;  %v449_v21 = vadd.f32 %v828_v24, %v448_v19 }
  0xd6   : > { %531 = vst.msk [vmem:[%s837_s29 + $0x3c] sm:$0xf] %vm515_vm3, %v498_v17 }
  0xd7   : > { %v474_v22 = vmax.f32 %v429_v20, 0.0  ;;  %v482_v23 = vmax.f32 %v449_v21, 0.0 }
  0xd9   : > { %v506_v25 = vpack.c.bf16 %v474_v22, %v474_v22  ;;  %v514_v26 = vpack.c.bf16 %v482_v23, %v482_v23 }
  0xdb   : > { %539 = vst.msk [vmem:[%s837_s29 + $0x5c] sm:$0xf] %vm515_vm3, %v506_v25 }
  0xdc   : > { %547 = vst.msk [vmem:[%s837_s29 + $0x7c] sm:$0xf] %vm515_vm3, %v514_v26 }
  0xdd PF: > { %s13_s12 = sadd.s32 1, %s743_s12  }
  0xde   : > { %p10_p4 = scmp.ge.s32.totalorder %s13_s12, 10  }
  0xe0   :  { %12 = sbr.rel (!%p10_p4) target bundleno = 1 (0x1), region = 62 }

// kernel: regressor_forward.23
= control target key start
LH: loop header
LB: loop body
LE: loop exit
PB: predicated region body
PF: predicated region fallthrough
CT: control target
= control target key end

     0   :  { %s1937_s15 = smov 0   ;;  %s2506_s0 = inlined_call_operand.vmem [shape: bf16[2,16,16,64], index: 0, kind: input, shape index: {}]   ;;  %s2507_s1 = inlined_call_operand.vmem [shape: bf16[2,16,16,64], index: 1, kind: input, shape index: {}]   ;;  %s2508_s2 = inlined_call_operand.vmem [shape: bf16[2,16,16,64], index: 2, kind: input, shape index: {}]   ;;  %s2509_s3 = inlined_call_operand.vmem [shape: bf16[2,16,16,64], index: 3, kind: input, shape index: {}]   ;;  %s2510_s4 = inlined_call_operand.vmem [shape: bf16[2,15,15,64], index: 4, kind: output, shape index: {}]  }
   0x1 LB: > { %s1569_s16 = sadd.s32 4294967295, %s1910_s15   ;;  %p1573_p0 = scmp.ge.s32.totalorder %s1910_s15, 1  ;;  %s1910_s15 = sphi %s1937_s15, %s14_s15  }
   0x2   : > { %p192_p1 = scmp.lt.s32.totalorder %s1910_s15, 3 }
   0x4   : > { %p193_p2 = pnand %p1573_p0, %p192_p1 }
   0x5   : > { %p233_p3 = scmp.lt.s32.totalorder (!%p193_p2), %s1569_s16, 1 }
   0x6   : > { %196 = sbr.rel (%p193_p2) target bundleno = 151 (0x97), region = 36 }
   0xb   : > { %s2514_s16 = smov (!%p233_p3, %s1569_s16), 1  ;;  %vm442_vm0 = vcmask 1046528   ;;  %vm1414_vm1 = vcmask 519168   ;;  %vm1417_vm2 = vsmask.f32 3328 }
   0xc   : > { %s1585_s17 = sshll.u32 %s2514_s16, 7  ;;  %s1895_s30 = smul.u32 120, %s2514_s16  ;;  %vm2060_vm3 = vmand %vm1414_vm1, %vm1417_vm2 }
   0xd   : > { %s1951_s20 = scalar_lea.vmem %s2506_s0, %s1585_s17  ;;  %s1956_s23 = scalar_lea.vmem %s2507_s1, %s1585_s17 }
   0xe   : > { %s1961_s26 = scalar_lea.vmem %s2508_s2, %s1585_s17  ;;  %v1590_v0 = vld [vmem:[%s1951_s20] sm:$0xff]   ;;  %v1837_v1 = vld [vmem:[%s1951_s20 + $0x8] sm:$0xff]   ;;  %s1969_s29 = scalar_lea.vmem %s2509_s3, %s1585_s17  ;;  %v1838_v9 = vld [vmem:[%s1951_s20 + $0x10] sm:$0xff]  }
   0xf   : > { %v1654_v2 = vld [vmem:[%s1956_s23] sm:$0xff]   ;;  %v1591_v3 = vunpack.c.l.bf16 %v1590_v0  ;;  %v1592_v4 = vunpack.c.h.bf16 %v1590_v0  ;;  %v1595_v5 = vunpack.c.l.bf16 %v1837_v1  ;;  %v1596_v6 = vunpack.c.h.bf16 %v1837_v1  ;;  %v1975_v8 = vld [vmem:[%s1956_s23 + $0x8] sm:$0xff]   ;;  %v1996_v28 = vld [vmem:[%s1956_s23 + $0x10] sm:$0xff]   ;;  %s2045_s7 = scalar_lea.vmem %s2510_s4, %s1895_s30 }
  0x10   : > { %v1972_v7 = vld [vmem:[%s1961_s26] sm:$0xff]   ;;  %v1655_v10 = vunpack.c.l.bf16 %v1654_v2  ;;  %v1656_v11 = vunpack.c.h.bf16 %v1654_v2  ;;  %v1659_v19 = vunpack.c.l.bf16 %v1975_v8  ;;  %v1599_v21 = vunpack.c.l.bf16 %v1838_v9  ;;  %v1989_v23 = vld [vmem:[%s1961_s26 + $0x8] sm:$0xff]   ;;  %v1839_v41 = vld [vmem:[%s1951_s20 + $0x18] sm:$0xff]  }
  0x11   : > { %v1719_v12 = vunpack.c.l.bf16 %v1972_v7  ;;  %v1720_v13 = vunpack.c.h.bf16 %v1972_v7  ;;  %v1981_v14 = vld [vmem:[%s1969_s29] sm:$0xff]   ;;  %v443_v15 = vrot.slane %v1591_v3, 1  ;;  %v444_v16 = vrot.slane %v1592_v4, 1  ;;  %v2009_v47 = vld [vmem:[%s1969_s29 + $0x8] sm:$0xff]   ;;  %v2018_v55 = vld [vmem:[%s1961_s26 + $0x10] sm:$0xff]  }
  0x12   : > { %v446_v17 = vrot.slane %v1595_v5, 1  ;;  %v447_v18 = vrot.slane %v1596_v6, 1  ;;  %v1986_v22 = vunpack.c.h.bf16 %v1838_v9  ;;  %v1660_v29 = vunpack.c.h.bf16 %v1975_v8 }
  0x13   : > { %v1159_v20 = vrot.slane %v1719_v12, 1  ;;  %v445_v24 = vsel %vm442_vm0, %v443_v15, %v444_v16  ;;  %v1993_v26 = vrot.slane %v1720_v13, 1  ;;  %v519_v27 = vmax.f32 %v1592_v4, %v444_v16 }
  0x14   : > { %v448_v25 = vsel %vm442_vm0, %v446_v17, %v447_v18  ;;  %v1779_v30 = vunpack.c.l.bf16 %v1981_v14  ;;  %v518_v31 = vmax.f32 %v1591_v3, %v445_v24  ;;  %v1780_v33 = vunpack.c.h.bf16 %v1981_v14  ;;  %v2029_v3 = vld [vmem:[%s1956_s23 + $0x18] sm:$0xff]  }
  0x15   : > { %v520_v32 = vmax.f32 %v1595_v5, %v448_v25  ;;  %v611_v34 = vmax.f32 %v519_v27, %v1596_v6  ;;  %v1723_v35 = vunpack.c.l.bf16 %v1989_v23  ;;  %v1724_v36 = vunpack.c.h.bf16 %v1989_v23  ;;  %v1840_v23 = vld [vmem:[%s1951_s20 + $0x20] sm:$0xff]   ;;  %v2071_v14 = vld [vmem:[%s1961_s26 + $0x18] sm:$0xff]  }
  0x16   : > { %v610_v37 = vmax.f32 %v518_v31, %v1595_v5  ;;  %v1663_v38 = vunpack.c.l.bf16 %v1996_v28  ;;  %v449_v39 = vrot.slane %v1599_v21, 1  ;;  %v450_v40 = vrot.slane %v1986_v22, 1 }
  0x17   : > { %v1161_v42 = vsel %vm442_vm0, %v1159_v20, %v1993_v26  ;;  %v708_v43 = vmax.f32 %v611_v34, %v447_v18  ;;  %v612_v44 = vmax.f32 %v520_v32, %v1599_v21  ;;  %v1162_v45 = vrot.slane %v1723_v35, 1  ;;  %v1419_v32 = vld [vmem:[%s2045_s7 + $0x4] sm:$0xf] }
  0x18   : > { %v707_v46 = vmax.f32 %v610_v37, %v448_v25  ;;  %v451_v48 = vsel %vm442_vm0, %v449_v39, %v450_v40  ;;  %v2012_v49 = vrot.slane %v1724_v36, 1  ;;  %v521_v50 = vmax.f32 %v1596_v6, %v447_v18 }
  0x19   : > { %v828_v51 = vmax.f32 %v708_v43, %v1656_v11  ;;  %v1664_v52 = vunpack.c.h.bf16 %v1996_v28  ;;  %v709_v53 = vmax.f32 %v612_v44, %v451_v48  ;;  %v2015_v54 = vunpack.c.l.bf16 %v1839_v41 }
  0x1a   : > { %v827_v56 = vmax.f32 %v707_v46, %v1655_v10  ;;  %v522_v57 = vmax.f32 %v1599_v21, %v451_v48  ;;  %v613_v58 = vmax.f32 %v521_v50, %v1986_v22  ;;  %v2021_v59 = vunpack.c.h.bf16 %v1839_v41 }
  0x1b   : > { %v920_v60 = vmax.f32 %v828_v51, %v1660_v29  ;;  %v1783_v61 = vunpack.c.l.bf16 %v2009_v47  ;;  %v1784_v62 = vunpack.c.h.bf16 %v2009_v47  ;;  %v829_v63 = vmax.f32 %v709_v53, %v1659_v19  ;;  %v1423_v51 = vld [vmem:[%s2045_s7 + $0xc] sm:$0xf] }
  0x1c   : > { %v919_v0 = vmax.f32 %v827_v56, %v1659_v19  ;;  %v1164_v1 = vsel %vm442_vm0, %v1162_v45, %v2012_v49  ;;  %v710_v2 = vmax.f32 %v613_v58, %v450_v40  ;;  %v1727_v4 = vunpack.c.l.bf16 %v2018_v55 }
  0x1d   : > { %v1040_v5 = vmax.f32 %v920_v60, %v1720_v13  ;;  %v921_v6 = vmax.f32 %v829_v63, %v1663_v38  ;;  %v1728_v8 = vunpack.c.h.bf16 %v2018_v55  ;;  %v452_v9 = vrot.slane %v2015_v54, 1  ;;  %v1841_v63 = vld [vmem:[%s1951_s20 + $0x28] sm:$0xff]  }
  0x1e   : > { %v1039_v10 = vmax.f32 %v919_v0, %v1719_v12  ;;  %v830_v11 = vmax.f32 %v710_v2, %v1660_v29  ;;  %v2039_v15 = vrot.slane %v2021_v59, 1  ;;  %v614_v16 = vmax.f32 %v522_v57, %v2015_v54  ;;  %v2103_v2 = vld [vmem:[%s1956_s23 + $0x20] sm:$0xff]  }
  0x1f   : > { %v1235_v13 = vmax.f32 %v1040_v5, %v1993_v26  ;;  %v1041_v17 = vmax.f32 %v921_v6, %v1723_v35  ;;  %v1667_v18 = vunpack.c.l.bf16 %v2029_v3  ;;  %v1668_v7 = vunpack.c.h.bf16 %v2029_v3  ;;  %v2140_v3 = vld [vmem:[%s1961_s26 + $0x28] sm:$0xff]  }
  0x20   : > { %v1234_v12 = vmax.f32 %v1039_v10, %v1161_v42  ;;  %v922_v19 = vmax.f32 %v830_v11, %v1664_v52  ;;  %v454_v20 = vsel %vm442_vm0, %v452_v9, %v2039_v15  ;;  %v523_v21 = vmax.f32 %v1986_v22, %v450_v40  ;;  %v1882_v42 = vld [vmem:[%s1969_s29 + $0x10] sm:$0xff]   ;;  %v1883_v9 = vld [vmem:[%s1969_s29 + $0x18] sm:$0xff]  }
  0x21   : > { %v1355_v24 = vmax.f32 %v1235_v13, %v1780_v33  ;;  %v1236_v25 = vmax.f32 %v1041_v17, %v1164_v1  ;;  %v711_v26 = vmax.f32 %v614_v16, %v454_v20  ;;  %v1165_v27 = vrot.slane %v1727_v4, 1  ;;  %v2112_v13 = vld [vmem:[%s1961_s26 + $0x20] sm:$0xff]  }
  0x22   : > { %v1354_v29 = vmax.f32 %v1234_v12, %v1779_v30  ;;  %v1042_v34 = vmax.f32 %v922_v19, %v1724_v36  ;;  %v1166_v35 = vrot.slane %v1728_v8, 1  ;;  %v615_v22 = vmax.f32 %v523_v21, %v2021_v59 }
  0x23   : > { %v1385_v33 = vpack.c.bf16 %v1355_v24, %v1355_v24  ;;  %v1356_v37 = vmax.f32 %v1236_v25, %v1783_v61  ;;  %v831_v39 = vmax.f32 %v711_v26, %v1663_v38  ;;  %v2068_v40 = vunpack.c.l.bf16 %v1840_v23  ;;  %v2122_v26 = vld [vmem:[%s1956_s23 + $0x28] sm:$0xff]  }
  0x24   : > { %v1384_v30 = vpack.c.bf16 %v1354_v29, %v1354_v29  ;;  %v1237_v41 = vmax.f32 %v1042_v34, %v2012_v49  ;;  %v712_v36 = vmax.f32 %v615_v22, %v2039_v15  ;;  %v2076_v43 = vunpack.c.h.bf16 %v1840_v23  ;;  %v1427_v29 = vld [vmem:[%s2045_s7 + $0x14] sm:$0xf] }
  0x25   : > { %v1420_v44 = vsel %vm2060_vm3, %v1385_v33, %v1419_v32  ;;  %v1386_v45 = vpack.c.bf16 %v1356_v37, %v1356_v37  ;;  %v524_v38 = vmax.f32 %v2015_v54, %v454_v20  ;;  %v923_v46 = vmax.f32 %v831_v39, %v1667_v18 }
  0x26   : > { %1415 = vst.msk [vmem:[%s2045_s7] sm:$0xf] %vm1414_vm1, %v1384_v30  ;;  %v1357_v47 = vmax.f32 %v1237_v41, %v1784_v62  ;;  %v1167_v48 = vsel %vm442_vm0, %v1165_v27, %v1166_v35  ;;  %v832_v49 = vmax.f32 %v712_v36, %v1664_v52  ;;  %v1731_v50 = vunpack.c.l.bf16 %v2071_v14 }
  0x27   : > { %1421 = vst [vmem:[%s2045_s7 + $0x4] sm:$0xf] %v1420_v44  ;;  %v1787_v53 = vunpack.c.l.bf16 %v1882_v42  ;;  %v1043_v55 = vmax.f32 %v923_v46, %v1727_v4  ;;  %v1732_v54 = vunpack.c.h.bf16 %v2071_v14  ;;  %v455_v28 = vrot.slane %v2068_v40, 1  ;;  %v1884_v46 = vld [vmem:[%s1969_s29 + $0x20] sm:$0xff]  }
  0x28   : > { %1422 = vst.msk [vmem:[%s2045_s7 + $0x8] sm:$0xf] %vm1414_vm1, %v1386_v45  ;;  %v1387_v56 = vpack.c.bf16 %v1357_v47, %v1357_v47  ;;  %v924_v57 = vmax.f32 %v832_v49, %v1668_v7  ;;  %v456_v52 = vrot.slane %v2076_v43, 1  ;;  %v1788_v58 = vunpack.c.h.bf16 %v1882_v42 }
  0x29   : > { %v1238_v60 = vmax.f32 %v1043_v55, %v1167_v48  ;;  %v616_v61 = vmax.f32 %v524_v38, %v2068_v40  ;;  %v1168_v62 = vrot.slane %v1731_v50, 1  ;;  %v525_v5 = vmax.f32 %v2021_v59, %v2039_v15 }
  0x2a   : > { %v1424_v0 = vsel %vm2060_vm3, %v1387_v56, %v1423_v51  ;;  %v1044_v1 = vmax.f32 %v924_v57, %v1728_v8  ;;  %v457_v4 = vsel %vm442_vm0, %v455_v28, %v456_v52  ;;  %v1169_v16 = vrot.slane %v1732_v54, 1 }
  0x2b   : > { %1425 = vst [vmem:[%s2045_s7 + $0xc] sm:$0xf] %v1424_v0  ;;  %v1358_v6 = vmax.f32 %v1238_v60, %v1787_v53  ;;  %v526_v10 = vmax.f32 %v2068_v40, %v457_v4  ;;  %v713_v11 = vmax.f32 %v616_v61, %v457_v4  ;;  %v617_v17 = vmax.f32 %v525_v5, %v2076_v43  ;;  %v1842_v40 = vld [vmem:[%s1951_s20 + $0x30] sm:$0xff]  }
  0x2c   : > { %v1239_v8 = vmax.f32 %v1044_v1, %v1166_v35  ;;  %v1611_v12 = vunpack.c.l.bf16 %v1841_v63  ;;  %v2115_v19 = vunpack.c.h.bf16 %v1841_v63  ;;  %v1671_v59 = vunpack.c.l.bf16 %v2103_v2  ;;  %v2155_v4 = vld [vmem:[%s1956_s23 + $0x30] sm:$0xff]  }
  0x2d   : > { %v1388_v20 = vpack.c.bf16 %v1358_v6, %v1358_v6  ;;  %v1672_v15 = vunpack.c.h.bf16 %v2103_v2  ;;  %v833_v21 = vmax.f32 %v713_v11, %v1667_v18  ;;  %v1791_v24 = vunpack.c.l.bf16 %v1883_v9 }
  0x2e   : > { %v1359_v23 = vmax.f32 %v1239_v8, %v1788_v58  ;;  %v714_v25 = vmax.f32 %v617_v17, %v456_v52  ;;  %v1735_v27 = vunpack.c.l.bf16 %v2112_v13  ;;  %v1170_v34 = vsel %vm442_vm0, %v1168_v62, %v1169_v16 }
  0x2f   : > { %1426 = vst.msk [vmem:[%s2045_s7 + $0x10] sm:$0xf] %vm1414_vm1, %v1388_v20  ;;  %v925_v32 = vmax.f32 %v833_v21, %v1671_v59  ;;  %v1736_v35 = vunpack.c.h.bf16 %v2112_v13  ;;  %v458_v22 = vrot.slane %v1611_v12, 1  ;;  %v459_v37 = vrot.slane %v2115_v19, 1 }
  0x30   : > { %v1389_v18 = vpack.c.bf16 %v1359_v23, %v1359_v23  ;;  %v834_v33 = vmax.f32 %v714_v25, %v1668_v7  ;;  %v618_v39 = vmax.f32 %v526_v10, %v1611_v12  ;;  %v1792_v14 = vunpack.c.h.bf16 %v1883_v9  ;;  %v1843_v9 = vld [vmem:[%s1951_s20 + $0x38] sm:$0xff]   ;;  %v1885_v23 = vld [vmem:[%s1969_s29 + $0x28] sm:$0xff]  }
  0x31   : > { %v1045_v30 = vmax.f32 %v925_v32, %v1731_v50  ;;  %v1675_v41 = vunpack.c.l.bf16 %v2122_v26  ;;  %v527_v42 = vmax.f32 %v2076_v43, %v456_v52  ;;  %v460_v45 = vsel %vm442_vm0, %v458_v22, %v459_v37  ;;  %v1431_v10 = vld [vmem:[%s2045_s7 + $0x1c] sm:$0xf]  ;;  %v2179_v32 = vld [vmem:[%s1961_s26 + $0x30] sm:$0xff]  }
  0x32   : > { %v1428_v36 = vsel %vm2060_vm3, %v1389_v18, %v1427_v29  ;;  %v926_v44 = vmax.f32 %v834_v33, %v1672_v15  ;;  %v1171_v38 = vrot.slane %v1735_v27, 1  ;;  %v715_v47 = vmax.f32 %v618_v39, %v460_v45 }
  0x33   : > { %1429 = vst [vmem:[%s2045_s7 + $0x14] sm:$0xf] %v1428_v36  ;;  %v1240_v7 = vmax.f32 %v1045_v30, %v1170_v34  ;;  %v1172_v48 = vrot.slane %v1736_v35, 1  ;;  %v2144_v49 = vunpack.c.l.bf16 %v1842_v40  ;;  %v528_v51 = vmax.f32 %v1611_v12, %v460_v45 }
  0x34   : > { %v1046_v50 = vmax.f32 %v926_v44, %v1732_v54  ;;  %v619_v43 = vmax.f32 %v527_v42, %v2115_v19  ;;  %v2147_v53 = vunpack.c.h.bf16 %v1842_v40  ;;  %v1676_v56 = vunpack.c.h.bf16 %v2122_v26 }
  0x35   : > { %v1360_v55 = vmax.f32 %v1240_v7, %v1791_v24  ;;  %v835_v57 = vmax.f32 %v715_v47, %v1671_v59  ;;  %v1739_v28 = vunpack.c.l.bf16 %v2140_v3  ;;  %v1795_v58 = vunpack.c.l.bf16 %v1884_v46 }
  0x36   : > { %v1241_v52 = vmax.f32 %v1046_v50, %v1169_v16  ;;  %v716_v60 = vmax.f32 %v619_v43, %v459_v37  ;;  %v1740_v54 = vunpack.c.h.bf16 %v2140_v3  ;;  %v1173_v63 = vsel %vm442_vm0, %v1171_v38, %v1172_v48 }
  0x37   : > { %v1390_v61 = vpack.c.bf16 %v1360_v55, %v1360_v55  ;;  %v927_v62 = vmax.f32 %v835_v57, %v1675_v41  ;;  %v461_v0 = vrot.slane %v2144_v49, 1  ;;  %v462_v5 = vrot.slane %v2147_v53, 1 }
  0x38   : > { %v1361_v1 = vmax.f32 %v1241_v52, %v1792_v14  ;;  %v836_v2 = vmax.f32 %v716_v60, %v1672_v15  ;;  %v620_v6 = vmax.f32 %v528_v51, %v2144_v49  ;;  %v1796_v11 = vunpack.c.h.bf16 %v1884_v46  ;;  %v2187_v14 = vld [vmem:[%s1956_s23 + $0x38] sm:$0xff]   ;;  %v1435_v46 = vld [vmem:[%s2045_s7 + $0x24] sm:$0xf] }
  0x39   : > { %1430 = vst.msk [vmem:[%s2045_s7 + $0x18] sm:$0xf] %vm1414_vm1, %v1390_v61  ;;  %v1047_v16 = vmax.f32 %v927_v62, %v1735_v27  ;;  %v1174_v13 = vrot.slane %v1739_v28, 1  ;;  %v529_v8 = vmax.f32 %v2115_v19, %v459_v37  ;;  %v463_v20 = vsel %vm442_vm0, %v461_v0, %v462_v5  ;;  %v1844_v51 = vld [vmem:[%s1951_s20 + $0x40] sm:$0xff]  }
  0x3a   : > { %v1391_v17 = vpack.c.bf16 %v1361_v1, %v1361_v1  ;;  %v928_v12 = vmax.f32 %v836_v2, %v1676_v56  ;;  %v2167_v59 = vrot.slane %v1740_v54, 1  ;;  %v1679_v21 = vunpack.c.l.bf16 %v2155_v4  ;;  %v2215_v2 = vld [vmem:[%s1961_s26 + $0x38] sm:$0xff]  }
  0x3b   : > { %v1242_v15 = vmax.f32 %v1047_v16, %v1173_v63  ;;  %v717_v24 = vmax.f32 %v620_v6, %v463_v20  ;;  %v2171_v25 = vunpack.c.l.bf16 %v1843_v9  ;;  %v621_v27 = vmax.f32 %v529_v8, %v2147_v53 }
  0x3c   : > { %v1432_v26 = vsel %vm2060_vm3, %v1391_v17, %v1431_v10  ;;  %v1048_v19 = vmax.f32 %v928_v12, %v1736_v35  ;;  %v2176_v29 = vunpack.c.h.bf16 %v1843_v9  ;;  %v1680_v22 = vunpack.c.h.bf16 %v2155_v4 }
  0x3d   : > { %1433 = vst [vmem:[%s2045_s7 + $0x1c] sm:$0xf] %v1432_v26  ;;  %v1362_v34 = vmax.f32 %v1242_v15, %v1795_v58  ;;  %v530_v18 = vmax.f32 %v2144_v49, %v463_v20  ;;  %v837_v33 = vmax.f32 %v717_v24, %v1675_v41  ;;  %v1799_v39 = vunpack.c.l.bf16 %v1885_v23  ;;  %v2205_v58 = vld [vmem:[%s1969_s29 + $0x30] sm:$0xff]  }
  0x3e   : > { %v1243_v37 = vmax.f32 %v1048_v19, %v1172_v48  ;;  %v1176_v35 = vsel %vm442_vm0, %v1174_v13, %v2167_v59  ;;  %v718_v40 = vmax.f32 %v621_v27, %v462_v5  ;;  %v1743_v36 = vunpack.c.l.bf16 %v2179_v32  ;;  %v2228_v13 = vld [vmem:[%s1956_s23 + $0x40] sm:$0xff]   ;;  %v1845_v19 = vld [vmem:[%s1951_s20 + $0x48] sm:$0xff]  }
  0x3f   : > { %v1392_v30 = vpack.c.bf16 %v1362_v34, %v1362_v34  ;;  %v929_v42 = vmax.f32 %v837_v33, %v1679_v21  ;;  %v1744_v44 = vunpack.c.h.bf16 %v2179_v32  ;;  %v464_v41 = vrot.slane %v2171_v25, 1  ;;  %v2245_v33 = vld [vmem:[%s1969_s29 + $0x38] sm:$0xff]  }
  0x40   : > { %v1363_v45 = vmax.f32 %v1243_v37, %v1796_v11  ;;  %v838_v38 = vmax.f32 %v718_v40, %v1676_v56  ;;  %v2193_v7 = vrot.slane %v2176_v29, 1  ;;  %v1800_v47 = vunpack.c.h.bf16 %v1885_v23 }
  0x41   : > { %1434 = vst.msk [vmem:[%s2045_s7 + $0x20] sm:$0xf] %vm1414_vm1, %v1392_v30  ;;  %v1049_v48 = vmax.f32 %v929_v42, %v1739_v28  ;;  %v1683_v49 = vunpack.c.l.bf16 %v2187_v14  ;;  %v622_v50 = vmax.f32 %v530_v18, %v2171_v25  ;;  %v531_v57 = vmax.f32 %v2147_v53, %v462_v5 }
  0x42   : > { %v1393_v43 = vpack.c.bf16 %v1363_v45, %v1363_v45  ;;  %v930_v55 = vmax.f32 %v838_v38, %v1680_v22  ;;  %v466_v56 = vsel %vm442_vm0, %v464_v41, %v2193_v7  ;;  %v1177_v61 = vrot.slane %v1743_v36, 1  ;;  %v2257_v45 = vld [vmem:[%s1961_s26 + $0x40] sm:$0xff]  }
  0x43   : > { %v1244_v52 = vmax.f32 %v1049_v48, %v1176_v35  ;;  %v719_v60 = vmax.f32 %v622_v50, %v466_v56  ;;  %v1178_v28 = vrot.slane %v1744_v44, 1  ;;  %v623_v0 = vmax.f32 %v531_v57, %v2176_v29 }
  0x44   : > { %v1436_v62 = vsel %vm2060_vm3, %v1393_v43, %v1435_v46  ;;  %v1050_v63 = vmax.f32 %v930_v55, %v1740_v54  ;;  %v2212_v1 = vunpack.c.l.bf16 %v1844_v51  ;;  %v532_v4 = vmax.f32 %v2171_v25, %v466_v56  ;;  %v2269_v43 = vld [vmem:[%s1956_s23 + $0x48] sm:$0xff]  }
  0x45   : > { %1437 = vst [vmem:[%s2045_s7 + $0x24] sm:$0xf] %v1436_v62  ;;  %v1364_v53 = vmax.f32 %v1244_v52, %v1799_v39  ;;  %v839_v5 = vmax.f32 %v719_v60, %v1679_v21  ;;  %v2219_v6 = vunpack.c.h.bf16 %v1844_v51  ;;  %v1684_v3 = vunpack.c.h.bf16 %v2187_v14  ;;  %v1439_v21 = vld [vmem:[%s2045_s7 + $0x2c] sm:$0xf]  ;;  %v1443_v14 = vld [vmem:[%s2045_s7 + $0x34] sm:$0xf] }
  0x46   : > { %v1245_v9 = vmax.f32 %v1050_v63, %v2167_v59  ;;  %v1803_v54 = vunpack.c.l.bf16 %v2205_v58  ;;  %v720_v10 = vmax.f32 %v623_v0, %v2193_v7  ;;  %v1747_v8 = vunpack.c.l.bf16 %v2215_v2  ;;  %v1846_v63 = vld [vmem:[%s1951_s20 + $0x50] sm:$0xff]  }
  0x47   : > { %v1394_v11 = vpack.c.bf16 %v1364_v53, %v1364_v53  ;;  %v931_v16 = vmax.f32 %v839_v5, %v1683_v49  ;;  %v1748_v17 = vunpack.c.h.bf16 %v2215_v2  ;;  %v1179_v20 = vsel %vm442_vm0, %v1177_v61, %v1178_v28 }
  0x48   : > { %v1365_v12 = vmax.f32 %v1245_v9, %v1800_v47  ;;  %v840_v59 = vmax.f32 %v720_v10, %v1680_v22  ;;  %v467_v15 = vrot.slane %v2212_v1, 1  ;;  %v1804_v23 = vunpack.c.h.bf16 %v2205_v58 }
  0x49   : > { %1438 = vst.msk [vmem:[%s2045_s7 + $0x28] sm:$0xf] %vm1414_vm1, %v1394_v11  ;;  %v1051_v24 = vmax.f32 %v931_v16, %v1743_v36  ;;  %v468_v25 = vrot.slane %v2219_v6, 1  ;;  %v624_v26 = vmax.f32 %v532_v4, %v2212_v1  ;;  %v1687_v34 = vunpack.c.l.bf16 %v2228_v13 }
  0x4a   : > { %v1395_v27 = vpack.c.bf16 %v1365_v12, %v1365_v12  ;;  %v932_v32 = vmax.f32 %v840_v59, %v1684_v3  ;;  %v533_v22 = vmax.f32 %v2176_v29, %v2193_v7  ;;  %v1180_v39 = vrot.slane %v1747_v8, 1 }
  0x4b   : > { %v1246_v18 = vmax.f32 %v1051_v24, %v1179_v20  ;;  %v469_v37 = vsel %vm442_vm0, %v467_v15, %v468_v25  ;;  %v2250_v35 = vrot.slane %v1748_v17, 1  ;;  %v2254_v36 = vunpack.c.l.bf16 %v1845_v19 }
  0x4c   : > { %v1440_v40 = vsel %vm2060_vm3, %v1395_v27, %v1439_v21  ;;  %v1052_v30 = vmax.f32 %v932_v32, %v1744_v44  ;;  %v721_v42 = vmax.f32 %v624_v26, %v469_v37  ;;  %v534_v38 = vmax.f32 %v2212_v1, %v469_v37 }
  0x4d   : > { %1441 = vst [vmem:[%s2045_s7 + $0x2c] sm:$0xf] %v1440_v40  ;;  %v1366_v29 = vmax.f32 %v1246_v18, %v1803_v54  ;;  %v625_v41 = vmax.f32 %v533_v22, %v2219_v6  ;;  %v2262_v7 = vunpack.c.h.bf16 %v1845_v19  ;;  %v1688_v47 = vunpack.c.h.bf16 %v2228_v13  ;;  %v1888_v13 = vld [vmem:[%s1969_s29 + $0x40] sm:$0xff]   ;;  %v1847_v40 = vld [vmem:[%s1951_s20 + $0x58] sm:$0xff]  }
  0x4e   : > { %v1247_v46 = vmax.f32 %v1052_v30, %v1178_v28  ;;  %v1807_v44 = vunpack.c.l.bf16 %v2245_v33  ;;  %v841_v48 = vmax.f32 %v721_v42, %v1683_v49  ;;  %v1751_v55 = vunpack.c.l.bf16 %v2257_v45  ;;  %v1447_v30 = vld [vmem:[%s2045_s7 + $0x3c] sm:$0xf] }
  0x4f   : > { %v1396_v50 = vpack.c.bf16 %v1366_v29, %v1366_v29  ;;  %v722_v51 = vmax.f32 %v625_v41, %v468_v25  ;;  %v1752_v56 = vunpack.c.h.bf16 %v2257_v45  ;;  %v1808_v52 = vunpack.c.h.bf16 %v2245_v33 }
  0x50   : > { %v1367_v57 = vmax.f32 %v1247_v46, %v1804_v23  ;;  %v933_v58 = vmax.f32 %v841_v48, %v1687_v34  ;;  %v470_v60 = vrot.slane %v2254_v36, 1  ;;  %v1182_v49 = vsel %vm442_vm0, %v1180_v39, %v2250_v35 }
  0x51   : > { %1442 = vst.msk [vmem:[%s2045_s7 + $0x30] sm:$0xf] %vm1414_vm1, %v1396_v50  ;;  %v842_v61 = vmax.f32 %v722_v51, %v1684_v3  ;;  %v471_v28 = vrot.slane %v2262_v7, 1  ;;  %v626_v62 = vmax.f32 %v534_v38, %v2254_v36  ;;  %v1691_v53 = vunpack.c.l.bf16 %v2269_v43  ;;  %v2291_v3 = vld [vmem:[%s1961_s26 + $0x48] sm:$0xff]  }
  0x52   : > { %v1397_v0 = vpack.c.bf16 %v1367_v57, %v1367_v57  ;;  %v1053_v1 = vmax.f32 %v933_v58, %v1747_v8  ;;  %v535_v4 = vmax.f32 %v2219_v6, %v468_v25  ;;  %v1183_v54 = vrot.slane %v1751_v55, 1  ;;  %v1889_v51 = vld [vmem:[%s1969_s29 + $0x48] sm:$0xff]  }
  0x53   : > { %v934_v5 = vmax.f32 %v842_v61, %v1688_v47  ;;  %v472_v9 = vsel %vm442_vm0, %v470_v60, %v471_v28  ;;  %v2288_v10 = vrot.slane %v1752_v56, 1  ;;  %v2296_v12 = vunpack.c.l.bf16 %v1846_v63  ;;  %v2339_v60 = vld [vmem:[%s1961_s26 + $0x50] sm:$0xff]  }
  0x54   : > { %v1444_v11 = vsel %vm2060_vm3, %v1397_v0, %v1443_v14  ;;  %v1248_v16 = vmax.f32 %v1053_v1, %v1182_v49  ;;  %v723_v8 = vmax.f32 %v626_v62, %v472_v9  ;;  %v536_v20 = vmax.f32 %v2254_v36, %v472_v9  ;;  %v2348_v0 = vld [vmem:[%s1956_s23 + $0x58] sm:$0xff]  }
  0x55   : > { %1445 = vst [vmem:[%s2045_s7 + $0x34] sm:$0xf] %v1444_v11  ;;  %v1054_v6 = vmax.f32 %v934_v5, %v1748_v17  ;;  %v627_v59 = vmax.f32 %v535_v4, %v2262_v7  ;;  %v2303_v15 = vunpack.c.h.bf16 %v1846_v63  ;;  %v1692_v23 = vunpack.c.h.bf16 %v2269_v43 }
  0x56   : > { %v1368_v21 = vmax.f32 %v1248_v16, %v1807_v44  ;;  %v843_v24 = vmax.f32 %v723_v8, %v1687_v34  ;;  %v1755_v25 = vunpack.c.l.bf16 %v2291_v3  ;;  %v1811_v2 = vunpack.c.l.bf16 %v1888_v13  ;;  %v2313_v34 = vld [vmem:[%s1956_s23 + $0x50] sm:$0xff]   ;;  %v1451_v16 = vld [vmem:[%s2045_s7 + $0x44] sm:$0xf] }
  0x57   : > { %v1249_v26 = vmax.f32 %v1054_v6, %v2250_v35  ;;  %v724_v17 = vmax.f32 %v627_v59, %v471_v28  ;;  %v1756_v19 = vunpack.c.h.bf16 %v2291_v3  ;;  %v1185_v22 = vsel %vm442_vm0, %v1183_v54, %v2288_v10 }
  0x58   : > { %v1398_v27 = vpack.c.bf16 %v1368_v21, %v1368_v21  ;;  %v935_v32 = vmax.f32 %v843_v24, %v1691_v53  ;;  %v473_v18 = vrot.slane %v2296_v12, 1  ;;  %v474_v39 = vrot.slane %v2303_v15, 1 }
  0x59   : > { %v1369_v33 = vmax.f32 %v1249_v26, %v1808_v52  ;;  %v844_v37 = vmax.f32 %v724_v17, %v1688_v47  ;;  %v628_v35 = vmax.f32 %v536_v20, %v2296_v12  ;;  %v1812_v42 = vunpack.c.h.bf16 %v1888_v13  ;;  %v1848_v20 = vld [vmem:[%s1951_s20 + $0x60] sm:$0xff]  }
  0x5a   : > { %1446 = vst.msk [vmem:[%s2045_s7 + $0x38] sm:$0xf] %vm1414_vm1, %v1398_v27  ;;  %v1055_v36 = vmax.f32 %v935_v32, %v1751_v55  ;;  %v1186_v29 = vrot.slane %v1755_v25, 1  ;;  %v537_v38 = vmax.f32 %v2262_v7, %v471_v28  ;;  %v475_v47 = vsel %vm442_vm0, %v473_v18, %v474_v39 }
  0x5b   : > { %v1399_v41 = vpack.c.bf16 %v1369_v33, %v1369_v33  ;;  %v936_v46 = vmax.f32 %v844_v37, %v1692_v23  ;;  %v2325_v44 = vrot.slane %v1756_v19, 1  ;;  %v1695_v50 = vunpack.c.l.bf16 %v2313_v34  ;;  %v2373_v33 = vld [vmem:[%s1961_s26 + $0x58] sm:$0xff]  }
  0x5c   : > { %v1250_v48 = vmax.f32 %v1055_v36, %v1185_v22  ;;  %v725_v43 = vmax.f32 %v628_v35, %v475_v47  ;;  %v2329_v55 = vunpack.c.l.bf16 %v1847_v40  ;;  %v629_v52 = vmax.f32 %v537_v38, %v2303_v15 }
  0x5d   : > { %v1448_v57 = vsel %vm2060_vm3, %v1399_v41, %v1447_v30  ;;  %v1056_v7 = vmax.f32 %v936_v46, %v1752_v56  ;;  %v2336_v58 = vunpack.c.h.bf16 %v1847_v40  ;;  %v1696_v49 = vunpack.c.h.bf16 %v2313_v34 }
  0x5e   : > { %1449 = vst [vmem:[%s2045_s7 + $0x3c] sm:$0xf] %v1448_v57  ;;  %v1370_v14 = vmax.f32 %v1250_v48, %v1811_v2  ;;  %v538_v61 = vmax.f32 %v2296_v12, %v475_v47  ;;  %v845_v28 = vmax.f32 %v725_v43, %v1691_v53  ;;  %v1815_v63 = vunpack.c.l.bf16 %v1889_v51 }
  0x5f   : > { %v1251_v62 = vmax.f32 %v1056_v7, %v2288_v10  ;;  %v1188_v45 = vsel %vm442_vm0, %v1186_v29, %v2325_v44  ;;  %v726_v56 = vmax.f32 %v629_v52, %v474_v39  ;;  %v1759_v5 = vunpack.c.l.bf16 %v2339_v60 }
  0x60   : > { %v1400_v1 = vpack.c.bf16 %v1370_v14, %v1370_v14  ;;  %v937_v4 = vmax.f32 %v845_v28, %v1695_v50  ;;  %v1760_v9 = vunpack.c.h.bf16 %v2339_v60  ;;  %v476_v53 = vrot.slane %v2329_v55, 1 }
  0x61   : > { %v1371_v54 = vmax.f32 %v1251_v62, %v1812_v42  ;;  %v846_v11 = vmax.f32 %v726_v56, %v1692_v23  ;;  %v2354_v10 = vrot.slane %v2336_v58, 1  ;;  %v1816_v13 = vunpack.c.h.bf16 %v1889_v51 }
  0x62   : > { %1450 = vst.msk [vmem:[%s2045_s7 + $0x40] sm:$0xf] %vm1414_vm1, %v1400_v1  ;;  %v1057_v8 = vmax.f32 %v937_v4, %v1755_v25  ;;  %v1699_v12 = vunpack.c.l.bf16 %v2348_v0  ;;  %v630_v6 = vmax.f32 %v538_v61, %v2329_v55  ;;  %v539_v24 = vmax.f32 %v2303_v15, %v474_v39  ;;  %v2410_v4 = vld [vmem:[%s1961_s26 + $0x60] sm:$0xff]  }
  0x63   : > { %v1401_v59 = vpack.c.bf16 %v1371_v54, %v1371_v54  ;;  %v938_v21 = vmax.f32 %v846_v11, %v1696_v49  ;;  %v478_v23 = vsel %vm442_vm0, %v476_v53, %v2354_v10  ;;  %v1189_v17 = vrot.slane %v1759_v5, 1 }
  0x64   : > { %v1252_v26 = vmax.f32 %v1057_v8, %v1188_v45  ;;  %v727_v2 = vmax.f32 %v630_v6, %v478_v23  ;;  %v1190_v27 = vrot.slane %v1760_v9, 1  ;;  %v631_v22 = vmax.f32 %v539_v24, %v2336_v58 }
  0x65   : > { %v1452_v25 = vsel %vm2060_vm3, %v1401_v59, %v1451_v16  ;;  %v1058_v32 = vmax.f32 %v938_v21, %v1756_v19  ;;  %v2370_v18 = vunpack.c.l.bf16 %v1848_v20  ;;  %v540_v15 = vmax.f32 %v2329_v55, %v478_v23  ;;  %v1890_v19 = vld [vmem:[%s1969_s29 + $0x50] sm:$0xff]   ;;  %v1849_v55 = vld [vmem:[%s1951_s20 + $0x68] sm:$0xff]  }
  0x66   : > { %1453 = vst [vmem:[%s2045_s7 + $0x44] sm:$0xf] %v1452_v25  ;;  %v1372_v37 = vmax.f32 %v1252_v26, %v1815_v63  ;;  %v847_v34 = vmax.f32 %v727_v2, %v1695_v50  ;;  %v2377_v39 = vunpack.c.h.bf16 %v1848_v20  ;;  %v1700_v3 = vunpack.c.h.bf16 %v2348_v0  ;;  %v1459_v2 = vld [vmem:[%s2045_s7 + $0x54] sm:$0xf] }
  0x67   : > { %v1253_v35 = vmax.f32 %v1058_v32, %v2325_v44  ;;  %v728_v40 = vmax.f32 %v631_v22, %v2354_v10  ;;  %v1763_v36 = vunpack.c.l.bf16 %v2373_v33  ;;  %v1764_v29 = vunpack.c.h.bf16 %v2373_v33  ;;  %v1455_v44 = vld [vmem:[%s2045_s7 + $0x4c] sm:$0xf]  ;;  %v1850_v25 = vld [vmem:[%s1951_s20 + $0x70] sm:$0xff]  }
  0x68   : > { %v1402_v30 = vpack.c.bf16 %v1372_v37, %v1372_v37  ;;  %v939_v42 = vmax.f32 %v847_v34, %v1699_v12  ;;  %v1191_v41 = vsel %vm442_vm0, %v1189_v17, %v1190_v27  ;;  %v479_v47 = vrot.slane %v2370_v18, 1  ;;  %v2435_v34 = vld [vmem:[%s1956_s23 + $0x68] sm:$0xff]  }
  0x69   : > { %v1373_v38 = vmax.f32 %v1253_v35, %v1816_v13  ;;  %v848_v46 = vmax.f32 %v728_v40, %v1696_v49  ;;  %v1819_v48 = vunpack.c.l.bf16 %v1890_v19  ;;  %v480_v51 = vrot.slane %v2377_v39, 1  ;;  %v2398_v49 = vld [vmem:[%s1956_s23 + $0x60] sm:$0xff]  }
  0x6a   : > { %1454 = vst.msk [vmem:[%s2045_s7 + $0x48] sm:$0xf] %vm1414_vm1, %v1402_v30  ;;  %v1059_v50 = vmax.f32 %v939_v42, %v1759_v5  ;;  %v632_v43 = vmax.f32 %v540_v15, %v2370_v18  ;;  %v1820_v7 = vunpack.c.h.bf16 %v1890_v19  ;;  %v541_v60 = vmax.f32 %v2336_v58, %v2354_v10  ;;  %v1891_v5 = vld [vmem:[%s1969_s29 + $0x58] sm:$0xff]  }
  0x6b   : > { %v1403_v57 = vpack.c.bf16 %v1373_v38, %v1373_v38  ;;  %v940_v52 = vmax.f32 %v848_v46, %v1700_v3  ;;  %v481_v61 = vsel %vm442_vm0, %v479_v47, %v480_v51  ;;  %v1192_v28 = vrot.slane %v1763_v36, 1 }
  0x6c   : > { %v1254_v14 = vmax.f32 %v1059_v50, %v1191_v41  ;;  %v2403_v62 = vrot.slane %v1764_v29, 1  ;;  %v729_v56 = vmax.f32 %v632_v43, %v481_v61  ;;  %v2407_v1 = vunpack.c.l.bf16 %v1849_v55 }
  0x6d   : > { %v1456_v63 = vsel %vm2060_vm3, %v1403_v57, %v1455_v44  ;;  %v1060_v45 = vmax.f32 %v940_v52, %v1760_v9  ;;  %v542_v54 = vmax.f32 %v2370_v18, %v481_v61  ;;  %v633_v11 = vmax.f32 %v541_v60, %v2377_v39 }
  0x6e   : > { %1457 = vst [vmem:[%s2045_s7 + $0x4c] sm:$0xf] %v1456_v63  ;;  %v1374_v58 = vmax.f32 %v1254_v14, %v1819_v48  ;;  %v2416_v53 = vunpack.c.h.bf16 %v1849_v55  ;;  %v1703_v16 = vunpack.c.l.bf16 %v2398_v49  ;;  %v1704_v9 = vunpack.c.h.bf16 %v2398_v49  ;;  %v1892_v55 = vld [vmem:[%s1969_s29 + $0x60] sm:$0xff]  }
  0x6f   : > { %v1255_v10 = vmax.f32 %v1060_v45, %v1190_v27  ;;  %v849_v13 = vmax.f32 %v729_v56, %v1699_v12  ;;  %v730_v6 = vmax.f32 %v633_v11, %v480_v51  ;;  %v1767_v20 = vunpack.c.l.bf16 %v2410_v4  ;;  %v1851_v45 = vld [vmem:[%s1951_s20 + $0x78] sm:$0xff]  }
  0x70   : > { %v1404_v8 = vpack.c.bf16 %v1374_v58, %v1374_v58  ;;  %v1768_v59 = vunpack.c.h.bf16 %v2410_v4  ;;  %v1823_v23 = vunpack.c.l.bf16 %v1891_v5  ;;  %v482_v26 = vrot.slane %v2407_v1, 1 }
  0x71   : > { %v1375_v21 = vmax.f32 %v1255_v10, %v1820_v7  ;;  %v941_v24 = vmax.f32 %v849_v13, %v1703_v16  ;;  %v1194_v0 = vsel %vm442_vm0, %v1192_v28, %v2403_v62  ;;  %v850_v17 = vmax.f32 %v730_v6, %v1700_v3  ;;  %v1865_v10 = vld [vmem:[%s1956_s23 + $0x70] sm:$0xff]  }
  0x72   : > { %1458 = vst.msk [vmem:[%s2045_s7 + $0x50] sm:$0xf] %vm1414_vm1, %v1404_v8  ;;  %v483_v12 = vrot.slane %v2416_v53, 1  ;;  %v634_v27 = vmax.f32 %v542_v54, %v2407_v1  ;;  %v1824_v22 = vunpack.c.h.bf16 %v1891_v5  ;;  %v543_v37 = vmax.f32 %v2377_v39, %v480_v51 }
  0x73   : > { %v1405_v32 = vpack.c.bf16 %v1375_v21, %v1375_v21  ;;  %v1061_v18 = vmax.f32 %v941_v24, %v1763_v36  ;;  %v942_v15 = vmax.f32 %v850_v17, %v1704_v9  ;;  %v1195_v19 = vrot.slane %v1767_v20, 1  ;;  %v2445_v36 = vld [vmem:[%s1961_s26 + $0x68] sm:$0xff]  }
  0x74   : > { %v484_v35 = vsel %vm442_vm0, %v482_v26, %v483_v12  ;;  %v2440_v3 = vrot.slane %v1768_v59, 1  ;;  %v1647_v38 = vunpack.c.l.bf16 %v1850_v25  ;;  %v635_v46 = vmax.f32 %v543_v37, %v2416_v53  ;;  %v1893_v24 = vld [vmem:[%s1969_s29 + $0x68] sm:$0xff]  }
  0x75   : > { %v1460_v40 = vsel %vm2060_vm3, %v1405_v32, %v1459_v2  ;;  %v1256_v30 = vmax.f32 %v1061_v18, %v1194_v0  ;;  %v731_v42 = vmax.f32 %v634_v27, %v484_v35  ;;  %v1062_v39 = vmax.f32 %v942_v15, %v1764_v29 }
  0x76   : > { %1461 = vst [vmem:[%s2045_s7 + $0x54] sm:$0xf] %v1460_v40  ;;  %v544_v41 = vmax.f32 %v2407_v1, %v484_v35  ;;  %v2452_v47 = vunpack.c.h.bf16 %v1850_v25  ;;  %v1707_v48 = vunpack.c.l.bf16 %v2435_v34  ;;  %v1708_v50 = vunpack.c.h.bf16 %v2435_v34  ;;  %v1866_v35 = vld [vmem:[%s1956_s23 + $0x78] sm:$0xff]  }
  0x77   : > { %v1376_v44 = vmax.f32 %v1256_v30, %v1823_v23  ;;  %v851_v51 = vmax.f32 %v731_v42, %v1703_v16  ;;  %v1257_v43 = vmax.f32 %v1062_v39, %v2403_v62  ;;  %v1197_v33 = vsel %vm442_vm0, %v1195_v19, %v2440_v3  ;;  %v1463_v62 = vld [vmem:[%s2045_s7 + $0x5c] sm:$0xf]  ;;  %v1467_v30 = vld [vmem:[%s2045_s7 + $0x64] sm:$0xf] }
  0x78   : > { %v732_v29 = vmax.f32 %v635_v46, %v483_v12  ;;  %v1771_v57 = vunpack.c.l.bf16 %v2445_v36  ;;  %v1772_v60 = vunpack.c.h.bf16 %v2445_v36  ;;  %v485_v14 = vrot.slane %v1647_v38, 1 }
  0x79   : > { %v1406_v7 = vpack.c.bf16 %v1376_v44, %v1376_v44  ;;  %v943_v52 = vmax.f32 %v851_v51, %v1707_v48  ;;  %v1377_v49 = vmax.f32 %v1257_v43, %v1824_v22  ;;  %v486_v28 = vrot.slane %v2452_v47, 1  ;;  %v1880_v22 = vld [vmem:[%s1961_s26 + $0x70] sm:$0xff]  }
  0x7a   : > { %v852_v61 = vmax.f32 %v732_v29, %v1704_v9  ;;  %v636_v63 = vmax.f32 %v544_v41, %v1647_v38  ;;  %v1827_v56 = vunpack.c.l.bf16 %v1892_v55  ;;  %v1828_v1 = vunpack.c.h.bf16 %v1892_v55 }
  0x7b   : > { %1462 = vst.msk [vmem:[%s2045_s7 + $0x58] sm:$0xf] %vm1414_vm1, %v1406_v7  ;;  %v1063_v58 = vmax.f32 %v943_v52, %v1767_v20  ;;  %v545_v5 = vmax.f32 %v2416_v53, %v483_v12  ;;  %v1407_v54 = vpack.c.bf16 %v1377_v49, %v1377_v49  ;;  %v487_v16 = vsel %vm442_vm0, %v485_v14, %v486_v28 }
  0x7c   : > { %v944_v11 = vmax.f32 %v852_v61, %v1708_v50  ;;  %v1198_v9 = vrot.slane %v1771_v57, 1  ;;  %v733_v8 = vmax.f32 %v636_v63, %v487_v16  ;;  %v1199_v6 = vrot.slane %v1772_v60, 1  ;;  %v1894_v63 = vld [vmem:[%s1969_s29 + $0x70] sm:$0xff]  }
  0x7d   : > { %v1258_v13 = vmax.f32 %v1063_v58, %v1197_v33  ;;  %v1651_v21 = vunpack.c.l.bf16 %v1851_v45  ;;  %v1464_v23 = vsel %vm2060_vm3, %v1407_v54, %v1463_v62  ;;  %v546_v26 = vmax.f32 %v1647_v38, %v487_v16 }
  0x7e   : > { %v1064_v20 = vmax.f32 %v944_v11, %v1768_v59  ;;  %v637_v53 = vmax.f32 %v545_v5, %v2452_v47  ;;  %1465 = vst [vmem:[%s2045_s7 + $0x5c] sm:$0xf] %v1464_v23  ;;  %v1711_v0 = vunpack.c.l.bf16 %v1865_v10  ;;  %v853_v17 = vmax.f32 %v733_v8, %v1707_v48 }
  0x7f   : > { %v1378_v2 = vmax.f32 %v1258_v13, %v1827_v56  ;;  %v1652_v12 = vunpack.c.h.bf16 %v1851_v45  ;;  %v1712_v25 = vunpack.c.h.bf16 %v1865_v10  ;;  %v1831_v4 = vunpack.c.l.bf16 %v1893_v24 }
  0x80   : > { %v1259_v27 = vmax.f32 %v1064_v20, %v2440_v3  ;;  %v734_v32 = vmax.f32 %v637_v53, %v486_v28  ;;  %v945_v59 = vmax.f32 %v853_v17, %v1711_v0  ;;  %v1200_v37 = vsel %vm442_vm0, %v1198_v9, %v1199_v6  ;;  %v1475_v20 = vld [vmem:[%s2045_s7 + $0x74] sm:$0xf] }
  0x81   : > { %v1408_v18 = vpack.c.bf16 %v1378_v2, %v1378_v2  ;;  %v638_v19 = vmax.f32 %v546_v26, %v1651_v21  ;;  %v702_v40 = vrot.slane %v1651_v21, 1  ;;  %v1775_v38 = vunpack.c.l.bf16 %v1880_v22 }
  0x82   : > { %v1379_v15 = vmax.f32 %v1259_v27, %v1828_v1  ;;  %v854_v34 = vmax.f32 %v734_v32, %v1708_v50  ;;  %v1065_v42 = vmax.f32 %v945_v59, %v1771_v57  ;;  %v1776_v3 = vunpack.c.h.bf16 %v1880_v22 }
  0x83   : > { %1466 = vst.msk [vmem:[%s2045_s7 + $0x60] sm:$0xf] %vm1414_vm1, %v1408_v18  ;;  %v703_v36 = vrot.slane %v1652_v12, 1  ;;  %v547_v46 = vmax.f32 %v2452_v47, %v486_v28  ;;  %v1832_v44 = vunpack.c.h.bf16 %v1893_v24  ;;  %v1715_v51 = vunpack.c.l.bf16 %v1866_v35 }
  0x84   : > { %v1409_v39 = vpack.c.bf16 %v1379_v15, %v1379_v15  ;;  %v946_v41 = vmax.f32 %v854_v34, %v1712_v25  ;;  %v1260_v48 = vmax.f32 %v1065_v42, %v1200_v37  ;;  %v1201_v7 = vrot.slane %v1775_v38, 1 }
  0x85   : > { %v704_v50 = vsel %vm442_vm0, %v702_v40, %v703_v36  ;;  %v639_v29 = vmax.f32 %v547_v46, %v1652_v12  ;;  %v1202_v52 = vrot.slane %v1776_v3, 1  ;;  %v1716_v47 = vunpack.c.h.bf16 %v1866_v35 }
  0x86   : > { %v1468_v43 = vsel %vm2060_vm3, %v1409_v39, %v1467_v30  ;;  %v1066_v55 = vmax.f32 %v946_v41, %v1772_v60  ;;  %v735_v33 = vmax.f32 %v638_v19, %v704_v50  ;;  %v1380_v57 = vmax.f32 %v1260_v48, %v1831_v4  ;;  %v1471_v60 = vld [vmem:[%s2045_s7 + $0x6c] sm:$0xf] }
  0x87   : > { %1469 = vst [vmem:[%s2045_s7 + $0x64] sm:$0xf] %v1468_v43  ;;  %v736_v61 = vmax.f32 %v639_v29, %v703_v36  ;;  %v1203_v1 = vsel %vm442_vm0, %v1201_v7, %v1202_v52  ;;  %v1835_v5 = vunpack.c.l.bf16 %v1894_v63  ;;  %v1836_v16 = vunpack.c.h.bf16 %v1894_v63 }
  0x88   : > { %v1261_v14 = vmax.f32 %v1066_v55, %v1199_v6  ;;  %v855_v49 = vmax.f32 %v735_v33, %v1711_v0  ;;  %v1410_v28 = vpack.c.bf16 %v1380_v57, %v1380_v57 }
  0x89   : > { %v856_v56 = vmax.f32 %v736_v61, %v1712_v25 }
  0x8a   : > { %v1381_v45 = vmax.f32 %v1261_v14, %v1832_v44  ;;  %v947_v62 = vmax.f32 %v855_v49, %v1715_v51  ;;  %1470 = vst.msk [vmem:[%s2045_s7 + $0x68] sm:$0xf] %vm1414_vm1, %v1410_v28 }
  0x8b   : > { %v948_v11 = vmax.f32 %v856_v56, %v1716_v47 }
  0x8c   : > { %v1411_v58 = vpack.c.bf16 %v1381_v45, %v1381_v45  ;;  %v1067_v54 = vmax.f32 %v947_v62, %v1775_v38 }
  0x8d   : > { %v1068_v13 = vmax.f32 %v948_v11, %v1776_v3 }
  0x8e   : > { %v1472_v10 = vsel %vm2060_vm3, %v1411_v58, %v1471_v60  ;;  %v1262_v9 = vmax.f32 %v1067_v54, %v1203_v1 }
  0x8f   : > { %1473 = vst [vmem:[%s2045_s7 + $0x6c] sm:$0xf] %v1472_v10  ;;  %v1263_v6 = vmax.f32 %v1068_v13, %v1202_v52 }
  0x90   : > { %v1382_v8 = vmax.f32 %v1262_v9, %v1835_v5 }
  0x91   : > { %v1383_v23 = vmax.f32 %v1263_v6, %v1836_v16 }
  0x92   : > { %v1412_v21 = vpack.c.bf16 %v1382_v8, %v1382_v8 }
  0x93   : > { %v1413_v24 = vpack.c.bf16 %v1383_v23, %v1383_v23 }
  0x94   : > { %1474 = vst.msk [vmem:[%s2045_s7 + $0x70] sm:$0xf] %vm1414_vm1, %v1412_v21 }
  0x95   : > { %v1476_v26 = vsel %vm2060_vm3, %v1413_v24, %v1475_v20 }
  0x96   : > { %1477 = vst [vmem:[%s2045_s7 + $0x74] sm:$0xf] %v1476_v26 }
  0x97 PF: > { %s14_s15 = sadd.s32 1, %s1910_s15  }
  0x98   : > { %p11_p4 = scmp.ge.s32.totalorder %s14_s15, 4  }
  0x9a   :  { %13 = sbr.rel (!%p11_p4) target bundleno = 1 (0x1), region = 75 }

// kernel: regressor_forward.24
= control target key start
LH: loop header
LB: loop body
LE: loop exit
PB: predicated region body
PF: predicated region fallthrough
CT: control target
= control target key end

     0   :  { %s790_s12 = smov 0   ;;  %s963_s0 = inlined_call_operand.vmem [shape: bf16[512,64], index: 0, kind: input, shape index: {}]   ;;  %s964_s1 = inlined_call_operand.vmem [shape: bf16[64,16], index: 1, kind: input, shape index: {}]   ;;  %s965_s2 = inlined_call_operand.vmem [shape: f32[1,16], index: 2, kind: input, shape index: {}]   ;;  %s966_s3 = inlined_call_operand.vmem [shape: bf16[512,16], index: 3, kind: output, shape index: {}]  }
   0x1 LB: > { %s614_s13 = sadd.s32 4294967295, %s768_s12   ;;  %p618_p0 = scmp.ge.s32.totalorder %s768_s12, 1  ;;  %s768_s12 = sphi %s790_s12, %s13_s12  }
   0x2   : > { %p138_p1 = scmp.lt.s32.totalorder %s768_s12, 3 }
   0x4   : > { %p139_p2 = pnand %p618_p0, %p138_p1 }
   0x5   : > { %s619_s16 = sshll.u32 (!%p139_p2), %s614_s13, 5 }
   0x6   : > { %142 = sbr.rel (%p139_p2) target bundleno = 224 (0xe0), region = 32  ;;  %p163_p3 = scmp.lt.s32.totalorder (!%p139_p2), %s619_s16, 63 }
   0xb   : > { %v740_v0 = vld [vmem:[%s964_s1 + $0x18] sm:$0xff]  ;;  %v739_v1 = vld [vmem:[%s964_s1 + $0x10] sm:$0xff]  ;;  %s968_s16 = smov (!%p163_p3, %s619_s16), 63  ;;  %v738_v2 = vld [vmem:[%s964_s1 + $0x8] sm:$0xff]  ;;  %vm323_vm0 = vcmask 523264   ;;  %vm525_vm1 = vcmask 125952  }
   0xc   : > { %376 = vmatpush.bf16.msra.mxu0 %v740_v0  ;;  %741 = vmatpush.bf16.msra.mxu1 %v740_v0  ;;  %s620_s21 = sshll.u32 %s968_s16, 2  ;;  %v737_v3 = vld [vmem:[%s964_s1] sm:$0xff] }
   0xd   : > { %742 = vmatpush.bf16.msra.mxu2 %v740_v0  ;;  %743 = vmatpush.bf16.msra.mxu3 %v740_v0  ;;  %s818_s26 = scalar_lea.vmem %s963_s0, %s620_s21  ;;  %v855_v20 = vld [vmem:[%s965_s2] ss:$0 sm:$0xff]  ;;  %s864_s4 = scalar_lea.vmem %s966_s3, %s620_s21 }
   0xe   : > { %v721_v4 = vld [vmem:[%s818_s26] sm:$0xff]  ;;  %v722_v8 = vld [vmem:[%s818_s26 + $0x8] sm:$0xff]  ;;  %v723_v12 = vld [vmem:[%s818_s26 + $0x10] sm:$0xff] }
   0xf   : > { %v725_v5 = vld [vmem:[%s818_s26 + $0x20] sm:$0xff]  ;;  %v726_v9 = vld [vmem:[%s818_s26 + $0x28] sm:$0xff]  ;;  %v727_v13 = vld [vmem:[%s818_s26 + $0x30] sm:$0xff] }
  0x10   : > { %377 = vmatpush.bf16.msra.mxu0 %v739_v1  ;;  %744 = vmatpush.bf16.msra.mxu1 %v739_v1  ;;  %v729_v6 = vld [vmem:[%s818_s26 + $0x40] sm:$0xff]  ;;  %v730_v10 = vld [vmem:[%s818_s26 + $0x48] sm:$0xff]  ;;  %v731_v14 = vld [vmem:[%s818_s26 + $0x50] sm:$0xff] }
  0x11   : > { %745 = vmatpush.bf16.msra.mxu2 %v739_v1  ;;  %746 = vmatpush.bf16.msra.mxu3 %v739_v1  ;;  %v733_v7 = vld [vmem:[%s818_s26 + $0x60] sm:$0xff]  ;;  %v734_v11 = vld [vmem:[%s818_s26 + $0x68] sm:$0xff]  ;;  %v735_v15 = vld [vmem:[%s818_s26 + $0x70] sm:$0xff] }
  0x12   : > { %v724_v16 = vld [vmem:[%s818_s26 + $0x18] sm:$0xff] }
  0x13   : > { %v728_v17 = vld [vmem:[%s818_s26 + $0x38] sm:$0xff] }
  0x14   : > { %378 = vmatpush.bf16.msra.mxu0 %v738_v2  ;;  %747 = vmatpush.bf16.msra.mxu1 %v738_v2  ;;  %v732_v18 = vld [vmem:[%s818_s26 + $0x58] sm:$0xff] }
  0x15   : > { %748 = vmatpush.bf16.msra.mxu2 %v738_v2  ;;  %749 = vmatpush.bf16.msra.mxu3 %v738_v2  ;;  %v736_v19 = vld [vmem:[%s818_s26 + $0x78] sm:$0xff] }
  0x18   : > { %379 = vmatpush.bf16.msra.mxu0 %v737_v3  ;;  %750 = vmatpush.bf16.msra.mxu1 %v737_v3 }
  0x19   : > { %751 = vmatpush.bf16.msra.mxu2 %v737_v3  ;;  %752 = vmatpush.bf16.msra.mxu3 %v737_v3 }
  0x1b   : > { %703 = vmatmul.msk.bf16.vlgmr.msra.gmra.mxu0 %vm323_vm0, %v721_v4  ;;  %707 = vmatmul.msk.bf16.vlgmr.msra.gmra.mxu1 %vm323_vm0, %v725_v5 }
  0x1c   : > { %711 = vmatmul.msk.bf16.vlgmr.msra.gmra.mxu2 %vm323_vm0, %v729_v6  ;;  %715 = vmatmul.msk.bf16.vlgmr.msra.gmra.mxu3 %vm323_vm0, %v733_v7 }
  0x2b   : > { %704 = vmatmul.msk.bf16.gmra.mxu0 %vm323_vm0, %v722_v8  ;;  %708 = vmatmul.msk.bf16.gmra.mxu1 %vm323_vm0, %v726_v9 }
  0x2c   : > { %712 = vmatmul.msk.bf16.gmra.mxu2 %vm323_vm0, %v730_v10  ;;  %716 = vmatmul.msk.bf16.gmra.mxu3 %vm323_vm0, %v734_v11 }
  0x3b   : > { %705 = vmatmul.msk.bf16.gmra.mxu0 %vm323_vm0, %v723_v12  ;;  %709 = vmatmul.msk.bf16.gmra.mxu1 %vm323_vm0, %v727_v13 }
  0x3c   : > { %713 = vmatmul.msk.bf16.gmra.mxu2 %vm323_vm0, %v731_v14  ;;  %717 = vmatmul.msk.bf16.gmra.mxu3 %vm323_vm0, %v735_v15 }
  0x4b   : > { %706 = vmatmul.msk.bf16.gmra.mxu0 %vm323_vm0, %v724_v16  ;;  %710 = vmatmul.msk.bf16.gmra.mxu1 %vm323_vm0, %v728_v17 }
  0x4c   : > { %714 = vmatmul.msk.bf16.gmra.mxu2 %vm323_vm0, %v732_v18  ;;  %718 = vmatmul.msk.bf16.gmra.mxu3 %vm323_vm0, %v736_v19 }
  0x98   : > { %v381_v21 = vpop.f32.mrf.mxu0  ;;  %v401_v22 = vpop.f32.mrf.mxu1 }
  0x99   : > { %v382_v23 = vadd.f32 %v855_v20, %v381_v21  ;;  %v402_v24 = vadd.f32 %v855_v20, %v401_v22 }
  0x9b   : > { %v461_v25 = vmax.f32 %v382_v23, 0.0  ;;  %v469_v26 = vmax.f32 %v402_v24, 0.0 }
  0x9d   : > { %v493_v27 = vpack.c.bf16 %v461_v25, %v461_v25  ;;  %v501_v28 = vpack.c.bf16 %v469_v26, %v469_v26 }
  0x9f   : > { %526 = vst.msk [vmem:[%s864_s4] sm:$0xf] %vm525_vm1, %v493_v27  ;;  %v421_v29 = vpop.f32.mrf.mxu2  ;;  %v441_v30 = vpop.f32.mrf.mxu3 }
  0xa0   : > { %534 = vst.msk [vmem:[%s864_s4 + $0x20] sm:$0xf] %vm525_vm1, %v501_v28  ;;  %v422_v31 = vadd.f32 %v855_v20, %v421_v29  ;;  %v442_v32 = vadd.f32 %v855_v20, %v441_v30  ;;  %v383_v33 = vpop.f32.mrf.mxu0  ;;  %v403_v34 = vpop.f32.mrf.mxu1 }
  0xa1   : > { %v384_v35 = vadd.f32 %v855_v20, %v383_v33  ;;  %v404_v36 = vadd.f32 %v855_v20, %v403_v34 }
  0xa2   : > { %v477_v37 = vmax.f32 %v422_v31, 0.0  ;;  %v485_v38 = vmax.f32 %v442_v32, 0.0 }
  0xa3   : > { %v462_v39 = vmax.f32 %v384_v35, 0.0  ;;  %v470_v40 = vmax.f32 %v404_v36, 0.0 }
  0xa4   : > { %v509_v41 = vpack.c.bf16 %v477_v37, %v477_v37  ;;  %v517_v42 = vpack.c.bf16 %v485_v38, %v485_v38 }
  0xa5   : > { %v494_v43 = vpack.c.bf16 %v462_v39, %v462_v39  ;;  %v502_v44 = vpack.c.bf16 %v470_v40, %v470_v40 }
  0xa6   : > { %542 = vst.msk [vmem:[%s864_s4 + $0x40] sm:$0xf] %vm525_vm1, %v509_v41 }
  0xa7   : > { %550 = vst.msk [vmem:[%s864_s4 + $0x60] sm:$0xf] %vm525_vm1, %v517_v42  ;;  %v423_v45 = vpop.f32.mrf.mxu2  ;;  %v443_v46 = vpop.f32.mrf.mxu3 }
  0xa8   : > { %527 = vst.msk [vmem:[%s864_s4 + $0x4] sm:$0xf] %vm525_vm1, %v494_v43  ;;  %v424_v47 = vadd.f32 %v855_v20, %v423_v45  ;;  %v444_v48 = vadd.f32 %v855_v20, %v443_v46  ;;  %v386_v49 = vpop.f32.mrf.mxu0  ;;  %v406_v50 = vpop.f32.mrf.mxu1 }
  0xa9   : > { %535 = vst.msk [vmem:[%s864_s4 + $0x24] sm:$0xf] %vm525_vm1, %v502_v44  ;;  %v387_v51 = vadd.f32 %v855_v20, %v386_v49  ;;  %v407_v52 = vadd.f32 %v855_v20, %v406_v50 }
  0xaa   : > { %v478_v53 = vmax.f32 %v424_v47, 0.0  ;;  %v486_v54 = vmax.f32 %v444_v48, 0.0 }
  0xab   : > { %v463_v55 = vmax.f32 %v387_v51, 0.0  ;;  %v471_v56 = vmax.f32 %v407_v52, 0.0 }
  0xac   : > { %v510_v57 = vpack.c.bf16 %v478_v53, %v478_v53  ;;  %v518_v58 = vpack.c.bf16 %v486_v54, %v486_v54 }
  0xad   : > { %v495_v59 = vpack.c.bf16 %v463_v55, %v463_v55  ;;  %v503_v60 = vpack.c.bf16 %v471_v56, %v471_v56 }
  0xae   : > { %543 = vst.msk [vmem:[%s864_s4 + $0x44] sm:$0xf] %vm525_vm1, %v510_v57 }
  0xaf   : > { %551 = vst.msk [vmem:[%s864_s4 + $0x64] sm:$0xf] %vm525_vm1, %v518_v58  ;;  %v426_v61 = vpop.f32.mrf.mxu2  ;;  %v446_v62 = vpop.f32.mrf.mxu3 }
  0xb0   : > { %528 = vst.msk [vmem:[%s864_s4 + $0x8] sm:$0xf] %vm525_vm1, %v495_v59  ;;  %v427_v63 = vadd.f32 %v855_v20, %v426_v61  ;;  %v447_v0 = vadd.f32 %v855_v20, %v446_v62  ;;  %v388_v1 = vpop.f32.mrf.mxu0  ;;  %v408_v2 = vpop.f32.mrf.mxu1 }
  0xb1   : > { %536 = vst.msk [vmem:[%s864_s4 + $0x28] sm:$0xf] %vm525_vm1, %v503_v60  ;;  %v389_v3 = vadd.f32 %v855_v20, %v388_v1  ;;  %v409_v4 = vadd.f32 %v855_v20, %v408_v2 }
  0xb2   : > { %v479_v5 = vmax.f32 %v427_v63, 0.0  ;;  %v487_v6 = vmax.f32 %v447_v0, 0.0 }
  0xb3   : > { %v464_v7 = vmax.f32 %v389_v3, 0.0  ;;  %v472_v8 = vmax.f32 %v409_v4, 0.0 }
  0xb4   : > { %v511_v9 = vpack.c.bf16 %v479_v5, %v479_v5  ;;  %v519_v10 = vpack.c.bf16 %v487_v6, %v487_v6 }
  0xb5   : > { %v496_v11 = vpack.c.bf16 %v464_v7, %v464_v7  ;;  %v504_v12 = vpack.c.bf16 %v472_v8, %v472_v8 }
  0xb6   : > { %544 = vst.msk [vmem:[%s864_s4 + $0x48] sm:$0xf] %vm525_vm1, %v511_v9 }
  0xb7   : > { %552 = vst.msk [vmem:[%s864_s4 + $0x68] sm:$0xf] %vm525_vm1, %v519_v10  ;;  %v428_v13 = vpop.f32.mrf.mxu2  ;;  %v448_v14 = vpop.f32.mrf.mxu3 }
  0xb8   : > { %529 = vst.msk [vmem:[%s864_s4 + $0xc] sm:$0xf] %vm525_vm1, %v496_v11  ;;  %v429_v15 = vadd.f32 %v855_v20, %v428_v13  ;;  %v449_v16 = vadd.f32 %v855_v20, %v448_v14  ;;  %v391_v17 = vpop.f32.mrf.mxu0  ;;  %v411_v18 = vpop.f32.mrf.mxu1 }
  0xb9   : > { %537 = vst.msk [vmem:[%s864_s4 + $0x2c] sm:$0xf] %vm525_vm1, %v504_v12  ;;  %v392_v19 = vadd.f32 %v855_v20, %v391_v17  ;;  %v412_v21 = vadd.f32 %v855_v20, %v411_v18 }
  0xba   : > { %v480_v22 = vmax.f32 %v429_v15, 0.0  ;;  %v488_v23 = vmax.f32 %v449_v16, 0.0 }
  0xbb   : > { %v465_v24 = vmax.f32 %v392_v19, 0.0  ;;  %v473_v25 = vmax.f32 %v412_v21, 0.0 }
  0xbc   : > { %v512_v26 = vpack.c.bf16 %v480_v22, %v480_v22  ;;  %v520_v27 = vpack.c.bf16 %v488_v23, %v488_v23 }
  0xbd   : > { %v497_v28 = vpack.c.bf16 %v465_v24, %v465_v24  ;;  %v505_v29 = vpack.c.bf16 %v473_v25, %v473_v25 }
  0xbe   : > { %545 = vst.msk [vmem:[%s864_s4 + $0x4c] sm:$0xf] %vm525_vm1, %v512_v26 }
  0xbf   : > { %553 = vst.msk [vmem:[%s864_s4 + $0x6c] sm:$0xf] %vm525_vm1, %v520_v27  ;;  %v431_v30 = vpop.f32.mrf.mxu2  ;;  %v451_v31 = vpop.f32.mrf.mxu3 }
  0xc0   : > { %530 = vst.msk [vmem:[%s864_s4 + $0x10] sm:$0xf] %vm525_vm1, %v497_v28  ;;  %v432_v32 = vadd.f32 %v855_v20, %v431_v30  ;;  %v452_v33 = vadd.f32 %v855_v20, %v451_v31  ;;  %v393_v34 = vpop.f32.mrf.mxu0  ;;  %v413_v35 = vpop.f32.mrf.mxu1 }
  0xc1   : > { %538 = vst.msk [vmem:[%s864_s4 + $0x30] sm:$0xf] %vm525_vm1, %v505_v29  ;;  %v394_v36 = vadd.f32 %v855_v20, %v393_v34  ;;  %v414_v37 = vadd.f32 %v855_v20, %v413_v35 }
  0xc2   : > { %v481_v38 = vmax.f32 %v432_v32, 0.0  ;;  %v489_v39 = vmax.f32 %v452_v33, 0.0 }
  0xc3   : > { %v466_v40 = vmax.f32 %v394_v36, 0.0  ;;  %v474_v41 = vmax.f32 %v414_v37, 0.0 }
  0xc4   : > { %v513_v42 = vpack.c.bf16 %v481_v38, %v481_v38  ;;  %v521_v43 = vpack.c.bf16 %v489_v39, %v489_v39 }
  0xc5   : > { %v498_v44 = vpack.c.bf16 %v466_v40, %v466_v40  ;;  %v506_v45 = vpack.c.bf16 %v474_v41, %v474_v41 }
  0xc6   : > { %546 = vst.msk [vmem:[%s864_s4 + $0x50] sm:$0xf] %vm525_vm1, %v513_v42 }
  0xc7   : > { %554 = vst.msk [vmem:[%s864_s4 + $0x70] sm:$0xf] %vm525_vm1, %v521_v43  ;;  %v433_v46 = vpop.f32.mrf.mxu2  ;;  %v453_v47 = vpop.f32.mrf.mxu3 }
  0xc8   : > { %531 = vst.msk [vmem:[%s864_s4 + $0x14] sm:$0xf] %vm525_vm1, %v498_v44  ;;  %v434_v48 = vadd.f32 %v855_v20, %v433_v46  ;;  %v454_v49 = vadd.f32 %v855_v20, %v453_v47  ;;  %v396_v50 = vpop.f32.mrf.mxu0  ;;  %v416_v51 = vpop.f32.mrf.mxu1 }
  0xc9   : > { %539 = vst.msk [vmem:[%s864_s4 + $0x34] sm:$0xf] %vm525_vm1, %v506_v45  ;;  %v397_v52 = vadd.f32 %v855_v20, %v396_v50  ;;  %v417_v53 = vadd.f32 %v855_v20, %v416_v51 }
  0xca   : > { %v482_v54 = vmax.f32 %v434_v48, 0.0  ;;  %v490_v55 = vmax.f32 %v454_v49, 0.0 }
  0xcb   : > { %v467_v56 = vmax.f32 %v397_v52, 0.0  ;;  %v475_v57 = vmax.f32 %v417_v53, 0.0 }
  0xcc   : > { %v514_v58 = vpack.c.bf16 %v482_v54, %v482_v54  ;;  %v522_v59 = vpack.c.bf16 %v490_v55, %v490_v55 }
  0xcd   : > { %v499_v60 = vpack.c.bf16 %v467_v56, %v467_v56  ;;  %v507_v61 = vpack.c.bf16 %v475_v57, %v475_v57 }
  0xce   : > { %547 = vst.msk [vmem:[%s864_s4 + $0x54] sm:$0xf] %vm525_vm1, %v514_v58 }
  0xcf   : > { %555 = vst.msk [vmem:[%s864_s4 + $0x74] sm:$0xf] %vm525_vm1, %v522_v59  ;;  %v436_v62 = vpop.f32.mrf.mxu2  ;;  %v456_v63 = vpop.f32.mrf.mxu3 }
  0xd0   : > { %532 = vst.msk [vmem:[%s864_s4 + $0x18] sm:$0xf] %vm525_vm1, %v499_v60  ;;  %v437_v0 = vadd.f32 %v855_v20, %v436_v62  ;;  %v457_v1 = vadd.f32 %v855_v20, %v456_v63  ;;  %v398_v2 = vpop.f32.mrf.mxu0  ;;  %v418_v3 = vpop.f32.mrf.mxu1 }
  0xd1   : > { %540 = vst.msk [vmem:[%s864_s4 + $0x38] sm:$0xf] %vm525_vm1, %v507_v61  ;;  %v399_v4 = vadd.f32 %v855_v20, %v398_v2  ;;  %v419_v5 = vadd.f32 %v855_v20, %v418_v3 }
  0xd2   : > { %v483_v6 = vmax.f32 %v437_v0, 0.0  ;;  %v491_v7 = vmax.f32 %v457_v1, 0.0 }
  0xd3   : > { %v468_v8 = vmax.f32 %v399_v4, 0.0  ;;  %v476_v9 = vmax.f32 %v419_v5, 0.0 }
  0xd4   : > { %v515_v10 = vpack.c.bf16 %v483_v6, %v483_v6  ;;  %v523_v11 = vpack.c.bf16 %v491_v7, %v491_v7 }
  0xd5   : > { %v500_v12 = vpack.c.bf16 %v468_v8, %v468_v8  ;;  %v508_v13 = vpack.c.bf16 %v476_v9, %v476_v9 }
  0xd6   : > { %548 = vst.msk [vmem:[%s864_s4 + $0x58] sm:$0xf] %vm525_vm1, %v515_v10 }
  0xd7   : > { %556 = vst.msk [vmem:[%s864_s4 + $0x78] sm:$0xf] %vm525_vm1, %v523_v11  ;;  %v438_v14 = vpop.f32.mrf.mxu2  ;;  %v458_v15 = vpop.f32.mrf.mxu3 }
  0xd8   : > { %533 = vst.msk [vmem:[%s864_s4 + $0x1c] sm:$0xf] %vm525_vm1, %v500_v12  ;;  %v439_v16 = vadd.f32 %v855_v20, %v438_v14  ;;  %v459_v17 = vadd.f32 %v855_v20, %v458_v15 }
  0xd9   : > { %541 = vst.msk [vmem:[%s864_s4 + $0x3c] sm:$0xf] %vm525_vm1, %v508_v13 }
  0xda   : > { %v484_v18 = vmax.f32 %v439_v16, 0.0  ;;  %v492_v19 = vmax.f32 %v459_v17, 0.0 }
  0xdc   : > { %v516_v21 = vpack.c.bf16 %v484_v18, %v484_v18  ;;  %v524_v22 = vpack.c.bf16 %v492_v19, %v492_v19 }
  0xde   : > { %549 = vst.msk [vmem:[%s864_s4 + $0x5c] sm:$0xf] %vm525_vm1, %v516_v21 }
  0xdf   : > { %557 = vst.msk [vmem:[%s864_s4 + $0x7c] sm:$0xf] %vm525_vm1, %v524_v22 }
  0xe0 PF: > { %s13_s12 = sadd.s32 1, %s768_s12  }
  0xe1   : > { %p10_p4 = scmp.ge.s32.totalorder %s13_s12, 4  }
  0xe3   :  { %12 = sbr.rel (!%p10_p4) target bundleno = 1 (0x1), region = 62 }

// kernel: regressor_forward.26
= control target key start
LH: loop header
LB: loop body
LE: loop exit
PB: predicated region body
PF: predicated region fallthrough
CT: control target
= control target key end

     0   :  { %s804_s12 = smov 0   ;;  %s973_s0 = inlined_call_operand.vmem [shape: bf16[512,128], index: 0, kind: input, shape index: {}]   ;;  %s974_s1 = inlined_call_operand.vmem [shape: bf16[128,16], index: 1, kind: input, shape index: {}]   ;;  %s975_s2 = inlined_call_operand.vmem [shape: f32[1,16], index: 2, kind: input, shape index: {}]   ;;  %s976_s3 = inlined_call_operand.vmem [shape: bf16[512,16], index: 3, kind: output, shape index: {}]  }
   0x1 LB: > { %s612_s13 = sadd.s32 4294967295, %s782_s12   ;;  %p616_p0 = scmp.ge.s32.totalorder %s782_s12, 1  ;;  %s782_s12 = sphi %s804_s12, %s13_s12  }
   0x2   : > { %p138_p1 = scmp.lt.s32.totalorder %s782_s12, 3 }
   0x4   : > { %p139_p2 = pnand %p616_p0, %p138_p1 }
   0x5   : > { %s617_s22 = sshll.u32 (!%p139_p2), %s612_s13, 5 }
   0x6   : > { %142 = sbr.rel (%p139_p2) target bundleno = 240 (0xf0), region = 32  ;;  %p163_p3 = scmp.lt.s32.totalorder (!%p139_p2), %s617_s22, 63 }
   0xb   : > { %v742_v0 = vld [vmem:[%s974_s1 + $0x38] sm:$0xff]  ;;  %v741_v1 = vld [vmem:[%s974_s1 + $0x30] sm:$0xff]  ;;  %v740_v2 = vld [vmem:[%s974_s1 + $0x28] sm:$0xff]  ;;  %s978_s22 = smov (!%p163_p3, %s617_s22), 63  ;;  %vm523_vm0 = vcmask 125952  }
   0xc   : > { %370 = vmatpush.bf16.msra.mxu0 %v742_v0  ;;  %743 = vmatpush.bf16.msra.mxu1 %v742_v0  ;;  %v739_v3 = vld [vmem:[%s974_s1 + $0x20] sm:$0xff]  ;;  %v738_v4 = vld [vmem:[%s974_s1 + $0x18] sm:$0xff]  ;;  %v737_v5 = vld [vmem:[%s974_s1 + $0x10] sm:$0xff]  ;;  %s618_s29 = sshll.u32 %s978_s22, 2 }
   0xd   : > { %744 = vmatpush.bf16.msra.mxu2 %v742_v0  ;;  %745 = vmatpush.bf16.msra.mxu3 %v742_v0  ;;  %v736_v6 = vld [vmem:[%s974_s1 + $0x8] sm:$0xff]  ;;  %v735_v7 = vld [vmem:[%s974_s1] sm:$0xff]  ;;  %s844_s7 = scalar_lea.vmem %s973_s0, %s618_s29  ;;  %s874_s13 = scalar_lea.vmem %s976_s3, %s618_s29 }
   0xe   : > { %v719_v8 = vld [vmem:[%s844_s7] sm:$0xff]  ;;  %v720_v12 = vld [vmem:[%s844_s7 + $0x8] sm:$0xff]  ;;  %v721_v16 = vld [vmem:[%s844_s7 + $0x10] sm:$0xff] }
   0xf   : > { %v723_v9 = vld [vmem:[%s844_s7 + $0x20] sm:$0xff]  ;;  %v724_v13 = vld [vmem:[%s844_s7 + $0x28] sm:$0xff]  ;;  %v725_v17 = vld [vmem:[%s844_s7 + $0x30] sm:$0xff] }
  0x10   : > { %371 = vmatpush.bf16.msra.mxu0 %v741_v1  ;;  %746 = vmatpush.bf16.msra.mxu1 %v741_v1  ;;  %v727_v10 = vld [vmem:[%s844_s7 + $0x40] sm:$0xff]  ;;  %v728_v14 = vld [vmem:[%s844_s7 + $0x48] sm:$0xff]  ;;  %v729_v18 = vld [vmem:[%s844_s7 + $0x50] sm:$0xff] }
  0x11   : > { %747 = vmatpush.bf16.msra.mxu2 %v741_v1  ;;  %748 = vmatpush.bf16.msra.mxu3 %v741_v1  ;;  %v731_v11 = vld [vmem:[%s844_s7 + $0x60] sm:$0xff]  ;;  %v732_v15 = vld [vmem:[%s844_s7 + $0x68] sm:$0xff]  ;;  %v733_v19 = vld [vmem:[%s844_s7 + $0x70] sm:$0xff] }
  0x12   : > { %v722_v20 = vld [vmem:[%s844_s7 + $0x18] sm:$0xff]  ;;  %v865_v24 = vld [vmem:[%s975_s2] ss:$0 sm:$0xff] }
  0x13   : > { %v726_v21 = vld [vmem:[%s844_s7 + $0x38] sm:$0xff] }
  0x14   : > { %372 = vmatpush.bf16.msra.mxu0 %v740_v2  ;;  %749 = vmatpush.bf16.msra.mxu1 %v740_v2  ;;  %v730_v22 = vld [vmem:[%s844_s7 + $0x58] sm:$0xff] }
  0x15   : > { %750 = vmatpush.bf16.msra.mxu2 %v740_v2  ;;  %751 = vmatpush.bf16.msra.mxu3 %v740_v2  ;;  %v734_v23 = vld [vmem:[%s844_s7 + $0x78] sm:$0xff] }
  0x18   : > { %373 = vmatpush.bf16.msra.mxu0 %v739_v3  ;;  %752 = vmatpush.bf16.msra.mxu1 %v739_v3 }
  0x19   : > { %753 = vmatpush.bf16.msra.mxu2 %v739_v3  ;;  %754 = vmatpush.bf16.msra.mxu3 %v739_v3 }
  0x1c   : > { %374 = vmatpush.bf16.msra.mxu0 %v738_v4  ;;  %755 = vmatpush.bf16.msra.mxu1 %v738_v4 }
  0x1d   : > { %756 = vmatpush.bf16.msra.mxu2 %v738_v4  ;;  %757 = vmatpush.bf16.msra.mxu3 %v738_v4 }
  0x20   : > { %375 = vmatpush.bf16.msra.mxu0 %v737_v5  ;;  %758 = vmatpush.bf16.msra.mxu1 %v737_v5 }
  0x21   : > { %759 = vmatpush.bf16.msra.mxu2 %v737_v5  ;;  %760 = vmatpush.bf16.msra.mxu3 %v737_v5 }
  0x24   : > { %376 = vmatpush.bf16.msra.mxu0 %v736_v6  ;;  %761 = vmatpush.bf16.msra.mxu1 %v736_v6 }
  0x25   : > { %762 = vmatpush.bf16.msra.mxu2 %v736_v6  ;;  %763 = vmatpush.bf16.msra.mxu3 %v736_v6 }
  0x28   : > { %377 = vmatpush.bf16.msra.mxu0 %v735_v7  ;;  %764 = vmatpush.bf16.msra.mxu1 %v735_v7 }
  0x29   : > { %765 = vmatpush.bf16.msra.mxu2 %v735_v7  ;;  %766 = vmatpush.bf16.msra.mxu3 %v735_v7 }
  0x2b   : > { %378 = vmatmul.bf16.vlgmr.msra.gmra.mxu0 %v719_v8  ;;  %398 = vmatmul.bf16.vlgmr.msra.gmra.mxu1 %v723_v9 }
  0x2c   : > { %418 = vmatmul.bf16.vlgmr.msra.gmra.mxu2 %v727_v10  ;;  %438 = vmatmul.bf16.vlgmr.msra.gmra.mxu3 %v731_v11 }
  0x3b   : > { %383 = vmatmul.bf16.gmra.mxu0 %v720_v12  ;;  %403 = vmatmul.bf16.gmra.mxu1 %v724_v13 }
  0x3c   : > { %423 = vmatmul.bf16.gmra.mxu2 %v728_v14  ;;  %443 = vmatmul.bf16.gmra.mxu3 %v732_v15 }
  0x4b   : > { %388 = vmatmul.bf16.gmra.mxu0 %v721_v16  ;;  %408 = vmatmul.bf16.gmra.mxu1 %v725_v17 }
  0x4c   : > { %428 = vmatmul.bf16.gmra.mxu2 %v729_v18  ;;  %448 = vmatmul.bf16.gmra.mxu3 %v733_v19 }
  0x5b   : > { %393 = vmatmul.bf16.gmra.mxu0 %v722_v20  ;;  %413 = vmatmul.bf16.gmra.mxu1 %v726_v21 }
  0x5c   : > { %433 = vmatmul.bf16.gmra.mxu2 %v730_v22  ;;  %453 = vmatmul.bf16.gmra.mxu3 %v734_v23 }
  0xa8   : > { %v379_v25 = vpop.f32.mrf.mxu0  ;;  %v399_v26 = vpop.f32.mrf.mxu1 }
  0xa9   : > { %v380_v27 = vadd.f32 %v865_v24, %v379_v25  ;;  %v400_v28 = vadd.f32 %v865_v24, %v399_v26 }
  0xab   : > { %v459_v29 = vmax.f32 %v380_v27, 0.0  ;;  %v467_v30 = vmax.f32 %v400_v28, 0.0 }
  0xad   : > { %v491_v31 = vpack.c.bf16 %v459_v29, %v459_v29  ;;  %v499_v32 = vpack.c.bf16 %v467_v30, %v467_v30 }
  0xaf   : > { %524 = vst.msk [vmem:[%s874_s13] sm:$0xf] %vm523_vm0, %v491_v31  ;;  %v419_v33 = vpop.f32.mrf.mxu2  ;;  %v439_v34 = vpop.f32.mrf.mxu3 }
  0xb0   : > { %532 = vst.msk [vmem:[%s874_s13 + $0x20] sm:$0xf] %vm523_vm0, %v499_v32  ;;  %v420_v35 = vadd.f32 %v865_v24, %v419_v33  ;;  %v440_v36 = vadd.f32 %v865_v24, %v439_v34  ;;  %v381_v37 = vpop.f32.mrf.mxu0  ;;  %v401_v38 = vpop.f32.mrf.mxu1 }
  0xb1   : > { %v382_v39 = vadd.f32 %v865_v24, %v381_v37  ;;  %v402_v40 = vadd.f32 %v865_v24, %v401_v38 }
  0xb2   : > { %v475_v41 = vmax.f32 %v420_v35, 0.0  ;;  %v483_v42 = vmax.f32 %v440_v36, 0.0 }
  0xb3   : > { %v460_v43 = vmax.f32 %v382_v39, 0.0  ;;  %v468_v44 = vmax.f32 %v402_v40, 0.0 }
  0xb4   : > { %v507_v45 = vpack.c.bf16 %v475_v41, %v475_v41  ;;  %v515_v46 = vpack.c.bf16 %v483_v42, %v483_v42 }
  0xb5   : > { %v492_v47 = vpack.c.bf16 %v460_v43, %v460_v43  ;;  %v500_v48 = vpack.c.bf16 %v468_v44, %v468_v44 }
  0xb6   : > { %540 = vst.msk [vmem:[%s874_s13 + $0x40] sm:$0xf] %vm523_vm0, %v507_v45 }
  0xb7   : > { %548 = vst.msk [vmem:[%s874_s13 + $0x60] sm:$0xf] %vm523_vm0, %v515_v46  ;;  %v421_v49 = vpop.f32.mrf.mxu2  ;;  %v441_v50 = vpop.f32.mrf.mxu3 }
  0xb8   : > { %525 = vst.msk [vmem:[%s874_s13 + $0x4] sm:$0xf] %vm523_vm0, %v492_v47  ;;  %v422_v51 = vadd.f32 %v865_v24, %v421_v49  ;;  %v442_v52 = vadd.f32 %v865_v24, %v441_v50  ;;  %v384_v53 = vpop.f32.mrf.mxu0  ;;  %v404_v54 = vpop.f32.mrf.mxu1 }
  0xb9   : > { %533 = vst.msk [vmem:[%s874_s13 + $0x24] sm:$0xf] %vm523_vm0, %v500_v48  ;;  %v385_v55 = vadd.f32 %v865_v24, %v384_v53  ;;  %v405_v56 = vadd.f32 %v865_v24, %v404_v54 }
  0xba   : > { %v476_v57 = vmax.f32 %v422_v51, 0.0  ;;  %v484_v58 = vmax.f32 %v442_v52, 0.0 }
  0xbb   : > { %v461_v59 = vmax.f32 %v385_v55, 0.0  ;;  %v469_v60 = vmax.f32 %v405_v56, 0.0 }
  0xbc   : > { %v508_v61 = vpack.c.bf16 %v476_v57, %v476_v57  ;;  %v516_v62 = vpack.c.bf16 %v484_v58, %v484_v58 }
  0xbd   : > { %v493_v63 = vpack.c.bf16 %v461_v59, %v461_v59  ;;  %v501_v0 = vpack.c.bf16 %v469_v60, %v469_v60 }
  0xbe   : > { %541 = vst.msk [vmem:[%s874_s13 + $0x44] sm:$0xf] %vm523_vm0, %v508_v61 }
  0xbf   : > { %549 = vst.msk [vmem:[%s874_s13 + $0x64] sm:$0xf] %vm523_vm0, %v516_v62  ;;  %v424_v1 = vpop.f32.mrf.mxu2  ;;  %v444_v2 = vpop.f32.mrf.mxu3 }
  0xc0   : > { %526 = vst.msk [vmem:[%s874_s13 + $0x8] sm:$0xf] %vm523_vm0, %v493_v63  ;;  %v425_v3 = vadd.f32 %v865_v24, %v424_v1  ;;  %v445_v4 = vadd.f32 %v865_v24, %v444_v2  ;;  %v386_v5 = vpop.f32.mrf.mxu0  ;;  %v406_v6 = vpop.f32.mrf.mxu1 }
  0xc1   : > { %534 = vst.msk [vmem:[%s874_s13 + $0x28] sm:$0xf] %vm523_vm0, %v501_v0  ;;  %v387_v7 = vadd.f32 %v865_v24, %v386_v5  ;;  %v407_v8 = vadd.f32 %v865_v24, %v406_v6 }
  0xc2   : > { %v477_v9 = vmax.f32 %v425_v3, 0.0  ;;  %v485_v10 = vmax.f32 %v445_v4, 0.0 }
  0xc3   : > { %v462_v11 = vmax.f32 %v387_v7, 0.0  ;;  %v470_v12 = vmax.f32 %v407_v8, 0.0 }
  0xc4   : > { %v509_v13 = vpack.c.bf16 %v477_v9, %v477_v9  ;;  %v517_v14 = vpack.c.bf16 %v485_v10, %v485_v10 }
  0xc5   : > { %v494_v15 = vpack.c.bf16 %v462_v11, %v462_v11  ;;  %v502_v16 = vpack.c.bf16 %v470_v12, %v470_v12 }
  0xc6   : > { %542 = vst.msk [vmem:[%s874_s13 + $0x48] sm:$0xf] %vm523_vm0, %v509_v13 }
  0xc7   : > { %550 = vst.msk [vmem:[%s874_s13 + $0x68] sm:$0xf] %vm523_vm0, %v517_v14  ;;  %v426_v17 = vpop.f32.mrf.mxu2  ;;  %v446_v18 = vpop.f32.mrf.mxu3 }
  0xc8   : > { %527 = vst.msk [vmem:[%s874_s13 + $0xc] sm:$0xf] %vm523_vm0, %v494_v15  ;;  %v427_v19 = vadd.f32 %v865_v24, %v426_v17  ;;  %v447_v20 = vadd.f32 %v865_v24, %v446_v18  ;;  %v389_v21 = vpop.f32.mrf.mxu0  ;;  %v409_v22 = vpop.f32.mrf.mxu1 }
  0xc9   : > { %535 = vst.msk [vmem:[%s874_s13 + $0x2c] sm:$0xf] %vm523_vm0, %v502_v16  ;;  %v390_v23 = vadd.f32 %v865_v24, %v389_v21  ;;  %v410_v25 = vadd.f32 %v865_v24, %v409_v22 }
  0xca   : > { %v478_v26 = vmax.f32 %v427_v19, 0.0  ;;  %v486_v27 = vmax.f32 %v447_v20, 0.0 }
  0xcb   : > { %v463_v28 = vmax.f32 %v390_v23, 0.0  ;;  %v471_v29 = vmax.f32 %v410_v25, 0.0 }
  0xcc   : > { %v510_v30 = vpack.c.bf16 %v478_v26, %v478_v26  ;;  %v518_v31 = vpack.c.bf16 %v486_v27, %v486_v27 }
  0xcd   : > { %v495_v32 = vpack.c.bf16 %v463_v28, %v463_v28  ;;  %v503_v33 = vpack.c.bf16 %v471_v29, %v471_v29 }
  0xce   : > { %543 = vst.msk [vmem:[%s874_s13 + $0x4c] sm:$0xf] %vm523_vm0, %v510_v30 }
  0xcf   : > { %551 = vst.msk [vmem:[%s874_s13 + $0x6c] sm:$0xf] %vm523_vm0, %v518_v31  ;;  %v429_v34 = vpop.f32.mrf.mxu2  ;;  %v449_v35 = vpop.f32.mrf.mxu3 }
  0xd0   : > { %528 = vst.msk [vmem:[%s874_s13 + $0x10] sm:$0xf] %vm523_vm0, %v495_v32  ;;  %v430_v36 = vadd.f32 %v865_v24, %v429_v34  ;;  %v450_v37 = vadd.f32 %v865_v24, %v449_v35  ;;  %v391_v38 = vpop.f32.mrf.mxu0  ;;  %v411_v39 = vpop.f32.mrf.mxu1 }
  0xd1   : > { %536 = vst.msk [vmem:[%s874_s13 + $0x30] sm:$0xf] %vm523_vm0, %v503_v33  ;;  %v392_v40 = vadd.f32 %v865_v24, %v391_v38  ;;  %v412_v41 = vadd.f32 %v865_v24, %v411_v39 }
  0xd2   : > { %v479_v42 = vmax.f32 %v430_v36, 0.0  ;;  %v487_v43 = vmax.f32 %v450_v37, 0.0 }
  0xd3   : > { %v464_v44 = vmax.f32 %v392_v40, 0.0  ;;  %v472_v45 = vmax.f32 %v412_v41, 0.0 }
  0xd4   : > { %v511_v46 = vpack.c.bf16 %v479_v42, %v479_v42  ;;  %v519_v47 = vpack.c.bf16 %v487_v43, %v487_v43 }
  0xd5   : > { %v496_v48 = vpack.c.bf16 %v464_v44, %v464_v44  ;;  %v504_v49 = vpack.c.bf16 %v472_v45, %v472_v45 }
  0xd6   : > { %544 = vst.msk [vmem:[%s874_s13 + $0x50] sm:$0xf] %vm523_vm0, %v511_v46 }
  0xd7   : > { %552 = vst.msk [vmem:[%s874_s13 + $0x70] sm:$0xf] %vm523_vm0, %v519_v47  ;;  %v431_v50 = vpop.f32.mrf.mxu2  ;;  %v451_v51 = vpop.f32.mrf.mxu3 }
  0xd8   : > { %529 = vst.msk [vmem:[%s874_s13 + $0x14] sm:$0xf] %vm523_vm0, %v496_v48  ;;  %v432_v52 = vadd.f32 %v865_v24, %v431_v50  ;;  %v452_v53 = vadd.f32 %v865_v24, %v451_v51  ;;  %v394_v54 = vpop.f32.mrf.mxu0  ;;  %v414_v55 = vpop.f32.mrf.mxu1 }
  0xd9   : > { %537 = vst.msk [vmem:[%s874_s13 + $0x34] sm:$0xf] %vm523_vm0, %v504_v49  ;;  %v395_v56 = vadd.f32 %v865_v24, %v394_v54  ;;  %v415_v57 = vadd.f32 %v865_v24, %v414_v55 }
  0xda   : > { %v480_v58 = vmax.f32 %v432_v52, 0.0  ;;  %v488_v59 = vmax.f32 %v452_v53, 0.0 }
  0xdb   : > { %v465_v60 = vmax.f32 %v395_v56, 0.0  ;;  %v473_v61 = vmax.f32 %v415_v57, 0.0 }
  0xdc   : > { %v512_v62 = vpack.c.bf16 %v480_v58, %v480_v58  ;;  %v520_v63 = vpack.c.bf16 %v488_v59, %v488_v59 }
  0xdd   : > { %v497_v0 = vpack.c.bf16 %v465_v60, %v465_v60  ;;  %v505_v1 = vpack.c.bf16 %v473_v61, %v473_v61 }
  0xde   : > { %545 = vst.msk [vmem:[%s874_s13 + $0x54] sm:$0xf] %vm523_vm0, %v512_v62 }
  0xdf   : > { %553 = vst.msk [vmem:[%s874_s13 + $0x74] sm:$0xf] %vm523_vm0, %v520_v63  ;;  %v434_v2 = vpop.f32.mrf.mxu2  ;;  %v454_v3 = vpop.f32.mrf.mxu3 }
  0xe0   : > { %530 = vst.msk [vmem:[%s874_s13 + $0x18] sm:$0xf] %vm523_vm0, %v497_v0  ;;  %v435_v4 = vadd.f32 %v865_v24, %v434_v2  ;;  %v455_v5 = vadd.f32 %v865_v24, %v454_v3  ;;  %v396_v6 = vpop.f32.mrf.mxu0  ;;  %v416_v7 = vpop.f32.mrf.mxu1 }
  0xe1   : > { %538 = vst.msk [vmem:[%s874_s13 + $0x38] sm:$0xf] %vm523_vm0, %v505_v1  ;;  %v397_v8 = vadd.f32 %v865_v24, %v396_v6  ;;  %v417_v9 = vadd.f32 %v865_v24, %v416_v7 }
  0xe2   : > { %v481_v10 = vmax.f32 %v435_v4, 0.0  ;;  %v489_v11 = vmax.f32 %v455_v5, 0.0 }
  0xe3   : > { %v466_v12 = vmax.f32 %v397_v8, 0.0  ;;  %v474_v13 = vmax.f32 %v417_v9, 0.0 }
  0xe4   : > { %v513_v14 = vpack.c.bf16 %v481_v10, %v481_v10  ;;  %v521_v15 = vpack.c.bf16 %v489_v11, %v489_v11 }
  0xe5   : > { %v498_v16 = vpack.c.bf16 %v466_v12, %v466_v12  ;;  %v506_v17 = vpack.c.bf16 %v474_v13, %v474_v13 }
  0xe6   : > { %546 = vst.msk [vmem:[%s874_s13 + $0x58] sm:$0xf] %vm523_vm0, %v513_v14 }
  0xe7   : > { %554 = vst.msk [vmem:[%s874_s13 + $0x78] sm:$0xf] %vm523_vm0, %v521_v15  ;;  %v436_v18 = vpop.f32.mrf.mxu2  ;;  %v456_v19 = vpop.f32.mrf.mxu3 }
  0xe8   : > { %531 = vst.msk [vmem:[%s874_s13 + $0x1c] sm:$0xf] %vm523_vm0, %v498_v16  ;;  %v437_v20 = vadd.f32 %v865_v24, %v436_v18  ;;  %v457_v21 = vadd.f32 %v865_v24, %v456_v19 }
  0xe9   : > { %539 = vst.msk [vmem:[%s874_s13 + $0x3c] sm:$0xf] %vm523_vm0, %v506_v17 }
  0xea   : > { %v482_v22 = vmax.f32 %v437_v20, 0.0  ;;  %v490_v23 = vmax.f32 %v457_v21, 0.0 }
  0xec   : > { %v514_v25 = vpack.c.bf16 %v482_v22, %v482_v22  ;;  %v522_v26 = vpack.c.bf16 %v490_v23, %v490_v23 }
  0xee   : > { %547 = vst.msk [vmem:[%s874_s13 + $0x5c] sm:$0xf] %vm523_vm0, %v514_v25 }
  0xef   : > { %555 = vst.msk [vmem:[%s874_s13 + $0x7c] sm:$0xf] %vm523_vm0, %v522_v26 }
  0xf0 PF: > { %s13_s12 = sadd.s32 1, %s782_s12  }
  0xf1   : > { %p10_p4 = scmp.ge.s32.totalorder %s13_s12, 4  }
  0xf3   :  { %12 = sbr.rel (!%p10_p4) target bundleno = 1 (0x1), region = 62 }

// kernel: regressor_forward.25
= control target key start
LH: loop header
LB: loop body
LE: loop exit
PB: predicated region body
PF: predicated region fallthrough
CT: control target
= control target key end

     0   :  { %s1184_s12 = smov 0   ;;  %s1375_s0 = inlined_call_operand.vmem [shape: bf16[512,144], index: 0, kind: input, shape index: {}]   ;;  %s1376_s1 = inlined_call_operand.vmem [shape: bf16[144,128], index: 1, kind: input, shape index: {}]   ;;  %s1377_s2 = inlined_call_operand.vmem [shape: f32[1,128], index: 2, kind: input, shape index: {}]   ;;  %s1378_s3 = inlined_call_operand.vmem [shape: bf16[512,128], index: 3, kind: output, shape index: {}]  }
   0x1 LB: > { %s809_s13 = sadd.s32 4294967295, %s1162_s12   ;;  %p813_p0 = scmp.ge.s32.totalorder %s1162_s12, 1  ;;  %s1162_s12 = sphi %s1184_s12, %s13_s12  }
   0x2   : > { %p139_p1 = scmp.lt.s32.totalorder %s1162_s12, 3 }
   0x4   : > { %p140_p2 = pnand %p813_p0, %p139_p1 }
   0x5   : > { %s814_s18 = sshll.u32 (!%p140_p2), %s809_s13, 5 }
   0x6   : > { %143 = sbr.rel (%p140_p2) target bundleno = 304 (0x130), region = 32  ;;  %p165_p3 = scmp.lt.s32.totalorder (!%p140_p2), %s814_s18, 63 }
   0xb   : > { %v1041_v0 = vld [vmem:[%s1376_s1 + $0x38] sm:$0xff]  ;;  %v1042_v1 = vld [vmem:[%s1376_s1 + $0x40] sm:$0xff]  ;;  %v1040_v2 = vld [vmem:[%s1376_s1 + $0x30] sm:$0xff]  ;;  %s1380_s18 = smov (!%p165_p3, %s814_s18), 63  ;;  %vm430_vm0 = vcmask 130048  }
   0xc   : > { %479 = vmatpush.bf16.msra.mxu0 %v1041_v0  ;;  %1138 = vmatpush.bf16.msra.mxu2 %v1041_v0  ;;  %s1001_s21 = sshll.u32 %s1380_s18, 3  ;;  %v1039_v3 = vld [vmem:[%s1376_s1 + $0x28] sm:$0xff]  ;;  %v1038_v7 = vld [vmem:[%s1376_s1 + $0x20] sm:$0xff]  ;;  %v1037_v11 = vld [vmem:[%s1376_s1 + $0x18] sm:$0xff]  ;;  %s818_s13 = sshll.u32 %s1380_s18, 2 }
   0xd   : > { %575 = vmatpush.bf16.msra.mxu1 %v1042_v1  ;;  %1146 = vmatpush.bf16.msra.mxu3 %v1042_v1  ;;  %s1207_s24 = scalar_lea.vmem %s1375_s0, %s1001_s21  ;;  %v1036_v12 = vld [vmem:[%s1376_s1 + $0x10] sm:$0xff]  ;;  %v1035_v16 = vld [vmem:[%s1376_s1 + $0x8] sm:$0xff]  ;;  %v1034_v19 = vld [vmem:[%s1376_s1] sm:$0xff]  ;;  %s1320_s16 = scalar_lea.vmem %s1378_s3, %s818_s13 }
   0xe   : > { %v1002_v4 = vld [vmem:[%s1207_s24 + $0x4] sm:$0xf]  ;;  %v823_v5 = vld [vmem:[%s1207_s24 + $0x8] sm:$0xf0]  ;;  %v1020_v8 = vld [vmem:[%s1207_s24 + $0x94] sm:$0xf] }
   0xf   : > { %v826_v6 = vor.u32 %v1002_v4, %v823_v5  ;;  %v895_v9 = vld [vmem:[%s1207_s24 + $0x98] sm:$0xf0]  ;;  %v1004_v13 = vld [vmem:[%s1207_s24 + $0x14] sm:$0xf]  ;;  %v1022_v17 = vld [vmem:[%s1207_s24 + $0xa4] sm:$0xf] }
  0x10   : > { %480 = vmatpush.bf16.msra.mxu0 %v1040_v2  ;;  %1139 = vmatpush.bf16.msra.mxu2 %v1040_v2  ;;  %v898_v10 = vor.u32 %v1020_v8, %v895_v9  ;;  %v831_v14 = vld [vmem:[%s1207_s24 + $0x18] sm:$0xf0]  ;;  %v903_v18 = vld [vmem:[%s1207_s24 + $0xa8] sm:$0xf0]  ;;  %v821_v20 = vld [vmem:[%s1207_s24] sm:$0xf] }
  0x11   : > { %983 = vmatmul.msk.bf16.vlgmr.msra.gmra.mxu1 %vm430_vm0, %v826_v6  ;;  %v834_v15 = vor.u32 %v1004_v13, %v831_v14  ;;  %v1003_v21 = vld [vmem:[%s1207_s24 + $0x4] sm:$0xf0]  ;;  %v906_v22 = vor.u32 %v1022_v17, %v903_v18  ;;  %v885_v23 = vld [vmem:[%s1207_s24 + $0x80] sm:$0xf]  ;;  %v1006_v27 = vld [vmem:[%s1207_s24 + $0x24] sm:$0xf] }
  0x12   : > { %992 = vmatmul.msk.bf16.vlgmr.msra.gmra.mxu3 %vm430_vm0, %v898_v10  ;;  %v1019_v24 = vld [vmem:[%s1207_s24 + $0x84] sm:$0xf0]  ;;  %v822_v25 = vor.u32 %v1003_v21, %v821_v20  ;;  %v839_v28 = vld [vmem:[%s1207_s24 + $0x28] sm:$0xf0]  ;;  %v1024_v30 = vld [vmem:[%s1207_s24 + $0xb4] sm:$0xf] }
  0x13   : > { %v886_v26 = vor.u32 %v1019_v24, %v885_v23  ;;  %v842_v29 = vor.u32 %v1006_v27, %v839_v28  ;;  %v911_v31 = vld [vmem:[%s1207_s24 + $0xb8] sm:$0xf0]  ;;  %v829_v32 = vld [vmem:[%s1207_s24 + $0x10] sm:$0xf]  ;;  %v1005_v33 = vld [vmem:[%s1207_s24 + $0x14] sm:$0xf0] }
  0x14   : > { %481 = vmatpush.bf16.msra.mxu0 %v1039_v3  ;;  %1140 = vmatpush.bf16.msra.mxu2 %v1039_v3  ;;  %v914_v34 = vor.u32 %v1024_v30, %v911_v31  ;;  %v893_v35 = vld [vmem:[%s1207_s24 + $0x90] sm:$0xf]  ;;  %v1021_v36 = vld [vmem:[%s1207_s24 + $0x94] sm:$0xf0]  ;;  %v830_v37 = vor.u32 %v1005_v33, %v829_v32  ;;  %v1008_v39 = vld [vmem:[%s1207_s24 + $0x34] sm:$0xf] }
  0x15   : > { %v894_v38 = vor.u32 %v1021_v36, %v893_v35  ;;  %v847_v40 = vld [vmem:[%s1207_s24 + $0x38] sm:$0xf0]  ;;  %v1026_v42 = vld [vmem:[%s1207_s24 + $0xc4] sm:$0xf]  ;;  %v919_v43 = vld [vmem:[%s1207_s24 + $0xc8] sm:$0xf0] }
  0x16   : > { %v850_v41 = vor.u32 %v1008_v39, %v847_v40  ;;  %v837_v44 = vld [vmem:[%s1207_s24 + $0x20] sm:$0xf]  ;;  %v1007_v45 = vld [vmem:[%s1207_s24 + $0x24] sm:$0xf0]  ;;  %v922_v46 = vor.u32 %v1026_v42, %v919_v43  ;;  %v1010_v51 = vld [vmem:[%s1207_s24 + $0x44] sm:$0xf] }
  0x17   : > { %v901_v47 = vld [vmem:[%s1207_s24 + $0xa0] sm:$0xf]  ;;  %v1023_v48 = vld [vmem:[%s1207_s24 + $0xa4] sm:$0xf0]  ;;  %v838_v49 = vor.u32 %v1007_v45, %v837_v44  ;;  %v855_v52 = vld [vmem:[%s1207_s24 + $0x48] sm:$0xf0] }
  0x18   : > { %482 = vmatpush.bf16.msra.mxu0 %v1038_v7  ;;  %1141 = vmatpush.bf16.msra.mxu2 %v1038_v7  ;;  %v902_v50 = vor.u32 %v1023_v48, %v901_v47  ;;  %v858_v53 = vor.u32 %v1010_v51, %v855_v52  ;;  %v1028_v54 = vld [vmem:[%s1207_s24 + $0xd4] sm:$0xf]  ;;  %v927_v55 = vld [vmem:[%s1207_s24 + $0xd8] sm:$0xf0]  ;;  %v845_v56 = vld [vmem:[%s1207_s24 + $0x30] sm:$0xf] }
  0x19   : > { %v1009_v57 = vld [vmem:[%s1207_s24 + $0x34] sm:$0xf0]  ;;  %v930_v58 = vor.u32 %v1028_v54, %v927_v55  ;;  %v909_v59 = vld [vmem:[%s1207_s24 + $0xb0] sm:$0xf]  ;;  %v1012_v63 = vld [vmem:[%s1207_s24 + $0x54] sm:$0xf] }
  0x1a   : > { %v1025_v60 = vld [vmem:[%s1207_s24 + $0xb4] sm:$0xf0]  ;;  %v846_v61 = vor.u32 %v1009_v57, %v845_v56  ;;  %v863_v0 = vld [vmem:[%s1207_s24 + $0x58] sm:$0xf0]  ;;  %v1030_v2 = vld [vmem:[%s1207_s24 + $0xe4] sm:$0xf] }
  0x1b   : > { %v910_v62 = vor.u32 %v1025_v60, %v909_v59  ;;  %v866_v1 = vor.u32 %v1012_v63, %v863_v0  ;;  %v935_v3 = vld [vmem:[%s1207_s24 + $0xe8] sm:$0xf0]  ;;  %v853_v4 = vld [vmem:[%s1207_s24 + $0x40] sm:$0xf]  ;;  %v1011_v5 = vld [vmem:[%s1207_s24 + $0x44] sm:$0xf0] }
  0x1c   : > { %483 = vmatpush.bf16.msra.mxu0 %v1037_v11  ;;  %1142 = vmatpush.bf16.msra.mxu2 %v1037_v11  ;;  %v938_v6 = vor.u32 %v1030_v2, %v935_v3  ;;  %v917_v7 = vld [vmem:[%s1207_s24 + $0xc0] sm:$0xf]  ;;  %v1027_v8 = vld [vmem:[%s1207_s24 + $0xc4] sm:$0xf0]  ;;  %v854_v9 = vor.u32 %v1011_v5, %v853_v4  ;;  %v1014_v11 = vld [vmem:[%s1207_s24 + $0x64] sm:$0xf] }
  0x1d   : > { %v918_v10 = vor.u32 %v1027_v8, %v917_v7  ;;  %v1032_v14 = vld [vmem:[%s1207_s24 + $0xf4] sm:$0xf]  ;;  %v1013_v17 = vld [vmem:[%s1207_s24 + $0x54] sm:$0xf0]  ;;  %v879_v24 = vld [vmem:[%s1207_s24 + $0x78] sm:$0xf0] }
  0x1e   : > { %v1029_v20 = vld [vmem:[%s1207_s24 + $0xd4] sm:$0xf0]  ;;  %v1016_v23 = vld [vmem:[%s1207_s24 + $0x74] sm:$0xf]  ;;  %v1015_v27 = vld [vmem:[%s1207_s24 + $0x64] sm:$0xf0] }
  0x1f   : > { %v933_v28 = vld [vmem:[%s1207_s24 + $0xe0] sm:$0xf]  ;;  %v1018_v32 = vld [vmem:[%s1207_s24 + $0x84] sm:$0xf]  ;;  %v887_v33 = vld [vmem:[%s1207_s24 + $0x88] sm:$0xf0] }
  0x20   : > { %484 = vmatpush.bf16.msra.mxu0 %v1036_v12  ;;  %1143 = vmatpush.bf16.msra.mxu2 %v1036_v12  ;;  %v871_v12 = vld [vmem:[%s1207_s24 + $0x68] sm:$0xf0]  ;;  %v877_v36 = vld [vmem:[%s1207_s24 + $0x70] sm:$0xf]  ;;  %v1033_v39 = vld [vmem:[%s1207_s24 + $0xf4] sm:$0xf0] }
  0x21   : > { %984 = vmatmul.msk.bf16.gmra.mxu1 %vm430_vm0, %v834_v15  ;;  %v874_v13 = vor.u32 %v1014_v11, %v871_v12  ;;  %v943_v15 = vld [vmem:[%s1207_s24 + $0xf8] sm:$0xf0] }
  0x22   : > { %993 = vmatmul.msk.bf16.gmra.mxu3 %vm430_vm0, %v906_v22  ;;  %v946_v18 = vor.u32 %v1032_v14, %v943_v15 }
  0x24   : > { %485 = vmatpush.bf16.msra.mxu0 %v1035_v16  ;;  %1144 = vmatpush.bf16.msra.mxu2 %v1035_v16  ;;  %v861_v16 = vld [vmem:[%s1207_s24 + $0x50] sm:$0xf] }
  0x25   : > { %v862_v21 = vor.u32 %v1013_v17, %v861_v16 }
  0x28   : > { %486 = vmatpush.bf16.msra.mxu0 %v1034_v19  ;;  %1145 = vmatpush.bf16.msra.mxu2 %v1034_v19  ;;  %v925_v19 = vld [vmem:[%s1207_s24 + $0xd0] sm:$0xf] }
  0x29   : > { %v926_v22 = vor.u32 %v1029_v20, %v925_v19 }
  0x2b   : > { %487 = vmatmul.bf16.vlgmr.msra.gmra.mxu0 %v822_v25  ;;  %527 = vmatmul.bf16.vlgmr.msra.gmra.mxu2 %v886_v26  ;;  %v882_v25 = vor.u32 %v1016_v23, %v879_v24  ;;  %v869_v26 = vld [vmem:[%s1207_s24 + $0x60] sm:$0xf] }
  0x2c   : > { %v870_v30 = vor.u32 %v1015_v27, %v869_v26 }
  0x31   : > { %985 = vmatmul.msk.bf16.gmra.mxu1 %vm430_vm0, %v842_v29  ;;  %v1031_v29 = vld [vmem:[%s1207_s24 + $0xe4] sm:$0xf0] }
  0x32   : > { %994 = vmatmul.msk.bf16.gmra.mxu3 %vm430_vm0, %v914_v34  ;;  %v934_v31 = vor.u32 %v1031_v29, %v933_v28  ;;  %v890_v34 = vor.u32 %v1018_v32, %v887_v33 }
  0x3b   : > { %492 = vmatmul.bf16.gmra.mxu0 %v830_v37  ;;  %532 = vmatmul.bf16.gmra.mxu2 %v894_v38  ;;  %v1017_v37 = vld [vmem:[%s1207_s24 + $0x74] sm:$0xf0]  ;;  %v941_v38 = vld [vmem:[%s1207_s24 + $0xf0] sm:$0xf] }
  0x3c   : > { %v878_v40 = vor.u32 %v1017_v37, %v877_v36 }
  0x41   : > { %986 = vmatmul.msk.bf16.gmra.mxu1 %vm430_vm0, %v850_v41  ;;  %v942_v41 = vor.u32 %v1033_v39, %v941_v38 }
  0x42   : > { %995 = vmatmul.msk.bf16.gmra.mxu3 %vm430_vm0, %v922_v46  ;;  %v1310_v46 = vld [vmem:[%s1377_s2] ss:$0 sm:$0xff] }
  0x4b   : > { %497 = vmatmul.bf16.gmra.mxu0 %v838_v49  ;;  %537 = vmatmul.bf16.gmra.mxu2 %v902_v50 }
  0x51   : > { %987 = vmatmul.msk.bf16.gmra.mxu1 %vm430_vm0, %v858_v53 }
  0x52   : > { %996 = vmatmul.msk.bf16.gmra.mxu3 %vm430_vm0, %v930_v58 }
  0x5b   : > { %502 = vmatmul.bf16.gmra.mxu0 %v846_v61  ;;  %542 = vmatmul.bf16.gmra.mxu2 %v910_v62 }
  0x61   : > { %988 = vmatmul.msk.bf16.gmra.mxu1 %vm430_vm0, %v866_v1 }
  0x62   : > { %997 = vmatmul.msk.bf16.gmra.mxu3 %vm430_vm0, %v938_v6 }
  0x6b   : > { %507 = vmatmul.bf16.gmra.mxu0 %v854_v9  ;;  %547 = vmatmul.bf16.gmra.mxu2 %v918_v10 }
  0x71   : > { %989 = vmatmul.msk.bf16.gmra.mxu1 %vm430_vm0, %v874_v13 }
  0x72   : > { %998 = vmatmul.msk.bf16.gmra.mxu3 %vm430_vm0, %v946_v18 }
  0x7b   : > { %512 = vmatmul.bf16.gmra.mxu0 %v862_v21  ;;  %552 = vmatmul.bf16.gmra.mxu2 %v926_v22 }
  0x81   : > { %990 = vmatmul.msk.bf16.gmra.mxu1 %vm430_vm0, %v882_v25 }
  0x8b   : > { %517 = vmatmul.bf16.gmra.mxu0 %v870_v30  ;;  %557 = vmatmul.bf16.gmra.mxu2 %v934_v31 }
  0x8e   : > { %v577_v35 = vpop.f32.mrf.mxu1 }
  0x91   : > { %991 = vmatmul.msk.bf16.gmra.mxu1 %vm430_vm0, %v890_v34 }
  0x95   : > { %v622_v44 = vpop.f32.mrf.mxu3 }
  0x96   : > { %v579_v42 = vpop.f32.mrf.mxu1 }
  0x9b   : > { %522 = vmatmul.bf16.gmra.mxu0 %v878_v40  ;;  %562 = vmatmul.bf16.gmra.mxu2 %v942_v41 }
  0x9d   : > { %v624_v54 = vpop.f32.mrf.mxu3 }
  0x9e   : > { %v582_v43 = vpop.f32.mrf.mxu1 }
  0xa5   : > { %v627_v62 = vpop.f32.mrf.mxu3 }
  0xa6   : > { %v584_v47 = vpop.f32.mrf.mxu1 }
  0xa8   : > { %v488_v45 = vpop.f32.mrf.mxu0 }
  0xa9   : > { %v489_v48 = vadd.f32 %v1310_v46, %v488_v45 }
  0xab   : > { %v578_v51 = vadd.f32 %v577_v35, %v489_v48 }
  0xad   : > { %v657_v56 = vmax.f32 %v578_v51, 0.0  ;;  %v629_v9 = vpop.f32.mrf.mxu3 }
  0xae   : > { %v1313_v49 = vpop.f32.mrf.mxu2  ;;  %v587_v53 = vpop.f32.mrf.mxu1 }
  0xb0   : > { %v490_v50 = vpop.f32.mrf.mxu0 }
  0xb1   : > { %v491_v52 = vadd.f32 %v1310_v46, %v490_v50 }
  0xb3   : > { %v580_v55 = vadd.f32 %v579_v42, %v491_v52 }
  0xb5   : > { %v658_v57 = vmax.f32 %v580_v55, 0.0  ;;  %v632_v22 = vpop.f32.mrf.mxu3 }
  0xb6   : > { %v1322_v59 = vpop.f32.mrf.mxu2  ;;  %v589_v61 = vpop.f32.mrf.mxu1 }
  0xb7   : > { %v1046_v58 = vpack.c.bf16 %v658_v57, %v657_v56 }
  0xb8   : > { %v493_v60 = vpop.f32.mrf.mxu0 }
  0xb9   : > { %1047 = vst [vmem:[%s1320_s16] sm:$0xff] %v1046_v58   ;;  %v494_v63 = vadd.f32 %v1310_v46, %v493_v60 }
  0xbb   : > { %v583_v2 = vadd.f32 %v582_v43, %v494_v63 }
  0xbd   : > { %v659_v7 = vmax.f32 %v583_v2, 0.0  ;;  %v634_v37 = vpop.f32.mrf.mxu3 }
  0xbe   : > { %v533_v0 = vpop.f32.mrf.mxu2  ;;  %v592_v4 = vpop.f32.mrf.mxu1 }
  0xbf   : > { %v534_v6 = vadd.f32 %v1310_v46, %v533_v0 }
  0xc0   : > { %v495_v1 = vpop.f32.mrf.mxu0 }
  0xc1   : > { %v496_v3 = vadd.f32 %v1310_v46, %v495_v1  ;;  %v623_v12 = vadd.f32 %v622_v44, %v534_v6 }
  0xc3   : > { %v585_v5 = vadd.f32 %v584_v47, %v496_v3  ;;  %v675_v17 = vmax.f32 %v623_v12, 0.0 }
  0xc5   : > { %v660_v8 = vmax.f32 %v585_v5, 0.0  ;;  %v637_v51 = vpop.f32.mrf.mxu3 }
  0xc6   : > { %v535_v11 = vpop.f32.mrf.mxu2  ;;  %v594_v15 = vpop.f32.mrf.mxu1 }
  0xc7   : > { %v1051_v10 = vpack.c.bf16 %v660_v8, %v659_v7  ;;  %v536_v13 = vadd.f32 %v1310_v46, %v535_v11 }
  0xc8   : > { %v498_v14 = vpop.f32.mrf.mxu0 }
  0xc9   : > { %1123 = vst [vmem:[%s1320_s16 + $0x8] sm:$0xff] %v1051_v10   ;;  %v625_v16 = vadd.f32 %v624_v54, %v536_v13  ;;  %v499_v19 = vadd.f32 %v1310_v46, %v498_v14 }
  0xcb   : > { %v676_v18 = vmax.f32 %v625_v16, 0.0  ;;  %v588_v24 = vadd.f32 %v587_v53, %v499_v19 }
  0xcd   : > { %v1091_v20 = vpack.c.bf16 %v676_v18, %v675_v17  ;;  %v661_v29 = vmax.f32 %v588_v24, 0.0  ;;  %v639_v2 = vpop.f32.mrf.mxu3 }
  0xce   : > { %v538_v21 = vpop.f32.mrf.mxu2  ;;  %v597_v26 = vpop.f32.mrf.mxu1 }
  0xcf   : > { %1131 = vst [vmem:[%s1320_s16 + $0x48] sm:$0xff] %v1091_v20   ;;  %v539_v28 = vadd.f32 %v1310_v46, %v538_v21 }
  0xd0   : > { %v500_v23 = vpop.f32.mrf.mxu0 }
  0xd1   : > { %v501_v25 = vadd.f32 %v1310_v46, %v500_v23  ;;  %v628_v33 = vadd.f32 %v627_v62, %v539_v28 }
  0xd3   : > { %v590_v27 = vadd.f32 %v589_v61, %v501_v25  ;;  %v677_v39 = vmax.f32 %v628_v33, 0.0 }
  0xd5   : > { %v662_v30 = vmax.f32 %v590_v27, 0.0 }
  0xd6   : > { %v540_v32 = vpop.f32.mrf.mxu2  ;;  %v599_v36 = vpop.f32.mrf.mxu1 }
  0xd7   : > { %v1056_v31 = vpack.c.bf16 %v662_v30, %v661_v29  ;;  %v541_v34 = vadd.f32 %v1310_v46, %v540_v32 }
  0xd8   : > { %v503_v35 = vpop.f32.mrf.mxu0 }
  0xd9   : > { %1124 = vst [vmem:[%s1320_s16 + $0x10] sm:$0xff] %v1056_v31   ;;  %v630_v38 = vadd.f32 %v629_v9, %v541_v34  ;;  %v504_v41 = vadd.f32 %v1310_v46, %v503_v35 }
  0xdb   : > { %v678_v40 = vmax.f32 %v630_v38, 0.0  ;;  %v593_v45 = vadd.f32 %v592_v4, %v504_v41 }
  0xdd   : > { %v1096_v42 = vpack.c.bf16 %v678_v40, %v677_v39  ;;  %v663_v53 = vmax.f32 %v593_v45, 0.0 }
  0xde   : > { %v543_v43 = vpop.f32.mrf.mxu2  ;;  %v602_v48 = vpop.f32.mrf.mxu1 }
  0xdf   : > { %1132 = vst [vmem:[%s1320_s16 + $0x50] sm:$0xff] %v1096_v42   ;;  %v544_v52 = vadd.f32 %v1310_v46, %v543_v43 }
  0xe0   : > { %v505_v44 = vpop.f32.mrf.mxu0 }
  0xe1   : > { %v506_v47 = vadd.f32 %v1310_v46, %v505_v44  ;;  %v633_v57 = vadd.f32 %v632_v22, %v544_v52 }
  0xe3   : > { %v595_v50 = vadd.f32 %v594_v15, %v506_v47  ;;  %v679_v63 = vmax.f32 %v633_v57, 0.0  ;;  %v642_v15 = vpop.f32.mrf.mxu3 }
  0xe5   : > { %v664_v54 = vmax.f32 %v595_v50, 0.0 }
  0xe6   : > { %v545_v56 = vpop.f32.mrf.mxu2  ;;  %v604_v61 = vpop.f32.mrf.mxu1 }
  0xe7   : > { %v1061_v55 = vpack.c.bf16 %v664_v54, %v663_v53  ;;  %v546_v58 = vadd.f32 %v1310_v46, %v545_v56 }
  0xe8   : > { %v508_v60 = vpop.f32.mrf.mxu0 }
  0xe9   : > { %1125 = vst [vmem:[%s1320_s16 + $0x18] sm:$0xff] %v1061_v55   ;;  %v635_v62 = vadd.f32 %v634_v37, %v546_v58  ;;  %v509_v1 = vadd.f32 %v1310_v46, %v508_v60  ;;  %v529_v60 = vadd.f32 %v1310_v46, %v1313_v49 }
  0xeb   : > { %v680_v0 = vmax.f32 %v635_v62, 0.0  ;;  %v598_v6 = vadd.f32 %v597_v26, %v509_v1  ;;  %v644_v30 = vpop.f32.mrf.mxu3 }
  0xed   : > { %v1101_v3 = vpack.c.bf16 %v680_v0, %v679_v63  ;;  %v665_v11 = vmax.f32 %v598_v6, 0.0  ;;  %v531_v63 = vadd.f32 %v1310_v46, %v1322_v59 }
  0xee   : > { %v548_v4 = vpop.f32.mrf.mxu2  ;;  %v607_v8 = vpop.f32.mrf.mxu1 }
  0xef   : > { %1133 = vst [vmem:[%s1320_s16 + $0x58] sm:$0xff] %v1101_v3   ;;  %v549_v10 = vadd.f32 %v1310_v46, %v548_v4 }
  0xf0   : > { %v510_v5 = vpop.f32.mrf.mxu0 }
  0xf1   : > { %v511_v7 = vadd.f32 %v1310_v46, %v510_v5  ;;  %v638_v16 = vadd.f32 %v637_v51, %v549_v10 }
  0xf3   : > { %v600_v9 = vadd.f32 %v599_v36, %v511_v7  ;;  %v681_v21 = vmax.f32 %v638_v16, 0.0  ;;  %v647_v42 = vpop.f32.mrf.mxu3 }
  0xf5   : > { %v666_v12 = vmax.f32 %v600_v9, 0.0 }
  0xf6   : > { %v550_v14 = vpop.f32.mrf.mxu2  ;;  %v609_v19 = vpop.f32.mrf.mxu1 }
  0xf7   : > { %v1066_v13 = vpack.c.bf16 %v666_v12, %v665_v11  ;;  %v551_v17 = vadd.f32 %v1310_v46, %v550_v14 }
  0xf8   : > { %v513_v18 = vpop.f32.mrf.mxu0 }
  0xf9   : > { %1126 = vst [vmem:[%s1320_s16 + $0x20] sm:$0xff] %v1066_v13   ;;  %v640_v20 = vadd.f32 %v639_v2, %v551_v17  ;;  %v514_v23 = vadd.f32 %v1310_v46, %v513_v18 }
  0xfb   : > { %v682_v22 = vmax.f32 %v640_v20, 0.0  ;;  %v603_v27 = vadd.f32 %v602_v48, %v514_v23  ;;  %v649_v58 = vpop.f32.mrf.mxu3 }
  0xfd   : > { %v1106_v24 = vpack.c.bf16 %v682_v22, %v681_v21  ;;  %v667_v33 = vmax.f32 %v603_v27, 0.0 }
  0xfe   : > { %v553_v25 = vpop.f32.mrf.mxu2  ;;  %v612_v29 = vpop.f32.mrf.mxu1 }
  0xff   : > { %1134 = vst [vmem:[%s1320_s16 + $0x60] sm:$0xff] %v1106_v24   ;;  %v554_v32 = vadd.f32 %v1310_v46, %v553_v25 }
 0x100   : > { %v515_v26 = vpop.f32.mrf.mxu0 }
 0x101   : > { %v516_v28 = vadd.f32 %v1310_v46, %v515_v26  ;;  %v643_v37 = vadd.f32 %v642_v15, %v554_v32 }
 0x103   : > { %v605_v31 = vadd.f32 %v604_v61, %v516_v28  ;;  %v683_v43 = vmax.f32 %v643_v37, 0.0  ;;  %v652_v59 = vpop.f32.mrf.mxu3 }
 0x105   : > { %v668_v34 = vmax.f32 %v605_v31, 0.0 }
 0x106   : > { %v555_v36 = vpop.f32.mrf.mxu2  ;;  %v614_v40 = vpop.f32.mrf.mxu1 }
 0x107   : > { %v1071_v35 = vpack.c.bf16 %v668_v34, %v667_v33  ;;  %v556_v38 = vadd.f32 %v1310_v46, %v555_v36 }
 0x108   : > { %v518_v39 = vpop.f32.mrf.mxu0 }
 0x109   : > { %1127 = vst [vmem:[%s1320_s16 + $0x28] sm:$0xff] %v1071_v35   ;;  %v645_v41 = vadd.f32 %v644_v30, %v556_v38  ;;  %v519_v45 = vadd.f32 %v1310_v46, %v518_v39 }
 0x10b   : > { %v684_v44 = vmax.f32 %v645_v41, 0.0  ;;  %v608_v51 = vadd.f32 %v607_v8, %v519_v45  ;;  %v654_v25 = vpop.f32.mrf.mxu3 }
 0x10d   : > { %v1111_v47 = vpack.c.bf16 %v684_v44, %v683_v43  ;;  %v669_v56 = vmax.f32 %v608_v51, 0.0 }
 0x10e   : > { %v558_v48 = vpop.f32.mrf.mxu2  ;;  %v617_v53 = vpop.f32.mrf.mxu1 }
 0x10f   : > { %1135 = vst [vmem:[%s1320_s16 + $0x68] sm:$0xff] %v1111_v47   ;;  %v559_v55 = vadd.f32 %v1310_v46, %v558_v48  ;;  %v618_v1 = vadd.f32 %v617_v53, %v529_v60 }
 0x110   : > { %v520_v50 = vpop.f32.mrf.mxu0 }
 0x111   : > { %v521_v52 = vadd.f32 %v1310_v46, %v520_v50  ;;  %v648_v0 = vadd.f32 %v647_v42, %v559_v55  ;;  %v673_v8 = vmax.f32 %v618_v1, 0.0 }
 0x113   : > { %v610_v54 = vadd.f32 %v609_v19, %v521_v52  ;;  %v685_v7 = vmax.f32 %v648_v0, 0.0 }
 0x115   : > { %v670_v57 = vmax.f32 %v610_v54, 0.0 }
 0x116   : > { %v560_v62 = vpop.f32.mrf.mxu2  ;;  %v619_v4 = vpop.f32.mrf.mxu1 }
 0x117   : > { %v1076_v61 = vpack.c.bf16 %v670_v57, %v669_v56  ;;  %v561_v2 = vadd.f32 %v1310_v46, %v560_v62  ;;  %v620_v6 = vadd.f32 %v619_v4, %v531_v63 }
 0x118   : > { %v523_v3 = vpop.f32.mrf.mxu0 }
 0x119   : > { %1128 = vst [vmem:[%s1320_s16 + $0x30] sm:$0xff] %v1076_v61   ;;  %v650_v5 = vadd.f32 %v649_v58, %v561_v2  ;;  %v674_v49 = vmax.f32 %v620_v6, 0.0  ;;  %v524_v10 = vadd.f32 %v1310_v46, %v523_v3 }
 0x11b   : > { %v686_v9 = vmax.f32 %v650_v5, 0.0  ;;  %v1086_v12 = vpack.c.bf16 %v674_v49, %v673_v8  ;;  %v613_v15 = vadd.f32 %v612_v29, %v524_v10 }
 0x11d   : > { %v1116_v11 = vpack.c.bf16 %v686_v9, %v685_v7  ;;  %1130 = vst [vmem:[%s1320_s16 + $0x40] sm:$0xff] %v1086_v12   ;;  %v671_v19 = vmax.f32 %v613_v15, 0.0 }
 0x11e   : > { %v563_v13 = vpop.f32.mrf.mxu2 }
 0x11f   : > { %1136 = vst [vmem:[%s1320_s16 + $0x70] sm:$0xff] %v1116_v11   ;;  %v564_v18 = vadd.f32 %v1310_v46, %v563_v13 }
 0x120   : > { %v525_v14 = vpop.f32.mrf.mxu0 }
 0x121   : > { %v526_v16 = vadd.f32 %v1310_v46, %v525_v14  ;;  %v653_v23 = vadd.f32 %v652_v59, %v564_v18 }
 0x123   : > { %v615_v17 = vadd.f32 %v614_v40, %v526_v16  ;;  %v687_v27 = vmax.f32 %v653_v23, 0.0 }
 0x125   : > { %v672_v20 = vmax.f32 %v615_v17, 0.0 }
 0x126   : > { %v565_v22 = vpop.f32.mrf.mxu2 }
 0x127   : > { %v1081_v21 = vpack.c.bf16 %v672_v20, %v671_v19  ;;  %v566_v24 = vadd.f32 %v1310_v46, %v565_v22 }
 0x129   : > { %1129 = vst [vmem:[%s1320_s16 + $0x38] sm:$0xff] %v1081_v21   ;;  %v655_v26 = vadd.f32 %v654_v25, %v566_v24 }
 0x12b   : > { %v688_v28 = vmax.f32 %v655_v26, 0.0 }
 0x12d   : > { %v1121_v29 = vpack.c.bf16 %v688_v28, %v687_v27 }
 0x12f   : > { %1137 = vst [vmem:[%s1320_s16 + $0x78] sm:$0xff] %v1121_v29  }
 0x130 PF: > { %s13_s12 = sadd.s32 1, %s1162_s12  }
 0x131   : > { %p10_p4 = scmp.ge.s32.totalorder %s13_s12, 4  }
 0x133   :  { %12 = sbr.rel (!%p10_p4) target bundleno = 1 (0x1), region = 62 }

// kernel: regressor_forward.28
= control target key start
LH: loop header
LB: loop body
LE: loop exit
PB: predicated region body
PF: predicated region fallthrough
CT: control target
= control target key end

     0   :  { %s767_s15 = smov 0   ;;  %s911_s0 = inlined_call_operand.vmem [shape: bf16[2,8,8,128], index: 0, kind: input, shape index: {}]   ;;  %s912_s1 = inlined_call_operand.vmem [shape: bf16[2,8,8,128], index: 1, kind: input, shape index: {}]   ;;  %s913_s2 = inlined_call_operand.vmem [shape: bf16[2,8,8,128], index: 2, kind: input, shape index: {}]   ;;  %s914_s3 = inlined_call_operand.vmem [shape: bf16[2,8,8,128], index: 3, kind: input, shape index: {}]   ;;  %s915_s4 = inlined_call_operand.vmem [shape: bf16[2,7,7,128], index: 4, kind: output, shape index: {}]  }
   0x1 LB: > { %s639_s16 = sadd.s32 4294967295, %s740_s15   ;;  %p643_p0 = scmp.ge.s32.totalorder %s740_s15, 1  ;;  %s740_s15 = sphi %s767_s15, %s14_s15  }
   0x2   : > { %p192_p1 = scmp.lt.s32.totalorder %s740_s15, 3 }
   0x4   : > { %p193_p2 = pnand %p643_p0, %p192_p1 }
   0x5   : > { %p233_p3 = scmp.lt.s32.totalorder (!%p193_p2), %s639_s16, 1 }
   0x6   : > { %196 = sbr.rel (%p193_p2) target bundleno = 53 (0x35), region = 36 }
   0xb   : > { %s919_s16 = smov (!%p233_p3, %s639_s16), 1  ;;  %vm524_vm0 = vcmask 1043456   ;;  %vm525_vm1 = vsmask.f32 3328 }
   0xc   : > { %s655_s17 = sshll.u32 %s919_s16, 5  ;;  %s725_s30 = smul.u32 28, %s919_s16  ;;  %vm866_vm2 = vmand %vm524_vm0, %vm525_vm1 }
   0xd   : > { %s781_s20 = scalar_lea.vmem %s911_s0, %s655_s17  ;;  %s786_s23 = scalar_lea.vmem %s912_s1, %s655_s17 }
   0xe   : > { %s791_s26 = scalar_lea.vmem %s913_s2, %s655_s17  ;;  %s796_s29 = scalar_lea.vmem %s914_s3, %s655_s17  ;;  %v660_v0 = vld [vmem:[%s781_s20] sm:$0xff]   ;;  %v715_v2 = vld [vmem:[%s781_s20 + $0x8] sm:$0xff]   ;;  %v716_v18 = vld [vmem:[%s781_s20 + $0x10] sm:$0xff]  }
   0xf   : > { %v800_v1 = vld [vmem:[%s786_s23] sm:$0xff]   ;;  %v661_v3 = vunpack.c.l.bf16 %v660_v0  ;;  %v662_v4 = vunpack.c.h.bf16 %v660_v0  ;;  %v811_v8 = vld [vmem:[%s786_s23 + $0x8] sm:$0xff]   ;;  %v665_v12 = vunpack.c.l.bf16 %v715_v2  ;;  %v666_v22 = vunpack.c.h.bf16 %v715_v2  ;;  %v831_v28 = vld [vmem:[%s786_s23 + $0x10] sm:$0xff]   ;;  %s858_s7 = scalar_lea.vmem %s915_s4, %s725_s30 }
  0x10   : > { %v677_v5 = vunpack.c.l.bf16 %v800_v1  ;;  %v805_v6 = vld [vmem:[%s791_s26] sm:$0xff]   ;;  %v678_v9 = vunpack.c.h.bf16 %v800_v1  ;;  %v817_v13 = vld [vmem:[%s791_s26 + $0x8] sm:$0xff]   ;;  %v681_v16 = vunpack.c.l.bf16 %v811_v8  ;;  %v682_v26 = vunpack.c.h.bf16 %v811_v8  ;;  %v837_v37 = vld [vmem:[%s791_s26 + $0x10] sm:$0xff]  }
  0x11   : > { %v808_v7 = vld [vmem:[%s796_s29] sm:$0xff]   ;;  %v693_v10 = vunpack.c.l.bf16 %v805_v6  ;;  %v302_v14 = vrot.slane %v661_v3, 1  ;;  %v303_v15 = vrot.slane %v662_v4, 1  ;;  %v694_v17 = vunpack.c.h.bf16 %v805_v6  ;;  %v826_v23 = vld [vmem:[%s796_s29 + $0x8] sm:$0xff]   ;;  %v842_v46 = vld [vmem:[%s796_s29 + $0x10] sm:$0xff]  }
  0x12   : > { %v705_v11 = vunpack.c.l.bf16 %v808_v7  ;;  %v706_v20 = vunpack.c.h.bf16 %v808_v7  ;;  %v304_v21 = vrot.slane %v665_v12, 1  ;;  %v697_v27 = vunpack.c.l.bf16 %v817_v13  ;;  %v717_v51 = vld [vmem:[%s781_s20 + $0x18] sm:$0xff]  }
  0x13   : > { %v822_v19 = vrot.slane %v693_v10, 1  ;;  %v316_v24 = vmax.f32 %v661_v3, %v302_v14  ;;  %v317_v25 = vmax.f32 %v662_v4, %v303_v15  ;;  %v833_v29 = vrot.slane %v694_v17, 1  ;;  %v850_v60 = vld [vmem:[%s786_s23 + $0x18] sm:$0xff]  }
  0x14   : > { %v305_v30 = vrot.slane %v666_v22, 1  ;;  %v318_v31 = vmax.f32 %v665_v12, %v304_v21  ;;  %v669_v32 = vunpack.c.l.bf16 %v716_v18  ;;  %v709_v35 = vunpack.c.l.bf16 %v826_v23 }
  0x15   : > { %v338_v33 = vmax.f32 %v316_v24, %v662_v4  ;;  %v339_v34 = vmax.f32 %v317_v25, %v665_v12  ;;  %v470_v36 = vrot.slane %v697_v27, 1  ;;  %v685_v39 = vunpack.c.l.bf16 %v831_v28 }
  0x16   : > { %v340_v38 = vmax.f32 %v318_v31, %v666_v22  ;;  %v698_v40 = vunpack.c.h.bf16 %v817_v13  ;;  %v306_v41 = vrot.slane %v669_v32, 1  ;;  %v319_v44 = vmax.f32 %v666_v22, %v305_v30  ;;  %v530_v31 = vld [vmem:[%s858_s7 + $0x4] sm:$0xf] }
  0x17   : > { %v362_v42 = vmax.f32 %v338_v33, %v303_v15  ;;  %v363_v43 = vmax.f32 %v339_v34, %v304_v21  ;;  %v670_v45 = vunpack.c.h.bf16 %v716_v18  ;;  %v710_v48 = vunpack.c.h.bf16 %v826_v23 }
  0x18   : > { %v364_v47 = vmax.f32 %v340_v38, %v305_v30  ;;  %v471_v49 = vrot.slane %v698_v40, 1  ;;  %v701_v50 = vunpack.c.l.bf16 %v837_v37  ;;  %v341_v54 = vmax.f32 %v319_v44, %v669_v32  ;;  %v527_v30 = vld [vmem:[%s858_s7] sm:$0xf] }
  0x19   : > { %v390_v52 = vmax.f32 %v362_v42, %v677_v5  ;;  %v391_v53 = vmax.f32 %v363_v43, %v678_v9  ;;  %v686_v55 = vunpack.c.h.bf16 %v831_v28  ;;  %v713_v57 = vunpack.c.l.bf16 %v842_v46 }
  0x1a   : > { %v392_v56 = vmax.f32 %v364_v47, %v681_v16  ;;  %v307_v58 = vrot.slane %v670_v45, 1  ;;  %v320_v59 = vmax.f32 %v669_v32, %v306_v41  ;;  %v365_v63 = vmax.f32 %v341_v54, %v306_v41 }
  0x1b   : > { %v412_v61 = vmax.f32 %v390_v52, %v678_v9  ;;  %v413_v62 = vmax.f32 %v391_v53, %v681_v16  ;;  %v673_v0 = vunpack.c.l.bf16 %v717_v51  ;;  %v472_v3 = vrot.slane %v701_v50, 1 }
  0x1c   : > { %v414_v1 = vmax.f32 %v392_v56, %v682_v26  ;;  %v342_v2 = vmax.f32 %v320_v59, %v670_v45  ;;  %v702_v4 = vunpack.c.h.bf16 %v837_v37  ;;  %v393_v8 = vmax.f32 %v365_v63, %v682_v26  ;;  %v539_v59 = vld [vmem:[%s858_s7 + $0x10] sm:$0xf] }
  0x1d   : > { %v440_v5 = vmax.f32 %v412_v61, %v693_v10  ;;  %v441_v6 = vmax.f32 %v413_v62, %v694_v17  ;;  %v689_v12 = vunpack.c.l.bf16 %v850_v60  ;;  %v308_v15 = vrot.slane %v673_v0, 1 }
  0x1e   : > { %v442_v13 = vmax.f32 %v414_v1, %v697_v27  ;;  %v366_v14 = vmax.f32 %v342_v2, %v307_v58  ;;  %v321_v18 = vmax.f32 %v670_v45, %v307_v58  ;;  %v415_v10 = vmax.f32 %v393_v8, %v685_v39 }
  0x1f   : > { %v482_v9 = vmax.f32 %v440_v5, %v822_v19  ;;  %v483_v16 = vmax.f32 %v441_v6, %v833_v29  ;;  %v473_v17 = vrot.slane %v702_v4, 1  ;;  %v674_v25 = vunpack.c.h.bf16 %v717_v51 }
  0x20   : > { %v484_v21 = vmax.f32 %v442_v13, %v470_v36  ;;  %v394_v22 = vmax.f32 %v366_v14, %v685_v39  ;;  %v343_v24 = vmax.f32 %v321_v18, %v673_v0  ;;  %v443_v28 = vmax.f32 %v415_v10, %v698_v40  ;;  %v280_v36 = vld [vmem:[%s791_s26 + $0x18] sm:$0xf]  ;;  %v533_v39 = vld [vmem:[%s858_s7 + $0x8] sm:$0xf] }
  0x21   : > { %v510_v26 = vmax.f32 %v482_v9, %v705_v11  ;;  %v511_v19 = vmax.f32 %v483_v16, %v706_v20  ;;  %v690_v29 = vunpack.c.h.bf16 %v850_v60  ;;  %v322_v11 = vmax.f32 %v673_v0, %v308_v15  ;;  %v287_v60 = vld [vmem:[%s796_s29 + $0x18] sm:$0xf] }
  0x22   : > { %v512_v32 = vmax.f32 %v484_v21, %v709_v35  ;;  %v416_v33 = vmax.f32 %v394_v22, %v686_v55  ;;  %v367_v34 = vmax.f32 %v343_v24, %v308_v15  ;;  %v485_v41 = vmax.f32 %v443_v28, %v471_v49 }
  0x23   : > { %v517_v37 = vpack.c.bf16 %v510_v26, %v510_v26  ;;  %v518_v38 = vpack.c.bf16 %v511_v19, %v511_v19  ;;  %v360_v42 = vrot.slane %v674_v25, 1  ;;  %v344_v43 = vmax.f32 %v322_v11, %v674_v25 }
  0x24   : > { %v519_v7 = vpack.c.bf16 %v512_v32, %v512_v32  ;;  %v444_v20 = vmax.f32 %v416_v33, %v701_v50  ;;  %v395_v40 = vmax.f32 %v367_v34, %v686_v55  ;;  %v513_v45 = vmax.f32 %v485_v41, %v710_v48  ;;  %v536_v50 = vld [vmem:[%s858_s7 + $0xc] sm:$0xf] }
  0x25   : > { %v528_v35 = vsel %vm866_vm2, %v517_v37, %v527_v30  ;;  %v531_v44 = vsel %vm866_vm2, %v518_v38, %v530_v31  ;;  %v439_v47 = vunpack.c.l.bf16 %v280_v36  ;;  %v368_v53 = vmax.f32 %v344_v43, %v360_v42 }
  0x26   : > { %529 = vst [vmem:[%s858_s7] sm:$0xf] %v528_v35  ;;  %v534_v49 = vsel %vm866_vm2, %v519_v7, %v533_v39  ;;  %v486_v51 = vmax.f32 %v444_v20, %v472_v3  ;;  %v417_v52 = vmax.f32 %v395_v40, %v689_v12  ;;  %v520_v54 = vpack.c.bf16 %v513_v45, %v513_v45  ;;  %v542_v3 = vld [vmem:[%s858_s7 + $0x14] sm:$0xf] }
  0x27   : > { %532 = vst [vmem:[%s858_s7 + $0x4] sm:$0xf] %v531_v44  ;;  %v714_v23 = vunpack.c.h.bf16 %v842_v46  ;;  %v396_v56 = vmax.f32 %v368_v53, %v689_v12  ;;  %v474_v0 = vrot.slane %v439_v47, 1  ;;  %v509_v2 = vunpack.c.l.bf16 %v287_v60  ;;  %v545_v12 = vld [vmem:[%s858_s7 + $0x18] sm:$0xf] }
  0x28   : > { %535 = vst [vmem:[%s858_s7 + $0x8] sm:$0xf] %v534_v49  ;;  %v514_v55 = vmax.f32 %v486_v51, %v713_v57  ;;  %v445_v48 = vmax.f32 %v417_v52, %v702_v4  ;;  %v537_v58 = vsel %vm866_vm2, %v520_v54, %v536_v50 }
  0x29   : > { %538 = vst [vmem:[%s858_s7 + $0xc] sm:$0xf] %v537_v58  ;;  %v418_v63 = vmax.f32 %v396_v56, %v690_v29 }
  0x2a   : > { %v521_v61 = vpack.c.bf16 %v514_v55, %v514_v55  ;;  %v487_v62 = vmax.f32 %v445_v48, %v473_v17 }
  0x2b   : > { %v446_v1 = vmax.f32 %v418_v63, %v439_v47 }
  0x2c   : > { %v540_v57 = vsel %vm866_vm2, %v521_v61, %v539_v59  ;;  %v515_v46 = vmax.f32 %v487_v62, %v714_v23 }
  0x2d   : > { %541 = vst [vmem:[%s858_s7 + $0x10] sm:$0xf] %v540_v57  ;;  %v488_v5 = vmax.f32 %v446_v1, %v474_v0 }
  0x2e   : > { %v522_v4 = vpack.c.bf16 %v515_v46, %v515_v46 }
  0x2f   : > { %v516_v8 = vmax.f32 %v488_v5, %v509_v2 }
  0x30   : > { %v543_v6 = vsel %vm866_vm2, %v522_v4, %v542_v3 }
  0x31   : > { %544 = vst [vmem:[%s858_s7 + $0x14] sm:$0xf] %v543_v6  ;;  %v523_v13 = vpack.c.bf16 %v516_v8, %v516_v8 }
  0x33   : > { %v546_v14 = vsel %vm866_vm2, %v523_v13, %v545_v12 }
  0x34   : > { %547 = vst [vmem:[%s858_s7 + $0x18] sm:$0xf] %v546_v14 }
  0x35 PF: > { %s14_s15 = sadd.s32 1, %s740_s15  }
  0x36   : > { %p11_p4 = scmp.ge.s32.totalorder %s14_s15, 4  }
  0x38   :  { %13 = sbr.rel (!%p11_p4) target bundleno = 1 (0x1), region = 75 }

// kernel: regressor_forward.29
= control target key start
LH: loop header
LB: loop body
LE: loop exit
PB: predicated region body
PF: predicated region fallthrough
CT: control target
= control target key end

     0   :  { %vm204_vm0 = vcmask 257024   ;;  %vm217_vm1 = vcmask 253952   ;;  %s452_s1 = inlined_call_operand.vmem [shape: bf16[128,32], index: 1, kind: input, shape index: {}]   ;;  %s453_s2 = inlined_call_operand.vmem [shape: f32[1,32], index: 2, kind: input, shape index: {}]   ;;  %s454_s0 = inlined_call_operand.vmem [shape: bf16[98,128], index: 0, kind: input, shape index: {}]   ;;  %s455_s3 = inlined_call_operand.vmem [shape: bf16[98,32], index: 3, kind: output, shape index: {}]  }
   0x1   :  { %v292_v0 = vld [vmem:[%s452_s1 + $0x38] sm:$0xff]  ;;  %v291_v1 = vld [vmem:[%s452_s1 + $0x30] sm:$0xff]  ;;  %v290_v2 = vld [vmem:[%s452_s1 + $0x28] sm:$0xff] }
   0x2   :  { %293 = vmatpush.bf16.msra.mxu1 %v292_v0  ;;  %294 = vmatpush.bf16.msra.mxu2 %v292_v0  ;;  %v289_v3 = vld [vmem:[%s452_s1 + $0x20] sm:$0xff]  ;;  %v288_v4 = vld [vmem:[%s452_s1 + $0x18] sm:$0xff]  ;;  %v287_v5 = vld [vmem:[%s452_s1 + $0x10] sm:$0xff] }
   0x3   :  { %295 = vmatpush.bf16.msra.mxu3 %v292_v0  ;;  %135 = vmatpush.bf16.msra.mxu0 %v292_v0  ;;  %v286_v6 = vld [vmem:[%s452_s1 + $0x8] sm:$0xff]  ;;  %v285_v7 = vld [vmem:[%s452_s1] sm:$0xff]  ;;  %v282_v9 = vld [vmem:[%s454_s0 + $0x18] sm:$0xff] }
   0x4   :  { %v280_v8 = vld [vmem:[%s454_s0 + $0x8] sm:$0xff]  ;;  %v279_v11 = vld [vmem:[%s454_s0] sm:$0xff]  ;;  %v26_v12 = vld [vmem:[%s454_s0 + $0x30] sm:$0x1] }
   0x5   :  { %v284_v10 = vld [vmem:[%s454_s0 + $0x28] sm:$0xff]  ;;  %v72_v13 = vunpack.c.l.b16 %v26_v12  ;;  %v281_v14 = vld [vmem:[%s454_s0 + $0x10] sm:$0xff]  ;;  %v283_v15 = vld [vmem:[%s454_s0 + $0x20] sm:$0xff] }
   0x6   :  { %296 = vmatpush.bf16.msra.mxu1 %v291_v1  ;;  %297 = vmatpush.bf16.msra.mxu2 %v291_v1  ;;  %v386_v17 = vld [vmem:[%s453_s2] ss:$0 sm:$0xff] }
   0x7   :  { %298 = vmatpush.bf16.msra.mxu3 %v291_v1  ;;  %136 = vmatpush.bf16.msra.mxu0 %v291_v1  ;;  %v79_v16 = vpack.c.b16 %v72_v13, %v72_v13 }
   0xa   :  { %299 = vmatpush.bf16.msra.mxu1 %v290_v2  ;;  %300 = vmatpush.bf16.msra.mxu2 %v290_v2 }
   0xb   :  { %301 = vmatpush.bf16.msra.mxu3 %v290_v2  ;;  %137 = vmatpush.bf16.msra.mxu0 %v290_v2 }
   0xe   :  { %302 = vmatpush.bf16.msra.mxu1 %v289_v3  ;;  %303 = vmatpush.bf16.msra.mxu2 %v289_v3 }
   0xf   :  { %304 = vmatpush.bf16.msra.mxu3 %v289_v3  ;;  %138 = vmatpush.bf16.msra.mxu0 %v289_v3 }
  0x12   :  { %305 = vmatpush.bf16.msra.mxu1 %v288_v4  ;;  %306 = vmatpush.bf16.msra.mxu2 %v288_v4 }
  0x13   :  { %307 = vmatpush.bf16.msra.mxu3 %v288_v4  ;;  %139 = vmatpush.bf16.msra.mxu0 %v288_v4 }
  0x16   :  { %308 = vmatpush.bf16.msra.mxu1 %v287_v5  ;;  %309 = vmatpush.bf16.msra.mxu2 %v287_v5 }
  0x17   :  { %310 = vmatpush.bf16.msra.mxu3 %v287_v5  ;;  %140 = vmatpush.bf16.msra.mxu0 %v287_v5 }
  0x1a   :  { %311 = vmatpush.bf16.msra.mxu1 %v286_v6  ;;  %312 = vmatpush.bf16.msra.mxu2 %v286_v6 }
  0x1b   :  { %313 = vmatpush.bf16.msra.mxu3 %v286_v6  ;;  %141 = vmatpush.bf16.msra.mxu0 %v286_v6 }
  0x1e   :  { %314 = vmatpush.bf16.msra.mxu1 %v285_v7  ;;  %315 = vmatpush.bf16.msra.mxu2 %v285_v7 }
  0x1f   :  { %316 = vmatpush.bf16.msra.mxu3 %v285_v7  ;;  %142 = vmatpush.bf16.msra.mxu0 %v285_v7 }
  0x21   :  { %148 = vmatmul.bf16.vlgmr.msra.gmra.mxu1 %v280_v8  ;;  %158 = vmatmul.bf16.vlgmr.msra.gmra.mxu2 %v282_v9 }
  0x22   :  { %168 = vmatmul.bf16.vlgmr.msra.gmra.mxu3 %v284_v10  ;;  %143 = vmatmul.bf16.vlgmr.msra.gmra.mxu0 %v279_v11 }
  0x31   :  { %153 = vmatmul.bf16.gmra.mxu1 %v281_v14  ;;  %163 = vmatmul.bf16.gmra.mxu2 %v283_v15 }
  0x32   :  { %173 = vmatmul.bf16.gmra.mxu3 %v79_v16 }
  0x9e   :  { %v149_v18 = vpop.f32.mrf.mxu1 }
  0x9f   :  { %v150_v19 = vadd.f32 %v386_v17, %v149_v18  ;;  %v144_v20 = vpop.f32.mrf.mxu0 }
  0xa0   :  { %v145_v21 = vadd.f32 %v386_v17, %v144_v20 }
  0xa1   :  { %v180_v22 = vmax.f32 %v150_v19, 0.0 }
  0xa2   :  { %v178_v23 = vmax.f32 %v145_v21, 0.0 }
  0xa3   :  { %v193_v24 = vpack.c.bf16 %v180_v22, %v180_v22 }
  0xa4   :  { %v159_v25 = vpop.f32.mrf.mxu2  ;;  %v191_v26 = vpack.c.bf16 %v178_v23, %v178_v23 }
  0xa5   :  { %207 = vst.msk [vmem:[%s455_s3 + $0x8] sm:$0xf] %vm204_vm0, %v193_v24  ;;  %v160_v27 = vadd.f32 %v386_v17, %v159_v25  ;;  %v169_v28 = vpop.f32.mrf.mxu3 }
  0xa6   :  { %v170_v29 = vadd.f32 %v386_v17, %v169_v28  ;;  %v151_v30 = vpop.f32.mrf.mxu1  ;;  %205 = vst.msk [vmem:[%s455_s3] sm:$0xf] %vm204_vm0, %v191_v26 }
  0xa7   :  { %v184_v31 = vmax.f32 %v160_v27, 0.0  ;;  %v152_v32 = vadd.f32 %v386_v17, %v151_v30  ;;  %v146_v33 = vpop.f32.mrf.mxu0 }
  0xa8   :  { %v188_v34 = vmax.f32 %v170_v29, 0.0  ;;  %v147_v35 = vadd.f32 %v386_v17, %v146_v33 }
  0xa9   :  { %v197_v36 = vpack.c.bf16 %v184_v31, %v184_v31  ;;  %v181_v37 = vmax.f32 %v152_v32, 0.0 }
  0xaa   :  { %v201_v38 = vpack.c.bf16 %v188_v34, %v188_v34  ;;  %v179_v39 = vmax.f32 %v147_v35, 0.0 }
  0xab   :  { %211 = vst.msk [vmem:[%s455_s3 + $0x18] sm:$0xf] %vm204_vm0, %v197_v36  ;;  %v194_v40 = vpack.c.bf16 %v181_v37, %v181_v37 }
  0xac   :  { %215 = vst.msk [vmem:[%s455_s3 + $0x28] sm:$0xf] %vm204_vm0, %v201_v38  ;;  %v161_v41 = vpop.f32.mrf.mxu2  ;;  %v192_v42 = vpack.c.bf16 %v179_v39, %v179_v39 }
  0xad   :  { %208 = vst.msk [vmem:[%s455_s3 + $0xc] sm:$0xf] %vm204_vm0, %v194_v40  ;;  %v162_v43 = vadd.f32 %v386_v17, %v161_v41  ;;  %v171_v44 = vpop.f32.mrf.mxu3 }
  0xae   :  { %v172_v45 = vadd.f32 %v386_v17, %v171_v44  ;;  %v154_v46 = vpop.f32.mrf.mxu1  ;;  %206 = vst.msk [vmem:[%s455_s3 + $0x4] sm:$0xf] %vm204_vm0, %v192_v42 }
  0xaf   :  { %v185_v47 = vmax.f32 %v162_v43, 0.0  ;;  %v155_v48 = vadd.f32 %v386_v17, %v154_v46 }
  0xb0   :  { %v189_v49 = vmax.f32 %v172_v45, 0.0 }
  0xb1   :  { %v198_v50 = vpack.c.bf16 %v185_v47, %v185_v47  ;;  %v182_v51 = vmax.f32 %v155_v48, 0.0 }
  0xb2   :  { %v202_v52 = vpack.c.bf16 %v189_v49, %v189_v49 }
  0xb3   :  { %212 = vst.msk [vmem:[%s455_s3 + $0x1c] sm:$0xf] %vm204_vm0, %v198_v50  ;;  %v195_v53 = vpack.c.bf16 %v182_v51, %v182_v51 }
  0xb4   :  { %216 = vst.msk [vmem:[%s455_s3 + $0x2c] sm:$0xf] %vm204_vm0, %v202_v52  ;;  %v164_v54 = vpop.f32.mrf.mxu2 }
  0xb5   :  { %209 = vst.msk [vmem:[%s455_s3 + $0x10] sm:$0xf] %vm204_vm0, %v195_v53  ;;  %v165_v55 = vadd.f32 %v386_v17, %v164_v54  ;;  %v174_v56 = vpop.f32.mrf.mxu3 }
  0xb6   :  { %v175_v57 = vadd.f32 %v386_v17, %v174_v56  ;;  %v156_v58 = vpop.f32.mrf.mxu1 }
  0xb7   :  { %v186_v59 = vmax.f32 %v165_v55, 0.0  ;;  %v157_v60 = vadd.f32 %v386_v17, %v156_v58 }
  0xb8   :  { %v190_v61 = vmax.f32 %v175_v57, 0.0 }
  0xb9   :  { %v199_v62 = vpack.c.bf16 %v186_v59, %v186_v59  ;;  %v183_v63 = vmax.f32 %v157_v60, 0.0 }
  0xba   :  { %v203_v0 = vpack.c.bf16 %v190_v61, %v190_v61 }
  0xbb   :  { %213 = vst.msk [vmem:[%s455_s3 + $0x20] sm:$0xf] %vm204_vm0, %v199_v62  ;;  %v196_v1 = vpack.c.bf16 %v183_v63, %v183_v63 }
  0xbc   :  { %218 = vst.msk [vmem:[%s455_s3 + $0x30] sm:$0x1] %vm217_vm1, %v203_v0  ;;  %v166_v2 = vpop.f32.mrf.mxu2 }
  0xbd   :  { %210 = vst.msk [vmem:[%s455_s3 + $0x14] sm:$0xf] %vm204_vm0, %v196_v1  ;;  %v167_v3 = vadd.f32 %v386_v17, %v166_v2  ;;  %v176_v4 = vpop.f32.mrf.mxu3 }
  0xbf   :  { %v187_v5 = vmax.f32 %v167_v3, 0.0 }
  0xc1   :  { %v200_v6 = vpack.c.bf16 %v187_v5, %v187_v5 }
  0xc3   :  { %214 = vst.msk [vmem:[%s455_s3 + $0x24] sm:$0xf] %vm204_vm0, %v200_v6 }

// kernel: regressor_forward.31
= control target key start
LH: loop header
LB: loop body
LE: loop exit
PB: predicated region body
PF: predicated region fallthrough
CT: control target
= control target key end

     0   :  { %vm338_vm0 = vcmask 257024   ;;  %vm351_vm1 = vcmask 253952   ;;  %s732_s1 = inlined_call_operand.vmem [shape: bf16[256,32], index: 1, kind: input, shape index: {}]   ;;  %s733_s2 = inlined_call_operand.vmem [shape: f32[1,32], index: 2, kind: input, shape index: {}]   ;;  %s734_s0 = inlined_call_operand.vmem [shape: bf16[98,256], index: 0, kind: input, shape index: {}]   ;;  %s735_s3 = inlined_call_operand.vmem [shape: bf16[98,32], index: 3, kind: output, shape index: {}]  }
   0x1   :  { %v488_v0 = vld [vmem:[%s732_s1 + $0x38] sm:$0xff]  ;;  %v487_v2 = vld [vmem:[%s732_s1 + $0x30] sm:$0xff]  ;;  %v486_v4 = vld [vmem:[%s732_s1 + $0x28] sm:$0xff] }
   0x2   :  { %v496_v1 = vld [vmem:[%s732_s1 + $0x78] sm:$0xff]  ;;  %226 = vmatpush.bf16.msra.mxu0 %v488_v0  ;;  %497 = vmatpush.bf16.msra.mxu2 %v488_v0  ;;  %v495_v3 = vld [vmem:[%s732_s1 + $0x70] sm:$0xff]  ;;  %v494_v5 = vld [vmem:[%s732_s1 + $0x68] sm:$0xff] }
   0x3   :  { %269 = vmatpush.bf16.msra.mxu1 %v496_v1  ;;  %505 = vmatpush.bf16.msra.mxu3 %v496_v1  ;;  %v485_v6 = vld [vmem:[%s732_s1 + $0x20] sm:$0xff]  ;;  %v484_v8 = vld [vmem:[%s732_s1 + $0x18] sm:$0xff]  ;;  %v483_v10 = vld [vmem:[%s732_s1 + $0x10] sm:$0xff] }
   0x4   :  { %v493_v7 = vld [vmem:[%s732_s1 + $0x60] sm:$0xff]  ;;  %v492_v9 = vld [vmem:[%s732_s1 + $0x58] sm:$0xff]  ;;  %v491_v11 = vld [vmem:[%s732_s1 + $0x50] sm:$0xff] }
   0x5   :  { %v482_v12 = vld [vmem:[%s732_s1 + $0x8] sm:$0xff]  ;;  %v481_v14 = vld [vmem:[%s732_s1] sm:$0xff]  ;;  %v383_v18 = vld [vmem:[%s734_s0 + $0x30] sm:$0xf] }
   0x6   :  { %227 = vmatpush.bf16.msra.mxu0 %v487_v2  ;;  %498 = vmatpush.bf16.msra.mxu2 %v487_v2  ;;  %v490_v13 = vld [vmem:[%s732_s1 + $0x48] sm:$0xff]  ;;  %v489_v15 = vld [vmem:[%s732_s1 + $0x40] sm:$0xff]  ;;  %v476_v19 = vld [vmem:[%s734_s0 + $0x34] sm:$0xf0] }
   0x7   :  { %270 = vmatpush.bf16.msra.mxu1 %v495_v3  ;;  %506 = vmatpush.bf16.msra.mxu3 %v495_v3  ;;  %v359_v16 = vld [vmem:[%s734_s0] sm:$0xf]  ;;  %v470_v17 = vld [vmem:[%s734_s0 + $0x4] sm:$0xf0]  ;;  %v469_v20 = vld [vmem:[%s734_s0 + $0x4] sm:$0xf]  ;;  %v384_v25 = vor.u32 %v476_v19, %v383_v18 }
   0x8   :  { %v361_v21 = vld [vmem:[%s734_s0 + $0x8] sm:$0xf0]  ;;  %v477_v22 = vld [vmem:[%s734_s0 + $0x44] sm:$0xf]  ;;  %v360_v24 = vor.u32 %v470_v17, %v359_v16  ;;  %v367_v28 = vld [vmem:[%s734_s0 + $0x10] sm:$0xf] }
   0x9   :  { %v393_v23 = vld [vmem:[%s734_s0 + $0x48] sm:$0xf0]  ;;  %v364_v26 = vor.u32 %v469_v20, %v361_v21  ;;  %v472_v29 = vld [vmem:[%s734_s0 + $0x14] sm:$0xf0]  ;;  %v391_v30 = vld [vmem:[%s734_s0 + $0x40] sm:$0xf] }
   0xa   :  { %228 = vmatpush.bf16.msra.mxu0 %v486_v4  ;;  %499 = vmatpush.bf16.msra.mxu2 %v486_v4  ;;  %v396_v27 = vor.u32 %v477_v22, %v393_v23  ;;  %v478_v31 = vld [vmem:[%s734_s0 + $0x44] sm:$0xf0]  ;;  %v471_v32 = vld [vmem:[%s734_s0 + $0x14] sm:$0xf]  ;;  %v369_v33 = vld [vmem:[%s734_s0 + $0x18] sm:$0xf0]  ;;  %v368_v36 = vor.u32 %v472_v29, %v367_v28 }
   0xb   :  { %271 = vmatpush.bf16.msra.mxu1 %v494_v5  ;;  %507 = vmatpush.bf16.msra.mxu3 %v494_v5  ;;  %v479_v34 = vld [vmem:[%s734_s0 + $0x54] sm:$0xf]  ;;  %v401_v35 = vld [vmem:[%s734_s0 + $0x58] sm:$0xf0]  ;;  %v392_v37 = vor.u32 %v478_v31, %v391_v30  ;;  %v372_v38 = vor.u32 %v471_v32, %v369_v33  ;;  %v26_v40 = vld [vmem:[%s734_s0 + $0x60] sm:$0x11] }
   0xc   :  { %v404_v39 = vor.u32 %v479_v34, %v401_v35  ;;  %v375_v41 = vld [vmem:[%s734_s0 + $0x20] sm:$0xf]  ;;  %v474_v42 = vld [vmem:[%s734_s0 + $0x24] sm:$0xf0]  ;;  %v399_v43 = vld [vmem:[%s734_s0 + $0x50] sm:$0xf]  ;;  %v101_v45 = vunpack.c.h.b16 %v26_v40  ;;  %v100_v52 = vunpack.c.l.b16 %v26_v40 }
   0xd   :  { %v480_v44 = vld [vmem:[%s734_s0 + $0x54] sm:$0xf0]  ;;  %v473_v46 = vld [vmem:[%s734_s0 + $0x24] sm:$0xf]  ;;  %v377_v47 = vld [vmem:[%s734_s0 + $0x28] sm:$0xf0]  ;;  %v376_v48 = vor.u32 %v474_v42, %v375_v41 }
   0xe   :  { %229 = vmatpush.bf16.msra.mxu0 %v485_v6  ;;  %500 = vmatpush.bf16.msra.mxu2 %v485_v6  ;;  %v400_v49 = vor.u32 %v480_v44, %v399_v43  ;;  %v380_v50 = vor.u32 %v473_v46, %v377_v47  ;;  %v115_v51 = vpack.c.b16 %v101_v45, %v101_v45  ;;  %v475_v53 = vld [vmem:[%s734_s0 + $0x34] sm:$0xf]  ;;  %v385_v54 = vld [vmem:[%s734_s0 + $0x38] sm:$0xf0]  ;;  %v660_v57 = vld [vmem:[%s733_s2] ss:$0 sm:$0xff] }
   0xf   :  { %272 = vmatpush.bf16.msra.mxu1 %v493_v7  ;;  %508 = vmatpush.bf16.msra.mxu3 %v493_v7  ;;  %v114_v55 = vpack.c.b16 %v100_v52, %v100_v52  ;;  %v388_v56 = vor.u32 %v475_v53, %v385_v54 }
  0x12   :  { %230 = vmatpush.bf16.msra.mxu0 %v484_v8  ;;  %501 = vmatpush.bf16.msra.mxu2 %v484_v8 }
  0x13   :  { %273 = vmatpush.bf16.msra.mxu1 %v492_v9  ;;  %509 = vmatpush.bf16.msra.mxu3 %v492_v9 }
  0x16   :  { %231 = vmatpush.bf16.msra.mxu0 %v483_v10  ;;  %502 = vmatpush.bf16.msra.mxu2 %v483_v10 }
  0x17   :  { %274 = vmatpush.bf16.msra.mxu1 %v491_v11  ;;  %510 = vmatpush.bf16.msra.mxu3 %v491_v11 }
  0x1a   :  { %232 = vmatpush.bf16.msra.mxu0 %v482_v12  ;;  %503 = vmatpush.bf16.msra.mxu2 %v482_v12 }
  0x1b   :  { %275 = vmatpush.bf16.msra.mxu1 %v490_v13  ;;  %511 = vmatpush.bf16.msra.mxu3 %v490_v13 }
  0x1e   :  { %233 = vmatpush.bf16.msra.mxu0 %v481_v14  ;;  %504 = vmatpush.bf16.msra.mxu2 %v481_v14 }
  0x1f   :  { %276 = vmatpush.bf16.msra.mxu1 %v489_v15  ;;  %512 = vmatpush.bf16.msra.mxu3 %v489_v15 }
  0x21   :  { %234 = vmatmul.bf16.vlgmr.msra.gmra.mxu0 %v360_v24  ;;  %249 = vmatmul.bf16.vlgmr.msra.gmra.mxu2 %v384_v25 }
  0x22   :  { %277 = vmatmul.bf16.vlgmr.msra.gmra.mxu1 %v364_v26  ;;  %297 = vmatmul.bf16.vlgmr.msra.gmra.mxu3 %v396_v27 }
  0x31   :  { %239 = vmatmul.bf16.gmra.mxu0 %v368_v36  ;;  %254 = vmatmul.bf16.gmra.mxu2 %v392_v37 }
  0x32   :  { %282 = vmatmul.bf16.gmra.mxu1 %v372_v38  ;;  %302 = vmatmul.bf16.gmra.mxu3 %v404_v39 }
  0x41   :  { %244 = vmatmul.bf16.gmra.mxu0 %v376_v48  ;;  %259 = vmatmul.bf16.gmra.mxu2 %v400_v49 }
  0x42   :  { %287 = vmatmul.bf16.gmra.mxu1 %v380_v50  ;;  %307 = vmatmul.bf16.gmra.mxu3 %v115_v51 }
  0x51   :  { %264 = vmatmul.bf16.gmra.mxu2 %v114_v55 }
  0x52   :  { %292 = vmatmul.bf16.gmra.mxu1 %v388_v56 }
  0x9e   :  { %v235_v58 = vpop.f32.mrf.mxu0 }
  0x9f   :  { %v236_v59 = vadd.f32 %v660_v57, %v235_v58  ;;  %v278_v60 = vpop.f32.mrf.mxu1 }
  0xa1   :  { %v279_v61 = vadd.f32 %v278_v60, %v236_v59 }
  0xa3   :  { %v312_v62 = vmax.f32 %v279_v61, 0.0 }
  0xa4   :  { %v663_v63 = vpop.f32.mrf.mxu2 }
  0xa5   :  { %v325_v0 = vpack.c.bf16 %v312_v62, %v312_v62  ;;  %v298_v1 = vpop.f32.mrf.mxu3  ;;  %v251_v55 = vadd.f32 %v660_v57, %v663_v63 }
  0xa6   :  { %v237_v2 = vpop.f32.mrf.mxu0 }
  0xa7   :  { %339 = vst.msk [vmem:[%s735_s3] sm:$0xf] %vm338_vm0, %v325_v0  ;;  %v238_v3 = vadd.f32 %v660_v57, %v237_v2  ;;  %v280_v4 = vpop.f32.mrf.mxu1 }
  0xa9   :  { %v281_v5 = vadd.f32 %v280_v4, %v238_v3 }
  0xab   :  { %v313_v6 = vmax.f32 %v281_v5, 0.0 }
  0xac   :  { %v670_v7 = vpop.f32.mrf.mxu2 }
  0xad   :  { %v326_v8 = vpack.c.bf16 %v313_v6, %v313_v6  ;;  %v300_v9 = vpop.f32.mrf.mxu3  ;;  %v253_v2 = vadd.f32 %v660_v57, %v670_v7 }
  0xae   :  { %v240_v10 = vpop.f32.mrf.mxu0 }
  0xaf   :  { %340 = vst.msk [vmem:[%s735_s3 + $0x4] sm:$0xf] %vm338_vm0, %v326_v8  ;;  %v241_v11 = vadd.f32 %v660_v57, %v240_v10  ;;  %v283_v12 = vpop.f32.mrf.mxu1 }
  0xb1   :  { %v284_v13 = vadd.f32 %v283_v12, %v241_v11 }
  0xb3   :  { %v314_v14 = vmax.f32 %v284_v13, 0.0 }
  0xb4   :  { %v255_v15 = vpop.f32.mrf.mxu2 }
  0xb5   :  { %v327_v16 = vpack.c.bf16 %v314_v14, %v314_v14  ;;  %v256_v17 = vadd.f32 %v660_v57, %v255_v15  ;;  %v303_v18 = vpop.f32.mrf.mxu3 }
  0xb6   :  { %v242_v19 = vpop.f32.mrf.mxu0 }
  0xb7   :  { %341 = vst.msk [vmem:[%s735_s3 + $0x8] sm:$0xf] %vm338_vm0, %v327_v16  ;;  %v299_v20 = vadd.f32 %v298_v1, %v256_v17  ;;  %v243_v21 = vadd.f32 %v660_v57, %v242_v19  ;;  %v285_v22 = vpop.f32.mrf.mxu1 }
  0xb9   :  { %v320_v23 = vmax.f32 %v299_v20, 0.0  ;;  %v286_v24 = vadd.f32 %v285_v22, %v243_v21 }
  0xbb   :  { %v333_v25 = vpack.c.bf16 %v320_v23, %v320_v23  ;;  %v315_v26 = vmax.f32 %v286_v24, 0.0 }
  0xbc   :  { %v257_v27 = vpop.f32.mrf.mxu2 }
  0xbd   :  { %347 = vst.msk [vmem:[%s735_s3 + $0x20] sm:$0xf] %vm338_vm0, %v333_v25  ;;  %v328_v28 = vpack.c.bf16 %v315_v26, %v315_v26  ;;  %v258_v29 = vadd.f32 %v660_v57, %v257_v27  ;;  %v305_v30 = vpop.f32.mrf.mxu3 }
  0xbe   :  { %v245_v31 = vpop.f32.mrf.mxu0 }
  0xbf   :  { %342 = vst.msk [vmem:[%s735_s3 + $0xc] sm:$0xf] %vm338_vm0, %v328_v28  ;;  %v301_v32 = vadd.f32 %v300_v9, %v258_v29  ;;  %v246_v33 = vadd.f32 %v660_v57, %v245_v31  ;;  %v288_v34 = vpop.f32.mrf.mxu1 }
  0xc1   :  { %v321_v35 = vmax.f32 %v301_v32, 0.0  ;;  %v289_v36 = vadd.f32 %v288_v34, %v246_v33 }
  0xc3   :  { %v334_v37 = vpack.c.bf16 %v321_v35, %v321_v35  ;;  %v316_v38 = vmax.f32 %v289_v36, 0.0 }
  0xc4   :  { %v260_v39 = vpop.f32.mrf.mxu2 }
  0xc5   :  { %348 = vst.msk [vmem:[%s735_s3 + $0x24] sm:$0xf] %vm338_vm0, %v334_v37  ;;  %v329_v40 = vpack.c.bf16 %v316_v38, %v316_v38  ;;  %v261_v41 = vadd.f32 %v660_v57, %v260_v39  ;;  %v308_v42 = vpop.f32.mrf.mxu3 }
  0xc6   :  { %v247_v43 = vpop.f32.mrf.mxu0 }
  0xc7   :  { %343 = vst.msk [vmem:[%s735_s3 + $0x10] sm:$0xf] %vm338_vm0, %v329_v40  ;;  %v304_v44 = vadd.f32 %v303_v18, %v261_v41  ;;  %v248_v45 = vadd.f32 %v660_v57, %v247_v43  ;;  %v290_v46 = vpop.f32.mrf.mxu1 }
  0xc9   :  { %v322_v47 = vmax.f32 %v304_v44, 0.0  ;;  %v291_v48 = vadd.f32 %v290_v46, %v248_v45 }
  0xcb   :  { %v335_v49 = vpack.c.bf16 %v322_v47, %v322_v47  ;;  %v317_v50 = vmax.f32 %v291_v48, 0.0 }
  0xcc   :  { %v262_v51 = vpop.f32.mrf.mxu2 }
  0xcd   :  { %349 = vst.msk [vmem:[%s735_s3 + $0x28] sm:$0xf] %vm338_vm0, %v335_v49  ;;  %v330_v52 = vpack.c.bf16 %v317_v50, %v317_v50  ;;  %v263_v53 = vadd.f32 %v660_v57, %v262_v51  ;;  %v310_v54 = vpop.f32.mrf.mxu3 }
  0xcf   :  { %344 = vst.msk [vmem:[%s735_s3 + $0x14] sm:$0xf] %vm338_vm0, %v330_v52  ;;  %v306_v56 = vadd.f32 %v305_v30, %v263_v53  ;;  %v293_v58 = vpop.f32.mrf.mxu1 }
  0xd0   :  { %v294_v59 = vadd.f32 %v293_v58, %v251_v55 }
  0xd1   :  { %v323_v60 = vmax.f32 %v306_v56, 0.0 }
  0xd2   :  { %v318_v61 = vmax.f32 %v294_v59, 0.0 }
  0xd3   :  { %v336_v62 = vpack.c.bf16 %v323_v60, %v323_v60 }
  0xd4   :  { %v331_v0 = vpack.c.bf16 %v318_v61, %v318_v61  ;;  %v265_v1 = vpop.f32.mrf.mxu2 }
  0xd5   :  { %350 = vst.msk [vmem:[%s735_s3 + $0x2c] sm:$0xf] %vm338_vm0, %v336_v62  ;;  %v266_v63 = vadd.f32 %v660_v57, %v265_v1 }
  0xd6   :  { %345 = vst.msk [vmem:[%s735_s3 + $0x18] sm:$0xf] %vm338_vm0, %v331_v0 }
  0xd7   :  { %v309_v3 = vadd.f32 %v308_v42, %v266_v63  ;;  %v295_v4 = vpop.f32.mrf.mxu1 }
  0xd8   :  { %v296_v5 = vadd.f32 %v295_v4, %v253_v2 }
  0xd9   :  { %v324_v6 = vmax.f32 %v309_v3, 0.0 }
  0xda   :  { %v319_v8 = vmax.f32 %v296_v5, 0.0 }
  0xdb   :  { %v337_v9 = vpack.c.bf16 %v324_v6, %v324_v6 }
  0xdc   :  { %v332_v10 = vpack.c.bf16 %v319_v8, %v319_v8  ;;  %v267_v11 = vpop.f32.mrf.mxu2 }
  0xdd   :  { %352 = vst.msk [vmem:[%s735_s3 + $0x30] sm:$0x1] %vm351_vm1, %v337_v9 }
  0xde   :  { %346 = vst.msk [vmem:[%s735_s3 + $0x1c] sm:$0xf] %vm338_vm0, %v332_v10 }

// kernel: regressor_forward.30
= control target key start
LH: loop header
LB: loop body
LE: loop exit
PB: predicated region body
PF: predicated region fallthrough
CT: control target
= control target key end

     0   :  { %vm363_vm0 = vcmask 261120   ;;  %s1565_s1 = inlined_call_operand.vmem [shape: bf16[288,256], index: 1, kind: input, shape index: {}]   ;;  %s1566_s0 = inlined_call_operand.vmem [shape: bf16[98,288], index: 0, kind: input, shape index: {}]   ;;  %s1567_s2 = inlined_call_operand.vmem [shape: f32[1,256], index: 2, kind: input, shape index: {}]   ;;  %s1568_s3 = inlined_call_operand.vmem [shape: bf16[98,256], index: 3, kind: output, shape index: {}]  }
   0x1   :  { %v829_v0 = vld [vmem:[%s1565_s1 + $0x70] sm:$0xf]  ;;  %v962_v1 = vld [vmem:[%s1565_s1 + $0x74] sm:$0xf0]  ;;  %v821_v5 = vld [vmem:[%s1565_s1 + $0x60] sm:$0xf] }
   0x2   :  { %v909_v2 = vld [vmem:[%s1565_s1 + $0x110] sm:$0xf]  ;;  %v830_v3 = vor.u32 %v962_v1, %v829_v0  ;;  %v982_v4 = vld [vmem:[%s1565_s1 + $0x114] sm:$0xf0]  ;;  %v960_v6 = vld [vmem:[%s1565_s1 + $0x64] sm:$0xf0] }
   0x3   :  { %v910_v7 = vor.u32 %v982_v4, %v909_v2  ;;  %v901_v8 = vld [vmem:[%s1565_s1 + $0x100] sm:$0xf]  ;;  %v980_v9 = vld [vmem:[%s1565_s1 + $0x104] sm:$0xf0]  ;;  %v822_v10 = vor.u32 %v960_v6, %v821_v5  ;;  %v733_v11 = vld [vmem:[%s1566_s0 + $0x38] sm:$0xf] }
   0x4   :  { %983 = vmatpush.bf16.msra.mxu1 %v830_v3  ;;  %385 = vmatpush.bf16.msra.mxu0 %v830_v3  ;;  %v961_v12 = vld [vmem:[%s1565_s1 + $0x74] sm:$0xf]  ;;  %v831_v13 = vld [vmem:[%s1565_s1 + $0x78] sm:$0xf0]  ;;  %v902_v14 = vor.u32 %v980_v9, %v901_v8  ;;  %v937_v15 = vld [vmem:[%s1566_s0 + $0x40] sm:$0xf0] }
   0x5   :  { %991 = vmatpush.bf16.msra.mxu3 %v910_v7  ;;  %v813_v16 = vld [vmem:[%s1565_s1 + $0x50] sm:$0xf]  ;;  %v958_v17 = vld [vmem:[%s1565_s1 + $0x54] sm:$0xf0]  ;;  %477 = vmatpush.bf16.msra.mxu2 %v910_v7  ;;  %v834_v18 = vor.u32 %v961_v12, %v831_v13  ;;  %v959_v19 = vld [vmem:[%s1565_s1 + $0x64] sm:$0xf]  ;;  %v1063_v21 = vor.u32 %v937_v15, %v733_v11 }
   0x6   :  { %v823_v20 = vld [vmem:[%s1565_s1 + $0x68] sm:$0xf0]  ;;  %v814_v22 = vor.u32 %v958_v17, %v813_v16  ;;  %v805_v23 = vld [vmem:[%s1565_s1 + $0x40] sm:$0xf]  ;;  %v956_v24 = vld [vmem:[%s1565_s1 + $0x44] sm:$0xf0] }
   0x7   :  { %v826_v25 = vor.u32 %v959_v19, %v823_v20  ;;  %v957_v26 = vld [vmem:[%s1565_s1 + $0x54] sm:$0xf]  ;;  %v815_v27 = vld [vmem:[%s1565_s1 + $0x58] sm:$0xf0]  ;;  %v806_v28 = vor.u32 %v956_v24, %v805_v23  ;;  %v797_v29 = vld [vmem:[%s1565_s1 + $0x30] sm:$0xf] }
   0x8   :  { %984 = vmatpush.bf16.msra.mxu1 %v822_v10  ;;  %386 = vmatpush.bf16.msra.mxu0 %v822_v10  ;;  %v709_v30 = vld [vmem:[%s1566_s0 + $0x8] sm:$0xf]  ;;  %v931_v31 = vld [vmem:[%s1566_s0 + $0x10] sm:$0xf0]  ;;  %v954_v32 = vld [vmem:[%s1565_s1 + $0x34] sm:$0xf0]  ;;  %v818_v36 = vor.u32 %v957_v26, %v815_v27 }
   0x9   :  { %992 = vmatpush.bf16.msra.mxu3 %v902_v14  ;;  %478 = vmatpush.bf16.msra.mxu2 %v902_v14  ;;  %v1091_v33 = vor.u32 %v931_v31, %v709_v30  ;;  %v977_v34 = vld [vmem:[%s1565_s1 + $0xf4] sm:$0xf]  ;;  %v895_v35 = vld [vmem:[%s1565_s1 + $0xf8] sm:$0xf0]  ;;  %v955_v38 = vld [vmem:[%s1565_s1 + $0x44] sm:$0xf]  ;;  %v798_v42 = vor.u32 %v954_v32, %v797_v29 }
   0xa   :  { %v898_v37 = vor.u32 %v977_v34, %v895_v35  ;;  %v807_v39 = vld [vmem:[%s1565_s1 + $0x48] sm:$0xf0]  ;;  %v975_v40 = vld [vmem:[%s1565_s1 + $0xe4] sm:$0xf]  ;;  %v789_v43 = vld [vmem:[%s1565_s1 + $0x20] sm:$0xf] }
   0xb   :  { %v887_v41 = vld [vmem:[%s1565_s1 + $0xe8] sm:$0xf0]  ;;  %v952_v45 = vld [vmem:[%s1565_s1 + $0x24] sm:$0xf0]  ;;  %v973_v46 = vld [vmem:[%s1565_s1 + $0xd4] sm:$0xf]  ;;  %v810_v48 = vor.u32 %v955_v38, %v807_v39 }
   0xc   :  { %917 = vmatmul.msk.bf16.vlgmr.msra.gmra.mxu3 %vm363_vm0, %v1063_v21  ;;  %985 = vmatpush.bf16.msra.mxu1 %v814_v22  ;;  %v890_v44 = vor.u32 %v975_v40, %v887_v41  ;;  %v879_v47 = vld [vmem:[%s1565_s1 + $0xd8] sm:$0xf0]  ;;  %v953_v49 = vld [vmem:[%s1565_s1 + $0x34] sm:$0xf]  ;;  %v790_v51 = vor.u32 %v952_v45, %v789_v43  ;;  %v745_v52 = vld [vmem:[%s1566_s0 + $0x50] sm:$0xf] }
   0xd   :  { %514 = vmatpush.bf16.msrb.mxu3 %v834_v18  ;;  %387 = vmatpush.bf16.msra.mxu0 %v814_v22  ;;  %v799_v50 = vld [vmem:[%s1565_s1 + $0x38] sm:$0xf0]  ;;  %v882_v53 = vor.u32 %v973_v46, %v879_v47  ;;  %v781_v55 = vld [vmem:[%s1565_s1 + $0x10] sm:$0xf]  ;;  %v950_v56 = vld [vmem:[%s1565_s1 + $0x14] sm:$0xf0] }
   0xe   :  { %915 = vmatmul.msk.bf16.vlgmr.msra.gmra.mxu2 %vm363_vm0, %v1091_v33  ;;  %v940_v54 = vld [vmem:[%s1566_s0 + $0x58] sm:$0xf0]  ;;  %v802_v57 = vor.u32 %v953_v49, %v799_v50  ;;  %v971_v58 = vld [vmem:[%s1565_s1 + $0xc4] sm:$0xf]  ;;  %v871_v59 = vld [vmem:[%s1565_s1 + $0xc8] sm:$0xf0]  ;;  %v782_v61 = vor.u32 %v950_v56, %v781_v55 }
   0xf   :  { %557 = vmatpush.bf16.msrb.mxu2 %v898_v37  ;;  %v1149_v60 = vor.u32 %v940_v54, %v745_v52  ;;  %v721_v62 = vld [vmem:[%s1566_s0 + $0x20] sm:$0xf]  ;;  %v934_v63 = vld [vmem:[%s1566_s0 + $0x28] sm:$0xf0]  ;;  %v948_v1 = vld [vmem:[%s1565_s1 + $0x4] sm:$0xf0]  ;;  %v874_v2 = vor.u32 %v971_v58, %v871_v59 }
  0x10   :  { %986 = vmatpush.bf16.msra.mxu1 %v806_v28  ;;  %v773_v0 = vld [vmem:[%s1565_s1] sm:$0xf]  ;;  %v981_v4 = vld [vmem:[%s1565_s1 + $0x114] sm:$0xf]  ;;  %v893_v5 = vld [vmem:[%s1565_s1 + $0xf0] sm:$0xf]  ;;  %v1178_v8 = vor.u32 %v934_v63, %v721_v62 }
  0x11   :  { %515 = vmatpush.bf16.msrb.mxu3 %v826_v25  ;;  %388 = vmatpush.bf16.msra.mxu0 %v806_v28  ;;  %v749_v3 = vld [vmem:[%s1566_s0 + $0x60] sm:$0xf]  ;;  %v978_v6 = vld [vmem:[%s1565_s1 + $0xf4] sm:$0xf0]  ;;  %v911_v7 = vld [vmem:[%s1565_s1 + $0x118] sm:$0xf0]  ;;  %v774_v11 = vor.u32 %v948_v1, %v773_v0 }
  0x12   :  { %v969_v9 = vld [vmem:[%s1565_s1 + $0xb4] sm:$0xf]  ;;  %v863_v10 = vld [vmem:[%s1565_s1 + $0xb8] sm:$0xf0]  ;;  %v942_v12 = vld [vmem:[%s1566_s0 + $0x68] sm:$0xf0]  ;;  %v894_v17 = vor.u32 %v978_v6, %v893_v5  ;;  %v1203_v19 = vor.u32 %v981_v4, %v911_v7 }
  0x13   :  { %558 = vmatpush.bf16.msrb.mxu2 %v890_v44  ;;  %v951_v13 = vld [vmem:[%s1565_s1 + $0x24] sm:$0xf]  ;;  %v791_v14 = vld [vmem:[%s1565_s1 + $0x28] sm:$0xf0]  ;;  %v701_v15 = vld [vmem:[%s1566_s0] sm:$0xf]  ;;  %v866_v20 = vor.u32 %v969_v9, %v863_v10  ;;  %v1211_v24 = vor.u32 %v942_v12, %v749_v3 }
  0x14   :  { %987 = vmatpush.bf16.msra.mxu1 %v798_v42  ;;  %v930_v16 = vld [vmem:[%s1566_s0 + $0x8] sm:$0xf0]  ;;  %v794_v18 = vor.u32 %v951_v13, %v791_v14  ;;  %v885_v22 = vld [vmem:[%s1565_s1 + $0xe0] sm:$0xf]  ;;  %v976_v23 = vld [vmem:[%s1565_s1 + $0xe4] sm:$0xf0] }
  0x15   :  { %516 = vmatpush.bf16.msrb.mxu3 %v818_v36  ;;  %389 = vmatpush.bf16.msra.mxu0 %v798_v42  ;;  %v967_v25 = vld [vmem:[%s1565_s1 + $0xa4] sm:$0xf]  ;;  %v855_v26 = vld [vmem:[%s1565_s1 + $0xa8] sm:$0xf0]  ;;  %v1221_v27 = vor.u32 %v930_v16, %v701_v15  ;;  %v886_v28 = vor.u32 %v976_v23, %v885_v22  ;;  %v877_v30 = vld [vmem:[%s1565_s1 + $0xd0] sm:$0xf] }
  0x16   :  { %v858_v29 = vor.u32 %v967_v25, %v855_v26  ;;  %v974_v31 = vld [vmem:[%s1565_s1 + $0xd4] sm:$0xf0]  ;;  %v965_v32 = vld [vmem:[%s1565_s1 + $0x94] sm:$0xf]  ;;  %v847_v34 = vld [vmem:[%s1565_s1 + $0x98] sm:$0xf0] }
  0x17   :  { %559 = vmatpush.bf16.msrb.mxu2 %v882_v53  ;;  %v949_v35 = vld [vmem:[%s1565_s1 + $0x14] sm:$0xf]  ;;  %v757_v36 = vld [vmem:[%s1566_s0 + $0x68] sm:$0xf]  ;;  %v878_v38 = vor.u32 %v974_v31, %v877_v30  ;;  %v783_v39 = vld [vmem:[%s1565_s1 + $0x18] sm:$0xf0]  ;;  %v850_v40 = vor.u32 %v965_v32, %v847_v34 }
  0x18   :  { %988 = vmatpush.bf16.msra.mxu1 %v790_v51  ;;  %v943_v37 = vld [vmem:[%s1566_s0 + $0x70] sm:$0xf0]  ;;  %v869_v41 = vld [vmem:[%s1565_s1 + $0xc0] sm:$0xf]  ;;  %v972_v42 = vld [vmem:[%s1565_s1 + $0xc4] sm:$0xf0]  ;;  %v786_v43 = vor.u32 %v949_v35, %v783_v39 }
  0x19   :  { %517 = vmatpush.bf16.msrb.mxu3 %v810_v48  ;;  %390 = vmatpush.bf16.msra.mxu0 %v790_v51  ;;  %v963_v44 = vld [vmem:[%s1565_s1 + $0x84] sm:$0xf]  ;;  %v839_v45 = vld [vmem:[%s1565_s1 + $0x88] sm:$0xf0]  ;;  %v1262_v46 = vor.u32 %v943_v37, %v757_v36  ;;  %v870_v47 = vor.u32 %v972_v42, %v869_v41  ;;  %v861_v48 = vld [vmem:[%s1565_s1 + $0xb0] sm:$0xf] }
  0x1a   :  { %v842_v49 = vor.u32 %v963_v44, %v839_v45  ;;  %v970_v50 = vld [vmem:[%s1565_s1 + $0xb4] sm:$0xf0]  ;;  %v929_v51 = vld [vmem:[%s1566_s0 + $0x4] sm:$0xf]  ;;  %v703_v52 = vld [vmem:[%s1566_s0 + $0xc] sm:$0xf0] }
  0x1b   :  { %560 = vmatpush.bf16.msrb.mxu2 %v874_v2  ;;  %v761_v53 = vld [vmem:[%s1566_s0 + $0x78] sm:$0xf]  ;;  %v945_v54 = vld [vmem:[%s1566_s0 + $0x80] sm:$0xf0]  ;;  %v862_v59 = vor.u32 %v970_v50, %v861_v48  ;;  %v775_v0 = vld [vmem:[%s1565_s1 + $0x8] sm:$0xf0] }
  0x1c   :  { %918 = vmatmul.msk.bf16.gmra.mxu3 %vm363_vm0, %v1149_v60  ;;  %989 = vmatpush.bf16.msra.mxu1 %v782_v61  ;;  %v713_v55 = vld [vmem:[%s1566_s0 + $0x18] sm:$0xf]  ;;  %v979_v56 = vld [vmem:[%s1565_s1 + $0x104] sm:$0xf]  ;;  %v853_v1 = vld [vmem:[%s1565_s1 + $0xa0] sm:$0xf]  ;;  %v1308_v4 = vor.u32 %v945_v54, %v761_v53 }
  0x1d   :  { %518 = vmatpush.bf16.msrb.mxu3 %v802_v57  ;;  %391 = vmatpush.bf16.msra.mxu0 %v782_v61  ;;  %v903_v57 = vld [vmem:[%s1565_s1 + $0x108] sm:$0xf0]  ;;  %v933_v58 = vld [vmem:[%s1566_s0 + $0x20] sm:$0xf0]  ;;  %v706_v61 = vor.u32 %v929_v51, %v703_v52  ;;  %v968_v2 = vld [vmem:[%s1565_s1 + $0xa4] sm:$0xf0] }
  0x1e   :  { %916 = vmatmul.msk.bf16.gmra.mxu2 %vm363_vm0, %v1178_v8  ;;  %v906_v62 = vor.u32 %v979_v56, %v903_v57  ;;  %v947_v63 = vld [vmem:[%s1565_s1 + $0x4] sm:$0xf]  ;;  %v714_v5 = vor.u32 %v933_v58, %v713_v55  ;;  %v854_v6 = vor.u32 %v968_v2, %v853_v1  ;;  %v845_v7 = vld [vmem:[%s1565_s1 + $0x90] sm:$0xf]  ;;  %v966_v9 = vld [vmem:[%s1565_s1 + $0x94] sm:$0xf0] }
  0x1f   :  { %561 = vmatpush.bf16.msrb.mxu2 %v866_v20  ;;  %v778_v3 = vor.u32 %v947_v63, %v775_v0  ;;  %v769_v10 = vld [vmem:[%s1566_s0 + $0x80] sm:$0xf]  ;;  %v846_v12 = vor.u32 %v966_v9, %v845_v7  ;;  %v964_v14 = vld [vmem:[%s1565_s1 + $0x84] sm:$0xf0]  ;;  %v39_v16 = vld [vmem:[%s1566_s0 + $0x90] sm:$0x11] }
  0x20   :  { %990 = vmatpush.bf16.msra.mxu1 %v774_v11  ;;  %v837_v13 = vld [vmem:[%s1565_s1 + $0x80] sm:$0xf]  ;;  %v145_v20 = vunpack.c.l.b16 %v39_v16  ;;  %v725_v22 = vld [vmem:[%s1566_s0 + $0x30] sm:$0xf]  ;;  %v936_v23 = vld [vmem:[%s1566_s0 + $0x38] sm:$0xf0] }
  0x21   :  { %519 = vmatpush.bf16.msrb.mxu3 %v794_v18  ;;  %392 = vmatpush.bf16.msra.mxu0 %v774_v11  ;;  %v946_v11 = vld [vmem:[%s1566_s0 + $0x88] sm:$0xf0]  ;;  %v932_v18 = vld [vmem:[%s1566_s0 + $0x1c] sm:$0xf]  ;;  %v935_v32 = vld [vmem:[%s1566_s0 + $0x34] sm:$0xf] }
  0x22   :  { %v1330_v15 = vor.u32 %v946_v11, %v769_v10  ;;  %v1349_v26 = vpack.c.b16 %v145_v20, %v145_v20  ;;  %v727_v34 = vld [vmem:[%s1566_s0 + $0x3c] sm:$0xf0]  ;;  %v737_v35 = vld [vmem:[%s1566_s0 + $0x48] sm:$0xf]  ;;  %v939_v36 = vld [vmem:[%s1566_s0 + $0x50] sm:$0xf0] }
  0x23   :  { %413 = vmatmul.bf16.vlgmr.msra.gmra.mxu1 %v1211_v24  ;;  %562 = vmatpush.bf16.msrb.mxu2 %v858_v29  ;;  %v40_v29 = vld [vmem:[%s1566_s0 + $0x98] sm:$0x1]  ;;  %v730_v37 = vor.u32 %v935_v32, %v727_v34  ;;  %v938_v39 = vld [vmem:[%s1566_s0 + $0x4c] sm:$0xf]  ;;  %v941_v42 = vld [vmem:[%s1566_s0 + $0x64] sm:$0xf] }
  0x24   :  { %428 = vmatpush.bf16.msrb.mxu1 %v894_v17  ;;  %393 = vmatmul.bf16.vlgmr.msra.gmra.mxu0 %v1221_v27  ;;  %v838_v17 = vor.u32 %v964_v14, %v837_v13  ;;  %v147_v30 = vunpack.c.l.b16 %v40_v29 }
  0x25   :  { %606 = vmatpush.bf16.msrb.mxu0 %v1203_v19  ;;  %520 = vmatpush.bf16.msrb.mxu3 %v786_v43  ;;  %v751_v43 = vld [vmem:[%s1566_s0 + $0x6c] sm:$0xf0] }
  0x26   :  { %v168_v31 = vpack.c.b16 %v147_v30, %v147_v30  ;;  %v754_v44 = vor.u32 %v941_v42, %v751_v43 }
  0x27   :  { %563 = vmatpush.bf16.msrb.mxu2 %v850_v40  ;;  %v739_v40 = vld [vmem:[%s1566_s0 + $0x54] sm:$0xf0] }
  0x28   :  { %429 = vmatpush.bf16.msrb.mxu1 %v886_v28  ;;  %v726_v28 = vor.u32 %v936_v23, %v725_v22  ;;  %v742_v41 = vor.u32 %v938_v39, %v739_v40 }
  0x29   :  { %607 = vmatpush.bf16.msrb.mxu0 %v906_v62  ;;  %521 = vmatpush.bf16.msrb.mxu3 %v778_v3 }
  0x2b   :  { %564 = vmatpush.bf16.msrb.mxu2 %v842_v49 }
  0x2c   :  { %430 = vmatpush.bf16.msrb.mxu1 %v878_v38  ;;  %919 = vmatmul.msk.bf16.gmra.mxu3 %vm363_vm0, %v1262_v46  ;;  %v738_v38 = vor.u32 %v939_v36, %v737_v35 }
  0x2e   :  { %565 = vmatmul.bf16.vlgmr.msrb.gmra.mxu2 %v706_v61 }
  0x2f   :  { %993 = vmatpush.bf16.msra.mxu2 %v1203_v19  ;;  %v715_v19 = vld [vmem:[%s1566_s0 + $0x24] sm:$0xf0] }
  0x30   :  { %431 = vmatpush.bf16.msrb.mxu1 %v870_v47  ;;  %v718_v25 = vor.u32 %v932_v18, %v715_v19  ;;  %v146_v47 = vunpack.c.h.b16 %v39_v16 }
  0x32   :  { %v167_v48 = vpack.c.b16 %v146_v47, %v146_v47 }
  0x33   :  { %418 = vmatmul.bf16.gmra.mxu1 %v1308_v4  ;;  %994 = vmatpush.bf16.msra.mxu2 %v906_v62 }
  0x34   :  { %432 = vmatpush.bf16.msrb.mxu1 %v862_v59  ;;  %398 = vmatmul.bf16.gmra.mxu0 %v714_v5 }
  0x38   :  { %433 = vmatpush.bf16.msrb.mxu1 %v854_v6 }
  0x3c   :  { %434 = vmatpush.bf16.msrb.mxu1 %v846_v12  ;;  %920 = vmatmul.msk.bf16.gmra.mxu3 %vm363_vm0, %v1330_v15 }
  0x3e   :  { %570 = vmatmul.bf16.gmra.mxu2 %v718_v25 }
  0x40   :  { %435 = vmatpush.bf16.msrb.mxu1 %v838_v17 }
  0x43   :  { %423 = vmatmul.bf16.gmra.mxu1 %v1349_v26 }
  0x44   :  { %403 = vmatmul.bf16.gmra.mxu0 %v726_v28 }
  0x4c   :  { %921 = vmatmul.msk.bf16.gmra.mxu3 %vm363_vm0, %v168_v31 }
  0x4e   :  { %575 = vmatmul.bf16.gmra.mxu2 %v730_v37 }
  0x53   :  { %436 = vmatmul.bf16.vlgmr.msrb.gmra.mxu1 %v706_v61 }
  0x54   :  { %408 = vmatmul.bf16.gmra.mxu0 %v738_v38 }
  0x5c   :  { %522 = vmatmul.bf16.vlgmr.msrb.gmra.mxu3 %v1221_v27  ;;  %v944_v27 = vld [vmem:[%s1566_s0 + $0x7c] sm:$0xf] }
  0x5e   :  { %580 = vmatmul.bf16.gmra.mxu2 %v742_v41 }
  0x63   :  { %441 = vmatmul.bf16.gmra.mxu1 %v718_v25 }
  0x64   :  { %922 = vmatmul.msk.bf16.vlgmr.msrb.gmra.mxu0 %vm363_vm0, %v1091_v33  ;;  %v763_v33 = vld [vmem:[%s1566_s0 + $0x84] sm:$0xf0] }
  0x65   :  { %v766_v45 = vor.u32 %v944_v27, %v763_v33 }
  0x6c   :  { %527 = vmatmul.bf16.gmra.mxu3 %v714_v5 }
  0x6e   :  { %585 = vmatmul.bf16.gmra.mxu2 %v754_v44 }
  0x73   :  { %446 = vmatmul.bf16.gmra.mxu1 %v730_v37 }
  0x74   :  { %923 = vmatmul.msk.bf16.gmra.mxu0 %vm363_vm0, %v1178_v8 }
  0x7c   :  { %532 = vmatmul.bf16.gmra.mxu3 %v726_v28 }
  0x7e   :  { %590 = vmatmul.bf16.gmra.mxu2 %v766_v45 }
  0x83   :  { %451 = vmatmul.bf16.gmra.mxu1 %v742_v41 }
  0x84   :  { %924 = vmatmul.msk.bf16.gmra.mxu0 %vm363_vm0, %v1063_v21  ;;  %v77_v21 = vld [vmem:[%s1567_s2] sm:$0x3] }
  0x85   :  { %v1407_v53 = vperm.slane %v77_v21, 0  ;;  %v1458_v28 = vperm.slane %v77_v21, 1 }
  0x8c   :  { %537 = vmatmul.bf16.gmra.mxu3 %v738_v38 }
  0x8e   :  { %595 = vmatmul.bf16.gmra.mxu2 %v167_v48 }
  0x8f   :  { %v1393_v49 = vpop.f32.mrf.mxu3 }
  0x91   :  { %v480_v8 = vpop.f32.mrf.mxu2 }
  0x93   :  { %456 = vmatmul.bf16.gmra.mxu1 %v754_v44 }
  0x94   :  { %925 = vmatmul.msk.bf16.gmra.mxu0 %vm363_vm0, %v1149_v60 }
  0x97   :  { %v1397_v50 = vpop.f32.mrf.mxu3 }
  0x99   :  { %v1399_v51 = vpop.f32.mrf.mxu2 }
  0x9c   :  { %542 = vmatmul.bf16.gmra.mxu3 %v1211_v24 }
  0x9e   :  { %928 = vmatmul.msk.bf16.vlgmr.msra.gmra.mxu2 %vm363_vm0, %v168_v31 }
  0x9f   :  { %v1405_v52 = vpop.f32.mrf.mxu3 }
  0xa0   :  { %v414_v54 = vpop.f32.mrf.mxu1 }
  0xa1   :  { %v1410_v55 = vadd.f32 %v414_v54, %v1407_v53  ;;  %v394_v56 = vpop.f32.mrf.mxu0  ;;  %v1413_v60 = vpop.f32.mrf.mxu2 }
  0xa3   :  { %461 = vmatmul.bf16.gmra.mxu1 %v766_v45 }
  0xa4   :  { %926 = vmatmul.msk.bf16.gmra.mxu0 %vm363_vm0, %v1262_v46 }
  0xa7   :  { %v1417_v24 = vpop.f32.mrf.mxu3 }
  0xa8   :  { %v416_v57 = vpop.f32.mrf.mxu1 }
  0xa9   :  { %v1420_v58 = vadd.f32 %v416_v57, %v1407_v53  ;;  %v396_v59 = vpop.f32.mrf.mxu0  ;;  %v1422_v61 = vpop.f32.mrf.mxu2 }
  0xaa   :  { %v397_v38 = vadd.f32 %v396_v59, %v1407_v53 }
  0xac   :  { %547 = vmatmul.bf16.gmra.mxu3 %v1308_v4 }
  0xaf   :  { %v1425_v62 = vpop.f32.mrf.mxu3 }
  0xb0   :  { %v419_v63 = vpop.f32.mrf.mxu1 }
  0xb1   :  { %v1428_v0 = vadd.f32 %v419_v63, %v1407_v53  ;;  %v399_v1 = vpop.f32.mrf.mxu0  ;;  %v566_v46 = vpop.f32.mrf.mxu2 }
  0xb2   :  { %v400_v21 = vadd.f32 %v399_v1, %v1407_v53 }
  0xb3   :  { %466 = vmatmul.bf16.gmra.mxu1 %v167_v48 }
  0xb4   :  { %927 = vmatmul.msk.bf16.gmra.mxu0 %vm363_vm0, %v1330_v15 }
  0xb7   :  { %v1432_v2 = vpop.f32.mrf.mxu3 }
  0xb8   :  { %v421_v3 = vpop.f32.mrf.mxu1 }
  0xb9   :  { %v1435_v5 = vadd.f32 %v421_v3, %v1407_v53  ;;  %v401_v6 = vpop.f32.mrf.mxu0  ;;  %v568_v4 = vpop.f32.mrf.mxu2 }
  0xba   :  { %v402_v1 = vadd.f32 %v401_v6, %v1407_v53 }
  0xbc   :  { %552 = vmatmul.bf16.gmra.mxu3 %v1349_v26  ;;  %v395_v26 = vadd.f32 %v394_v56, %v1407_v53 }
  0xbf   :  { %v1438_v7 = vpop.f32.mrf.mxu3 }
  0xc0   :  { %v424_v9 = vpop.f32.mrf.mxu1 }
  0xc1   :  { %v1441_v10 = vadd.f32 %v424_v9, %v1407_v53  ;;  %v1443_v11 = vpop.f32.mrf.mxu0  ;;  %v571_v12 = vpop.f32.mrf.mxu2 }
  0xc2   :  { %v405_v6 = vadd.f32 %v1443_v11, %v1407_v53 }
  0xc7   :  { %v1445_v13 = vpop.f32.mrf.mxu3 }
  0xc8   :  { %v426_v14 = vpop.f32.mrf.mxu1 }
  0xc9   :  { %v1447_v15 = vpop.f32.mrf.mxu0  ;;  %v573_v16 = vpop.f32.mrf.mxu2 }
  0xcf   :  { %v1449_v17 = vpop.f32.mrf.mxu3 }
  0xd0   :  { %v437_v18 = vpop.f32.mrf.mxu1 }
  0xd1   :  { %v1451_v19 = vpop.f32.mrf.mxu0  ;;  %v1453_v20 = vpop.f32.mrf.mxu2  ;;  %v438_v30 = vadd.f32 %v437_v18, %v395_v26 }
  0xd3   :  { %v481_v36 = vadd.f32 %v480_v8, %v438_v30 }
  0xd5   :  { %v643_v41 = vmax.f32 %v481_v36, 0.0 }
  0xd7   :  { %v512_v22 = vpop.f32.mrf.mxu3 }
  0xd8   :  { %v439_v23 = vpop.f32.mrf.mxu1 }
  0xd9   :  { %v1455_v25 = vpop.f32.mrf.mxu0  ;;  %v1460_v29 = vpop.f32.mrf.mxu2  ;;  %v440_v42 = vadd.f32 %v439_v23, %v397_v38 }
  0xdb   :  { %v483_v48 = vadd.f32 %v1399_v51, %v440_v42 }
  0xdd   :  { %v645_v57 = vmax.f32 %v483_v48, 0.0 }
  0xdf   :  { %v523_v31 = vpop.f32.mrf.mxu3 }
  0xe0   :  { %v524_v32 = vadd.f32 %v523_v31, %v1458_v28  ;;  %v442_v34 = vpop.f32.mrf.mxu1 }
  0xe1   :  { %v609_v35 = vpop.f32.mrf.mxu0  ;;  %v1464_v40 = vpop.f32.mrf.mxu2  ;;  %v443_v59 = vadd.f32 %v442_v34, %v400_v21 }
  0xe2   :  { %v567_v37 = vadd.f32 %v566_v46, %v524_v32 }
  0xe3   :  { %v486_v51 = vadd.f32 %v1413_v60, %v443_v59 }
  0xe4   :  { %v610_v39 = vadd.f32 %v609_v35, %v567_v37 }
  0xe5   :  { %v647_v26 = vmax.f32 %v486_v51, 0.0 }
  0xe6   :  { %v644_v43 = vmax.f32 %v610_v39, 0.0 }
  0xe7   :  { %v525_v44 = vpop.f32.mrf.mxu3 }
  0xe8   :  { %v669_v27 = vpack.c.bf16 %v644_v43, %v643_v41  ;;  %v526_v33 = vadd.f32 %v525_v44, %v1458_v28  ;;  %v444_v45 = vpop.f32.mrf.mxu1 }
  0xe9   :  { %v611_v47 = vpop.f32.mrf.mxu0  ;;  %v1472_v56 = vpop.f32.mrf.mxu2  ;;  %v445_v30 = vadd.f32 %v444_v45, %v402_v1 }
  0xea   :  { %682 = vst [vmem:[%s1568_s3] sm:$0xff] %v669_v27  ;;  %v569_v8 = vadd.f32 %v568_v4, %v526_v33 }
  0xeb   :  { %v488_v60 = vadd.f32 %v1422_v61, %v445_v30 }
  0xec   :  { %v612_v54 = vadd.f32 %v611_v47, %v569_v8 }
  0xed   :  { %v649_v41 = vmax.f32 %v488_v60, 0.0 }
  0xee   :  { %v646_v63 = vmax.f32 %v612_v54, 0.0 }
  0xef   :  { %v528_v46 = vpop.f32.mrf.mxu3 }
  0xf0   :  { %v670_v3 = vpack.c.bf16 %v646_v63, %v645_v57  ;;  %v529_v9 = vadd.f32 %v528_v46, %v1458_v28  ;;  %v447_v14 = vpop.f32.mrf.mxu1 }
  0xf1   :  { %v614_v18 = vpop.f32.mrf.mxu0  ;;  %v1480_v23 = vpop.f32.mrf.mxu2  ;;  %v448_v42 = vadd.f32 %v447_v14, %v405_v6 }
  0xf2   :  { %683 = vst [vmem:[%s1568_s3 + $0x8] sm:$0xff] %v670_v3  ;;  %v572_v4 = vadd.f32 %v571_v12, %v529_v9 }
  0xf3   :  { %v491_v47 = vadd.f32 %v1393_v49, %v448_v42 }
  0xf4   :  { %v615_v22 = vadd.f32 %v614_v18, %v572_v4 }
  0xf5   :  { %v651_v21 = vmax.f32 %v491_v47, 0.0 }
  0xf6   :  { %v648_v31 = vmax.f32 %v615_v22, 0.0 }
  0xf7   :  { %v530_v32 = vpop.f32.mrf.mxu3 }
  0xf8   :  { %v671_v34 = vpack.c.bf16 %v648_v31, %v647_v26  ;;  %v531_v35 = vadd.f32 %v530_v32, %v1458_v28  ;;  %v449_v36 = vpop.f32.mrf.mxu1 }
  0xf9   :  { %v616_v37 = vpop.f32.mrf.mxu0  ;;  %v1489_v39 = vpop.f32.mrf.mxu2 }
  0xfa   :  { %684 = vst [vmem:[%s1568_s3 + $0x10] sm:$0xff] %v671_v34  ;;  %v574_v12 = vadd.f32 %v573_v16, %v531_v35  ;;  %v407_v16 = vadd.f32 %v1447_v15, %v1407_v53 }
  0xfc   :  { %v617_v38 = vadd.f32 %v616_v37, %v574_v12  ;;  %v450_v54 = vadd.f32 %v449_v36, %v407_v16 }
  0xfe   :  { %v650_v43 = vmax.f32 %v617_v38, 0.0  ;;  %v493_v9 = vadd.f32 %v1397_v50, %v450_v54 }
  0xff   :  { %v533_v44 = vpop.f32.mrf.mxu3 }
 0x100   :  { %v672_v27 = vpack.c.bf16 %v650_v43, %v649_v41  ;;  %v534_v33 = vadd.f32 %v533_v44, %v1458_v28  ;;  %v452_v45 = vpop.f32.mrf.mxu1  ;;  %v653_v51 = vmax.f32 %v493_v9, 0.0 }
 0x101   :  { %v619_v61 = vpop.f32.mrf.mxu0  ;;  %v1499_v8 = vpop.f32.mrf.mxu2 }
 0x102   :  { %685 = vst [vmem:[%s1568_s3 + $0x18] sm:$0xff] %v672_v27  ;;  %v577_v11 = vadd.f32 %v1453_v20, %v534_v33  ;;  %v410_v20 = vadd.f32 %v1451_v19, %v1407_v53 }
 0x104   :  { %v620_v48 = vadd.f32 %v619_v61, %v577_v11  ;;  %v453_v4 = vadd.f32 %v452_v45, %v410_v20 }
 0x106   :  { %v652_v57 = vmax.f32 %v620_v48, 0.0  ;;  %v496_v32 = vadd.f32 %v1405_v52, %v453_v4 }
 0x107   :  { %v535_v59 = vpop.f32.mrf.mxu3 }
 0x108   :  { %v673_v63 = vpack.c.bf16 %v652_v57, %v651_v21  ;;  %v536_v46 = vadd.f32 %v535_v59, %v1458_v28  ;;  %v454_v49 = vpop.f32.mrf.mxu1  ;;  %v655_v36 = vmax.f32 %v496_v32, 0.0 }
 0x109   :  { %v621_v3 = vpop.f32.mrf.mxu0  ;;  %v1509_v18 = vpop.f32.mrf.mxu2 }
 0x10a   :  { %686 = vst [vmem:[%s1568_s3 + $0x20] sm:$0xff] %v673_v63  ;;  %v579_v15 = vadd.f32 %v1460_v29, %v536_v46  ;;  %v412_v29 = vadd.f32 %v1455_v25, %v1407_v53 }
 0x10c   :  { %v622_v14 = vadd.f32 %v621_v3, %v579_v15  ;;  %v455_v37 = vadd.f32 %v454_v49, %v412_v29 }
 0x10e   :  { %v654_v1 = vmax.f32 %v622_v14, 0.0  ;;  %v498_v42 = vadd.f32 %v1417_v24, %v455_v37 }
 0x10f   :  { %v538_v22 = vpop.f32.mrf.mxu3 }
 0x110   :  { %v674_v26 = vpack.c.bf16 %v654_v1, %v653_v51  ;;  %v539_v30 = vadd.f32 %v538_v22, %v1458_v28  ;;  %v457_v50 = vpop.f32.mrf.mxu1  ;;  %v657_v43 = vmax.f32 %v498_v42, 0.0 }
 0x111   :  { %v624_v31 = vpop.f32.mrf.mxu0  ;;  %v1519_v35 = vpop.f32.mrf.mxu2  ;;  %v458_v44 = vadd.f32 %v457_v50, %v1410_v55 }
 0x112   :  { %687 = vst [vmem:[%s1568_s3 + $0x28] sm:$0xff] %v674_v26  ;;  %v582_v19 = vadd.f32 %v1464_v40, %v539_v30 }
 0x113   :  { %v501_v24 = vadd.f32 %v1425_v62, %v458_v44 }
 0x114   :  { %v625_v34 = vadd.f32 %v624_v31, %v582_v19 }
 0x115   :  { %v659_v21 = vmax.f32 %v501_v24, 0.0 }
 0x116   :  { %v656_v60 = vmax.f32 %v625_v34, 0.0 }
 0x117   :  { %v540_v12 = vpop.f32.mrf.mxu3 }
 0x118   :  { %v675_v6 = vpack.c.bf16 %v656_v60, %v655_v36  ;;  %v541_v38 = vadd.f32 %v540_v12, %v1458_v28  ;;  %v459_v52 = vpop.f32.mrf.mxu1 }
 0x119   :  { %v626_v41 = vpop.f32.mrf.mxu0  ;;  %v598_v40 = vpop.f32.mrf.mxu2  ;;  %v460_v55 = vadd.f32 %v459_v52, %v1420_v58 }
 0x11a   :  { %688 = vst [vmem:[%s1568_s3 + $0x30] sm:$0xff] %v675_v6  ;;  %v584_v53 = vadd.f32 %v1472_v56, %v541_v38 }
 0x11b   :  { %v503_v62 = vadd.f32 %v1432_v2, %v460_v55 }
 0x11c   :  { %v627_v25 = vadd.f32 %v626_v41, %v584_v53 }
 0x11d   :  { %v661_v15 = vmax.f32 %v503_v62, 0.0 }
 0x11e   :  { %v658_v27 = vmax.f32 %v627_v25, 0.0 }
 0x11f   :  { %v543_v33 = vpop.f32.mrf.mxu3 }
 0x120   :  { %v676_v45 = vpack.c.bf16 %v658_v27, %v657_v43  ;;  %v544_v61 = vadd.f32 %v543_v33, %v1458_v28  ;;  %v462_v47 = vpop.f32.mrf.mxu1 }
 0x121   :  { %v629_v11 = vpop.f32.mrf.mxu0  ;;  %v639_v48 = vpop.f32.mrf.mxu2  ;;  %v463_v58 = vadd.f32 %v462_v47, %v1428_v0 }
 0x122   :  { %689 = vst [vmem:[%s1568_s3 + $0x38] sm:$0xff] %v676_v45  ;;  %v587_v56 = vadd.f32 %v1480_v23, %v544_v61 }
 0x123   :  { %v506_v2 = vadd.f32 %v1438_v7, %v463_v58 }
 0x124   :  { %v630_v16 = vadd.f32 %v629_v11, %v587_v56 }
 0x125   :  { %v663_v30 = vmax.f32 %v506_v2, 0.0 }
 0x126   :  { %v660_v54 = vmax.f32 %v630_v16, 0.0 }
 0x127   :  { %v545_v57 = vpop.f32.mrf.mxu3 }
 0x128   :  { %v677_v59 = vpack.c.bf16 %v660_v54, %v659_v21  ;;  %v546_v63 = vadd.f32 %v545_v57, %v1458_v28  ;;  %v464_v46 = vpop.f32.mrf.mxu1 }
 0x129   :  { %v631_v49 = vpop.f32.mrf.mxu0  ;;  %v641_v9 = vpop.f32.mrf.mxu2  ;;  %v465_v50 = vadd.f32 %v464_v46, %v1435_v5 }
 0x12a   :  { %690 = vst [vmem:[%s1568_s3 + $0x40] sm:$0xff] %v677_v59  ;;  %v589_v23 = vadd.f32 %v1489_v39, %v546_v63 }
 0x12b   :  { %v508_v36 = vadd.f32 %v1445_v13, %v465_v50 }
 0x12c   :  { %v632_v3 = vadd.f32 %v631_v49, %v589_v23 }
 0x12d   :  { %v665_v37 = vmax.f32 %v508_v36, 0.0 }
 0x12e   :  { %v662_v20 = vmax.f32 %v632_v3, 0.0 }
 0x12f   :  { %v548_v14 = vpop.f32.mrf.mxu3 }
 0x130   :  { %v678_v51 = vpack.c.bf16 %v662_v20, %v661_v15  ;;  %v549_v4 = vadd.f32 %v548_v14, %v1458_v28  ;;  %v467_v1 = vpop.f32.mrf.mxu1 }
 0x131   :  { %v634_v22 = vpop.f32.mrf.mxu0  ;;  %v468_v60 = vadd.f32 %v467_v1, %v1441_v10 }
 0x132   :  { %691 = vst [vmem:[%s1568_s3 + $0x48] sm:$0xff] %v678_v51  ;;  %v592_v39 = vadd.f32 %v1499_v8, %v549_v4 }
 0x133   :  { %v511_v52 = vadd.f32 %v1449_v17, %v468_v60 }
 0x134   :  { %v635_v26 = vadd.f32 %v634_v22, %v592_v39 }
 0x135   :  { %v667_v42 = vmax.f32 %v511_v52, 0.0 }
 0x136   :  { %v664_v0 = vmax.f32 %v635_v26, 0.0 }
 0x137   :  { %v550_v31 = vpop.f32.mrf.mxu3 }
 0x138   :  { %v679_v32 = vpack.c.bf16 %v664_v0, %v663_v30  ;;  %v551_v19 = vadd.f32 %v550_v31, %v1458_v28  ;;  %v469_v29 = vpop.f32.mrf.mxu1 }
 0x139   :  { %v636_v34 = vpop.f32.mrf.mxu0 }
 0x13a   :  { %692 = vst [vmem:[%s1568_s3 + $0x50] sm:$0xff] %v679_v32  ;;  %v594_v7 = vadd.f32 %v1509_v18, %v551_v19 }
 0x13c   :  { %v637_v8 = vadd.f32 %v636_v34, %v594_v7 }
 0x13e   :  { %v666_v5 = vmax.f32 %v637_v8, 0.0 }
 0x13f   :  { %v553_v12 = vpop.f32.mrf.mxu3 }
 0x140   :  { %v680_v6 = vpack.c.bf16 %v666_v5, %v665_v37  ;;  %v554_v38 = vadd.f32 %v553_v12, %v1458_v28 }
 0x142   :  { %693 = vst [vmem:[%s1568_s3 + $0x58] sm:$0xff] %v680_v6  ;;  %v597_v13 = vadd.f32 %v1519_v35, %v554_v38 }
 0x144   :  { %v640_v41 = vadd.f32 %v639_v48, %v597_v13 }
 0x146   :  { %v668_v18 = vmax.f32 %v640_v41, 0.0 }
 0x147   :  { %v555_v53 = vpop.f32.mrf.mxu3 }
 0x148   :  { %v681_v25 = vpack.c.bf16 %v668_v18, %v667_v42 }
 0x14a   :  { %694 = vst [vmem:[%s1568_s3 + $0x60] sm:$0x11] %v681_v25 }

// kernel: regressor_forward.33
= control target key start
LH: loop header
LB: loop body
LE: loop exit
PB: predicated region body
PF: predicated region fallthrough
CT: control target
= control target key end

     0   :  { %s788_s15 = smov 0   ;;  %s937_s0 = inlined_call_operand.vmem [shape: bf16[2,4,4,256], index: 0, kind: input, shape index: {}]   ;;  %s938_s1 = inlined_call_operand.vmem [shape: bf16[2,4,4,256], index: 1, kind: input, shape index: {}]   ;;  %s939_s2 = inlined_call_operand.vmem [shape: bf16[2,4,4,256], index: 2, kind: input, shape index: {}]   ;;  %s940_s3 = inlined_call_operand.vmem [shape: bf16[2,4,4,256], index: 3, kind: input, shape index: {}]   ;;  %s941_s4 = inlined_call_operand.vmem [shape: bf16[2,3,3,256], index: 4, kind: output, shape index: {}]  }
   0x1 LB: > { %s697_s16 = sadd.s32 4294967295, %s761_s15   ;;  %p701_p0 = scmp.ge.s32.totalorder %s761_s15, 1  ;;  %s761_s15 = sphi %s788_s15, %s14_s15  }
   0x2   : > { %p192_p1 = scmp.lt.s32.totalorder %s761_s15, 3 }
   0x4   : > { %p193_p2 = pnand %p701_p0, %p192_p1 }
   0x5   : > { %p233_p3 = scmp.lt.s32.totalorder (!%p193_p2), %s697_s16, 1 }
   0x6   : > { %196 = sbr.rel (%p193_p2) target bundleno = 98 (0x62), region = 36 }
   0xb   : > { %s947_s16 = smov (!%p233_p3, %s697_s16), 1  ;;  %vm591_vm0 = vsmask.f32 1280  ;;  %vm577_vm1 = vcmask 1041408   ;;  %vm593_vm2 = vcmask 1043458  }
   0xc   : > { %s799_s17 = sshll.u32 %s947_s16, 4  ;;  %vm594_vm3 = vsmask.f32 3328  ;;  %s746_s30 = smul.u32 12, %s947_s16  ;;  %vm910_vm4 = vmand %vm577_vm1, %vm591_vm0 }
   0xd   : > { %s237_s20 = scalar_lea.vmem %s937_s0, %s799_s17  ;;  %s242_s23 = scalar_lea.vmem %s938_s1, %s799_s17  ;;  %vm595_vm5 = vmand %vm593_vm2, %vm594_vm3 }
   0xe   : > { %v721_v0 = vld [vmem:[%s237_s20] sm:$0xff]   ;;  %v744_v1 = vld [vmem:[%s237_s20 + $0x8] sm:$0xff]   ;;  %s247_s26 = scalar_lea.vmem %s939_s2, %s799_s17  ;;  %s252_s29 = scalar_lea.vmem %s940_s3, %s799_s17  ;;  %vm921_vm6 = vmor %vm595_vm5, %vm910_vm4 }
   0xf   : > { %v722_v2 = vunpack.c.l.bf16 %v721_v0  ;;  %v723_v3 = vunpack.c.h.bf16 %v721_v0  ;;  %v726_v4 = vunpack.c.l.bf16 %v744_v1  ;;  %v727_v11 = vunpack.c.h.bf16 %v744_v1  ;;  %v729_v20 = vld [vmem:[%s242_s23] sm:$0xff]   ;;  %v745_v26 = vld [vmem:[%s242_s23 + $0x8] sm:$0xff]   ;;  %s257_s7 = scalar_lea.vmem %s941_s4, %s746_s30 }
  0x10   : > { %v730_v25 = vunpack.c.l.bf16 %v729_v20  ;;  %v731_v27 = vunpack.c.h.bf16 %v729_v20  ;;  %v734_v30 = vunpack.c.l.bf16 %v745_v26  ;;  %v735_v37 = vunpack.c.h.bf16 %v745_v26  ;;  %v737_v38 = vld [vmem:[%s247_s26] sm:$0xff]   ;;  %v268_v44 = vld [vmem:[%s247_s26 + $0x8] sm:$0xf] }
  0x11   : > { %v711_v5 = vrot.slane %v722_v2, 9  ;;  %v712_v6 = vrot.slane %v723_v3, 9  ;;  %v713_v7 = vrot.slane %v726_v4, 9  ;;  %v738_v43 = vunpack.c.l.bf16 %v737_v38  ;;  %v741_v55 = vld [vmem:[%s252_s29] sm:$0xff]   ;;  %v271_v57 = vld [vmem:[%s252_s29 + $0x8] sm:$0xf] }
  0x12   : > { %v739_v45 = vunpack.c.h.bf16 %v737_v38  ;;  %v465_v48 = vunpack.c.l.bf16 %v268_v44 }
  0x13   : > { %v287_v8 = vmax.f32 %v722_v2, %v711_v5  ;;  %v288_v9 = vmax.f32 %v723_v3, %v712_v6  ;;  %v289_v10 = vmax.f32 %v726_v4, %v713_v7  ;;  %v742_v2 = vunpack.c.l.bf16 %v741_v55 }
  0x15   : > { %293 = vst [vmem:[#allocation1] ss:$2 sm:$0xff] %v287_v8 }
  0x16   : > { %297 = vst [vmem:[#allocation1 + $0x10] ss:$2 sm:$0xff] %v288_v9 }
  0x17   : > { %301 = vst [vmem:[#allocation1 + $0x20] ss:$2 sm:$0xff] %v289_v10  ;;  %v541_v10 = vunpack.c.l.bf16 %v271_v57 }
  0x1c   : > { %v805_v12 = vld.sshfl [vmem:[#allocation1] sm:$0xff pattern:$0x75316420]  ;;  %v807_v13 = vld.sshfl [vmem:[#allocation1 + $0x8] sm:$0xff pattern:$0x75316420] }
  0x1d   : > { %321 = vst [vmem:[#allocation1] ss:$2 sm:$0xff] %v723_v3  ;;  %v809_v14 = vld.sshfl [vmem:[#allocation1 + $0x10] sm:$0xff pattern:$0x75316420] }
  0x1e   : > { %v811_v15 = vld.sshfl [vmem:[#allocation1 + $0x18] sm:$0xff pattern:$0x75316420]  ;;  %v813_v16 = vld.sshfl [vmem:[#allocation1 + $0x20] sm:$0xff pattern:$0x75316420] }
  0x1f   : > { %325 = vst [vmem:[#allocation1 + $0x10] ss:$2 sm:$0xff] %v726_v4  ;;  %v815_v17 = vld.sshfl [vmem:[#allocation1 + $0x28] sm:$0xff pattern:$0x75316420] }
  0x20   : > { %329 = vst [vmem:[#allocation1 + $0x20] ss:$2 sm:$0xff] %v727_v11 }
  0x24   : > { %v821_v18 = vld.sshfl [vmem:[#allocation1] sm:$0xff pattern:$0x75316420]  ;;  %v823_v19 = vld.sshfl [vmem:[#allocation1 + $0x8] sm:$0xff pattern:$0x75316420] }
  0x25   : > { %353 = vst [vmem:[#allocation1] ss:$2 sm:$0xff] %v723_v3  ;;  %v338_v1 = vmax.f32 %v805_v12, %v821_v18  ;;  %v743_v3 = vunpack.c.h.bf16 %v741_v55 }
  0x26   : > { %v825_v21 = vld.sshfl [vmem:[#allocation1 + $0x10] sm:$0xff pattern:$0x75316420]  ;;  %v827_v22 = vld.sshfl [vmem:[#allocation1 + $0x18] sm:$0xff pattern:$0x75316420] }
  0x27   : > { %357 = vst [vmem:[#allocation1 + $0x10] ss:$2 sm:$0xff] %v726_v4  ;;  %v829_v23 = vld.sshfl [vmem:[#allocation1 + $0x20] sm:$0xff pattern:$0x75316420]  ;;  %v339_v4 = vmax.f32 %v807_v13, %v823_v19  ;;  %v340_v5 = vmax.f32 %v809_v14, %v825_v21  ;;  %v341_v7 = vmax.f32 %v811_v15, %v827_v22 }
  0x28   : > { %v831_v24 = vld.sshfl [vmem:[#allocation1 + $0x28] sm:$0xff pattern:$0x75316420]  ;;  %v342_v12 = vmax.f32 %v813_v16, %v829_v23 }
  0x29   : > { %361 = vst [vmem:[#allocation1 + $0x20] ss:$2 sm:$0xff] %v727_v11  ;;  %v343_v21 = vmax.f32 %v815_v17, %v831_v24 }
  0x2c   : > { %v354_v28 = vld.sshfl [vmem:[#allocation1] sm:$0xff pattern:$0x75316420]  ;;  %v355_v29 = vld.sshfl [vmem:[#allocation1 + $0x8] sm:$0xff pattern:$0x75316420] }
  0x2d   : > { %397 = vst [vmem:[#allocation1] ss:$2 sm:$0xff] %v730_v25  ;;  %v364_v56 = vrot.slane %v354_v28, 1  ;;  %v365_v60 = vrot.slane %v355_v29, 1 }
  0x2e   : > { %v833_v31 = vld.sshfl [vmem:[#allocation1 + $0x10] sm:$0xff pattern:$0x75316420]  ;;  %v835_v32 = vld.sshfl [vmem:[#allocation1 + $0x18] sm:$0xff pattern:$0x75316420] }
  0x2f   : > { %401 = vst [vmem:[#allocation1 + $0x10] ss:$2 sm:$0xff] %v731_v27  ;;  %v366_v61 = vrot.slane %v833_v31, 1  ;;  %v367_v62 = vrot.slane %v835_v32, 1  ;;  %v376_v6 = vmax.f32 %v338_v1, %v364_v56  ;;  %v377_v11 = vmax.f32 %v339_v4, %v365_v60  ;;  %v597_v4 = vld [vmem:[%s257_s7] sm:$0xf] }
  0x30   : > { %v837_v33 = vld.sshfl [vmem:[#allocation1 + $0x20] sm:$0xff pattern:$0x75316420]  ;;  %v839_v34 = vld.sshfl [vmem:[#allocation1 + $0x28] sm:$0xff pattern:$0x75316420] }
  0x31   : > { %405 = vst [vmem:[#allocation1 + $0x20] ss:$2 sm:$0xff] %v734_v30  ;;  %v368_v8 = vrot.slane %v837_v33, 1  ;;  %v369_v9 = vrot.slane %v839_v34, 1  ;;  %v378_v19 = vmax.f32 %v340_v5, %v366_v61  ;;  %v379_v14 = vmax.f32 %v341_v7, %v367_v62 }
  0x33   : > { %v380_v23 = vmax.f32 %v342_v12, %v368_v8 }
  0x34   : > { %v845_v35 = vld.sshfl [vmem:[#allocation1] sm:$0xff pattern:$0x75316420]  ;;  %v847_v36 = vld.sshfl [vmem:[#allocation1 + $0x8] sm:$0xff pattern:$0x75316420] }
  0x35   : > { %431 = vst [vmem:[#allocation1] ss:$2 sm:$0xff] %v731_v27  ;;  %v414_v13 = vmax.f32 %v376_v6, %v845_v35  ;;  %v415_v15 = vmax.f32 %v377_v11, %v847_v36  ;;  %v381_v27 = vmax.f32 %v343_v21, %v369_v9 }
  0x36   : > { %v849_v39 = vld.sshfl [vmem:[#allocation1 + $0x10] sm:$0xff pattern:$0x75316420]  ;;  %v851_v40 = vld.sshfl [vmem:[#allocation1 + $0x18] sm:$0xff pattern:$0x75316420] }
  0x37   : > { %435 = vst [vmem:[#allocation1 + $0x10] ss:$2 sm:$0xff] %v734_v30  ;;  %v416_v26 = vmax.f32 %v378_v19, %v849_v39  ;;  %v417_v16 = vmax.f32 %v379_v14, %v851_v40 }
  0x38   : > { %v853_v41 = vld.sshfl [vmem:[#allocation1 + $0x20] sm:$0xff pattern:$0x75316420]  ;;  %v855_v42 = vld.sshfl [vmem:[#allocation1 + $0x28] sm:$0xff pattern:$0x75316420] }
  0x39   : > { %439 = vst [vmem:[#allocation1 + $0x20] ss:$2 sm:$0xff] %v735_v37  ;;  %v418_v34 = vmax.f32 %v380_v23, %v853_v41  ;;  %v419_v35 = vmax.f32 %v381_v27, %v855_v42 }
  0x3c   : > { %v432_v46 = vld.sshfl [vmem:[#allocation1] sm:$0xff pattern:$0x75316420]  ;;  %v433_v47 = vld.sshfl [vmem:[#allocation1 + $0x8] sm:$0xff pattern:$0x75316420] }
  0x3d   : > { %469 = vst [vmem:[#allocation1] ss:$2 sm:$0xff] %v738_v43  ;;  %v448_v28 = vmax.f32 %v414_v13, %v432_v46  ;;  %v449_v29 = vmax.f32 %v415_v15, %v433_v47  ;;  %v603_v13 = vld [vmem:[%s257_s7 + $0x8] sm:$0xf] }
  0x3e   : > { %v436_v49 = vld.sshfl [vmem:[#allocation1 + $0x10] sm:$0xff pattern:$0x75316420]  ;;  %v437_v50 = vld.sshfl [vmem:[#allocation1 + $0x18] sm:$0xff pattern:$0x75316420] }
  0x3f   : > { %473 = vst [vmem:[#allocation1 + $0x10] ss:$2 sm:$0xff] %v739_v45  ;;  %v450_v32 = vmax.f32 %v416_v26, %v436_v49  ;;  %v451_v33 = vmax.f32 %v417_v16, %v437_v50 }
  0x40   : > { %v857_v51 = vld.sshfl [vmem:[#allocation1 + $0x20] sm:$0xff pattern:$0x75316420]  ;;  %v859_v52 = vld.sshfl [vmem:[#allocation1 + $0x28] sm:$0xff pattern:$0x75316420] }
  0x41   : > { %477 = vst [vmem:[#allocation1 + $0x20] ss:$2 sm:$0xff] %v465_v48  ;;  %v453_v44 = vmax.f32 %v419_v35, %v859_v52 }
  0x44   : > { %v865_v53 = vld.sshfl [vmem:[#allocation1] sm:$0xff pattern:$0x75316420]  ;;  %v867_v54 = vld.sshfl [vmem:[#allocation1 + $0x8] sm:$0xff pattern:$0x75316420] }
  0x45   : > { %501 = vst [vmem:[#allocation1] ss:$2 sm:$0xff] %v738_v43  ;;  %v486_v36 = vmax.f32 %v448_v28, %v865_v53  ;;  %v487_v37 = vmax.f32 %v449_v29, %v867_v54  ;;  %v452_v43 = vmax.f32 %v418_v34, %v857_v51 }
  0x46   : > { %v869_v58 = vld.sshfl [vmem:[#allocation1 + $0x10] sm:$0xff pattern:$0x75316420]  ;;  %v871_v59 = vld.sshfl [vmem:[#allocation1 + $0x18] sm:$0xff pattern:$0x75316420] }
  0x47   : > { %505 = vst [vmem:[#allocation1 + $0x10] ss:$2 sm:$0xff] %v739_v45  ;;  %v488_v40 = vmax.f32 %v450_v32, %v869_v58  ;;  %v489_v41 = vmax.f32 %v451_v33, %v871_v59 }
  0x48   : > { %v875_v63 = vld.sshfl [vmem:[#allocation1 + $0x20] sm:$0xff pattern:$0x75316420]  ;;  %v877_v0 = vld.sshfl [vmem:[#allocation1 + $0x28] sm:$0xff pattern:$0x75316420] }
  0x49   : > { %509 = vst [vmem:[#allocation1 + $0x20] ss:$2 sm:$0xff] %v465_v48  ;;  %v490_v50 = vmax.f32 %v452_v43, %v875_v63  ;;  %v491_v53 = vmax.f32 %v453_v44, %v877_v0 }
  0x4c   : > { %v502_v18 = vld.sshfl [vmem:[#allocation1] sm:$0xff pattern:$0x75316420]  ;;  %v503_v20 = vld.sshfl [vmem:[#allocation1 + $0x8] sm:$0xff pattern:$0x75316420] }
  0x4d   : > { %545 = vst [vmem:[#allocation1] ss:$2 sm:$0xff] %v742_v2  ;;  %v512_v30 = vrot.slane %v502_v18, 1  ;;  %v513_v17 = vrot.slane %v503_v20, 1 }
  0x4e   : > { %v506_v22 = vld.sshfl [vmem:[#allocation1 + $0x10] sm:$0xff pattern:$0x75316420]  ;;  %v507_v25 = vld.sshfl [vmem:[#allocation1 + $0x18] sm:$0xff pattern:$0x75316420] }
  0x4f   : > { %549 = vst [vmem:[#allocation1 + $0x10] ss:$2 sm:$0xff] %v743_v3  ;;  %v514_v38 = vrot.slane %v506_v22, 1  ;;  %v515_v39 = vrot.slane %v507_v25, 1  ;;  %v524_v46 = vmax.f32 %v486_v36, %v512_v30  ;;  %v525_v47 = vmax.f32 %v487_v37, %v513_v17 }
  0x50   : > { %v510_v24 = vld.sshfl [vmem:[#allocation1 + $0x20] sm:$0xff pattern:$0x75316420]  ;;  %v511_v31 = vld.sshfl [vmem:[#allocation1 + $0x28] sm:$0xff pattern:$0x75316420] }
  0x51   : > { %553 = vst [vmem:[#allocation1 + $0x20] ss:$2 sm:$0xff] %v541_v10  ;;  %v516_v45 = vrot.slane %v510_v24, 1  ;;  %v517_v42 = vrot.slane %v511_v31, 1  ;;  %v526_v52 = vmax.f32 %v488_v40, %v514_v38  ;;  %v527_v56 = vmax.f32 %v489_v41, %v515_v39  ;;  %v600_v10 = vld [vmem:[%s257_s7 + $0x4] sm:$0xf] }
  0x53   : > { %v528_v59 = vmax.f32 %v490_v50, %v516_v45  ;;  %v529_v63 = vmax.f32 %v491_v53, %v517_v42 }
  0x54   : > { %v546_v48 = vld.sshfl [vmem:[#allocation1] sm:$0xff pattern:$0x75316420]  ;;  %v547_v49 = vld.sshfl [vmem:[#allocation1 + $0x8] sm:$0xff pattern:$0x75316420] }
  0x55   : > { %v562_v54 = vmax.f32 %v524_v46, %v546_v48  ;;  %v563_v55 = vmax.f32 %v525_v47, %v547_v49 }
  0x56   : > { %v550_v57 = vld.sshfl [vmem:[#allocation1 + $0x10] sm:$0xff pattern:$0x75316420]  ;;  %v551_v58 = vld.sshfl [vmem:[#allocation1 + $0x18] sm:$0xff pattern:$0x75316420] }
  0x57   : > { %v568_v60 = vpack.c.bf16 %v563_v55, %v562_v54  ;;  %v564_v61 = vmax.f32 %v526_v52, %v550_v57  ;;  %v565_v62 = vmax.f32 %v527_v56, %v551_v58 }
  0x58   : > { %v554_v0 = vld.sshfl [vmem:[#allocation1 + $0x20] sm:$0xff pattern:$0x75316420]  ;;  %v555_v1 = vld.sshfl [vmem:[#allocation1 + $0x28] sm:$0xff pattern:$0x75316420] }
  0x59   : > { %v574_v2 = vrot.slane %v568_v60, 2  ;;  %v569_v5 = vpack.c.bf16 %v565_v62, %v564_v61  ;;  %v566_v6 = vmax.f32 %v528_v59, %v554_v0  ;;  %v567_v7 = vmax.f32 %v529_v63, %v555_v1 }
  0x5b   : > { %v580_v8 = vsel %vm577_vm1, %v568_v60, %v574_v2  ;;  %v575_v9 = vrot.slane %v569_v5, 2  ;;  %v570_v11 = vpack.c.bf16 %v567_v7, %v566_v6 }
  0x5c   : > { %v598_v12 = vsel %vm921_vm6, %v580_v8, %v597_v4 }
  0x5d   : > { %599 = vst [vmem:[%s257_s7] sm:$0xf] %v598_v12  ;;  %v583_v18 = vsel %vm577_vm1, %v569_v5, %v575_v9  ;;  %v576_v20 = vrot.slane %v570_v11, 2 }
  0x5e   : > { %v601_v19 = vsel %vm921_vm6, %v583_v18, %v600_v10 }
  0x5f   : > { %602 = vst [vmem:[%s257_s7 + $0x4] sm:$0xf] %v601_v19  ;;  %v586_v14 = vsel %vm577_vm1, %v570_v11, %v576_v20 }
  0x60   : > { %v604_v21 = vsel %vm921_vm6, %v586_v14, %v603_v13 }
  0x61   : > { %605 = vst [vmem:[%s257_s7 + $0x8] sm:$0xf] %v604_v21 }
  0x62 PF: > { %s14_s15 = sadd.s32 1, %s761_s15  }
  0x63   : > { %p11_p4 = scmp.ge.s32.totalorder %s14_s15, 4  }
  0x65   :  { %13 = sbr.rel (!%p11_p4) target bundleno = 1 (0x1), region = 91 }

// kernel: regressor_forward.34
= control target key start
LH: loop header
LB: loop body
LE: loop exit
PB: predicated region body
PF: predicated region fallthrough
CT: control target
= control target key end

     0   :  { %vm208_vm0 = vcmask 388096   ;;  %vm211_vm1 = vcmask 385024   ;;  %s421_s1 = inlined_call_operand.vmem [shape: bf16[256,48], index: 1, kind: input, shape index: {}]   ;;  %s422_s2 = inlined_call_operand.vmem [shape: f32[1,48], index: 2, kind: input, shape index: {}]   ;;  %s423_s0 = inlined_call_operand.vmem [shape: bf16[18,256], index: 0, kind: input, shape index: {}]   ;;  %s424_s3 = inlined_call_operand.vmem [shape: bf16[18,48], index: 3, kind: output, shape index: {}]  }
   0x1   :  { %v298_v0 = vld [vmem:[%s421_s1 + $0x38] sm:$0xff]  ;;  %v297_v2 = vld [vmem:[%s421_s1 + $0x30] sm:$0xff]  ;;  %v296_v4 = vld [vmem:[%s421_s1 + $0x28] sm:$0xff] }
   0x2   :  { %v306_v1 = vld [vmem:[%s421_s1 + $0x78] sm:$0xff]  ;;  %166 = vmatpush.bf16.msra.mxu0 %v298_v0  ;;  %307 = vmatpush.bf16.msra.mxu2 %v298_v0  ;;  %v305_v3 = vld [vmem:[%s421_s1 + $0x70] sm:$0xff]  ;;  %v304_v5 = vld [vmem:[%s421_s1 + $0x68] sm:$0xff] }
   0x3   :  { %184 = vmatpush.bf16.msra.mxu1 %v306_v1  ;;  %315 = vmatpush.bf16.msra.mxu3 %v306_v1  ;;  %v295_v6 = vld [vmem:[%s421_s1 + $0x20] sm:$0xff]  ;;  %v294_v8 = vld [vmem:[%s421_s1 + $0x18] sm:$0xff]  ;;  %v293_v10 = vld [vmem:[%s421_s1 + $0x10] sm:$0xff] }
   0x4   :  { %v303_v7 = vld [vmem:[%s421_s1 + $0x60] sm:$0xff]  ;;  %v302_v9 = vld [vmem:[%s421_s1 + $0x58] sm:$0xff]  ;;  %v301_v11 = vld [vmem:[%s421_s1 + $0x50] sm:$0xff] }
   0x5   :  { %v292_v12 = vld [vmem:[%s421_s1 + $0x8] sm:$0xff]  ;;  %v16_v13 = vld [vmem:[%s423_s0 + $0x10] sm:$0x11]  ;;  %v291_v16 = vld [vmem:[%s421_s1] sm:$0xff] }
   0x6   :  { %167 = vmatpush.bf16.msra.mxu0 %v297_v2  ;;  %308 = vmatpush.bf16.msra.mxu2 %v297_v2  ;;  %v300_v14 = vld [vmem:[%s421_s1 + $0x48] sm:$0xff]  ;;  %v60_v15 = vunpack.c.l.b16 %v16_v13  ;;  %v219_v17 = vld [vmem:[%s423_s0] sm:$0xf]  ;;  %v61_v19 = vunpack.c.h.b16 %v16_v13  ;;  %v289_v21 = vld [vmem:[%s423_s0 + $0x4] sm:$0xf] }
   0x7   :  { %185 = vmatpush.bf16.msra.mxu1 %v305_v3  ;;  %316 = vmatpush.bf16.msra.mxu3 %v305_v3  ;;  %v290_v18 = vld [vmem:[%s423_s0 + $0x4] sm:$0xf0]  ;;  %v299_v20 = vld [vmem:[%s421_s1 + $0x40] sm:$0xff]  ;;  %v221_v22 = vld [vmem:[%s423_s0 + $0x8] sm:$0xf0] }
   0x8   :  { %v220_v23 = vor.u32 %v290_v18, %v219_v17  ;;  %v64_v24 = vpack.c.b16 %v60_v15, %v60_v15  ;;  %v224_v25 = vor.u32 %v289_v21, %v221_v22  ;;  %v65_v26 = vpack.c.b16 %v61_v19, %v61_v19  ;;  %v323_v27 = vld [vmem:[%s422_s2] ss:$0 sm:$0xff] }
   0xa   :  { %168 = vmatpush.bf16.msra.mxu0 %v296_v4  ;;  %309 = vmatpush.bf16.msra.mxu2 %v296_v4 }
   0xb   :  { %186 = vmatpush.bf16.msra.mxu1 %v304_v5  ;;  %317 = vmatpush.bf16.msra.mxu3 %v304_v5 }
   0xe   :  { %169 = vmatpush.bf16.msra.mxu0 %v295_v6  ;;  %310 = vmatpush.bf16.msra.mxu2 %v295_v6 }
   0xf   :  { %187 = vmatpush.bf16.msra.mxu1 %v303_v7  ;;  %318 = vmatpush.bf16.msra.mxu3 %v303_v7 }
  0x12   :  { %170 = vmatpush.bf16.msra.mxu0 %v294_v8  ;;  %311 = vmatpush.bf16.msra.mxu2 %v294_v8 }
  0x13   :  { %188 = vmatpush.bf16.msra.mxu1 %v302_v9  ;;  %319 = vmatpush.bf16.msra.mxu3 %v302_v9 }
  0x16   :  { %171 = vmatpush.bf16.msra.mxu0 %v293_v10  ;;  %312 = vmatpush.bf16.msra.mxu2 %v293_v10 }
  0x17   :  { %189 = vmatpush.bf16.msra.mxu1 %v301_v11  ;;  %320 = vmatpush.bf16.msra.mxu3 %v301_v11 }
  0x1a   :  { %172 = vmatpush.bf16.msra.mxu0 %v292_v12  ;;  %313 = vmatpush.bf16.msra.mxu2 %v292_v12 }
  0x1b   :  { %190 = vmatpush.bf16.msra.mxu1 %v300_v14  ;;  %321 = vmatpush.bf16.msra.mxu3 %v300_v14 }
  0x1e   :  { %173 = vmatpush.bf16.msra.mxu0 %v291_v16  ;;  %314 = vmatpush.bf16.msra.mxu2 %v291_v16 }
  0x1f   :  { %191 = vmatpush.bf16.msra.mxu1 %v299_v20  ;;  %322 = vmatpush.bf16.msra.mxu3 %v299_v20 }
  0x21   :  { %174 = vmatmul.bf16.vlgmr.msra.gmra.mxu0 %v220_v23  ;;  %179 = vmatmul.bf16.vlgmr.msra.gmra.mxu2 %v64_v24 }
  0x22   :  { %192 = vmatmul.bf16.vlgmr.msra.gmra.mxu1 %v224_v25  ;;  %197 = vmatmul.bf16.vlgmr.msra.gmra.mxu3 %v65_v26 }
  0x9e   :  { %v175_v28 = vpop.f32.mrf.mxu0 }
  0x9f   :  { %v176_v29 = vadd.f32 %v323_v27, %v175_v28  ;;  %v193_v30 = vpop.f32.mrf.mxu1 }
  0xa1   :  { %v194_v31 = vadd.f32 %v193_v30, %v176_v29 }
  0xa3   :  { %v202_v32 = vmax.f32 %v194_v31, 0.0 }
  0xa4   :  { %v180_v33 = vpop.f32.mrf.mxu2 }
  0xa5   :  { %v205_v34 = vpack.c.bf16 %v202_v32, %v202_v32  ;;  %v181_v35 = vadd.f32 %v323_v27, %v180_v33  ;;  %v198_v36 = vpop.f32.mrf.mxu3 }
  0xa6   :  { %v177_v37 = vpop.f32.mrf.mxu0 }
  0xa7   :  { %209 = vst.msk [vmem:[%s424_s3] sm:$0xf] %vm208_vm0, %v205_v34  ;;  %v199_v38 = vadd.f32 %v198_v36, %v181_v35  ;;  %v178_v39 = vadd.f32 %v323_v27, %v177_v37  ;;  %v195_v40 = vpop.f32.mrf.mxu1 }
  0xa9   :  { %v204_v41 = vmax.f32 %v199_v38, 0.0  ;;  %v196_v42 = vadd.f32 %v195_v40, %v178_v39 }
  0xab   :  { %v207_v43 = vpack.c.bf16 %v204_v41, %v204_v41  ;;  %v203_v44 = vmax.f32 %v196_v42, 0.0 }
  0xac   :  { %v182_v45 = vpop.f32.mrf.mxu2 }
  0xad   :  { %212 = vst.msk [vmem:[%s424_s3 + $0x8] sm:$0x1] %vm211_vm1, %v207_v43  ;;  %v206_v46 = vpack.c.bf16 %v203_v44, %v203_v44  ;;  %v200_v47 = vpop.f32.mrf.mxu3 }
  0xaf   :  { %210 = vst.msk [vmem:[%s424_s3 + $0x4] sm:$0xf] %vm208_vm0, %v206_v46 }

// kernel: regressor_forward.36
= control target key start
LH: loop header
LB: loop body
LE: loop exit
PB: predicated region body
PF: predicated region fallthrough
CT: control target
= control target key end

     0   :  { %vm303_vm0 = vcmask 388096   ;;  %vm306_vm1 = vcmask 385024   ;;  %s584_s1 = inlined_call_operand.vmem [shape: bf16[384,48], index: 1, kind: input, shape index: {}]   ;;  %s585_s2 = inlined_call_operand.vmem [shape: f32[1,48], index: 2, kind: input, shape index: {}]   ;;  %s586_s0 = inlined_call_operand.vmem [shape: bf16[18,384], index: 0, kind: input, shape index: {}]   ;;  %s587_s3 = inlined_call_operand.vmem [shape: bf16[18,48], index: 3, kind: output, shape index: {}]  }
   0x1   :  { %v430_v0 = vld [vmem:[%s584_s1 + $0x38] sm:$0xff]  ;;  %v429_v3 = vld [vmem:[%s584_s1 + $0x30] sm:$0xff]  ;;  %v428_v6 = vld [vmem:[%s584_s1 + $0x28] sm:$0xff] }
   0x2   :  { %v438_v1 = vld [vmem:[%s584_s1 + $0x78] sm:$0xff]  ;;  %243 = vmatpush.bf16.msra.mxu0 %v430_v0  ;;  %v437_v4 = vld [vmem:[%s584_s1 + $0x70] sm:$0xff]  ;;  %447 = vmatpush.bf16.msra.mxu3 %v430_v0  ;;  %v436_v7 = vld [vmem:[%s584_s1 + $0x68] sm:$0xff] }
   0x3   :  { %v446_v2 = vld [vmem:[%s584_s1 + $0xb8] sm:$0xff]  ;;  %261 = vmatpush.bf16.msra.mxu1 %v438_v1  ;;  %v445_v5 = vld [vmem:[%s584_s1 + $0xb0] sm:$0xff]  ;;  %v444_v8 = vld [vmem:[%s584_s1 + $0xa8] sm:$0xff] }
   0x4   :  { %279 = vmatpush.bf16.msra.mxu2 %v446_v2  ;;  %v427_v9 = vld [vmem:[%s584_s1 + $0x20] sm:$0xff]  ;;  %v426_v12 = vld [vmem:[%s584_s1 + $0x18] sm:$0xff]  ;;  %v425_v15 = vld [vmem:[%s584_s1 + $0x10] sm:$0xff] }
   0x5   :  { %v435_v10 = vld [vmem:[%s584_s1 + $0x60] sm:$0xff]  ;;  %v434_v13 = vld [vmem:[%s584_s1 + $0x58] sm:$0xff]  ;;  %v433_v16 = vld [vmem:[%s584_s1 + $0x50] sm:$0xff] }
   0x6   :  { %244 = vmatpush.bf16.msra.mxu0 %v429_v3  ;;  %448 = vmatpush.bf16.msra.mxu3 %v429_v3  ;;  %v443_v11 = vld [vmem:[%s584_s1 + $0xa0] sm:$0xff]  ;;  %v442_v14 = vld [vmem:[%s584_s1 + $0x98] sm:$0xff]  ;;  %v441_v17 = vld [vmem:[%s584_s1 + $0x90] sm:$0xff] }
   0x7   :  { %262 = vmatpush.bf16.msra.mxu1 %v437_v4  ;;  %v424_v18 = vld [vmem:[%s584_s1 + $0x8] sm:$0xff]  ;;  %v18_v21 = vld [vmem:[%s586_s0 + $0x18] sm:$0x11]  ;;  %v423_v22 = vld [vmem:[%s584_s1] sm:$0xff] }
   0x8   :  { %280 = vmatpush.bf16.msra.mxu2 %v445_v5  ;;  %v432_v19 = vld [vmem:[%s584_s1 + $0x48] sm:$0xff]  ;;  %v431_v23 = vld [vmem:[%s584_s1 + $0x40] sm:$0xff]  ;;  %v316_v27 = vld [vmem:[%s586_s0 + $0xc] sm:$0xf0]  ;;  %v84_v28 = vunpack.c.l.b16 %v18_v21  ;;  %v85_v37 = vunpack.c.h.b16 %v18_v21 }
   0x9   :  { %v440_v20 = vld [vmem:[%s584_s1 + $0x88] sm:$0xff]  ;;  %v314_v24 = vld [vmem:[%s586_s0] sm:$0xf]  ;;  %v420_v26 = vld [vmem:[%s586_s0 + $0x4] sm:$0xf] }
   0xa   :  { %245 = vmatpush.bf16.msra.mxu0 %v428_v6  ;;  %449 = vmatpush.bf16.msra.mxu3 %v428_v6  ;;  %v421_v25 = vld [vmem:[%s586_s0 + $0x8] sm:$0xf0]  ;;  %v439_v29 = vld [vmem:[%s584_s1 + $0x80] sm:$0xff]  ;;  %v322_v30 = vld [vmem:[%s586_s0 + $0x8] sm:$0xf]  ;;  %v319_v33 = vor.u32 %v420_v26, %v316_v27  ;;  %v90_v35 = vpack.c.b16 %v84_v28, %v84_v28  ;;  %v91_v39 = vpack.c.b16 %v85_v37, %v85_v37 }
   0xb   :  { %263 = vmatpush.bf16.msra.mxu1 %v436_v7  ;;  %v422_v31 = vld [vmem:[%s586_s0 + $0x10] sm:$0xf0]  ;;  %v315_v32 = vor.u32 %v421_v25, %v314_v24  ;;  %v19_v36 = vld [vmem:[%s586_s0 + $0x20] sm:$0x1] }
   0xc   :  { %281 = vmatpush.bf16.msra.mxu2 %v444_v8  ;;  %v323_v34 = vor.u32 %v422_v31, %v322_v30  ;;  %v86_v38 = vunpack.c.l.b16 %v19_v36  ;;  %v455_v41 = vld [vmem:[%s585_s2] ss:$0 sm:$0xff] }
   0xe   :  { %246 = vmatpush.bf16.msra.mxu0 %v427_v9  ;;  %450 = vmatpush.bf16.msra.mxu3 %v427_v9  ;;  %v92_v40 = vpack.c.b16 %v86_v38, %v86_v38 }
   0xf   :  { %264 = vmatpush.bf16.msra.mxu1 %v435_v10 }
  0x10   :  { %282 = vmatpush.bf16.msra.mxu2 %v443_v11 }
  0x12   :  { %247 = vmatpush.bf16.msra.mxu0 %v426_v12  ;;  %451 = vmatpush.bf16.msra.mxu3 %v426_v12 }
  0x13   :  { %265 = vmatpush.bf16.msra.mxu1 %v434_v13 }
  0x14   :  { %283 = vmatpush.bf16.msra.mxu2 %v442_v14 }
  0x16   :  { %248 = vmatpush.bf16.msra.mxu0 %v425_v15  ;;  %452 = vmatpush.bf16.msra.mxu3 %v425_v15 }
  0x17   :  { %266 = vmatpush.bf16.msra.mxu1 %v433_v16 }
  0x18   :  { %284 = vmatpush.bf16.msra.mxu2 %v441_v17 }
  0x1a   :  { %249 = vmatpush.bf16.msra.mxu0 %v424_v18  ;;  %453 = vmatpush.bf16.msra.mxu3 %v424_v18 }
  0x1b   :  { %267 = vmatpush.bf16.msra.mxu1 %v432_v19 }
  0x1c   :  { %285 = vmatpush.bf16.msra.mxu2 %v440_v20 }
  0x1e   :  { %250 = vmatpush.bf16.msra.mxu0 %v423_v22  ;;  %454 = vmatpush.bf16.msra.mxu3 %v423_v22 }
  0x1f   :  { %268 = vmatpush.bf16.msra.mxu1 %v431_v23 }
  0x20   :  { %286 = vmatpush.bf16.msra.mxu2 %v439_v29 }
  0x21   :  { %251 = vmatmul.bf16.vlgmr.msra.gmra.mxu0 %v315_v32  ;;  %256 = vmatmul.bf16.vlgmr.msra.gmra.mxu3 %v90_v35 }
  0x22   :  { %269 = vmatmul.bf16.vlgmr.msra.gmra.mxu1 %v319_v33 }
  0x23   :  { %287 = vmatmul.bf16.vlgmr.msra.gmra.mxu2 %v323_v34 }
  0x32   :  { %274 = vmatmul.bf16.gmra.mxu1 %v91_v39 }
  0x33   :  { %292 = vmatmul.bf16.gmra.mxu2 %v92_v40 }
  0x9e   :  { %v252_v42 = vpop.f32.mrf.mxu0 }
  0x9f   :  { %v270_v43 = vpop.f32.mrf.mxu1  ;;  %v253_v44 = vadd.f32 %v455_v41, %v252_v42 }
  0xa1   :  { %v271_v45 = vadd.f32 %v270_v43, %v253_v44 }
  0xa4   :  { %v257_v47 = vpop.f32.mrf.mxu3 }
  0xa5   :  { %v258_v57 = vadd.f32 %v455_v41, %v257_v47 }
  0xa6   :  { %v288_v46 = vpop.f32.mrf.mxu2  ;;  %v254_v49 = vpop.f32.mrf.mxu0 }
  0xa7   :  { %v289_v48 = vadd.f32 %v288_v46, %v271_v45  ;;  %v272_v50 = vpop.f32.mrf.mxu1  ;;  %v255_v52 = vadd.f32 %v455_v41, %v254_v49 }
  0xa9   :  { %v297_v51 = vmax.f32 %v289_v48, 0.0  ;;  %v273_v54 = vadd.f32 %v272_v50, %v255_v52 }
  0xab   :  { %v300_v53 = vpack.c.bf16 %v297_v51, %v297_v51 }
  0xac   :  { %v259_v56 = vpop.f32.mrf.mxu3 }
  0xad   :  { %304 = vst.msk [vmem:[%s587_s3] sm:$0xf] %vm303_vm0, %v300_v53 }
  0xae   :  { %v290_v55 = vpop.f32.mrf.mxu2 }
  0xaf   :  { %v291_v58 = vadd.f32 %v290_v55, %v273_v54  ;;  %v275_v59 = vpop.f32.mrf.mxu1 }
  0xb0   :  { %v276_v62 = vadd.f32 %v275_v59, %v258_v57 }
  0xb1   :  { %v298_v60 = vmax.f32 %v291_v58, 0.0 }
  0xb3   :  { %v301_v61 = vpack.c.bf16 %v298_v60, %v298_v60 }
  0xb5   :  { %305 = vst.msk [vmem:[%s587_s3 + $0x4] sm:$0xf] %vm303_vm0, %v301_v61 }
  0xb6   :  { %v293_v63 = vpop.f32.mrf.mxu2 }
  0xb7   :  { %v294_v0 = vadd.f32 %v293_v63, %v276_v62  ;;  %v277_v1 = vpop.f32.mrf.mxu1 }
  0xb9   :  { %v299_v2 = vmax.f32 %v294_v0, 0.0 }
  0xbb   :  { %v302_v3 = vpack.c.bf16 %v299_v2, %v299_v2 }
  0xbd   :  { %307 = vst.msk [vmem:[%s587_s3 + $0x8] sm:$0x1] %vm306_vm1, %v302_v3 }
  0xbe   :  { %v295_v4 = vpop.f32.mrf.mxu2 }

// kernel: regressor_forward.38
= control target key start
LH: loop header
LB: loop body
LE: loop exit
PB: predicated region body
PF: predicated region fallthrough
CT: control target
= control target key end

     0   :  { %vm303_vm0 = vcmask 519168   ;;  %vm306_vm1 = vcmask 516096   ;;  %s584_s1 = inlined_call_operand.vmem [shape: bf16[384,64], index: 1, kind: input, shape index: {}]   ;;  %s585_s2 = inlined_call_operand.vmem [shape: f32[1,64], index: 2, kind: input, shape index: {}]   ;;  %s586_s0 = inlined_call_operand.vmem [shape: bf16[18,384], index: 0, kind: input, shape index: {}]   ;;  %s587_s3 = inlined_call_operand.vmem [shape: bf16[18,64], index: 3, kind: output, shape index: {}]  }
   0x1   :  { %v430_v0 = vld [vmem:[%s584_s1 + $0x38] sm:$0xff]  ;;  %v429_v3 = vld [vmem:[%s584_s1 + $0x30] sm:$0xff]  ;;  %v428_v6 = vld [vmem:[%s584_s1 + $0x28] sm:$0xff] }
   0x2   :  { %v438_v1 = vld [vmem:[%s584_s1 + $0x78] sm:$0xff]  ;;  %243 = vmatpush.bf16.msra.mxu0 %v430_v0  ;;  %v437_v4 = vld [vmem:[%s584_s1 + $0x70] sm:$0xff]  ;;  %447 = vmatpush.bf16.msra.mxu3 %v430_v0  ;;  %v436_v7 = vld [vmem:[%s584_s1 + $0x68] sm:$0xff] }
   0x3   :  { %v446_v2 = vld [vmem:[%s584_s1 + $0xb8] sm:$0xff]  ;;  %261 = vmatpush.bf16.msra.mxu1 %v438_v1  ;;  %v445_v5 = vld [vmem:[%s584_s1 + $0xb0] sm:$0xff]  ;;  %v444_v8 = vld [vmem:[%s584_s1 + $0xa8] sm:$0xff] }
   0x4   :  { %279 = vmatpush.bf16.msra.mxu2 %v446_v2  ;;  %v427_v9 = vld [vmem:[%s584_s1 + $0x20] sm:$0xff]  ;;  %v426_v12 = vld [vmem:[%s584_s1 + $0x18] sm:$0xff]  ;;  %v425_v15 = vld [vmem:[%s584_s1 + $0x10] sm:$0xff] }
   0x5   :  { %v435_v10 = vld [vmem:[%s584_s1 + $0x60] sm:$0xff]  ;;  %v434_v13 = vld [vmem:[%s584_s1 + $0x58] sm:$0xff]  ;;  %v433_v16 = vld [vmem:[%s584_s1 + $0x50] sm:$0xff] }
   0x6   :  { %244 = vmatpush.bf16.msra.mxu0 %v429_v3  ;;  %448 = vmatpush.bf16.msra.mxu3 %v429_v3  ;;  %v443_v11 = vld [vmem:[%s584_s1 + $0xa0] sm:$0xff]  ;;  %v442_v14 = vld [vmem:[%s584_s1 + $0x98] sm:$0xff]  ;;  %v441_v17 = vld [vmem:[%s584_s1 + $0x90] sm:$0xff] }
   0x7   :  { %262 = vmatpush.bf16.msra.mxu1 %v437_v4  ;;  %v424_v18 = vld [vmem:[%s584_s1 + $0x8] sm:$0xff]  ;;  %v18_v21 = vld [vmem:[%s586_s0 + $0x18] sm:$0x11]  ;;  %v423_v22 = vld [vmem:[%s584_s1] sm:$0xff] }
   0x8   :  { %280 = vmatpush.bf16.msra.mxu2 %v445_v5  ;;  %v432_v19 = vld [vmem:[%s584_s1 + $0x48] sm:$0xff]  ;;  %v431_v23 = vld [vmem:[%s584_s1 + $0x40] sm:$0xff]  ;;  %v316_v27 = vld [vmem:[%s586_s0 + $0xc] sm:$0xf0]  ;;  %v84_v28 = vunpack.c.l.b16 %v18_v21  ;;  %v85_v37 = vunpack.c.h.b16 %v18_v21 }
   0x9   :  { %v440_v20 = vld [vmem:[%s584_s1 + $0x88] sm:$0xff]  ;;  %v314_v24 = vld [vmem:[%s586_s0] sm:$0xf]  ;;  %v420_v26 = vld [vmem:[%s586_s0 + $0x4] sm:$0xf] }
   0xa   :  { %245 = vmatpush.bf16.msra.mxu0 %v428_v6  ;;  %449 = vmatpush.bf16.msra.mxu3 %v428_v6  ;;  %v421_v25 = vld [vmem:[%s586_s0 + $0x8] sm:$0xf0]  ;;  %v439_v29 = vld [vmem:[%s584_s1 + $0x80] sm:$0xff]  ;;  %v322_v30 = vld [vmem:[%s586_s0 + $0x8] sm:$0xf]  ;;  %v319_v33 = vor.u32 %v420_v26, %v316_v27  ;;  %v90_v35 = vpack.c.b16 %v84_v28, %v84_v28  ;;  %v91_v39 = vpack.c.b16 %v85_v37, %v85_v37 }
   0xb   :  { %263 = vmatpush.bf16.msra.mxu1 %v436_v7  ;;  %v422_v31 = vld [vmem:[%s586_s0 + $0x10] sm:$0xf0]  ;;  %v315_v32 = vor.u32 %v421_v25, %v314_v24  ;;  %v19_v36 = vld [vmem:[%s586_s0 + $0x20] sm:$0x1] }
   0xc   :  { %281 = vmatpush.bf16.msra.mxu2 %v444_v8  ;;  %v323_v34 = vor.u32 %v422_v31, %v322_v30  ;;  %v86_v38 = vunpack.c.l.b16 %v19_v36  ;;  %v455_v41 = vld [vmem:[%s585_s2] ss:$0 sm:$0xff] }
   0xe   :  { %246 = vmatpush.bf16.msra.mxu0 %v427_v9  ;;  %450 = vmatpush.bf16.msra.mxu3 %v427_v9  ;;  %v92_v40 = vpack.c.b16 %v86_v38, %v86_v38 }
   0xf   :  { %264 = vmatpush.bf16.msra.mxu1 %v435_v10 }
  0x10   :  { %282 = vmatpush.bf16.msra.mxu2 %v443_v11 }
  0x12   :  { %247 = vmatpush.bf16.msra.mxu0 %v426_v12  ;;  %451 = vmatpush.bf16.msra.mxu3 %v426_v12 }
  0x13   :  { %265 = vmatpush.bf16.msra.mxu1 %v434_v13 }
  0x14   :  { %283 = vmatpush.bf16.msra.mxu2 %v442_v14 }
  0x16   :  { %248 = vmatpush.bf16.msra.mxu0 %v425_v15  ;;  %452 = vmatpush.bf16.msra.mxu3 %v425_v15 }
  0x17   :  { %266 = vmatpush.bf16.msra.mxu1 %v433_v16 }
  0x18   :  { %284 = vmatpush.bf16.msra.mxu2 %v441_v17 }
  0x1a   :  { %249 = vmatpush.bf16.msra.mxu0 %v424_v18  ;;  %453 = vmatpush.bf16.msra.mxu3 %v424_v18 }
  0x1b   :  { %267 = vmatpush.bf16.msra.mxu1 %v432_v19 }
  0x1c   :  { %285 = vmatpush.bf16.msra.mxu2 %v440_v20 }
  0x1e   :  { %250 = vmatpush.bf16.msra.mxu0 %v423_v22  ;;  %454 = vmatpush.bf16.msra.mxu3 %v423_v22 }
  0x1f   :  { %268 = vmatpush.bf16.msra.mxu1 %v431_v23 }
  0x20   :  { %286 = vmatpush.bf16.msra.mxu2 %v439_v29 }
  0x21   :  { %251 = vmatmul.bf16.vlgmr.msra.gmra.mxu0 %v315_v32  ;;  %256 = vmatmul.bf16.vlgmr.msra.gmra.mxu3 %v90_v35 }
  0x22   :  { %269 = vmatmul.bf16.vlgmr.msra.gmra.mxu1 %v319_v33 }
  0x23   :  { %287 = vmatmul.bf16.vlgmr.msra.gmra.mxu2 %v323_v34 }
  0x32   :  { %274 = vmatmul.bf16.gmra.mxu1 %v91_v39 }
  0x33   :  { %292 = vmatmul.bf16.gmra.mxu2 %v92_v40 }
  0x9e   :  { %v252_v42 = vpop.f32.mrf.mxu0 }
  0x9f   :  { %v270_v43 = vpop.f32.mrf.mxu1  ;;  %v253_v44 = vadd.f32 %v455_v41, %v252_v42 }
  0xa1   :  { %v271_v45 = vadd.f32 %v270_v43, %v253_v44 }
  0xa4   :  { %v257_v47 = vpop.f32.mrf.mxu3 }
  0xa5   :  { %v258_v57 = vadd.f32 %v455_v41, %v257_v47 }
  0xa6   :  { %v288_v46 = vpop.f32.mrf.mxu2  ;;  %v254_v49 = vpop.f32.mrf.mxu0 }
  0xa7   :  { %v289_v48 = vadd.f32 %v288_v46, %v271_v45  ;;  %v272_v50 = vpop.f32.mrf.mxu1  ;;  %v255_v52 = vadd.f32 %v455_v41, %v254_v49 }
  0xa9   :  { %v297_v51 = vmax.f32 %v289_v48, 0.0  ;;  %v273_v54 = vadd.f32 %v272_v50, %v255_v52 }
  0xab   :  { %v300_v53 = vpack.c.bf16 %v297_v51, %v297_v51 }
  0xac   :  { %v259_v56 = vpop.f32.mrf.mxu3 }
  0xad   :  { %304 = vst.msk [vmem:[%s587_s3] sm:$0xf] %vm303_vm0, %v300_v53 }
  0xae   :  { %v290_v55 = vpop.f32.mrf.mxu2 }
  0xaf   :  { %v291_v58 = vadd.f32 %v290_v55, %v273_v54  ;;  %v275_v59 = vpop.f32.mrf.mxu1 }
  0xb0   :  { %v276_v62 = vadd.f32 %v275_v59, %v258_v57 }
  0xb1   :  { %v298_v60 = vmax.f32 %v291_v58, 0.0 }
  0xb3   :  { %v301_v61 = vpack.c.bf16 %v298_v60, %v298_v60 }
  0xb5   :  { %305 = vst.msk [vmem:[%s587_s3 + $0x4] sm:$0xf] %vm303_vm0, %v301_v61 }
  0xb6   :  { %v293_v63 = vpop.f32.mrf.mxu2 }
  0xb7   :  { %v294_v0 = vadd.f32 %v293_v63, %v276_v62  ;;  %v277_v1 = vpop.f32.mrf.mxu1 }
  0xb9   :  { %v299_v2 = vmax.f32 %v294_v0, 0.0 }
  0xbb   :  { %v302_v3 = vpack.c.bf16 %v299_v2, %v299_v2 }
  0xbd   :  { %307 = vst.msk [vmem:[%s587_s3 + $0x8] sm:$0x1] %vm306_vm1, %v302_v3 }
  0xbe   :  { %v295_v4 = vpop.f32.mrf.mxu2 }

// kernel: regressor_forward.35
= control target key start
LH: loop header
LB: loop body
LE: loop exit
PB: predicated region body
PF: predicated region fallthrough
CT: control target
= control target key end

     0   :  { %vm601_vm0 = vcmask 392192   ;;  %s1895_s1 = inlined_call_operand.vmem [shape: bf16[432,384], index: 1, kind: input, shape index: {}]   ;;  %s1896_s0 = inlined_call_operand.vmem [shape: bf16[18,432], index: 0, kind: input, shape index: {}]   ;;  %s1897_s2 = inlined_call_operand.vmem [shape: f32[1,384], index: 2, kind: input, shape index: {}]   ;;  %s1898_s3 = inlined_call_operand.vmem [shape: bf16[18,384], index: 3, kind: output, shape index: {}]  }
   0x1   :  { %v951_v0 = vld [vmem:[%s1895_s1 + $0xa8] sm:$0xf]  ;;  %v1221_v1 = vld [vmem:[%s1895_s1 + $0xb0] sm:$0xf0]  ;;  %v1179_v9 = vld [vmem:[%s1895_s1 + $0x270] sm:$0xf] }
   0x2   :  { %v1047_v2 = vld [vmem:[%s1895_s1 + $0x168] sm:$0xf]  ;;  %v952_v3 = vor.u32 %v1221_v1, %v951_v0  ;;  %v1245_v4 = vld [vmem:[%s1895_s1 + $0x170] sm:$0xf0]  ;;  %v1278_v10 = vld [vmem:[%s1895_s1 + $0x278] sm:$0xf0] }
   0x3   :  { %v1143_v5 = vld [vmem:[%s1895_s1 + $0x228] sm:$0xf]  ;;  %v1269_v6 = vld [vmem:[%s1895_s1 + $0x230] sm:$0xf0]  ;;  %v1048_v7 = vor.u32 %v1245_v4, %v1047_v2  ;;  %v939_v11 = vld [vmem:[%s1895_s1 + $0x90] sm:$0xf]  ;;  %v1180_v12 = vor.u32 %v1278_v10, %v1179_v9 }
   0x4   :  { %v1144_v8 = vor.u32 %v1269_v6, %v1143_v5  ;;  %608 = vmatpush.bf16.msra.mxu0 %v952_v3  ;;  %v1218_v13 = vld [vmem:[%s1895_s1 + $0x98] sm:$0xf0]  ;;  %v1035_v14 = vld [vmem:[%s1895_s1 + $0x150] sm:$0xf]  ;;  %v1167_v20 = vld [vmem:[%s1895_s1 + $0x258] sm:$0xf] }
   0x5   :  { %v1242_v15 = vld [vmem:[%s1895_s1 + $0x158] sm:$0xf0]  ;;  %626 = vmatpush.bf16.msra.mxu1 %v1048_v7  ;;  %v940_v16 = vor.u32 %v1218_v13, %v939_v11  ;;  %v1131_v18 = vld [vmem:[%s1895_s1 + $0x210] sm:$0xf]  ;;  %667 = vmatpush.bf16.msra.mxu3 %v1180_v12  ;;  %v1275_v22 = vld [vmem:[%s1895_s1 + $0x260] sm:$0xf0] }
   0x6   :  { %644 = vmatpush.bf16.msra.mxu2 %v1144_v8  ;;  %v1036_v17 = vor.u32 %v1242_v15, %v1035_v14  ;;  %v1266_v19 = vld [vmem:[%s1895_s1 + $0x218] sm:$0xf0]  ;;  %v927_v23 = vld [vmem:[%s1895_s1 + $0x78] sm:$0xf]  ;;  %v1215_v24 = vld [vmem:[%s1895_s1 + $0x80] sm:$0xf0]  ;;  %v1168_v25 = vor.u32 %v1275_v22, %v1167_v20 }
   0x7   :  { %v1132_v21 = vor.u32 %v1266_v19, %v1131_v18  ;;  %v1023_v26 = vld [vmem:[%s1895_s1 + $0x138] sm:$0xf]  ;;  %v1239_v27 = vld [vmem:[%s1895_s1 + $0x140] sm:$0xf0]  ;;  %v928_v29 = vor.u32 %v1215_v24, %v927_v23  ;;  %v1155_v31 = vld [vmem:[%s1895_s1 + $0x240] sm:$0xf] }
   0x8   :  { %v1119_v28 = vld [vmem:[%s1895_s1 + $0x1f8] sm:$0xf]  ;;  %609 = vmatpush.bf16.msra.mxu0 %v940_v16  ;;  %v1263_v30 = vld [vmem:[%s1895_s1 + $0x200] sm:$0xf0]  ;;  %v1272_v32 = vld [vmem:[%s1895_s1 + $0x248] sm:$0xf0]  ;;  %v1024_v33 = vor.u32 %v1239_v27, %v1023_v26 }
   0x9   :  { %627 = vmatpush.bf16.msra.mxu1 %v1036_v17  ;;  %v1120_v34 = vor.u32 %v1263_v30, %v1119_v28  ;;  %v1196_v35 = vld [vmem:[%s1896_s0 + $0xc] sm:$0xf]  ;;  %v861_v36 = vld [vmem:[%s1896_s0 + $0x18] sm:$0xf0]  ;;  %v915_v37 = vld [vmem:[%s1895_s1 + $0x60] sm:$0xf]  ;;  %668 = vmatpush.bf16.msra.mxu3 %v1168_v25  ;;  %v1156_v38 = vor.u32 %v1272_v32, %v1155_v31 }
   0xa   :  { %645 = vmatpush.bf16.msra.mxu2 %v1132_v21  ;;  %v1212_v39 = vld [vmem:[%s1895_s1 + $0x68] sm:$0xf0]  ;;  %v1011_v40 = vld [vmem:[%s1895_s1 + $0x120] sm:$0xf]  ;;  %v953_v46 = vld [vmem:[%s1895_s1 + $0xb4] sm:$0xf0]  ;;  %v1410_v47 = vor.u32 %v1196_v35, %v861_v36 }
   0xb   :  { %v1236_v41 = vld [vmem:[%s1895_s1 + $0x128] sm:$0xf0]  ;;  %v1107_v42 = vld [vmem:[%s1895_s1 + $0x1e0] sm:$0xf]  ;;  %v916_v45 = vor.u32 %v1212_v39, %v915_v37  ;;  %v903_v50 = vld [vmem:[%s1895_s1 + $0x48] sm:$0xf] }
   0xc   :  { %v1260_v43 = vld [vmem:[%s1895_s1 + $0x1e8] sm:$0xf0]  ;;  %610 = vmatpush.bf16.msra.mxu0 %v928_v29  ;;  %v1012_v48 = vor.u32 %v1236_v41, %v1011_v40  ;;  %v1209_v51 = vld [vmem:[%s1895_s1 + $0x50] sm:$0xf0]  ;;  %v999_v52 = vld [vmem:[%s1895_s1 + $0x108] sm:$0xf] }
   0xd   :  { %v1220_v44 = vld [vmem:[%s1895_s1 + $0xac] sm:$0xf]  ;;  %628 = vmatpush.bf16.msra.mxu1 %v1024_v33  ;;  %669 = vmatpush.bf16.msra.mxu3 %v1156_v38  ;;  %v1108_v53 = vor.u32 %v1260_v43, %v1107_v42  ;;  %v1233_v54 = vld [vmem:[%s1895_s1 + $0x110] sm:$0xf0]  ;;  %v941_v56 = vld [vmem:[%s1895_s1 + $0x9c] sm:$0xf0]  ;;  %v904_v60 = vor.u32 %v1209_v51, %v903_v50 }
   0xe   :  { %646 = vmatpush.bf16.msra.mxu2 %v1120_v34  ;;  %v956_v49 = vor.u32 %v1220_v44, %v953_v46  ;;  %v1217_v55 = vld [vmem:[%s1895_s1 + $0x94] sm:$0xf]  ;;  %v1095_v57 = vld [vmem:[%s1895_s1 + $0x1c8] sm:$0xf]  ;;  %v891_v61 = vld [vmem:[%s1895_s1 + $0x30] sm:$0xf]  ;;  %v1000_v62 = vor.u32 %v1233_v54, %v999_v52 }
   0xf   :  { %v1257_v58 = vld [vmem:[%s1895_s1 + $0x1d0] sm:$0xf0]  ;;  %v944_v59 = vor.u32 %v1217_v55, %v941_v56  ;;  %v1206_v63 = vld [vmem:[%s1895_s1 + $0x38] sm:$0xf0]  ;;  %v929_v1 = vld [vmem:[%s1895_s1 + $0x84] sm:$0xf0] }
  0x10   :  { %611 = vmatpush.bf16.msra.mxu0 %v916_v45  ;;  %1189 = vmatmul.msk.bf16.vlgmr.msra.gmra.mxu3 %vm601_vm0, %v1410_v47  ;;  %v1214_v0 = vld [vmem:[%s1895_s1 + $0x7c] sm:$0xf]  ;;  %v1096_v2 = vor.u32 %v1257_v58, %v1095_v57  ;;  %v987_v3 = vld [vmem:[%s1895_s1 + $0xf0] sm:$0xf]  ;;  %v892_v8 = vor.u32 %v1206_v63, %v891_v61  ;;  %v1211_v9 = vld [vmem:[%s1895_s1 + $0x64] sm:$0xf] }
  0x11   :  { %680 = vmatpush.bf16.msrb.mxu3 %v956_v49  ;;  %629 = vmatpush.bf16.msra.mxu1 %v1012_v48  ;;  %v1230_v4 = vld [vmem:[%s1895_s1 + $0xf8] sm:$0xf0]  ;;  %v1083_v5 = vld [vmem:[%s1895_s1 + $0x1b0] sm:$0xf]  ;;  %v932_v7 = vor.u32 %v1214_v0, %v929_v1  ;;  %v879_v12 = vld [vmem:[%s1895_s1 + $0x18] sm:$0xf] }
  0x12   :  { %647 = vmatpush.bf16.msra.mxu2 %v1108_v53  ;;  %v1254_v6 = vld [vmem:[%s1895_s1 + $0x1b8] sm:$0xf0]  ;;  %v917_v10 = vld [vmem:[%s1895_s1 + $0x6c] sm:$0xf0]  ;;  %v988_v11 = vor.u32 %v1230_v4, %v987_v3  ;;  %v1203_v13 = vld [vmem:[%s1895_s1 + $0x20] sm:$0xf0] }
  0x13   :  { %v1084_v14 = vor.u32 %v1254_v6, %v1083_v5  ;;  %v975_v15 = vld [vmem:[%s1895_s1 + $0xd8] sm:$0xf]  ;;  %v1227_v16 = vld [vmem:[%s1895_s1 + $0xe0] sm:$0xf0]  ;;  %v1483_v17 = vld [vmem:[%s1896_s0 + $0x28] sm:$0x11]  ;;  %v920_v20 = vor.u32 %v1211_v9, %v917_v10  ;;  %v880_v22 = vor.u32 %v1203_v13, %v879_v12 }
  0x14   :  { %612 = vmatpush.bf16.msra.mxu0 %v904_v60  ;;  %v1071_v18 = vld [vmem:[%s1895_s1 + $0x198] sm:$0xf]  ;;  %v1251_v19 = vld [vmem:[%s1895_s1 + $0x1a0] sm:$0xf0]  ;;  %v867_v21 = vld [vmem:[%s1895_s1] sm:$0xf]  ;;  %v976_v26 = vor.u32 %v1227_v16, %v975_v15  ;;  %v154_v27 = vunpack.c.h.b16 %v1483_v17 }
  0x15   :  { %681 = vmatpush.bf16.msrb.mxu3 %v944_v59  ;;  %630 = vmatpush.bf16.msra.mxu1 %v1000_v62  ;;  %v1200_v23 = vld [vmem:[%s1895_s1 + $0x8] sm:$0xf0]  ;;  %v905_v25 = vld [vmem:[%s1895_s1 + $0x54] sm:$0xf0]  ;;  %v963_v28 = vld [vmem:[%s1895_s1 + $0xc0] sm:$0xf]  ;;  %v1072_v31 = vor.u32 %v1251_v19, %v1071_v18 }
  0x16   :  { %648 = vmatpush.bf16.msra.mxu2 %v1096_v2  ;;  %v1208_v24 = vld [vmem:[%s1895_s1 + $0x4c] sm:$0xf]  ;;  %v1059_v30 = vld [vmem:[%s1895_s1 + $0x180] sm:$0xf]  ;;  %v1197_v34 = vld [vmem:[%s1896_s0 + $0xc] sm:$0xf0]  ;;  %v868_v39 = vor.u32 %v1200_v23, %v867_v21  ;;  %v1540_v43 = vpack.c.b16 %v154_v27, %v154_v27 }
  0x17   :  { %v1224_v29 = vld [vmem:[%s1895_s1 + $0xc8] sm:$0xf0]  ;;  %v851_v33 = vld [vmem:[%s1896_s0] sm:$0xf]  ;;  %v908_v35 = vor.u32 %v1208_v24, %v905_v25  ;;  %v1195_v36 = vld [vmem:[%s1896_s0 + $0x4] sm:$0xf] }
  0x18   :  { %613 = vmatpush.bf16.msra.mxu0 %v892_v8  ;;  %v1248_v32 = vld [vmem:[%s1895_s1 + $0x188] sm:$0xf0]  ;;  %v1049_v38 = vld [vmem:[%s1895_s1 + $0x174] sm:$0xf0]  ;;  %v853_v40 = vld [vmem:[%s1896_s0 + $0x10] sm:$0xf0]  ;;  %v964_v44 = vor.u32 %v1224_v29, %v963_v28  ;;  %v1560_v54 = vor.u32 %v1197_v34, %v851_v33 }
  0x19   :  { %682 = vmatpush.bf16.msrb.mxu3 %v932_v7  ;;  %631 = vmatpush.bf16.msra.mxu1 %v988_v11  ;;  %v1244_v37 = vld [vmem:[%s1895_s1 + $0x16c] sm:$0xf]  ;;  %v1277_v41 = vld [vmem:[%s1895_s1 + $0x274] sm:$0xf]  ;;  %v1181_v42 = vld [vmem:[%s1895_s1 + $0x27c] sm:$0xf0]  ;;  %v1060_v49 = vor.u32 %v1248_v32, %v1059_v30  ;;  %v1568_v58 = vor.u32 %v1195_v36, %v853_v40 }
  0x1a   :  { %649 = vmatpush.bf16.msra.mxu2 %v1084_v14  ;;  %v859_v45 = vld [vmem:[%s1896_s0 + $0x8] sm:$0xf]  ;;  %v1205_v46 = vld [vmem:[%s1895_s1 + $0x34] sm:$0xf]  ;;  %v893_v48 = vld [vmem:[%s1895_s1 + $0x3c] sm:$0xf0]  ;;  %v1052_v51 = vor.u32 %v1244_v37, %v1049_v38  ;;  %v1184_v55 = vor.u32 %v1277_v41, %v1181_v42 }
  0x1b   :  { %v1198_v50 = vld [vmem:[%s1896_s0 + $0x14] sm:$0xf0]  ;;  %v1268_v52 = vld [vmem:[%s1895_s1 + $0x22c] sm:$0xf]  ;;  %v1241_v56 = vld [vmem:[%s1895_s1 + $0x154] sm:$0xf]  ;;  %v896_v59 = vor.u32 %v1205_v46, %v893_v48 }
  0x1c   :  { %614 = vmatpush.bf16.msra.mxu0 %v880_v22  ;;  %v1145_v53 = vld [vmem:[%s1895_s1 + $0x234] sm:$0xf0]  ;;  %v1037_v57 = vld [vmem:[%s1895_s1 + $0x15c] sm:$0xf0]  ;;  %v1274_v60 = vld [vmem:[%s1895_s1 + $0x25c] sm:$0xf]  ;;  %v1578_v62 = vor.u32 %v1198_v50, %v859_v45 }
  0x1d   :  { %683 = vmatpush.bf16.msrb.mxu3 %v920_v20  ;;  %632 = vmatpush.bf16.msra.mxu1 %v976_v26  ;;  %v1169_v61 = vld [vmem:[%s1895_s1 + $0x264] sm:$0xf0]  ;;  %v1148_v63 = vor.u32 %v1268_v52, %v1145_v53  ;;  %v1202_v0 = vld [vmem:[%s1895_s1 + $0x1c] sm:$0xf]  ;;  %v1040_v2 = vor.u32 %v1241_v56, %v1037_v57  ;;  %v1265_v3 = vld [vmem:[%s1895_s1 + $0x214] sm:$0xf] }
  0x1e   :  { %650 = vmatpush.bf16.msra.mxu2 %v1072_v31  ;;  %v881_v1 = vld [vmem:[%s1895_s1 + $0x24] sm:$0xf0]  ;;  %v1133_v4 = vld [vmem:[%s1895_s1 + $0x21c] sm:$0xf0]  ;;  %v1238_v5 = vld [vmem:[%s1895_s1 + $0x13c] sm:$0xf]  ;;  %v1172_v7 = vor.u32 %v1274_v60, %v1169_v61 }
  0x1f   :  { %v1025_v6 = vld [vmem:[%s1895_s1 + $0x144] sm:$0xf0]  ;;  %v884_v8 = vor.u32 %v1202_v0, %v881_v1  ;;  %v1199_v9 = vld [vmem:[%s1895_s1 + $0x4] sm:$0xf]  ;;  %v1136_v10 = vor.u32 %v1265_v3, %v1133_v4  ;;  %v869_v11 = vld [vmem:[%s1895_s1 + $0xc] sm:$0xf0] }
  0x20   :  { %615 = vmatpush.bf16.msra.mxu0 %v868_v39  ;;  %1190 = vmatmul.msk.bf16.gmra.mxu3 %vm601_vm0, %v1540_v43  ;;  %v1262_v12 = vld [vmem:[%s1895_s1 + $0x1fc] sm:$0xf]  ;;  %v1121_v13 = vld [vmem:[%s1895_s1 + $0x204] sm:$0xf0]  ;;  %v1028_v14 = vor.u32 %v1238_v5, %v1025_v6  ;;  %v1235_v15 = vld [vmem:[%s1895_s1 + $0x124] sm:$0xf]  ;;  %v872_v22 = vor.u32 %v1199_v9, %v869_v11  ;;  %v153_v39 = vunpack.c.l.b16 %v1483_v17 }
  0x21   :  { %684 = vmatpush.bf16.msrb.mxu3 %v908_v35  ;;  %633 = vmatpush.bf16.msra.mxu1 %v964_v44  ;;  %v959_v16 = vld [vmem:[%s1895_s1 + $0xb0] sm:$0xf]  ;;  %v1222_v18 = vld [vmem:[%s1895_s1 + $0xb8] sm:$0xf0]  ;;  %v1271_v20 = vld [vmem:[%s1895_s1 + $0x244] sm:$0xf]  ;;  %v1124_v25 = vor.u32 %v1262_v12, %v1121_v13 }
  0x22   :  { %651 = vmatpush.bf16.msra.mxu2 %v1060_v49  ;;  %v1013_v19 = vld [vmem:[%s1895_s1 + $0x12c] sm:$0xf0]  ;;  %v19_v23 = vld [vmem:[%s1896_s0 + $0x20] sm:$0x11]  ;;  %v960_v27 = vor.u32 %v1222_v18, %v959_v16  ;;  %v1232_v30 = vld [vmem:[%s1895_s1 + $0x10c] sm:$0xf]  ;;  %v1682_v52 = vpack.c.b16 %v153_v39, %v153_v39 }
  0x23   :  { %616 = vmatmul.bf16.vlgmr.msra.gmra.mxu0 %v1560_v54  ;;  %v1157_v21 = vld [vmem:[%s1895_s1 + $0x24c] sm:$0xf0]  ;;  %v1259_v26 = vld [vmem:[%s1895_s1 + $0x1e4] sm:$0xf]  ;;  %v1016_v28 = vor.u32 %v1235_v15, %v1013_v19  ;;  %v1001_v31 = vld [vmem:[%s1895_s1 + $0x114] sm:$0xf0]  ;;  %v151_v32 = vunpack.c.l.b16 %v19_v23  ;;  %v152_v36 = vunpack.c.h.b16 %v19_v23 }
  0x24   :  { %698 = vmatpush.bf16.msrb.mxu0 %v1052_v51  ;;  %634 = vmatmul.bf16.vlgmr.msra.gmra.mxu1 %v1568_v58  ;;  %v1160_v24 = vor.u32 %v1271_v20, %v1157_v21  ;;  %v1109_v29 = vld [vmem:[%s1895_s1 + $0x1ec] sm:$0xf0]  ;;  %v947_v33 = vld [vmem:[%s1895_s1 + $0x98] sm:$0xf]  ;;  %v1219_v34 = vld [vmem:[%s1895_s1 + $0xa0] sm:$0xf0]  ;;  %v1004_v41 = vor.u32 %v1232_v30, %v1001_v31 }
  0x25   :  { %685 = vmatpush.bf16.msrb.mxu3 %v896_v59  ;;  %652 = vmatmul.bf16.vlgmr.msra.gmra.mxu2 %v1578_v62  ;;  %v1187_v35 = vld [vmem:[%s1895_s1 + $0x278] sm:$0xf]  ;;  %v1279_v37 = vld [vmem:[%s1895_s1 + $0x280] sm:$0xf0]  ;;  %v1112_v38 = vor.u32 %v1259_v26, %v1109_v29  ;;  %v1256_v42 = vld [vmem:[%s1895_s1 + $0x1cc] sm:$0xf]  ;;  %v948_v45 = vor.u32 %v1219_v34, %v947_v33  ;;  %v1668_v48 = vpack.c.b16 %v151_v32, %v151_v32 }
  0x26   :  { %739 = vmatpush.bf16.msrb.mxu2 %v1184_v55  ;;  %716 = vmatpush.bf16.msrb.mxu1 %v1148_v63  ;;  %v1188_v40 = vor.u32 %v1279_v37, %v1187_v35  ;;  %v1097_v44 = vld [vmem:[%s1895_s1 + $0x1d4] sm:$0xf0]  ;;  %v1229_v46 = vld [vmem:[%s1895_s1 + $0xf4] sm:$0xf]  ;;  %v989_v17 = vld [vmem:[%s1895_s1 + $0xfc] sm:$0xf0]  ;;  %v1679_v51 = vpack.c.b16 %v152_v36, %v152_v36 }
  0x27   :  { %v935_v49 = vld [vmem:[%s1895_s1 + $0x80] sm:$0xf]  ;;  %v1216_v50 = vld [vmem:[%s1895_s1 + $0x88] sm:$0xf0]  ;;  %v1100_v53 = vor.u32 %v1256_v42, %v1097_v44  ;;  %v1253_v55 = vld [vmem:[%s1895_s1 + $0x1b4] sm:$0xf]  ;;  %v992_v57 = vor.u32 %v1229_v46, %v989_v17 }
  0x28   :  { %699 = vmatpush.bf16.msrb.mxu0 %v1040_v2  ;;  %v1085_v56 = vld [vmem:[%s1895_s1 + $0x1bc] sm:$0xf0]  ;;  %v936_v59 = vor.u32 %v1216_v50, %v935_v49  ;;  %v1226_v60 = vld [vmem:[%s1895_s1 + $0xdc] sm:$0xf]  ;;  %v1276_v63 = vld [vmem:[%s1895_s1 + $0x268] sm:$0xf0] }
  0x29   :  { %686 = vmatpush.bf16.msrb.mxu3 %v884_v8  ;;  %v1175_v61 = vld [vmem:[%s1895_s1 + $0x260] sm:$0xf]  ;;  %v977_v0 = vld [vmem:[%s1895_s1 + $0xe4] sm:$0xf0]  ;;  %v1213_v2 = vld [vmem:[%s1895_s1 + $0x70] sm:$0xf0]  ;;  %v1088_v4 = vor.u32 %v1253_v55, %v1085_v56 }
  0x2a   :  { %740 = vmatpush.bf16.msrb.mxu2 %v1172_v7  ;;  %717 = vmatpush.bf16.msrb.mxu1 %v1136_v10  ;;  %v923_v1 = vld [vmem:[%s1895_s1 + $0x68] sm:$0xf]  ;;  %v1176_v3 = vor.u32 %v1276_v63, %v1175_v61  ;;  %v1250_v5 = vld [vmem:[%s1895_s1 + $0x19c] sm:$0xf]  ;;  %v980_v7 = vor.u32 %v1226_v60, %v977_v0  ;;  %v1223_v9 = vld [vmem:[%s1895_s1 + $0xc4] sm:$0xf] }
  0x2b   :  { %v1073_v6 = vld [vmem:[%s1895_s1 + $0x1a4] sm:$0xf0]  ;;  %v924_v8 = vor.u32 %v1213_v2, %v923_v1  ;;  %v965_v10 = vld [vmem:[%s1895_s1 + $0xcc] sm:$0xf0]  ;;  %v1210_v12 = vld [vmem:[%s1895_s1 + $0x58] sm:$0xf0] }
  0x2c   :  { %700 = vmatpush.bf16.msrb.mxu0 %v1028_v14  ;;  %v911_v11 = vld [vmem:[%s1895_s1 + $0x50] sm:$0xf]  ;;  %v1163_v13 = vld [vmem:[%s1895_s1 + $0x248] sm:$0xf]  ;;  %v1273_v14 = vld [vmem:[%s1895_s1 + $0x250] sm:$0xf0]  ;;  %v1076_v19 = vor.u32 %v1250_v5, %v1073_v6  ;;  %v968_v20 = vor.u32 %v1223_v9, %v965_v10 }
  0x2d   :  { %687 = vmatpush.bf16.msrb.mxu3 %v872_v22  ;;  %v1055_v15 = vld [vmem:[%s1895_s1 + $0x170] sm:$0xf]  ;;  %v1246_v16 = vld [vmem:[%s1895_s1 + $0x178] sm:$0xf0]  ;;  %v1164_v18 = vor.u32 %v1273_v14, %v1163_v13  ;;  %v1247_v21 = vld [vmem:[%s1895_s1 + $0x184] sm:$0xf]  ;;  %v912_v23 = vor.u32 %v1210_v12, %v911_v11 }
  0x2e   :  { %741 = vmatpush.bf16.msrb.mxu2 %v1160_v24  ;;  %718 = vmatpush.bf16.msrb.mxu1 %v1124_v25  ;;  %v1061_v22 = vld [vmem:[%s1895_s1 + $0x18c] sm:$0xf0]  ;;  %v899_v24 = vld [vmem:[%s1895_s1 + $0x38] sm:$0xf]  ;;  %v1207_v25 = vld [vmem:[%s1895_s1 + $0x40] sm:$0xf0]  ;;  %v1056_v26 = vor.u32 %v1246_v16, %v1055_v15 }
  0x2f   :  { %v1064_v29 = vor.u32 %v1247_v21, %v1061_v22  ;;  %v1043_v30 = vld [vmem:[%s1895_s1 + $0x158] sm:$0xf]  ;;  %v1243_v31 = vld [vmem:[%s1895_s1 + $0x160] sm:$0xf0]  ;;  %v900_v32 = vor.u32 %v1207_v25, %v899_v24  ;;  %v887_v34 = vld [vmem:[%s1895_s1 + $0x20] sm:$0xf] }
  0x30   :  { %701 = vmatpush.bf16.msrb.mxu0 %v1016_v28  ;;  %688 = vmatmul.bf16.vlgmr.msrb.gmra.mxu3 %v1560_v54  ;;  %v1270_v28 = vld [vmem:[%s1895_s1 + $0x238] sm:$0xf0]  ;;  %v1204_v35 = vld [vmem:[%s1895_s1 + $0x28] sm:$0xf0]  ;;  %v1139_v36 = vld [vmem:[%s1895_s1 + $0x218] sm:$0xf] }
  0x31   :  { %752 = vmatpush.bf16.msra.mxu3 %v960_v27  ;;  %v1151_v27 = vld [vmem:[%s1895_s1 + $0x230] sm:$0xf]  ;;  %v1267_v37 = vld [vmem:[%s1895_s1 + $0x220] sm:$0xf0]  ;;  %v1031_v39 = vld [vmem:[%s1895_s1 + $0x140] sm:$0xf] }
  0x32   :  { %811 = vmatpush.bf16.msra.mxu2 %v1188_v40  ;;  %719 = vmatpush.bf16.msrb.mxu1 %v1112_v38  ;;  %v1152_v33 = vor.u32 %v1270_v28, %v1151_v27  ;;  %v1044_v38 = vor.u32 %v1243_v31, %v1043_v30  ;;  %v1240_v40 = vld [vmem:[%s1895_s1 + $0x148] sm:$0xf0]  ;;  %v1140_v42 = vor.u32 %v1267_v37, %v1139_v36  ;;  %v875_v44 = vld [vmem:[%s1895_s1 + $0x8] sm:$0xf]  ;;  %v1127_v46 = vld [vmem:[%s1895_s1 + $0x200] sm:$0xf] }
  0x33   :  { %621 = vmatmul.bf16.gmra.mxu0 %v1668_v48  ;;  %v1264_v17 = vld [vmem:[%s1895_s1 + $0x208] sm:$0xf0]  ;;  %v1032_v49 = vor.u32 %v1240_v40, %v1031_v39  ;;  %v1019_v50 = vld [vmem:[%s1895_s1 + $0x128] sm:$0xf]  ;;  %v1007_v61 = vld [vmem:[%s1895_s1 + $0x110] sm:$0xf] }
  0x34   :  { %702 = vmatpush.bf16.msrb.mxu0 %v1004_v41  ;;  %639 = vmatmul.bf16.gmra.mxu1 %v1679_v51  ;;  %v888_v41 = vor.u32 %v1204_v35, %v887_v34  ;;  %v1128_v56 = vor.u32 %v1264_v17, %v1127_v46  ;;  %v1234_v63 = vld [vmem:[%s1895_s1 + $0x118] sm:$0xf0]  ;;  %v1103_v1 = vld [vmem:[%s1895_s1 + $0x1d0] sm:$0xf]  ;;  %v1231_v5 = vld [vmem:[%s1895_s1 + $0x100] sm:$0xf0] }
  0x35   :  { %753 = vmatpush.bf16.msra.mxu3 %v948_v45  ;;  %657 = vmatmul.bf16.gmra.mxu2 %v1682_v52  ;;  %v1201_v45 = vld [vmem:[%s1895_s1 + $0x10] sm:$0xf0]  ;;  %v1258_v2 = vld [vmem:[%s1895_s1 + $0x1d8] sm:$0xf0]  ;;  %v983_v10 = vld [vmem:[%s1895_s1 + $0xe0] sm:$0xf] }
  0x36   :  { %720 = vmatpush.bf16.msrb.mxu1 %v1100_v53  ;;  %812 = vmatpush.bf16.msra.mxu2 %v1176_v3  ;;  %v1237_v53 = vld [vmem:[%s1895_s1 + $0x130] sm:$0xf0]  ;;  %v876_v55 = vor.u32 %v1201_v45, %v875_v44  ;;  %v1008_v3 = vor.u32 %v1234_v63, %v1007_v61  ;;  %v1104_v6 = vor.u32 %v1258_v2, %v1103_v1  ;;  %v1228_v11 = vld [vmem:[%s1895_s1 + $0xe8] sm:$0xf0]  ;;  %v1079_v13 = vld [vmem:[%s1895_s1 + $0x1a0] sm:$0xf] }
  0x37   :  { %v1020_v60 = vor.u32 %v1237_v53, %v1019_v50  ;;  %v984_v14 = vor.u32 %v1228_v11, %v983_v10  ;;  %v971_v15 = vld [vmem:[%s1895_s1 + $0xc8] sm:$0xf]  ;;  %v1225_v16 = vld [vmem:[%s1895_s1 + $0xd0] sm:$0xf0] }
  0x38   :  { %703 = vmatpush.bf16.msrb.mxu0 %v992_v57  ;;  %v1115_v57 = vld [vmem:[%s1895_s1 + $0x1e8] sm:$0xf]  ;;  %v972_v21 = vor.u32 %v1225_v16, %v971_v15 }
  0x39   :  { %754 = vmatpush.bf16.msra.mxu3 %v936_v59  ;;  %v1261_v59 = vld [vmem:[%s1895_s1 + $0x1f0] sm:$0xf0] }
  0x3a   :  { %721 = vmatpush.bf16.msrb.mxu1 %v1088_v4  ;;  %813 = vmatpush.bf16.msra.mxu2 %v1164_v18  ;;  %v1116_v0 = vor.u32 %v1261_v59, %v1115_v57  ;;  %v995_v4 = vld [vmem:[%s1895_s1 + $0xf8] sm:$0xf] }
  0x3b   :  { %v996_v9 = vor.u32 %v1231_v5, %v995_v4 }
  0x3c   :  { %704 = vmatpush.bf16.msrb.mxu0 %v980_v7  ;;  %v1091_v7 = vld [vmem:[%s1895_s1 + $0x1b8] sm:$0xf] }
  0x3d   :  { %755 = vmatpush.bf16.msra.mxu3 %v924_v8  ;;  %v1255_v8 = vld [vmem:[%s1895_s1 + $0x1c0] sm:$0xf0] }
  0x3e   :  { %722 = vmatpush.bf16.msrb.mxu1 %v1076_v19  ;;  %v1092_v12 = vor.u32 %v1255_v8, %v1091_v7  ;;  %v1067_v19 = vld [vmem:[%s1895_s1 + $0x188] sm:$0xf] }
  0x40   :  { %705 = vmatpush.bf16.msrb.mxu0 %v968_v20  ;;  %693 = vmatmul.bf16.gmra.mxu3 %v1668_v48  ;;  %v1249_v20 = vld [vmem:[%s1895_s1 + $0x190] sm:$0xf0] }
  0x41   :  { %756 = vmatpush.bf16.msra.mxu3 %v912_v23  ;;  %v1068_v22 = vor.u32 %v1249_v20, %v1067_v19 }
  0x42   :  { %723 = vmatpush.bf16.msrb.mxu1 %v1064_v29 }
  0x43   :  { %706 = vmatmul.bf16.vlgmr.msrb.gmra.mxu0 %v1568_v58 }
  0x44   :  { %770 = vmatpush.bf16.msra.mxu0 %v1056_v26 }
  0x45   :  { %757 = vmatpush.bf16.msra.mxu3 %v900_v32  ;;  %724 = vmatmul.bf16.vlgmr.msrb.gmra.mxu1 %v1578_v62 }
  0x46   :  { %788 = vmatpush.bf16.msra.mxu1 %v1152_v33  ;;  %1191 = vmatmul.msk.bf16.vlgmr.msrb.gmra.mxu2 %vm601_vm0, %v1410_v47 }
  0x48   :  { %771 = vmatpush.bf16.msra.mxu0 %v1044_v38 }
  0x49   :  { %758 = vmatpush.bf16.msra.mxu3 %v888_v41 }
  0x4a   :  { %789 = vmatpush.bf16.msra.mxu1 %v1140_v42 }
  0x4c   :  { %772 = vmatpush.bf16.msra.mxu0 %v1032_v49 }
  0x4d   :  { %759 = vmatpush.bf16.msra.mxu3 %v876_v55 }
  0x4e   :  { %790 = vmatpush.bf16.msra.mxu1 %v1128_v56 }
  0x50   :  { %773 = vmatpush.bf16.msra.mxu0 %v1020_v60  ;;  %760 = vmatmul.bf16.vlgmr.msra.gmra.mxu3 %v1560_v54  ;;  %v1252_v54 = vld [vmem:[%s1895_s1 + $0x1a8] sm:$0xf0] }
  0x51   :  { %1280 = vmatpush.bf16.msrb.mxu3 %v1056_v26  ;;  %v1080_v18 = vor.u32 %v1252_v54, %v1079_v13 }
  0x52   :  { %791 = vmatpush.bf16.msra.mxu1 %v1116_v0 }
  0x53   :  { %711 = vmatmul.bf16.gmra.mxu0 %v1679_v51 }
  0x54   :  { %774 = vmatpush.bf16.msra.mxu0 %v1008_v3 }
  0x55   :  { %1281 = vmatpush.bf16.msrb.mxu3 %v1044_v38  ;;  %729 = vmatmul.bf16.gmra.mxu1 %v1682_v52 }
  0x56   :  { %792 = vmatpush.bf16.msra.mxu1 %v1104_v6  ;;  %1192 = vmatmul.msk.bf16.gmra.mxu2 %vm601_vm0, %v1540_v43 }
  0x58   :  { %775 = vmatpush.bf16.msra.mxu0 %v996_v9 }
  0x59   :  { %1282 = vmatpush.bf16.msrb.mxu3 %v1032_v49 }
  0x5a   :  { %793 = vmatpush.bf16.msra.mxu1 %v1092_v12 }
  0x5c   :  { %776 = vmatpush.bf16.msra.mxu0 %v984_v14 }
  0x5d   :  { %1283 = vmatpush.bf16.msrb.mxu3 %v1020_v60 }
  0x5e   :  { %794 = vmatpush.bf16.msra.mxu1 %v1080_v18 }
  0x60   :  { %777 = vmatpush.bf16.msra.mxu0 %v972_v21  ;;  %765 = vmatmul.bf16.gmra.mxu3 %v1668_v48 }
  0x61   :  { %1284 = vmatpush.bf16.msrb.mxu3 %v1008_v3 }
  0x62   :  { %795 = vmatpush.bf16.msra.mxu1 %v1068_v22 }
  0x63   :  { %778 = vmatmul.bf16.vlgmr.msra.gmra.mxu0 %v1568_v58 }
  0x65   :  { %1285 = vmatpush.bf16.msrb.mxu3 %v996_v9  ;;  %796 = vmatmul.bf16.vlgmr.msra.gmra.mxu1 %v1578_v62 }
  0x66   :  { %1193 = vmatmul.msk.bf16.vlgmr.msra.gmra.mxu2 %vm601_vm0, %v1410_v47 }
  0x69   :  { %1286 = vmatpush.bf16.msrb.mxu3 %v984_v14 }
  0x6d   :  { %1287 = vmatpush.bf16.msrb.mxu3 %v972_v21 }
  0x70   :  { %783 = vmatmul.bf16.vlgmr.msrb.gmra.mxu3 %v1679_v51  ;;  %v129_v51 = vld [vmem:[%s1897_s2] sm:$0x7] }
  0x71   :  { %v131_v31 = vperm.slane %v129_v51, 0  ;;  %v132_v36 = vperm.slane %v129_v51, 1 }
  0x75   :  { %801 = vmatmul.bf16.gmra.mxu1 %v1682_v52 }
  0x76   :  { %1194 = vmatmul.msk.bf16.gmra.mxu2 %vm601_vm0, %v1540_v43 }
  0x93   :  { %v671_v23 = vpop.f32.mrf.mxu3 }
  0x9b   :  { %v673_v24 = vpop.f32.mrf.mxu3 }
  0xa0   :  { %v617_v25 = vpop.f32.mrf.mxu0 }
  0xa1   :  { %v635_v48 = vpop.f32.mrf.mxu1  ;;  %v618_v34 = vadd.f32 %v617_v25, %v131_v31 }
  0xa3   :  { %v676_v26 = vpop.f32.mrf.mxu3  ;;  %v636_v37 = vadd.f32 %v635_v48, %v618_v34 }
  0xa8   :  { %v653_v58 = vpop.f32.mrf.mxu2  ;;  %v619_v27 = vpop.f32.mrf.mxu0 }
  0xa9   :  { %v637_v28 = vpop.f32.mrf.mxu1  ;;  %v654_v42 = vadd.f32 %v653_v58, %v636_v37  ;;  %v620_v46 = vadd.f32 %v619_v27, %v131_v31  ;;  %v133_v58 = vperm.slane %v129_v51, 2 }
  0xab   :  { %v678_v62 = vpop.f32.mrf.mxu3  ;;  %v672_v17 = vadd.f32 %v671_v23, %v654_v42  ;;  %v638_v55 = vadd.f32 %v637_v28, %v620_v46 }
  0xad   :  { %v824_v60 = vmax.f32 %v672_v17, 0.0 }
  0xb0   :  { %v655_v29 = vpop.f32.mrf.mxu2  ;;  %v622_v30 = vpop.f32.mrf.mxu0 }
  0xb1   :  { %v640_v47 = vpop.f32.mrf.mxu1  ;;  %v656_v61 = vadd.f32 %v655_v29, %v638_v55  ;;  %v623_v63 = vadd.f32 %v622_v30, %v131_v31 }
  0xb3   :  { %v689_v52 = vpop.f32.mrf.mxu3  ;;  %v674_v4 = vadd.f32 %v673_v24, %v656_v61  ;;  %v641_v5 = vadd.f32 %v640_v47, %v623_v63 }
  0xb4   :  { %v690_v40 = vadd.f32 %v689_v52, %v132_v36 }
  0xb5   :  { %v827_v12 = vmax.f32 %v674_v4, 0.0 }
  0xb8   :  { %v658_v32 = vpop.f32.mrf.mxu2  ;;  %v624_v43 = vpop.f32.mrf.mxu0 }
  0xb9   :  { %v642_v33 = vpop.f32.mrf.mxu1  ;;  %v659_v13 = vadd.f32 %v658_v32, %v641_v5 }
  0xbb   :  { %v691_v35 = vpop.f32.mrf.mxu3  ;;  %v677_v18 = vadd.f32 %v676_v26, %v659_v13 }
  0xbc   :  { %v692_v56 = vadd.f32 %v691_v35, %v132_v36 }
  0xbd   :  { %v830_v24 = vmax.f32 %v677_v18, 0.0 }
  0xc0   :  { %v660_v38 = vpop.f32.mrf.mxu2  ;;  %v707_v39 = vpop.f32.mrf.mxu0 }
  0xc1   :  { %v708_v44 = vadd.f32 %v707_v39, %v690_v40 }
  0xc2   :  { %v725_v41 = vpop.f32.mrf.mxu1 }
  0xc3   :  { %v694_v45 = vpop.f32.mrf.mxu3  ;;  %v726_v49 = vadd.f32 %v725_v41, %v708_v44 }
  0xc4   :  { %v695_v9 = vadd.f32 %v694_v45, %v132_v36 }
  0xc8   :  { %v709_v53 = vpop.f32.mrf.mxu0 }
  0xc9   :  { %v743_v50 = vpop.f32.mrf.mxu2  ;;  %v710_v1 = vadd.f32 %v709_v53, %v692_v56 }
  0xca   :  { %v744_v57 = vadd.f32 %v743_v50, %v726_v49  ;;  %v727_v59 = vpop.f32.mrf.mxu1 }
  0xcb   :  { %v696_v2 = vpop.f32.mrf.mxu3  ;;  %v728_v6 = vadd.f32 %v727_v59, %v710_v1 }
  0xcc   :  { %v825_v0 = vmax.f32 %v744_v57, 0.0 }
  0xce   :  { %v833_v3 = vpack.c.bf16 %v825_v0, %v824_v60 }
  0xd0   :  { %839 = vst [vmem:[%s1898_s3] sm:$0xff] %v833_v3  ;;  %v712_v8 = vpop.f32.mrf.mxu0 }
  0xd1   :  { %v745_v7 = vpop.f32.mrf.mxu2  ;;  %v713_v14 = vadd.f32 %v712_v8, %v695_v9 }
  0xd2   :  { %v746_v10 = vadd.f32 %v745_v7, %v728_v6  ;;  %v730_v11 = vpop.f32.mrf.mxu1 }
  0xd3   :  { %v761_v15 = vpop.f32.mrf.mxu3  ;;  %v731_v19 = vadd.f32 %v730_v11, %v713_v14 }
  0xd4   :  { %v828_v54 = vmax.f32 %v746_v10, 0.0  ;;  %v762_v62 = vadd.f32 %v761_v15, %v133_v58 }
  0xd6   :  { %v835_v16 = vpack.c.bf16 %v828_v54, %v827_v12 }
  0xd8   :  { %841 = vst [vmem:[%s1898_s3 + $0xc] sm:$0xff] %v835_v16  ;;  %v714_v21 = vpop.f32.mrf.mxu0 }
  0xd9   :  { %v748_v20 = vpop.f32.mrf.mxu2 }
  0xda   :  { %v749_v22 = vadd.f32 %v748_v20, %v731_v19  ;;  %v732_v23 = vpop.f32.mrf.mxu1 }
  0xdb   :  { %v763_v48 = vpop.f32.mrf.mxu3 }
  0xdc   :  { %v831_v25 = vmax.f32 %v749_v22, 0.0  ;;  %v764_v43 = vadd.f32 %v763_v48, %v133_v58 }
  0xde   :  { %v837_v27 = vpack.c.bf16 %v831_v25, %v830_v24 }
  0xe0   :  { %843 = vst [vmem:[%s1898_s3 + $0x18] sm:$0x11] %v837_v27  ;;  %v779_v26 = vpop.f32.mrf.mxu0 }
  0xe1   :  { %v750_v28 = vpop.f32.mrf.mxu2  ;;  %v780_v30 = vadd.f32 %v779_v26, %v762_v62 }
  0xe2   :  { %v797_v29 = vpop.f32.mrf.mxu1 }
  0xe3   :  { %v766_v47 = vpop.f32.mrf.mxu3  ;;  %v798_v52 = vadd.f32 %v797_v29, %v780_v30 }
  0xe4   :  { %v767_v42 = vadd.f32 %v766_v47, %v133_v58 }
  0xe8   :  { %v781_v32 = vpop.f32.mrf.mxu0 }
  0xe9   :  { %v815_v31 = vpop.f32.mrf.mxu2  ;;  %v782_v36 = vadd.f32 %v781_v32, %v764_v43 }
  0xea   :  { %v816_v33 = vadd.f32 %v815_v31, %v798_v52  ;;  %v799_v34 = vpop.f32.mrf.mxu1 }
  0xeb   :  { %v768_v51 = vpop.f32.mrf.mxu3  ;;  %v800_v38 = vadd.f32 %v799_v34, %v782_v36 }
  0xec   :  { %v826_v35 = vmax.f32 %v816_v33, 0.0 }
  0xee   :  { %v834_v37 = vpack.c.bf16 %v826_v35, %v826_v35 }
  0xf0   :  { %840 = vst [vmem:[%s1898_s3 + $0x8] sm:$0xf] %v834_v37 }
  0xf1   :  { %v817_v39 = vpop.f32.mrf.mxu2 }
  0xf2   :  { %v818_v40 = vadd.f32 %v817_v39, %v800_v38  ;;  %v802_v41 = vpop.f32.mrf.mxu1 }
  0xf3   :  { %v784_v45 = vpop.f32.mrf.mxu3 }
  0xf4   :  { %v829_v44 = vmax.f32 %v818_v40, 0.0  ;;  %v785_v17 = vadd.f32 %v784_v45, %v767_v42 }
  0xf6   :  { %v836_v46 = vpack.c.bf16 %v829_v44, %v829_v44  ;;  %v803_v49 = vadd.f32 %v802_v41, %v785_v17 }
  0xf8   :  { %842 = vst [vmem:[%s1898_s3 + $0x14] sm:$0xf] %v836_v46 }
  0xf9   :  { %v820_v50 = vpop.f32.mrf.mxu2 }
  0xfa   :  { %v821_v53 = vadd.f32 %v820_v50, %v803_v49  ;;  %v804_v55 = vpop.f32.mrf.mxu1 }
  0xfb   :  { %v786_v57 = vpop.f32.mrf.mxu3 }
  0xfc   :  { %v832_v56 = vmax.f32 %v821_v53, 0.0 }
  0xfe   :  { %v838_v59 = vpack.c.bf16 %v832_v56, %v832_v56 }
 0x100   :  { %844 = vst [vmem:[%s1898_s3 + $0x20] sm:$0x1] %v838_v59 }
 0x101   :  { %v822_v60 = vpop.f32.mrf.mxu2 }

// kernel: regressor_forward.40
= control target key start
LH: loop header
LB: loop body
LE: loop exit
PB: predicated region body
PF: predicated region fallthrough
CT: control target
= control target key end

     0   :  { %vm392_vm0 = vcmask 519168   ;;  %vm395_vm1 = vcmask 516096   ;;  %s742_s1 = inlined_call_operand.vmem [shape: bf16[512,64], index: 1, kind: input, shape index: {}]   ;;  %s743_s2 = inlined_call_operand.vmem [shape: f32[1,64], index: 2, kind: input, shape index: {}]   ;;  %s744_s0 = inlined_call_operand.vmem [shape: bf16[18,512], index: 0, kind: input, shape index: {}]   ;;  %s745_s3 = inlined_call_operand.vmem [shape: bf16[18,64], index: 3, kind: output, shape index: {}]  }
   0x1   :  { %v556_v0 = vld [vmem:[%s742_s1 + $0x38] sm:$0xff]  ;;  %v555_v4 = vld [vmem:[%s742_s1 + $0x30] sm:$0xff]  ;;  %v554_v8 = vld [vmem:[%s742_s1 + $0x28] sm:$0xff] }
   0x2   :  { %v564_v1 = vld [vmem:[%s742_s1 + $0x78] sm:$0xff]  ;;  %314 = vmatpush.bf16.msra.mxu0 %v556_v0  ;;  %v563_v5 = vld [vmem:[%s742_s1 + $0x70] sm:$0xff]  ;;  %v562_v9 = vld [vmem:[%s742_s1 + $0x68] sm:$0xff] }
   0x3   :  { %v572_v2 = vld [vmem:[%s742_s1 + $0xb8] sm:$0xff]  ;;  %332 = vmatpush.bf16.msra.mxu1 %v564_v1  ;;  %v571_v6 = vld [vmem:[%s742_s1 + $0xb0] sm:$0xff]  ;;  %v570_v10 = vld [vmem:[%s742_s1 + $0xa8] sm:$0xff] }
   0x4   :  { %v580_v3 = vld [vmem:[%s742_s1 + $0xf8] sm:$0xff]  ;;  %350 = vmatpush.bf16.msra.mxu2 %v572_v2  ;;  %v579_v7 = vld [vmem:[%s742_s1 + $0xf0] sm:$0xff]  ;;  %v578_v11 = vld [vmem:[%s742_s1 + $0xe8] sm:$0xff] }
   0x5   :  { %368 = vmatpush.bf16.msra.mxu3 %v580_v3  ;;  %v553_v12 = vld [vmem:[%s742_s1 + $0x20] sm:$0xff]  ;;  %v552_v16 = vld [vmem:[%s742_s1 + $0x18] sm:$0xff]  ;;  %v551_v20 = vld [vmem:[%s742_s1 + $0x10] sm:$0xff] }
   0x6   :  { %315 = vmatpush.bf16.msra.mxu0 %v555_v4  ;;  %v561_v13 = vld [vmem:[%s742_s1 + $0x60] sm:$0xff]  ;;  %v560_v17 = vld [vmem:[%s742_s1 + $0x58] sm:$0xff]  ;;  %v559_v21 = vld [vmem:[%s742_s1 + $0x50] sm:$0xff] }
   0x7   :  { %333 = vmatpush.bf16.msra.mxu1 %v563_v5  ;;  %v569_v14 = vld [vmem:[%s742_s1 + $0xa0] sm:$0xff]  ;;  %v568_v18 = vld [vmem:[%s742_s1 + $0x98] sm:$0xff]  ;;  %v567_v22 = vld [vmem:[%s742_s1 + $0x90] sm:$0xff] }
   0x8   :  { %351 = vmatpush.bf16.msra.mxu2 %v571_v6  ;;  %v577_v15 = vld [vmem:[%s742_s1 + $0xe0] sm:$0xff]  ;;  %v576_v19 = vld [vmem:[%s742_s1 + $0xd8] sm:$0xff]  ;;  %v575_v23 = vld [vmem:[%s742_s1 + $0xd0] sm:$0xff] }
   0x9   :  { %369 = vmatpush.bf16.msra.mxu3 %v579_v7  ;;  %v550_v24 = vld [vmem:[%s742_s1 + $0x8] sm:$0xff]  ;;  %v549_v28 = vld [vmem:[%s742_s1] sm:$0xff]  ;;  %v547_v33 = vld [vmem:[%s744_s0 + $0xc] sm:$0xf0] }
   0xa   :  { %316 = vmatpush.bf16.msra.mxu0 %v554_v8  ;;  %v558_v25 = vld [vmem:[%s742_s1 + $0x48] sm:$0xff]  ;;  %v557_v29 = vld [vmem:[%s742_s1 + $0x40] sm:$0xff]  ;;  %v405_v35 = vld [vmem:[%s744_s0 + $0x10] sm:$0xf0] }
   0xb   :  { %334 = vmatpush.bf16.msra.mxu1 %v562_v9  ;;  %v566_v26 = vld [vmem:[%s742_s1 + $0x88] sm:$0xff]  ;;  %v565_v30 = vld [vmem:[%s742_s1 + $0x80] sm:$0xff]  ;;  %v548_v37 = vld [vmem:[%s744_s0 + $0x14] sm:$0xf0] }
   0xc   :  { %352 = vmatpush.bf16.msra.mxu2 %v570_v10  ;;  %v574_v27 = vld [vmem:[%s742_s1 + $0xc8] sm:$0xff]  ;;  %v573_v31 = vld [vmem:[%s742_s1 + $0xc0] sm:$0xff]  ;;  %v413_v39 = vld [vmem:[%s744_s0 + $0x18] sm:$0xf0] }
   0xd   :  { %370 = vmatpush.bf16.msra.mxu3 %v578_v11  ;;  %v403_v32 = vld [vmem:[%s744_s0] sm:$0xf]  ;;  %v545_v34 = vld [vmem:[%s744_s0 + $0x4] sm:$0xf]  ;;  %v411_v36 = vld [vmem:[%s744_s0 + $0x8] sm:$0xf] }
   0xe   :  { %317 = vmatpush.bf16.msra.mxu0 %v553_v12  ;;  %v546_v38 = vld [vmem:[%s744_s0 + $0xc] sm:$0xf]  ;;  %v404_v40 = vor.u32 %v547_v33, %v403_v32  ;;  %v408_v41 = vor.u32 %v545_v34, %v405_v35  ;;  %v412_v42 = vor.u32 %v548_v37, %v411_v36  ;;  %v18_v44 = vld [vmem:[%s744_s0 + $0x20] sm:$0x11] }
   0xf   :  { %335 = vmatpush.bf16.msra.mxu1 %v561_v13  ;;  %v416_v43 = vor.u32 %v546_v38, %v413_v39  ;;  %v19_v45 = vld [vmem:[%s744_s0 + $0x28] sm:$0x11]  ;;  %v102_v46 = vunpack.c.l.b16 %v18_v44  ;;  %v103_v47 = vunpack.c.h.b16 %v18_v44  ;;  %v581_v54 = vld [vmem:[%s743_s2] ss:$0 sm:$0xff] }
  0x10   :  { %353 = vmatpush.bf16.msra.mxu2 %v569_v14  ;;  %v104_v48 = vunpack.c.l.b16 %v19_v45  ;;  %v105_v49 = vunpack.c.h.b16 %v19_v45 }
  0x11   :  { %371 = vmatpush.bf16.msra.mxu3 %v577_v15  ;;  %v110_v50 = vpack.c.b16 %v102_v46, %v102_v46  ;;  %v111_v51 = vpack.c.b16 %v103_v47, %v103_v47 }
  0x12   :  { %318 = vmatpush.bf16.msra.mxu0 %v552_v16  ;;  %v112_v52 = vpack.c.b16 %v104_v48, %v104_v48  ;;  %v113_v53 = vpack.c.b16 %v105_v49, %v105_v49 }
  0x13   :  { %336 = vmatpush.bf16.msra.mxu1 %v560_v17 }
  0x14   :  { %354 = vmatpush.bf16.msra.mxu2 %v568_v18 }
  0x15   :  { %372 = vmatpush.bf16.msra.mxu3 %v576_v19 }
  0x16   :  { %319 = vmatpush.bf16.msra.mxu0 %v551_v20 }
  0x17   :  { %337 = vmatpush.bf16.msra.mxu1 %v559_v21 }
  0x18   :  { %355 = vmatpush.bf16.msra.mxu2 %v567_v22 }
  0x19   :  { %373 = vmatpush.bf16.msra.mxu3 %v575_v23 }
  0x1a   :  { %320 = vmatpush.bf16.msra.mxu0 %v550_v24 }
  0x1b   :  { %338 = vmatpush.bf16.msra.mxu1 %v558_v25 }
  0x1c   :  { %356 = vmatpush.bf16.msra.mxu2 %v566_v26 }
  0x1d   :  { %374 = vmatpush.bf16.msra.mxu3 %v574_v27 }
  0x1e   :  { %321 = vmatpush.bf16.msra.mxu0 %v549_v28 }
  0x1f   :  { %339 = vmatpush.bf16.msra.mxu1 %v557_v29 }
  0x20   :  { %357 = vmatpush.bf16.msra.mxu2 %v565_v30 }
  0x21   :  { %375 = vmatpush.bf16.msra.mxu3 %v573_v31  ;;  %322 = vmatmul.bf16.vlgmr.msra.gmra.mxu0 %v404_v40 }
  0x22   :  { %340 = vmatmul.bf16.vlgmr.msra.gmra.mxu1 %v408_v41 }
  0x23   :  { %358 = vmatmul.bf16.vlgmr.msra.gmra.mxu2 %v412_v42 }
  0x24   :  { %376 = vmatmul.bf16.vlgmr.msra.gmra.mxu3 %v416_v43 }
  0x31   :  { %327 = vmatmul.bf16.gmra.mxu0 %v110_v50 }
  0x32   :  { %345 = vmatmul.bf16.gmra.mxu1 %v111_v51 }
  0x33   :  { %363 = vmatmul.bf16.gmra.mxu2 %v112_v52 }
  0x34   :  { %381 = vmatmul.bf16.gmra.mxu3 %v113_v53 }
  0x9e   :  { %v323_v55 = vpop.f32.mrf.mxu0 }
  0x9f   :  { %v341_v56 = vpop.f32.mrf.mxu1  ;;  %v324_v57 = vadd.f32 %v581_v54, %v323_v55 }
  0xa1   :  { %v342_v58 = vadd.f32 %v341_v56, %v324_v57 }
  0xa6   :  { %v359_v59 = vpop.f32.mrf.mxu2  ;;  %v325_v62 = vpop.f32.mrf.mxu0 }
  0xa7   :  { %v377_v60 = vpop.f32.mrf.mxu3  ;;  %v360_v61 = vadd.f32 %v359_v59, %v342_v58  ;;  %v343_v63 = vpop.f32.mrf.mxu1  ;;  %v326_v1 = vadd.f32 %v581_v54, %v325_v62 }
  0xa9   :  { %v378_v0 = vadd.f32 %v377_v60, %v360_v61  ;;  %v344_v4 = vadd.f32 %v343_v63, %v326_v1 }
  0xab   :  { %v386_v2 = vmax.f32 %v378_v0, 0.0 }
  0xad   :  { %v389_v3 = vpack.c.bf16 %v386_v2, %v386_v2 }
  0xae   :  { %v361_v5 = vpop.f32.mrf.mxu2  ;;  %v328_v8 = vpop.f32.mrf.mxu0 }
  0xaf   :  { %v379_v6 = vpop.f32.mrf.mxu3  ;;  %393 = vst.msk [vmem:[%s745_s3] sm:$0xf] %vm392_vm0, %v389_v3  ;;  %v362_v7 = vadd.f32 %v361_v5, %v344_v4  ;;  %v346_v9 = vpop.f32.mrf.mxu1  ;;  %v329_v10 = vadd.f32 %v581_v54, %v328_v8 }
  0xb1   :  { %v380_v11 = vadd.f32 %v379_v6, %v362_v7  ;;  %v347_v13 = vadd.f32 %v346_v9, %v329_v10 }
  0xb3   :  { %v387_v12 = vmax.f32 %v380_v11, 0.0 }
  0xb5   :  { %v390_v14 = vpack.c.bf16 %v387_v12, %v387_v12 }
  0xb6   :  { %v364_v15 = vpop.f32.mrf.mxu2  ;;  %v330_v18 = vpop.f32.mrf.mxu0 }
  0xb7   :  { %v382_v16 = vpop.f32.mrf.mxu3  ;;  %394 = vst.msk [vmem:[%s745_s3 + $0x4] sm:$0xf] %vm392_vm0, %v390_v14  ;;  %v365_v17 = vadd.f32 %v364_v15, %v347_v13  ;;  %v348_v19 = vpop.f32.mrf.mxu1 }
  0xb9   :  { %v383_v20 = vadd.f32 %v382_v16, %v365_v17 }
  0xbb   :  { %v388_v21 = vmax.f32 %v383_v20, 0.0 }
  0xbd   :  { %v391_v22 = vpack.c.bf16 %v388_v21, %v388_v21 }
  0xbe   :  { %v366_v23 = vpop.f32.mrf.mxu2 }
  0xbf   :  { %v384_v24 = vpop.f32.mrf.mxu3  ;;  %396 = vst.msk [vmem:[%s745_s3 + $0x8] sm:$0x1] %vm395_vm1, %v391_v22 }

// kernel: regressor_forward.39
= control target key start
LH: loop header
LB: loop body
LE: loop exit
PB: predicated region body
PF: predicated region fallthrough
CT: control target
= control target key end

     0   :  { %vm940_vm0 = vcmask 523264   ;;  %s3109_s1 = inlined_call_operand.vmem [shape: bf16[576,512], index: 1, kind: input, shape index: {}]   ;;  %s3110_s0 = inlined_call_operand.vmem [shape: bf16[18,576], index: 0, kind: input, shape index: {}]   ;;  %s3111_s2 = inlined_call_operand.vmem [shape: f32[1,512], index: 2, kind: input, shape index: {}]   ;;  %s3112_s3 = inlined_call_operand.vmem [shape: bf16[18,512], index: 3, kind: output, shape index: {}]  }
   0x1   :  { %v1469_v0 = vld [vmem:[%s3109_s1 + $0xe0] sm:$0xf]  ;;  %v1974_v1 = vld [vmem:[%s3109_s1 + $0xec] sm:$0xf0] }
   0x2   :  { %v1597_v2 = vld [vmem:[%s3109_s1 + $0x1e0] sm:$0xf]  ;;  %v1470_v3 = vor.u32 %v1974_v1, %v1469_v0  ;;  %v2006_v4 = vld [vmem:[%s3109_s1 + $0x1ec] sm:$0xf0] }
   0x3   :  { %v1725_v5 = vld [vmem:[%s3109_s1 + $0x2e0] sm:$0xf]  ;;  %v2038_v6 = vld [vmem:[%s3109_s1 + $0x2ec] sm:$0xf0]  ;;  %v1598_v7 = vor.u32 %v2006_v4, %v1597_v2 }
   0x4   :  { %v1726_v8 = vor.u32 %v2038_v6, %v1725_v5  ;;  %v1853_v9 = vld [vmem:[%s3109_s1 + $0x3e0] sm:$0xf]  ;;  %v2070_v10 = vld [vmem:[%s3109_s1 + $0x3ec] sm:$0xf0]  ;;  %947 = vmatpush.bf16.msra.mxu0 %v1470_v3 }
   0x5   :  { %v1453_v11 = vld [vmem:[%s3109_s1 + $0xc0] sm:$0xf]  ;;  %v1854_v12 = vor.u32 %v2070_v10, %v1853_v9  ;;  %v1970_v13 = vld [vmem:[%s3109_s1 + $0xcc] sm:$0xf0]  ;;  %965 = vmatpush.bf16.msra.mxu1 %v1598_v7 }
   0x6   :  { %v1581_v14 = vld [vmem:[%s3109_s1 + $0x1c0] sm:$0xf]  ;;  %v2002_v15 = vld [vmem:[%s3109_s1 + $0x1cc] sm:$0xf0]  ;;  %983 = vmatpush.bf16.msra.mxu2 %v1726_v8  ;;  %v1454_v16 = vor.u32 %v1970_v13, %v1453_v11 }
   0x7   :  { %v1582_v17 = vor.u32 %v2002_v15, %v1581_v14  ;;  %v1709_v18 = vld [vmem:[%s3109_s1 + $0x2c0] sm:$0xf]  ;;  %v2034_v19 = vld [vmem:[%s3109_s1 + $0x2cc] sm:$0xf0]  ;;  %1001 = vmatpush.bf16.msra.mxu3 %v1854_v12 }
   0x8   :  { %v1837_v20 = vld [vmem:[%s3109_s1 + $0x3c0] sm:$0xf]  ;;  %v1710_v21 = vor.u32 %v2034_v19, %v1709_v18  ;;  %v2066_v22 = vld [vmem:[%s3109_s1 + $0x3cc] sm:$0xf0]  ;;  %948 = vmatpush.bf16.msra.mxu0 %v1454_v16 }
   0x9   :  { %v1437_v23 = vld [vmem:[%s3109_s1 + $0xa0] sm:$0xf]  ;;  %v1966_v24 = vld [vmem:[%s3109_s1 + $0xac] sm:$0xf0]  ;;  %v1838_v25 = vor.u32 %v2066_v22, %v1837_v20  ;;  %966 = vmatpush.bf16.msra.mxu1 %v1582_v17 }
   0xa   :  { %v1565_v26 = vld [vmem:[%s3109_s1 + $0x1a0] sm:$0xf]  ;;  %v1998_v27 = vld [vmem:[%s3109_s1 + $0x1ac] sm:$0xf0]  ;;  %v1438_v29 = vor.u32 %v1966_v24, %v1437_v23  ;;  %984 = vmatpush.bf16.msra.mxu2 %v1710_v21 }
   0xb   :  { %v1693_v28 = vld [vmem:[%s3109_s1 + $0x2a0] sm:$0xf]  ;;  %v2030_v30 = vld [vmem:[%s3109_s1 + $0x2ac] sm:$0xf0]  ;;  %v1566_v33 = vor.u32 %v1998_v27, %v1565_v26  ;;  %1002 = vmatpush.bf16.msra.mxu3 %v1838_v25 }
   0xc   :  { %v1821_v31 = vld [vmem:[%s3109_s1 + $0x3a0] sm:$0xf]  ;;  %v2062_v32 = vld [vmem:[%s3109_s1 + $0x3ac] sm:$0xf0]  ;;  %v1694_v34 = vor.u32 %v2030_v30, %v1693_v28  ;;  %949 = vmatpush.bf16.msra.mxu0 %v1438_v29  ;;  %v1941_v29 = vld [vmem:[%s3110_s0 + $0x10] sm:$0xf0] }
   0xd   :  { %v1421_v35 = vld [vmem:[%s3109_s1 + $0x80] sm:$0xf]  ;;  %v1962_v36 = vld [vmem:[%s3109_s1 + $0x8c] sm:$0xf0]  ;;  %v1822_v38 = vor.u32 %v2062_v32, %v1821_v31  ;;  %967 = vmatpush.bf16.msra.mxu1 %v1566_v33  ;;  %v1939_v30 = vld [vmem:[%s3110_s0 + $0x4] sm:$0xf] }
   0xe   :  { %v1549_v37 = vld [vmem:[%s3109_s1 + $0x180] sm:$0xf]  ;;  %v1994_v39 = vld [vmem:[%s3109_s1 + $0x18c] sm:$0xf0]  ;;  %v1422_v44 = vor.u32 %v1962_v36, %v1421_v35  ;;  %985 = vmatpush.bf16.msra.mxu2 %v1694_v34  ;;  %v1339_v31 = vld [vmem:[%s3110_s0 + $0x14] sm:$0xf0] }
   0xf   :  { %v1677_v40 = vld [vmem:[%s3109_s1 + $0x280] sm:$0xf]  ;;  %v2026_v41 = vld [vmem:[%s3109_s1 + $0x28c] sm:$0xf0]  ;;  %v1550_v45 = vor.u32 %v1994_v39, %v1549_v37  ;;  %1003 = vmatpush.bf16.msra.mxu3 %v1822_v38  ;;  %v2004_v32 = vld [vmem:[%s3109_s1 + $0x1e4] sm:$0xf] }
  0x10   :  { %v1805_v42 = vld [vmem:[%s3109_s1 + $0x380] sm:$0xf]  ;;  %v2058_v43 = vld [vmem:[%s3109_s1 + $0x38c] sm:$0xf0]  ;;  %v1678_v46 = vor.u32 %v2026_v41, %v1677_v40  ;;  %950 = vmatpush.bf16.msra.mxu0 %v1422_v44  ;;  %v1599_v33 = vld [vmem:[%s3109_s1 + $0x1f0] sm:$0xf0] }
  0x11   :  { %v1405_v47 = vld [vmem:[%s3109_s1 + $0x60] sm:$0xf]  ;;  %v1958_v48 = vld [vmem:[%s3109_s1 + $0x6c] sm:$0xf0]  ;;  %v1806_v50 = vor.u32 %v2058_v43, %v1805_v42  ;;  %968 = vmatpush.bf16.msra.mxu1 %v1550_v45  ;;  %v1345_v35 = vld [vmem:[%s3110_s0 + $0x8] sm:$0xf]  ;;  %v1602_v44 = vor.u32 %v2004_v32, %v1599_v33 }
  0x12   :  { %v1533_v49 = vld [vmem:[%s3109_s1 + $0x160] sm:$0xf]  ;;  %v1990_v51 = vld [vmem:[%s3109_s1 + $0x16c] sm:$0xf0]  ;;  %v1406_v56 = vor.u32 %v1958_v48, %v1405_v47  ;;  %986 = vmatpush.bf16.msra.mxu2 %v1678_v46  ;;  %v1972_v36 = vld [vmem:[%s3109_s1 + $0xe4] sm:$0xf] }
  0x13   :  { %v1661_v52 = vld [vmem:[%s3109_s1 + $0x260] sm:$0xf]  ;;  %v2022_v53 = vld [vmem:[%s3109_s1 + $0x26c] sm:$0xf0]  ;;  %v1534_v57 = vor.u32 %v1990_v51, %v1533_v49  ;;  %1004 = vmatpush.bf16.msra.mxu3 %v1806_v50  ;;  %v1471_v37 = vld [vmem:[%s3109_s1 + $0xf0] sm:$0xf0] }
  0x14   :  { %v1789_v54 = vld [vmem:[%s3109_s1 + $0x360] sm:$0xf]  ;;  %v2054_v55 = vld [vmem:[%s3109_s1 + $0x36c] sm:$0xf0]  ;;  %v1662_v58 = vor.u32 %v2022_v53, %v1661_v52  ;;  %951 = vmatpush.bf16.msra.mxu0 %v1406_v56  ;;  %v1942_v40 = vld [vmem:[%s3110_s0 + $0x18] sm:$0xf0]  ;;  %v1474_v49 = vor.u32 %v1972_v36, %v1471_v37  ;;  %v2356_v53 = vor.u32 %v1939_v30, %v1339_v31 }
  0x15   :  { %v1389_v59 = vld [vmem:[%s3109_s1 + $0x40] sm:$0xf]  ;;  %v1954_v60 = vld [vmem:[%s3109_s1 + $0x4c] sm:$0xf0]  ;;  %v1790_v62 = vor.u32 %v2054_v55, %v1789_v54  ;;  %969 = vmatpush.bf16.msra.mxu1 %v1534_v57  ;;  %v1940_v41 = vld [vmem:[%s3110_s0 + $0xc] sm:$0xf]  ;;  %v2358_v54 = vor.u32 %v1942_v40, %v1345_v35 }
  0x16   :  { %v1517_v61 = vld [vmem:[%s3109_s1 + $0x140] sm:$0xf]  ;;  %v1986_v63 = vld [vmem:[%s3109_s1 + $0x14c] sm:$0xf0]  ;;  %v1390_v4 = vor.u32 %v1954_v60, %v1389_v59  ;;  %987 = vmatpush.bf16.msra.mxu2 %v1662_v58  ;;  %v2036_v45 = vld [vmem:[%s3109_s1 + $0x2e4] sm:$0xf] }
  0x17   :  { %v1645_v0 = vld [vmem:[%s3109_s1 + $0x240] sm:$0xf]  ;;  %v2018_v1 = vld [vmem:[%s3109_s1 + $0x24c] sm:$0xf0]  ;;  %v1518_v5 = vor.u32 %v1986_v63, %v1517_v61  ;;  %1005 = vmatpush.bf16.msra.mxu3 %v1790_v62  ;;  %v1727_v50 = vld [vmem:[%s3109_s1 + $0x2f0] sm:$0xf0] }
  0x18   :  { %v1773_v2 = vld [vmem:[%s3109_s1 + $0x340] sm:$0xf]  ;;  %v2050_v3 = vld [vmem:[%s3109_s1 + $0x34c] sm:$0xf0]  ;;  %v1646_v6 = vor.u32 %v2018_v1, %v1645_v0  ;;  %952 = vmatpush.bf16.msra.mxu0 %v1390_v4  ;;  %v2000_v51 = vld [vmem:[%s3109_s1 + $0x1c4] sm:$0xf]  ;;  %v1730_v59 = vor.u32 %v2036_v45, %v1727_v50 }
  0x19   :  { %v1373_v7 = vld [vmem:[%s3109_s1 + $0x20] sm:$0xf]  ;;  %v1950_v8 = vld [vmem:[%s3109_s1 + $0x2c] sm:$0xf0]  ;;  %v1774_v10 = vor.u32 %v2050_v3, %v1773_v2  ;;  %970 = vmatpush.bf16.msra.mxu1 %v1518_v5  ;;  %v1583_v52 = vld [vmem:[%s3109_s1 + $0x1d0] sm:$0xf0] }
  0x1a   :  { %v1501_v9 = vld [vmem:[%s3109_s1 + $0x120] sm:$0xf]  ;;  %v1982_v11 = vld [vmem:[%s3109_s1 + $0x12c] sm:$0xf0]  ;;  %v1374_v17 = vor.u32 %v1950_v8, %v1373_v7  ;;  %988 = vmatpush.bf16.msra.mxu2 %v1646_v6  ;;  %v1968_v55 = vld [vmem:[%s3109_s1 + $0xc4] sm:$0xf]  ;;  %v1586_v60 = vor.u32 %v2000_v51, %v1583_v52 }
  0x1b   :  { %v1629_v12 = vld [vmem:[%s3109_s1 + $0x220] sm:$0xf]  ;;  %v2014_v13 = vld [vmem:[%s3109_s1 + $0x22c] sm:$0xf0]  ;;  %v1502_v21 = vor.u32 %v1982_v11, %v1501_v9  ;;  %1006 = vmatpush.bf16.msra.mxu3 %v1774_v10  ;;  %v1455_v56 = vld [vmem:[%s3109_s1 + $0xd0] sm:$0xf0] }
  0x1c   :  { %v1757_v14 = vld [vmem:[%s3109_s1 + $0x320] sm:$0xf]  ;;  %v2046_v15 = vld [vmem:[%s3109_s1 + $0x32c] sm:$0xf0]  ;;  %v1630_v22 = vor.u32 %v2014_v13, %v1629_v12  ;;  %953 = vmatpush.bf16.msra.mxu0 %v1374_v17  ;;  %v2032_v61 = vld [vmem:[%s3109_s1 + $0x2c4] sm:$0xf]  ;;  %v1458_v0 = vor.u32 %v1968_v55, %v1455_v56 }
  0x1d   :  { %v1357_v16 = vld [vmem:[%s3109_s1] sm:$0xf]  ;;  %v1946_v18 = vld [vmem:[%s3109_s1 + $0xc] sm:$0xf0]  ;;  %v1758_v26 = vor.u32 %v2046_v15, %v1757_v14  ;;  %971 = vmatpush.bf16.msra.mxu1 %v1502_v21  ;;  %v1711_v1 = vld [vmem:[%s3109_s1 + $0x2d0] sm:$0xf0] }
  0x1e   :  { %v1485_v19 = vld [vmem:[%s3109_s1 + $0x100] sm:$0xf]  ;;  %v1978_v20 = vld [vmem:[%s3109_s1 + $0x10c] sm:$0xf0]  ;;  %v1358_v34 = vor.u32 %v1946_v18, %v1357_v16  ;;  %989 = vmatpush.bf16.msra.mxu2 %v1630_v22  ;;  %v1996_v2 = vld [vmem:[%s3109_s1 + $0x1a4] sm:$0xf]  ;;  %v1714_v7 = vor.u32 %v2032_v61, %v1711_v1 }
  0x1f   :  { %v1613_v23 = vld [vmem:[%s3109_s1 + $0x200] sm:$0xf]  ;;  %v2010_v24 = vld [vmem:[%s3109_s1 + $0x20c] sm:$0xf0]  ;;  %v1486_v38 = vor.u32 %v1978_v20, %v1485_v19  ;;  %1007 = vmatpush.bf16.msra.mxu3 %v1758_v26  ;;  %v1567_v3 = vld [vmem:[%s3109_s1 + $0x1b0] sm:$0xf0] }
  0x20   :  { %v1741_v25 = vld [vmem:[%s3109_s1 + $0x300] sm:$0xf]  ;;  %v2042_v27 = vld [vmem:[%s3109_s1 + $0x30c] sm:$0xf0]  ;;  %v1614_v39 = vor.u32 %v2010_v24, %v1613_v23  ;;  %954 = vmatpush.bf16.msra.mxu0 %v1358_v34  ;;  %v1964_v4 = vld [vmem:[%s3109_s1 + $0xa4] sm:$0xf]  ;;  %v1570_v8 = vor.u32 %v1996_v2, %v1567_v3 }
  0x21   :  { %v1337_v28 = vld [vmem:[%s3110_s0] sm:$0xf]  ;;  %v1742_v43 = vor.u32 %v2042_v27, %v1741_v25  ;;  %v2086_v47 = vld [vmem:[%s3109_s1 + $0x46c] sm:$0xf0]  ;;  %972 = vmatpush.bf16.msra.mxu1 %v1486_v38  ;;  %v1439_v5 = vld [vmem:[%s3109_s1 + $0xb0] sm:$0xf0] }
  0x22   :  { %v1347_v42 = vld [vmem:[%s3110_s0 + $0x1c] sm:$0xf0]  ;;  %v2345_v48 = vor.u32 %v1941_v29, %v1337_v28  ;;  %990 = vmatpush.bf16.msra.mxu2 %v1614_v39  ;;  %v2082_v63 = vld [vmem:[%s3109_s1 + $0x44c] sm:$0xf0]  ;;  %v2028_v9 = vld [vmem:[%s3109_s1 + $0x2a4] sm:$0xf]  ;;  %v1442_v12 = vor.u32 %v1964_v4, %v1439_v5 }
  0x23   :  { %v1917_v46 = vld [vmem:[%s3109_s1 + $0x460] sm:$0xf]  ;;  %v2366_v57 = vor.u32 %v1940_v41, %v1347_v42  ;;  %1008 = vmatpush.bf16.msra.mxu3 %v1742_v43  ;;  %v2078_v11 = vld [vmem:[%s3109_s1 + $0x42c] sm:$0xf0]  ;;  %v1695_v13 = vld [vmem:[%s3109_s1 + $0x2b0] sm:$0xf0] }
  0x24   :  { %v1918_v58 = vor.u32 %v2086_v47, %v1917_v46  ;;  %v1901_v62 = vld [vmem:[%s3109_s1 + $0x440] sm:$0xf]  ;;  %955 = vmatmul.bf16.vlgmr.msra.gmra.mxu0 %v2345_v48  ;;  %973 = vmatmul.bf16.vlgmr.msra.gmra.mxu1 %v2356_v53  ;;  %v1992_v14 = vld [vmem:[%s3109_s1 + $0x184] sm:$0xf]  ;;  %v1551_v15 = vld [vmem:[%s3109_s1 + $0x190] sm:$0xf0]  ;;  %v1698_v21 = vor.u32 %v2028_v9, %v1695_v13 }
  0x25   :  { %1037 = vmatpush.bf16.msrb.mxu1 %v1474_v49  ;;  %991 = vmatmul.bf16.vlgmr.msra.gmra.mxu2 %v2358_v54  ;;  %v1902_v6 = vor.u32 %v2082_v63, %v1901_v62  ;;  %v1885_v10 = vld [vmem:[%s3109_s1 + $0x420] sm:$0xf]  ;;  %v1960_v16 = vld [vmem:[%s3109_s1 + $0x84] sm:$0xf]  ;;  %v1423_v17 = vld [vmem:[%s3109_s1 + $0x90] sm:$0xf0]  ;;  %v1554_v22 = vor.u32 %v1992_v14, %v1551_v15 }
  0x26   :  { %1055 = vmatpush.bf16.msrb.mxu2 %v1602_v44  ;;  %1009 = vmatmul.bf16.vlgmr.msra.gmra.mxu3 %v2366_v57  ;;  %v21_v18 = vld [vmem:[%s3110_s0 + $0x28] sm:$0x11]  ;;  %v22_v19 = vld [vmem:[%s3110_s0 + $0x30] sm:$0x11]  ;;  %v1886_v20 = vor.u32 %v2078_v11, %v1885_v10  ;;  %v2024_v23 = vld [vmem:[%s3109_s1 + $0x284] sm:$0xf]  ;;  %v1426_v26 = vor.u32 %v1960_v16, %v1423_v17 }
  0x27   :  { %1023 = vmatpush.bf16.msrb.mxu0 %v1918_v58  ;;  %1073 = vmatpush.bf16.msrb.mxu3 %v1730_v59  ;;  %v1869_v24 = vld [vmem:[%s3109_s1 + $0x400] sm:$0xf]  ;;  %v2074_v25 = vld [vmem:[%s3109_s1 + $0x40c] sm:$0xf0]  ;;  %v1679_v27 = vld [vmem:[%s3109_s1 + $0x290] sm:$0xf0]  ;;  %v197_v28 = vunpack.c.l.b16 %v21_v18  ;;  %v198_v31 = vunpack.c.h.b16 %v21_v18  ;;  %v199_v32 = vunpack.c.l.b16 %v22_v19  ;;  %v200_v35 = vunpack.c.h.b16 %v22_v19 }
  0x28   :  { %v1988_v29 = vld [vmem:[%s3109_s1 + $0x164] sm:$0xf]  ;;  %v1535_v30 = vld [vmem:[%s3109_s1 + $0x170] sm:$0xf0]  ;;  %v1870_v36 = vor.u32 %v2074_v25, %v1869_v24  ;;  %v1682_v37 = vor.u32 %v2024_v23, %v1679_v27  ;;  %v1477_v16 = vld [vmem:[%s3109_s1 + $0xe8] sm:$0xf] }
  0x29   :  { %1038 = vmatpush.bf16.msrb.mxu1 %v1458_v0  ;;  %v1956_v33 = vld [vmem:[%s3109_s1 + $0x64] sm:$0xf]  ;;  %v1407_v34 = vld [vmem:[%s3109_s1 + $0x70] sm:$0xf0]  ;;  %v1538_v38 = vor.u32 %v1988_v29, %v1535_v30  ;;  %v2459_v42 = vpack.c.b16 %v197_v28, %v197_v28  ;;  %v2470_v47 = vpack.c.b16 %v198_v31, %v198_v31  ;;  %v2472_v49 = vpack.c.b16 %v199_v32, %v199_v32  ;;  %v1975_v17 = vld [vmem:[%s3109_s1 + $0xf4] sm:$0xf0] }
  0x2a   :  { %1056 = vmatpush.bf16.msrb.mxu2 %v1586_v60  ;;  %v2020_v39 = vld [vmem:[%s3109_s1 + $0x264] sm:$0xf]  ;;  %v1855_v41 = vld [vmem:[%s3109_s1 + $0x3f0] sm:$0xf0]  ;;  %v1410_v43 = vor.u32 %v1956_v33, %v1407_v34  ;;  %v2480_v52 = vpack.c.b16 %v200_v35, %v200_v35  ;;  %v1353_v28 = vld [vmem:[%s3110_s0 + $0x10] sm:$0xf]  ;;  %v1478_v29 = vor.u32 %v1975_v17, %v1477_v16 }
  0x2b   :  { %1024 = vmatpush.bf16.msrb.mxu0 %v1902_v6  ;;  %1074 = vmatpush.bf16.msrb.mxu3 %v1714_v7  ;;  %v2068_v40 = vld [vmem:[%s3109_s1 + $0x3e4] sm:$0xf]  ;;  %v1663_v44 = vld [vmem:[%s3109_s1 + $0x270] sm:$0xf0]  ;;  %v1605_v31 = vld [vmem:[%s3109_s1 + $0x1e8] sm:$0xf] }
  0x2c   :  { %v1984_v45 = vld [vmem:[%s3109_s1 + $0x144] sm:$0xf]  ;;  %v1519_v46 = vld [vmem:[%s3109_s1 + $0x150] sm:$0xf0]  ;;  %v1858_v55 = vor.u32 %v2068_v40, %v1855_v41  ;;  %v1666_v56 = vor.u32 %v2020_v39, %v1663_v44  ;;  %v2007_v32 = vld [vmem:[%s3109_s1 + $0x1f4] sm:$0xf0] }
  0x2d   :  { %1039 = vmatpush.bf16.msrb.mxu1 %v1442_v12  ;;  %v1952_v50 = vld [vmem:[%s3109_s1 + $0x44] sm:$0xf]  ;;  %v1391_v51 = vld [vmem:[%s3109_s1 + $0x50] sm:$0xf0]  ;;  %v1522_v58 = vor.u32 %v1984_v45, %v1519_v46  ;;  %v1606_v40 = vor.u32 %v2007_v32, %v1605_v31  ;;  %v1589_v45 = vld [vmem:[%s3109_s1 + $0x1c8] sm:$0xf] }
  0x2e   :  { %1057 = vmatpush.bf16.msrb.mxu2 %v1570_v8  ;;  %v2016_v59 = vld [vmem:[%s3109_s1 + $0x244] sm:$0xf]  ;;  %v1839_v61 = vld [vmem:[%s3109_s1 + $0x3d0] sm:$0xf0]  ;;  %v1394_v62 = vor.u32 %v1952_v50, %v1391_v51  ;;  %v2003_v46 = vld [vmem:[%s3109_s1 + $0x1d4] sm:$0xf0] }
  0x2f   :  { %1025 = vmatpush.bf16.msrb.mxu0 %v1886_v20  ;;  %1075 = vmatpush.bf16.msrb.mxu3 %v1698_v21  ;;  %v2064_v60 = vld [vmem:[%s3109_s1 + $0x3c4] sm:$0xf]  ;;  %v1647_v63 = vld [vmem:[%s3109_s1 + $0x250] sm:$0xf0]  ;;  %v1445_v51 = vld [vmem:[%s3109_s1 + $0xa8] sm:$0xf] }
  0x30   :  { %v1980_v0 = vld [vmem:[%s3109_s1 + $0x124] sm:$0xf]  ;;  %v1503_v1 = vld [vmem:[%s3109_s1 + $0x130] sm:$0xf0]  ;;  %v1842_v5 = vor.u32 %v2064_v60, %v1839_v61  ;;  %v1650_v6 = vor.u32 %v2016_v59, %v1647_v63  ;;  %v1590_v60 = vor.u32 %v2003_v46, %v1589_v45  ;;  %v2071_v16 = vld [vmem:[%s3109_s1 + $0x3f4] sm:$0xf0] }
  0x31   :  { %1040 = vmatpush.bf16.msrb.mxu1 %v1426_v26  ;;  %v1948_v2 = vld [vmem:[%s3109_s1 + $0x24] sm:$0xf]  ;;  %v1375_v3 = vld [vmem:[%s3109_s1 + $0x30] sm:$0xf0]  ;;  %v1506_v7 = vor.u32 %v1980_v0, %v1503_v1  ;;  %v1573_v0 = vld [vmem:[%s3109_s1 + $0x1a8] sm:$0xf] }
  0x32   :  { %1058 = vmatpush.bf16.msrb.mxu2 %v1554_v22  ;;  %v2012_v4 = vld [vmem:[%s3109_s1 + $0x224] sm:$0xf]  ;;  %v1631_v8 = vld [vmem:[%s3109_s1 + $0x230] sm:$0xf0]  ;;  %v1378_v11 = vor.u32 %v1948_v2, %v1375_v3  ;;  %v1999_v1 = vld [vmem:[%s3109_s1 + $0x1b4] sm:$0xf0] }
  0x33   :  { %1026 = vmatpush.bf16.msrb.mxu0 %v1870_v36  ;;  %1076 = vmatpush.bf16.msrb.mxu3 %v1682_v37  ;;  %v2060_v9 = vld [vmem:[%s3109_s1 + $0x3a4] sm:$0xf]  ;;  %v1823_v10 = vld [vmem:[%s3109_s1 + $0x3b0] sm:$0xf0]  ;;  %v1634_v21 = vor.u32 %v2012_v4, %v1631_v8  ;;  %v1461_v36 = vld [vmem:[%s3109_s1 + $0xc8] sm:$0xf] }
  0x34   :  { %960 = vmatmul.bf16.gmra.mxu0 %v2459_v42  ;;  %978 = vmatmul.bf16.gmra.mxu1 %v2470_v47  ;;  %v1976_v12 = vld [vmem:[%s3109_s1 + $0x104] sm:$0xf]  ;;  %v1487_v13 = vld [vmem:[%s3109_s1 + $0x110] sm:$0xf0]  ;;  %v1826_v20 = vor.u32 %v2060_v9, %v1823_v10  ;;  %v1971_v37 = vld [vmem:[%s3109_s1 + $0xd4] sm:$0xf0]  ;;  %v1574_v10 = vor.u32 %v1999_v1, %v1573_v0 }
  0x35   :  { %1041 = vmatpush.bf16.msrb.mxu1 %v1410_v43  ;;  %996 = vmatmul.bf16.gmra.mxu2 %v2472_v49  ;;  %v1944_v14 = vld [vmem:[%s3109_s1 + $0x4] sm:$0xf]  ;;  %v1359_v15 = vld [vmem:[%s3109_s1 + $0x10] sm:$0xf0]  ;;  %v1490_v22 = vor.u32 %v1976_v12, %v1487_v13  ;;  %v1462_v50 = vor.u32 %v1971_v37, %v1461_v36  ;;  %v1429_v3 = vld [vmem:[%s3109_s1 + $0x88] sm:$0xf] }
  0x36   :  { %1059 = vmatpush.bf16.msrb.mxu2 %v1538_v38  ;;  %1014 = vmatmul.bf16.gmra.mxu3 %v2480_v52  ;;  %v2084_v18 = vld [vmem:[%s3109_s1 + $0x464] sm:$0xf]  ;;  %v1919_v19 = vld [vmem:[%s3109_s1 + $0x470] sm:$0xf0]  ;;  %v1362_v25 = vor.u32 %v1944_v14, %v1359_v15  ;;  %v1963_v4 = vld [vmem:[%s3109_s1 + $0x94] sm:$0xf0] }
  0x37   :  { %1091 = vmatpush.bf16.msra.mxu0 %v1858_v55  ;;  %1077 = vmatpush.bf16.msrb.mxu3 %v1666_v56  ;;  %v2056_v23 = vld [vmem:[%s3109_s1 + $0x384] sm:$0xf]  ;;  %v1807_v24 = vld [vmem:[%s3109_s1 + $0x390] sm:$0xf0]  ;;  %v1922_v33 = vor.u32 %v2084_v18, %v1919_v19  ;;  %v1967_v55 = vld [vmem:[%s3109_s1 + $0xb4] sm:$0xf0]  ;;  %v1430_v17 = vor.u32 %v1963_v4, %v1429_v3 }
  0x38   :  { %v2008_v26 = vld [vmem:[%s3109_s1 + $0x204] sm:$0xf]  ;;  %v1615_v27 = vld [vmem:[%s3109_s1 + $0x210] sm:$0xf0]  ;;  %v1810_v34 = vor.u32 %v2056_v23, %v1807_v24  ;;  %v1446_v2 = vor.u32 %v1967_v55, %v1445_v51  ;;  %v23_v14 = vld [vmem:[%s3110_s0 + $0x38] sm:$0x1] }
  0x39   :  { %1042 = vmatpush.bf16.msrb.mxu1 %v1394_v62  ;;  %v1943_v30 = vld [vmem:[%s3110_s0 + $0x20] sm:$0xf0]  ;;  %v1618_v35 = vor.u32 %v2008_v26, %v1615_v27  ;;  %v1903_v41 = vld [vmem:[%s3109_s1 + $0x450] sm:$0xf0]  ;;  %v1861_v15 = vld [vmem:[%s3109_s1 + $0x3e8] sm:$0xf]  ;;  %v201_v23 = vunpack.c.l.b16 %v23_v14 }
  0x3a   :  { %1060 = vmatpush.bf16.msrb.mxu2 %v1522_v58  ;;  %v2080_v38 = vld [vmem:[%s3109_s1 + $0x444] sm:$0xf]  ;;  %v2579_v39 = vor.u32 %v1943_v30, %v1353_v28  ;;  %v1791_v44 = vld [vmem:[%s3109_s1 + $0x370] sm:$0xf0]  ;;  %v1413_v18 = vld [vmem:[%s3109_s1 + $0x68] sm:$0xf]  ;;  %v1862_v26 = vor.u32 %v2071_v16, %v1861_v15 }
  0x3b   :  { %1092 = vmatpush.bf16.msra.mxu0 %v1842_v5  ;;  %1078 = vmatpush.bf16.msrb.mxu3 %v1650_v6  ;;  %v2052_v43 = vld [vmem:[%s3109_s1 + $0x364] sm:$0xf]  ;;  %v1906_v56 = vor.u32 %v2080_v38, %v1903_v41  ;;  %v1887_v61 = vld [vmem:[%s3109_s1 + $0x430] sm:$0xf0]  ;;  %v1557_v5 = vld [vmem:[%s3109_s1 + $0x188] sm:$0xf] }
  0x3c   :  { %v1794_v58 = vor.u32 %v2052_v43, %v1791_v44  ;;  %v2076_v59 = vld [vmem:[%s3109_s1 + $0x424] sm:$0xf]  ;;  %v1775_v63 = vld [vmem:[%s3109_s1 + $0x350] sm:$0xf0]  ;;  %v1995_v6 = vld [vmem:[%s3109_s1 + $0x194] sm:$0xf0] }
  0x3d   :  { %1043 = vmatpush.bf16.msrb.mxu1 %v1378_v11  ;;  %v2048_v62 = vld [vmem:[%s3109_s1 + $0x344] sm:$0xf]  ;;  %v1759_v11 = vld [vmem:[%s3109_s1 + $0x330] sm:$0xf0]  ;;  %v1959_v19 = vld [vmem:[%s3109_s1 + $0x74] sm:$0xf0] }
  0x3e   :  { %1061 = vmatpush.bf16.msrb.mxu2 %v1506_v7  ;;  %v1890_v7 = vor.u32 %v2076_v59, %v1887_v61  ;;  %v1778_v8 = vor.u32 %v2048_v62, %v1775_v63  ;;  %v2044_v9 = vld [vmem:[%s3109_s1 + $0x324] sm:$0xf]  ;;  %v1871_v13 = vld [vmem:[%s3109_s1 + $0x410] sm:$0xf0]  ;;  %v1541_v27 = vld [vmem:[%s3109_s1 + $0x168] sm:$0xf] }
  0x3f   :  { %1093 = vmatpush.bf16.msra.mxu0 %v1826_v20  ;;  %1079 = vmatpush.bf16.msrb.mxu3 %v1634_v21  ;;  %v2072_v12 = vld [vmem:[%s3109_s1 + $0x404] sm:$0xf]  ;;  %v1762_v20 = vor.u32 %v2044_v9, %v1759_v11  ;;  %v1991_v28 = vld [vmem:[%s3109_s1 + $0x174] sm:$0xf0]  ;;  %v1397_v30 = vld [vmem:[%s3109_s1 + $0x48] sm:$0xf] }
  0x40   :  { %v1874_v21 = vor.u32 %v2072_v12, %v1871_v13  ;;  %v2040_v24 = vld [vmem:[%s3109_s1 + $0x304] sm:$0xf]  ;;  %v1955_v31 = vld [vmem:[%s3109_s1 + $0x54] sm:$0xf0]  ;;  %v1845_v37 = vld [vmem:[%s3109_s1 + $0x3c8] sm:$0xf] }
  0x41   :  { %1044 = vmatpush.bf16.msrb.mxu1 %v1362_v25  ;;  %v1743_v25 = vld [vmem:[%s3109_s1 + $0x310] sm:$0xf0]  ;;  %v2039_v36 = vld [vmem:[%s3109_s1 + $0x2f4] sm:$0xf0]  ;;  %v1398_v43 = vor.u32 %v1955_v31, %v1397_v30  ;;  %v1381_v44 = vld [vmem:[%s3109_s1 + $0x28] sm:$0xf] }
  0x42   :  { %1062 = vmatpush.bf16.msrb.mxu2 %v1490_v22  ;;  %v1558_v22 = vor.u32 %v1995_v6, %v1557_v5  ;;  %v1746_v32 = vor.u32 %v2040_v24, %v1743_v25  ;;  %v2067_v38 = vld [vmem:[%s3109_s1 + $0x3d4] sm:$0xf0]  ;;  %v1365_v63 = vld [vmem:[%s3109_s1 + $0x8] sm:$0xf]  ;;  %v1973_v13 = vld [vmem:[%s3109_s1 + $0xec] sm:$0xf] }
  0x43   :  { %1094 = vmatpush.bf16.msra.mxu0 %v1810_v34  ;;  %1080 = vmatpush.bf16.msrb.mxu3 %v1618_v35  ;;  %v2685_v34 = vpack.c.b16 %v201_v23, %v201_v23  ;;  %v1542_v35 = vor.u32 %v1991_v28, %v1541_v27  ;;  %v1987_v41 = vld [vmem:[%s3109_s1 + $0x154] sm:$0xf0]  ;;  %v1846_v51 = vor.u32 %v2067_v38, %v1845_v37  ;;  %v1493_v1 = vld [vmem:[%s3109_s1 + $0x108] sm:$0xf]  ;;  %v1479_v14 = vld [vmem:[%s3109_s1 + $0xf8] sm:$0xf0] }
  0x44   :  { %1931 = vmatmul.msk.bf16.vlgmr.msrb.gmra.mxu0 %vm940_vm0, %v2579_v39  ;;  %1045 = vmatmul.bf16.vlgmr.msrb.gmra.mxu1 %v2345_v48  ;;  %v1951_v45 = vld [vmem:[%s3109_s1 + $0x34] sm:$0xf0]  ;;  %v1909_v16 = vld [vmem:[%s3109_s1 + $0x448] sm:$0xf]  ;;  %v1482_v23 = vor.u32 %v1973_v13, %v1479_v14  ;;  %v1463_v27 = vld [vmem:[%s3109_s1 + $0xd8] sm:$0xf0] }
  0x45   :  { %1113 = vmatpush.bf16.msra.mxu1 %v1922_v33  ;;  %1063 = vmatmul.bf16.vlgmr.msrb.gmra.mxu2 %v2356_v53  ;;  %v1733_v33 = vld [vmem:[%s3109_s1 + $0x2e8] sm:$0xf]  ;;  %v2063_v59 = vld [vmem:[%s3109_s1 + $0x3b4] sm:$0xf0]  ;;  %v1382_v62 = vor.u32 %v1951_v45, %v1381_v44  ;;  %v1957_v13 = vld [vmem:[%s3109_s1 + $0x6c] sm:$0xf] }
  0x46   :  { %1127 = vmatpush.bf16.msra.mxu2 %v1478_v29  ;;  %1081 = vmatmul.bf16.vlgmr.msrb.gmra.mxu3 %v2358_v54  ;;  %v1414_v29 = vor.u32 %v1959_v19, %v1413_v18  ;;  %v1734_v46 = vor.u32 %v2039_v36, %v1733_v33  ;;  %v1983_v61 = vld [vmem:[%s3109_s1 + $0x134] sm:$0xf0]  ;;  %v1797_v24 = vld [vmem:[%s3109_s1 + $0x368] sm:$0xf]  ;;  %v1415_v14 = vld [vmem:[%s3109_s1 + $0x78] sm:$0xf0] }
  0x47   :  { %1145 = vmatpush.bf16.msra.mxu3 %v1606_v40  ;;  %1095 = vmatpush.bf16.msra.mxu0 %v1794_v58  ;;  %v1525_v40 = vld [vmem:[%s3109_s1 + $0x148] sm:$0xf]  ;;  %v1947_v0 = vld [vmem:[%s3109_s1 + $0x14] sm:$0xf0] }
  0x48   :  { %v1526_v55 = vor.u32 %v1987_v41, %v1525_v40  ;;  %v1829_v58 = vld [vmem:[%s3109_s1 + $0x3a8] sm:$0xf]  ;;  %v2087_v6 = vld [vmem:[%s3109_s1 + $0x474] sm:$0xf0]  ;;  %v1366_v12 = vor.u32 %v1947_v0, %v1365_v63  ;;  %v1965_v40 = vld [vmem:[%s3109_s1 + $0xac] sm:$0xf] }
  0x49   :  { %1114 = vmatpush.bf16.msra.mxu1 %v1906_v56  ;;  %v2035_v56 = vld [vmem:[%s3109_s1 + $0x2d4] sm:$0xf0]  ;;  %v1830_v4 = vor.u32 %v2063_v59, %v1829_v58  ;;  %v1893_v30 = vld [vmem:[%s3109_s1 + $0x428] sm:$0xf]  ;;  %v1447_v41 = vld [vmem:[%s3109_s1 + $0xb8] sm:$0xf0] }
  0x4a   :  { %1128 = vmatpush.bf16.msra.mxu2 %v1462_v50  ;;  %v1717_v50 = vld [vmem:[%s3109_s1 + $0x2c8] sm:$0xf]  ;;  %v1979_v9 = vld [vmem:[%s3109_s1 + $0x114] sm:$0xf0]  ;;  %v2069_v59 = vld [vmem:[%s3109_s1 + $0x3ec] sm:$0xf] }
  0x4b   :  { %1146 = vmatpush.bf16.msra.mxu3 %v1590_v60  ;;  %1096 = vmatpush.bf16.msra.mxu0 %v1778_v8  ;;  %v1509_v60 = vld [vmem:[%s3109_s1 + $0x128] sm:$0xf]  ;;  %v1718_v3 = vor.u32 %v2035_v56, %v1717_v50  ;;  %v2031_v8 = vld [vmem:[%s3109_s1 + $0x2b4] sm:$0xf0]  ;;  %v1494_v18 = vor.u32 %v1979_v9, %v1493_v1  ;;  %v1431_v0 = vld [vmem:[%s3109_s1 + $0x98] sm:$0xf0] }
  0x4c   :  { %v1510_v5 = vor.u32 %v1983_v61, %v1509_v60  ;;  %v2059_v11 = vld [vmem:[%s3109_s1 + $0x394] sm:$0xf0]  ;;  %v1781_v36 = vld [vmem:[%s3109_s1 + $0x348] sm:$0xf]  ;;  %v1863_v60 = vld [vmem:[%s3109_s1 + $0x3f8] sm:$0xf0]  ;;  %v1450_v61 = vor.u32 %v1965_v40, %v1447_v41 }
  0x4d   :  { %1115 = vmatpush.bf16.msra.mxu1 %v1890_v7  ;;  %v1701_v7 = vld [vmem:[%s3109_s1 + $0x2a8] sm:$0xf]  ;;  %v2083_v19 = vld [vmem:[%s3109_s1 + $0x454] sm:$0xf0]  ;;  %v1735_v9 = vld [vmem:[%s3109_s1 + $0x2f8] sm:$0xf0] }
  0x4e   :  { %1129 = vmatpush.bf16.msra.mxu2 %v1446_v2  ;;  %v1925_v2 = vld [vmem:[%s3109_s1 + $0x468] sm:$0xf]  ;;  %v2055_v25 = vld [vmem:[%s3109_s1 + $0x374] sm:$0xf0]  ;;  %v1910_v28 = vor.u32 %v2083_v19, %v1909_v16  ;;  %v1953_v19 = vld [vmem:[%s3109_s1 + $0x4c] sm:$0xf] }
  0x4f   :  { %1147 = vmatpush.bf16.msra.mxu3 %v1574_v10  ;;  %1097 = vmatpush.bf16.msra.mxu0 %v1762_v20  ;;  %v1813_v10 = vld [vmem:[%s3109_s1 + $0x388] sm:$0xf]  ;;  %v1926_v15 = vor.u32 %v2087_v6, %v1925_v2  ;;  %v2079_v31 = vld [vmem:[%s3109_s1 + $0x434] sm:$0xf0]  ;;  %v1798_v33 = vor.u32 %v2055_v25, %v1797_v24  ;;  %v2005_v24 = vld [vmem:[%s3109_s1 + $0x1ec] sm:$0xf] }
  0x50   :  { %v1685_v20 = vld [vmem:[%s3109_s1 + $0x288] sm:$0xf]  ;;  %v2051_v37 = vld [vmem:[%s3109_s1 + $0x354] sm:$0xf0]  ;;  %v1607_v25 = vld [vmem:[%s3109_s1 + $0x1f8] sm:$0xf0] }
  0x51   :  { %1116 = vmatpush.bf16.msra.mxu1 %v1874_v21  ;;  %v2027_v21 = vld [vmem:[%s3109_s1 + $0x294] sm:$0xf0]  ;;  %v1653_v45 = vld [vmem:[%s3109_s1 + $0x248] sm:$0xf]  ;;  %v2029_v41 = vld [vmem:[%s3109_s1 + $0x2ac] sm:$0xf] }
  0x52   :  { %1130 = vmatpush.bf16.msra.mxu2 %v1430_v17  ;;  %v1702_v17 = vor.u32 %v2031_v8, %v1701_v7  ;;  %v1877_v50 = vld [vmem:[%s3109_s1 + $0x408] sm:$0xf]  ;;  %v2047_v58 = vld [vmem:[%s3109_s1 + $0x334] sm:$0xf0]  ;;  %v1866_v7 = vor.u32 %v2069_v59, %v1863_v60  ;;  %v2037_v8 = vld [vmem:[%s3109_s1 + $0x2ec] sm:$0xf] }
  0x53   :  { %1148 = vmatpush.bf16.msra.mxu3 %v1558_v22  ;;  %1098 = vmatpush.bf16.msra.mxu0 %v1746_v32  ;;  %v1814_v22 = vor.u32 %v2059_v11, %v1813_v10  ;;  %v1669_v32 = vld [vmem:[%s3109_s1 + $0x268] sm:$0xf]  ;;  %v2043_v6 = vld [vmem:[%s3109_s1 + $0x314] sm:$0xf0]  ;;  %v2065_v10 = vld [vmem:[%s3109_s1 + $0x3cc] sm:$0xf] }
  0x54   :  { %1932 = vmatmul.msk.bf16.gmra.mxu0 %vm940_vm0, %v2685_v34  ;;  %1050 = vmatmul.bf16.gmra.mxu1 %v2459_v42  ;;  %v1765_v56 = vld [vmem:[%s3109_s1 + $0x328] sm:$0xf]  ;;  %v1847_v11 = vld [vmem:[%s3109_s1 + $0x3d8] sm:$0xf0] }
  0x55   :  { %1181 = vmatpush.bf16.msrb.mxu1 %v1862_v26  ;;  %1068 = vmatmul.bf16.gmra.mxu2 %v2470_v47  ;;  %v1969_v26 = vld [vmem:[%s3109_s1 + $0xcc] sm:$0xf]  ;;  %v1637_v2 = vld [vmem:[%s3109_s1 + $0x228] sm:$0xf]  ;;  %v1575_v59 = vld [vmem:[%s3109_s1 + $0x1b8] sm:$0xf0] }
  0x56   :  { %1131 = vmatpush.bf16.msra.mxu2 %v1414_v29  ;;  %1086 = vmatmul.bf16.gmra.mxu3 %v2472_v49  ;;  %v1686_v29 = vor.u32 %v2027_v21, %v1685_v20  ;;  %v1466_v38 = vor.u32 %v1969_v26, %v1463_v27  ;;  %v1418_v20 = vor.u32 %v1957_v13, %v1415_v14  ;;  %v1399_v21 = vld [vmem:[%s3109_s1 + $0x58] sm:$0xf0]  ;;  %v2033_v26 = vld [vmem:[%s3109_s1 + $0x2cc] sm:$0xf] }
  0x57   :  { %1149 = vmatpush.bf16.msra.mxu3 %v1542_v35  ;;  %1163 = vmatpush.bf16.msrb.mxu0 %v1734_v46  ;;  %v2023_v35 = vld [vmem:[%s3109_s1 + $0x274] sm:$0xf0]  ;;  %v1782_v46 = vor.u32 %v2051_v37, %v1781_v36  ;;  %v1719_v27 = vld [vmem:[%s3109_s1 + $0x2d8] sm:$0xf0]  ;;  %v2001_v36 = vld [vmem:[%s3109_s1 + $0x1cc] sm:$0xf] }
  0x58   :  { %v1670_v44 = vor.u32 %v2023_v35, %v1669_v32  ;;  %v1949_v32 = vld [vmem:[%s3109_s1 + $0x2c] sm:$0xf]  ;;  %v1610_v35 = vor.u32 %v2005_v24, %v1607_v25  ;;  %v1591_v37 = vld [vmem:[%s3109_s1 + $0x1d8] sm:$0xf0] }
  0x59   :  { %1182 = vmatpush.bf16.msrb.mxu1 %v1846_v51  ;;  %v2075_v51 = vld [vmem:[%s3109_s1 + $0x414] sm:$0xf0]  ;;  %v1989_v13 = vld [vmem:[%s3109_s1 + $0x16c] sm:$0xf] }
  0x5a   :  { %1132 = vmatpush.bf16.msra.mxu2 %v1398_v43  ;;  %v1894_v43 = vor.u32 %v2079_v31, %v1893_v30  ;;  %v1878_v63 = vor.u32 %v2075_v51, %v1877_v50  ;;  %v1402_v31 = vor.u32 %v1953_v19, %v1399_v21  ;;  %v1945_v50 = vld [vmem:[%s3109_s1 + $0xc] sm:$0xf]  ;;  %v1367_v51 = vld [vmem:[%s3109_s1 + $0x18] sm:$0xf0] }
  0x5b   :  { %1150 = vmatpush.bf16.msra.mxu3 %v1526_v55  ;;  %1164 = vmatpush.bf16.msrb.mxu0 %v1718_v3  ;;  %v2019_v55 = vld [vmem:[%s3109_s1 + $0x254] sm:$0xf0]  ;;  %v2021_v14 = vld [vmem:[%s3109_s1 + $0x26c] sm:$0xf]  ;;  %v1783_v19 = vld [vmem:[%s3109_s1 + $0x358] sm:$0xf0] }
  0x5c   :  { %v1654_v1 = vor.u32 %v2019_v55, %v1653_v45  ;;  %v2015_v3 = vld [vmem:[%s3109_s1 + $0x234] sm:$0xf0]  ;;  %v1815_v45 = vld [vmem:[%s3109_s1 + $0x398] sm:$0xf0]  ;;  %v1594_v55 = vor.u32 %v2001_v36, %v1591_v37  ;;  %v1985_v25 = vld [vmem:[%s3109_s1 + $0x14c] sm:$0xf] }
  0x5d   :  { %1183 = vmatpush.bf16.msrb.mxu1 %v1830_v4  ;;  %v1766_v4 = vor.u32 %v2047_v58, %v1765_v56  ;;  %v2085_v56 = vld [vmem:[%s3109_s1 + $0x46c] sm:$0xf]  ;;  %v1895_v21 = vld [vmem:[%s3109_s1 + $0x438] sm:$0xf0] }
  0x5e   :  { %1133 = vmatpush.bf16.msra.mxu2 %v1382_v62  ;;  %v1961_v62 = vld [vmem:[%s3109_s1 + $0x8c] sm:$0xf] }
  0x5f   :  { %1151 = vmatpush.bf16.msra.mxu3 %v1510_v5  ;;  %1165 = vmatpush.bf16.msrb.mxu0 %v1702_v17  ;;  %v1749_v5 = vld [vmem:[%s3109_s1 + $0x308] sm:$0xf]  ;;  %v1738_v17 = vor.u32 %v2037_v8, %v1735_v9  ;;  %v1997_v58 = vld [vmem:[%s3109_s1 + $0x1ac] sm:$0xf] }
  0x60   :  { %v1750_v16 = vor.u32 %v2043_v6, %v1749_v5  ;;  %v1993_v6 = vld [vmem:[%s3109_s1 + $0x18c] sm:$0xf] }
  0x61   :  { %1184 = vmatpush.bf16.msrb.mxu1 %v1814_v22  ;;  %v1621_v22 = vld [vmem:[%s3109_s1 + $0x208] sm:$0xf]  ;;  %v2081_v9 = vld [vmem:[%s3109_s1 + $0x44c] sm:$0xf] }
  0x62   :  { %1134 = vmatpush.bf16.msra.mxu2 %v1366_v12  ;;  %v1434_v12 = vor.u32 %v1961_v62, %v1431_v0  ;;  %v1927_v62 = vld [vmem:[%s3109_s1 + $0x478] sm:$0xf0] }
  0x63   :  { %1152 = vmatpush.bf16.msra.mxu3 %v1494_v18  ;;  %1166 = vmatpush.bf16.msrb.mxu0 %v1686_v29  ;;  %v1850_v18 = vor.u32 %v2065_v10, %v1847_v11  ;;  %v1831_v29 = vld [vmem:[%s3109_s1 + $0x3b8] sm:$0xf0]  ;;  %v1930_v5 = vor.u32 %v2085_v56, %v1927_v62 }
  0x64   :  { %1099 = vmatmul.bf16.vlgmr.msra.gmra.mxu0 %v2366_v57  ;;  %1933 = vmatmul.msk.bf16.vlgmr.msra.gmra.mxu1 %vm940_vm0, %v2579_v39  ;;  %v1687_v0 = vld [vmem:[%s3109_s1 + $0x298] sm:$0xf0] }
  0x65   :  { %1185 = vmatpush.bf16.msrb.mxu1 %v1798_v33  ;;  %1135 = vmatmul.bf16.vlgmr.msra.gmra.mxu2 %v2345_v48  ;;  %v1383_v33 = vld [vmem:[%s3109_s1 + $0x38] sm:$0xf0] }
  0x66   :  { %1203 = vmatpush.bf16.msrb.mxu2 %v1926_v15  ;;  %1153 = vmatmul.bf16.vlgmr.msra.gmra.mxu3 %v2356_v53  ;;  %v1638_v15 = vor.u32 %v2015_v3, %v1637_v2  ;;  %v1799_v2 = vld [vmem:[%s3109_s1 + $0x378] sm:$0xf0]  ;;  %v1370_v3 = vor.u32 %v1945_v50, %v1367_v51 }
  0x67   :  { %1217 = vmatpush.bf16.msrb.mxu3 %v1482_v23  ;;  %1167 = vmatpush.bf16.msrb.mxu0 %v1670_v44  ;;  %v2011_v23 = vld [vmem:[%s3109_s1 + $0x214] sm:$0xf0]  ;;  %v2057_v44 = vld [vmem:[%s3109_s1 + $0x38c] sm:$0xf]  ;;  %v1911_v10 = vld [vmem:[%s3109_s1 + $0x458] sm:$0xf0] }
  0x68   :  { %v1622_v30 = vor.u32 %v2011_v23, %v1621_v22  ;;  %v1623_v56 = vld [vmem:[%s3109_s1 + $0x218] sm:$0xf0] }
  0x69   :  { %1186 = vmatpush.bf16.msrb.mxu1 %v1782_v46  ;;  %v1386_v46 = vor.u32 %v1949_v32, %v1383_v33  ;;  %v2073_v32 = vld [vmem:[%s3109_s1 + $0x40c] sm:$0xf]  ;;  %v1879_v33 = vld [vmem:[%s3109_s1 + $0x418] sm:$0xf0] }
  0x6a   :  { %1204 = vmatpush.bf16.msrb.mxu2 %v1910_v28  ;;  %v2061_v28 = vld [vmem:[%s3109_s1 + $0x3ac] sm:$0xf] }
  0x6b   :  { %1218 = vmatpush.bf16.msrb.mxu3 %v1466_v38  ;;  %1168 = vmatpush.bf16.msrb.mxu0 %v1654_v1  ;;  %v1722_v38 = vor.u32 %v2033_v26, %v1719_v27  ;;  %v1834_v40 = vor.u32 %v2061_v28, %v1831_v29  ;;  %v2053_v1 = vld [vmem:[%s3109_s1 + $0x36c] sm:$0xf]  ;;  %v1655_v27 = vld [vmem:[%s3109_s1 + $0x258] sm:$0xf0] }
  0x6c   :  { %v1802_v11 = vor.u32 %v2053_v1, %v1799_v2  ;;  %v2017_v26 = vld [vmem:[%s3109_s1 + $0x24c] sm:$0xf]  ;;  %v1527_v29 = vld [vmem:[%s3109_s1 + $0x158] sm:$0xf0] }
  0x6d   :  { %1187 = vmatpush.bf16.msrb.mxu1 %v1766_v4  ;;  %v1578_v4 = vor.u32 %v1997_v58, %v1575_v59  ;;  %v1530_v36 = vor.u32 %v1985_v25, %v1527_v29  ;;  %v1977_v58 = vld [vmem:[%s3109_s1 + $0x10c] sm:$0xf]  ;;  %v1495_v59 = vld [vmem:[%s3109_s1 + $0x118] sm:$0xf0] }
  0x6e   :  { %1205 = vmatpush.bf16.msrb.mxu2 %v1894_v43  ;;  %v1703_v43 = vld [vmem:[%s3109_s1 + $0x2b8] sm:$0xf0] }
  0x6f   :  { %1219 = vmatpush.bf16.msrb.mxu3 %v1450_v61  ;;  %1169 = vmatpush.bf16.msrb.mxu0 %v1638_v15  ;;  %v1706_v60 = vor.u32 %v2029_v41, %v1703_v43  ;;  %v1818_v61 = vor.u32 %v2057_v44, %v1815_v45  ;;  %v1671_v15 = vld [vmem:[%s3109_s1 + $0x278] sm:$0xf0]  ;;  %v1882_v43 = vor.u32 %v2073_v32, %v1879_v33  ;;  %v2041_v44 = vld [vmem:[%s3109_s1 + $0x30c] sm:$0xf] }
  0x70   :  { %v1674_v22 = vor.u32 %v2021_v14, %v1671_v15  ;;  %v1639_v41 = vld [vmem:[%s3109_s1 + $0x238] sm:$0xf0] }
  0x71   :  { %1188 = vmatpush.bf16.msrb.mxu1 %v1750_v16  ;;  %v1914_v16 = vor.u32 %v2081_v9, %v1911_v10  ;;  %v1751_v45 = vld [vmem:[%s3109_s1 + $0x318] sm:$0xf0] }
  0x72   :  { %1206 = vmatpush.bf16.msrb.mxu2 %v1878_v63  ;;  %v2025_v63 = vld [vmem:[%s3109_s1 + $0x28c] sm:$0xf]  ;;  %v1754_v51 = vor.u32 %v2041_v44, %v1751_v45 }
  0x73   :  { %1220 = vmatpush.bf16.msrb.mxu3 %v1434_v12  ;;  %1170 = vmatpush.bf16.msrb.mxu0 %v1622_v30  ;;  %v1690_v8 = vor.u32 %v2025_v63, %v1687_v0  ;;  %v2045_v30 = vld [vmem:[%s3109_s1 + $0x32c] sm:$0xf] }
  0x74   :  { %1104 = vmatmul.bf16.gmra.mxu0 %v2480_v52  ;;  %1934 = vmatmul.msk.bf16.gmra.mxu1 %vm940_vm0, %v2685_v34 }
  0x75   :  { %1253 = vmatpush.bf16.msra.mxu1 %v1738_v17  ;;  %1140 = vmatmul.bf16.gmra.mxu2 %v2459_v42  ;;  %v1543_v17 = vld [vmem:[%s3109_s1 + $0x178] sm:$0xf0] }
  0x76   :  { %1271 = vmatpush.bf16.msra.mxu2 %v1866_v7  ;;  %1158 = vmatmul.bf16.gmra.mxu3 %v2470_v47  ;;  %v1559_v7 = vld [vmem:[%s3109_s1 + $0x198] sm:$0xf0]  ;;  %v1546_v23 = vor.u32 %v1989_v13, %v1543_v17 }
  0x77   :  { %1221 = vmatpush.bf16.msrb.mxu3 %v1418_v20  ;;  %1235 = vmatpush.bf16.msra.mxu0 %v1610_v35  ;;  %v1562_v12 = vor.u32 %v1993_v6, %v1559_v7  ;;  %v2077_v20 = vld [vmem:[%s3109_s1 + $0x42c] sm:$0xf]  ;;  %v1658_v35 = vor.u32 %v2017_v26, %v1655_v27 }
  0x78   :  { %v1898_v28 = vor.u32 %v2077_v20, %v1895_v21 }
  0x79   :  { %1254 = vmatpush.bf16.msra.mxu1 %v1722_v38  ;;  %v1981_v38 = vld [vmem:[%s3109_s1 + $0x12c] sm:$0xf] }
  0x7a   :  { %1272 = vmatpush.bf16.msra.mxu2 %v1850_v18  ;;  %v2049_v18 = vld [vmem:[%s3109_s1 + $0x34c] sm:$0xf] }
  0x7b   :  { %1222 = vmatpush.bf16.msrb.mxu3 %v1402_v31  ;;  %1236 = vmatpush.bf16.msra.mxu0 %v1594_v55  ;;  %v1786_v24 = vor.u32 %v2049_v18, %v1783_v19  ;;  %v1767_v31 = vld [vmem:[%s3109_s1 + $0x338] sm:$0xf0]  ;;  %v2009_v55 = vld [vmem:[%s3109_s1 + $0x20c] sm:$0xf] }
  0x7c   :  { %v1770_v37 = vor.u32 %v2045_v30, %v1767_v31 }
  0x7d   :  { %1255 = vmatpush.bf16.msra.mxu1 %v1706_v60  ;;  %v1626_v60 = vor.u32 %v2009_v55, %v1623_v56 }
  0x7e   :  { %1273 = vmatpush.bf16.msra.mxu2 %v1834_v40  ;;  %v2013_v40 = vld [vmem:[%s3109_s1 + $0x22c] sm:$0xf] }
  0x7f   :  { %1223 = vmatpush.bf16.msrb.mxu3 %v1386_v46  ;;  %1237 = vmatpush.bf16.msra.mxu0 %v1578_v4  ;;  %v1642_v46 = vor.u32 %v2013_v40, %v1639_v41 }
  0x81   :  { %1256 = vmatpush.bf16.msra.mxu1 %v1690_v8 }
  0x82   :  { %1274 = vmatpush.bf16.msra.mxu2 %v1818_v61  ;;  %v1498_v61 = vor.u32 %v1977_v58, %v1495_v59 }
  0x83   :  { %1224 = vmatpush.bf16.msrb.mxu3 %v1370_v3  ;;  %1238 = vmatpush.bf16.msra.mxu0 %v1562_v12 }
  0x84   :  { %1171 = vmatmul.bf16.vlgmr.msrb.gmra.mxu0 %v2358_v54  ;;  %1189 = vmatmul.bf16.vlgmr.msrb.gmra.mxu1 %v2366_v57 }
  0x85   :  { %1935 = vmatmul.msk.bf16.vlgmr.msrb.gmra.mxu2 %vm940_vm0, %v2579_v39  ;;  %1257 = vmatpush.bf16.msra.mxu1 %v1674_v22 }
  0x86   :  { %1275 = vmatpush.bf16.msra.mxu2 %v1802_v11  ;;  %1225 = vmatmul.bf16.vlgmr.msrb.gmra.mxu3 %v2345_v48  ;;  %v1511_v48 = vld [vmem:[%s3109_s1 + $0x138] sm:$0xf0] }
  0x87   :  { %1293 = vmatpush.bf16.msra.mxu3 %v1930_v5  ;;  %1239 = vmatpush.bf16.msra.mxu0 %v1546_v23  ;;  %v1514_v50 = vor.u32 %v1981_v38, %v1511_v48 }
  0x89   :  { %1258 = vmatpush.bf16.msra.mxu1 %v1658_v35 }
  0x8a   :  { %1276 = vmatpush.bf16.msra.mxu2 %v1786_v24 }
  0x8b   :  { %1294 = vmatpush.bf16.msra.mxu3 %v1914_v16  ;;  %1240 = vmatpush.bf16.msra.mxu0 %v1530_v36 }
  0x8d   :  { %1259 = vmatpush.bf16.msra.mxu1 %v1642_v46 }
  0x8e   :  { %1277 = vmatpush.bf16.msra.mxu2 %v1770_v37 }
  0x8f   :  { %1295 = vmatpush.bf16.msra.mxu3 %v1898_v28  ;;  %1241 = vmatpush.bf16.msra.mxu0 %v1514_v50 }
  0x91   :  { %1260 = vmatpush.bf16.msra.mxu1 %v1626_v60 }
  0x92   :  { %1278 = vmatpush.bf16.msra.mxu2 %v1754_v51 }
  0x93   :  { %1296 = vmatpush.bf16.msra.mxu3 %v1882_v43  ;;  %1242 = vmatpush.bf16.msra.mxu0 %v1498_v61 }
  0x94   :  { %1176 = vmatmul.bf16.gmra.mxu0 %v2472_v49  ;;  %1194 = vmatmul.bf16.gmra.mxu1 %v2480_v52 }
  0x95   :  { %1936 = vmatmul.msk.bf16.gmra.mxu2 %vm940_vm0, %v2685_v34 }
  0x96   :  { %1230 = vmatmul.bf16.gmra.mxu3 %v2459_v42 }
  0xa1   :  { %v956_v62 = vpop.f32.mrf.mxu0  ;;  %v974_v63 = vpop.f32.mrf.mxu1 }
  0xa4   :  { %1243 = vmatmul.bf16.vlgmr.msra.gmra.mxu0 %v2356_v53  ;;  %1261 = vmatmul.bf16.vlgmr.msra.gmra.mxu1 %v2358_v54 }
  0xa5   :  { %1279 = vmatmul.bf16.vlgmr.msra.gmra.mxu2 %v2366_v57 }
  0xa6   :  { %1937 = vmatmul.msk.bf16.vlgmr.msra.gmra.mxu3 %vm940_vm0, %v2579_v39 }
  0xa8   :  { %v992_v0 = vpop.f32.mrf.mxu2 }
  0xa9   :  { %v1010_v1 = vpop.f32.mrf.mxu3  ;;  %v958_v2 = vpop.f32.mrf.mxu0 }
  0xaa   :  { %v976_v3 = vpop.f32.mrf.mxu1 }
  0xb0   :  { %v994_v4 = vpop.f32.mrf.mxu2 }
  0xb1   :  { %v1012_v5 = vpop.f32.mrf.mxu3  ;;  %v961_v6 = vpop.f32.mrf.mxu0 }
  0xb2   :  { %v979_v7 = vpop.f32.mrf.mxu1 }
  0xb4   :  { %1248 = vmatmul.bf16.gmra.mxu0 %v2470_v47  ;;  %1266 = vmatmul.bf16.gmra.mxu1 %v2472_v49  ;;  %v3084_v49 = vld [vmem:[%s3111_s2] sm:$0xf] }
  0xb5   :  { %1284 = vmatmul.bf16.gmra.mxu2 %v2480_v52  ;;  %v170_v52 = vperm.slane %v3084_v49, 0  ;;  %v171_v18 = vperm.slane %v3084_v49, 1 }
  0xb6   :  { %1938 = vmatmul.msk.bf16.gmra.mxu3 %vm940_vm0, %v2685_v34 }
  0xb7   :  { %v957_v17 = vadd.f32 %v956_v62, %v170_v52  ;;  %v959_v27 = vadd.f32 %v958_v2, %v170_v52  ;;  %v962_v41 = vadd.f32 %v961_v6, %v170_v52 }
  0xb8   :  { %v997_v53 = vpop.f32.mrf.mxu2 }
  0xb9   :  { %v3079_v54 = vpop.f32.mrf.mxu3  ;;  %v963_v57 = vpop.f32.mrf.mxu0  ;;  %v975_v19 = vadd.f32 %v974_v63, %v957_v17  ;;  %v977_v31 = vadd.f32 %v976_v3, %v959_v27  ;;  %v980_v50 = vadd.f32 %v979_v7, %v962_v41  ;;  %v172_v27 = vperm.slane %v3084_v49, 2 }
  0xba   :  { %v981_v42 = vpop.f32.mrf.mxu1 }
  0xbb   :  { %v993_v25 = vadd.f32 %v992_v0, %v975_v19  ;;  %v995_v40 = vadd.f32 %v994_v4, %v977_v31  ;;  %v998_v0 = vadd.f32 %v997_v53, %v980_v50 }
  0xbd   :  { %v1011_v28 = vadd.f32 %v1010_v1, %v993_v25  ;;  %v1013_v46 = vadd.f32 %v1012_v5, %v995_v40  ;;  %v1016_v5 = vadd.f32 %v3079_v54, %v998_v0 }
  0xc0   :  { %v999_v39 = vpop.f32.mrf.mxu2 }
  0xc1   :  { %v1017_v8 = vpop.f32.mrf.mxu3  ;;  %v1028_v9 = vpop.f32.mrf.mxu0 }
  0xc2   :  { %v1046_v10 = vpop.f32.mrf.mxu1  ;;  %v1029_v35 = vadd.f32 %v1028_v9, %v1011_v28 }
  0xc3   :  { %v1047_v20 = vadd.f32 %v1046_v10, %v171_v18 }
  0xc4   :  { %v1307_v44 = vmax.f32 %v1029_v35, 0.0 }
  0xc8   :  { %v1064_v11 = vpop.f32.mrf.mxu2 }
  0xc9   :  { %v1082_v12 = vpop.f32.mrf.mxu3  ;;  %v1030_v13 = vpop.f32.mrf.mxu0  ;;  %v1065_v26 = vadd.f32 %v1064_v11, %v1047_v20 }
  0xca   :  { %v1048_v47 = vpop.f32.mrf.mxu1  ;;  %v1031_v61 = vadd.f32 %v1030_v13, %v1013_v46 }
  0xcb   :  { %v1083_v29 = vadd.f32 %v1082_v12, %v1065_v26  ;;  %v1049_v36 = vadd.f32 %v1048_v47, %v171_v18 }
  0xcc   :  { %v1311_v3 = vmax.f32 %v1031_v61, 0.0 }
  0xd0   :  { %v1066_v34 = vpop.f32.mrf.mxu2 }
  0xd1   :  { %v1084_v14 = vpop.f32.mrf.mxu3  ;;  %v1033_v15 = vpop.f32.mrf.mxu0  ;;  %v1067_v48 = vadd.f32 %v1066_v34, %v1049_v36 }
  0xd2   :  { %v1051_v16 = vpop.f32.mrf.mxu1  ;;  %v1034_v8 = vadd.f32 %v1033_v15, %v1016_v5 }
  0xd3   :  { %v1085_v51 = vadd.f32 %v1084_v14, %v1067_v48  ;;  %v1052_v55 = vadd.f32 %v1051_v16, %v171_v18 }
  0xd4   :  { %v1315_v53 = vmax.f32 %v1034_v8, 0.0 }
  0xd8   :  { %v1069_v21 = vpop.f32.mrf.mxu2 }
  0xd9   :  { %v1087_v22 = vpop.f32.mrf.mxu3  ;;  %v1035_v23 = vpop.f32.mrf.mxu0  ;;  %v1070_v1 = vadd.f32 %v1069_v21, %v1052_v55 }
  0xda   :  { %v1053_v24 = vpop.f32.mrf.mxu1 }
  0xdb   :  { %v1088_v6 = vadd.f32 %v1087_v22, %v1070_v1 }
  0xe0   :  { %v1071_v30 = vpop.f32.mrf.mxu2 }
  0xe1   :  { %v1089_v32 = vpop.f32.mrf.mxu3  ;;  %v1100_v33 = vpop.f32.mrf.mxu0 }
  0xe2   :  { %v1101_v37 = vadd.f32 %v1100_v33, %v1083_v29  ;;  %v1118_v38 = vpop.f32.mrf.mxu1  ;;  %v173_v32 = vperm.slane %v3084_v49, 3 }
  0xe4   :  { %v1119_v43 = vadd.f32 %v1118_v38, %v1101_v37 }
  0xe6   :  { %v1308_v45 = vmax.f32 %v1119_v43, 0.0 }
  0xe8   :  { %v1319_v56 = vpack.c.bf16 %v1308_v45, %v1307_v44  ;;  %v1136_v58 = vpop.f32.mrf.mxu2 }
  0xe9   :  { %v1154_v59 = vpop.f32.mrf.mxu3  ;;  %v1102_v60 = vpop.f32.mrf.mxu0  ;;  %v1137_v31 = vadd.f32 %v1136_v58, %v172_v27 }
  0xea   :  { %1325 = vst [vmem:[%s3112_s3] sm:$0xff] %v1319_v56  ;;  %v1103_v62 = vadd.f32 %v1102_v60, %v1085_v51  ;;  %v1120_v63 = vpop.f32.mrf.mxu1 }
  0xeb   :  { %v1155_v35 = vadd.f32 %v1154_v59, %v1137_v31 }
  0xec   :  { %v1121_v2 = vadd.f32 %v1120_v63, %v1103_v62 }
  0xee   :  { %v1312_v4 = vmax.f32 %v1121_v2, 0.0 }
  0xf0   :  { %v1321_v7 = vpack.c.bf16 %v1312_v4, %v1311_v3  ;;  %v1138_v57 = vpop.f32.mrf.mxu2 }
  0xf1   :  { %v1156_v42 = vpop.f32.mrf.mxu3  ;;  %v1105_v39 = vpop.f32.mrf.mxu0  ;;  %v1139_v43 = vadd.f32 %v1138_v57, %v172_v27 }
  0xf2   :  { %1327 = vst [vmem:[%s3112_s3 + $0x10] sm:$0xff] %v1321_v7  ;;  %v1106_v9 = vadd.f32 %v1105_v39, %v1088_v6  ;;  %v1123_v10 = vpop.f32.mrf.mxu1 }
  0xf3   :  { %v1157_v50 = vadd.f32 %v1156_v42, %v1139_v43 }
  0xf4   :  { %v1124_v11 = vadd.f32 %v1123_v10, %v1106_v9 }
  0xf6   :  { %v1316_v12 = vmax.f32 %v1124_v11, 0.0 }
  0xf8   :  { %v1323_v13 = vpack.c.bf16 %v1316_v12, %v1315_v53  ;;  %v1141_v47 = vpop.f32.mrf.mxu2 }
  0xf9   :  { %v1159_v52 = vpop.f32.mrf.mxu3  ;;  %v1107_v34 = vpop.f32.mrf.mxu0  ;;  %v1142_v63 = vadd.f32 %v1141_v47, %v172_v27 }
  0xfa   :  { %1329 = vst [vmem:[%s3112_s3 + $0x20] sm:$0x11] %v1323_v13  ;;  %v1125_v54 = vpop.f32.mrf.mxu1 }
  0xfb   :  { %v1160_v6 = vadd.f32 %v1159_v52, %v1142_v63 }
 0x100   :  { %v1143_v14 = vpop.f32.mrf.mxu2 }
 0x101   :  { %v1161_v15 = vpop.f32.mrf.mxu3  ;;  %v1172_v16 = vpop.f32.mrf.mxu0 }
 0x102   :  { %v1190_v17 = vpop.f32.mrf.mxu1  ;;  %v1173_v41 = vadd.f32 %v1172_v16, %v1155_v35 }
 0x104   :  { %v1191_v44 = vadd.f32 %v1190_v17, %v1173_v41 }
 0x108   :  { %v1208_v18 = vpop.f32.mrf.mxu2 }
 0x109   :  { %v1226_v19 = vpop.f32.mrf.mxu3  ;;  %v1174_v20 = vpop.f32.mrf.mxu0  ;;  %v1209_v51 = vadd.f32 %v1208_v18, %v1191_v44 }
 0x10a   :  { %v1192_v21 = vpop.f32.mrf.mxu1  ;;  %v1227_v36 = vadd.f32 %v1226_v19, %v173_v32  ;;  %v1175_v49 = vadd.f32 %v1174_v20, %v1157_v50 }
 0x10b   :  { %v1309_v0 = vmax.f32 %v1209_v51, 0.0 }
 0x10c   :  { %v1193_v2 = vadd.f32 %v1192_v21, %v1175_v49 }
 0x110   :  { %v1210_v22 = vpop.f32.mrf.mxu2 }
 0x111   :  { %v1228_v23 = vpop.f32.mrf.mxu3  ;;  %v1177_v24 = vpop.f32.mrf.mxu0  ;;  %v1211_v7 = vadd.f32 %v1210_v22, %v1193_v2 }
 0x112   :  { %v1195_v25 = vpop.f32.mrf.mxu1  ;;  %v1229_v55 = vadd.f32 %v1228_v23, %v173_v32  ;;  %v1178_v10 = vadd.f32 %v1177_v24, %v1160_v6 }
 0x113   :  { %v1313_v12 = vmax.f32 %v1211_v7, 0.0 }
 0x114   :  { %v1196_v47 = vadd.f32 %v1195_v25, %v1178_v10 }
 0x118   :  { %v1213_v26 = vpop.f32.mrf.mxu2 }
 0x119   :  { %v1231_v28 = vpop.f32.mrf.mxu3  ;;  %v1179_v29 = vpop.f32.mrf.mxu0  ;;  %v1214_v52 = vadd.f32 %v1213_v26, %v1196_v47 }
 0x11a   :  { %v1197_v30 = vpop.f32.mrf.mxu1  ;;  %v1232_v57 = vadd.f32 %v1231_v28, %v173_v32 }
 0x11b   :  { %v1317_v20 = vmax.f32 %v1214_v52, 0.0 }
 0x120   :  { %v1215_v33 = vpop.f32.mrf.mxu2 }
 0x121   :  { %v1233_v37 = vpop.f32.mrf.mxu3  ;;  %v1244_v38 = vpop.f32.mrf.mxu0 }
 0x122   :  { %v1262_v40 = vpop.f32.mrf.mxu1  ;;  %v1245_v48 = vadd.f32 %v1244_v38, %v1227_v36 }
 0x124   :  { %v1263_v45 = vadd.f32 %v1262_v40, %v1245_v48 }
 0x128   :  { %v1280_v46 = vpop.f32.mrf.mxu2 }
 0x129   :  { %v1281_v56 = vadd.f32 %v1280_v46, %v1263_v45  ;;  %v1298_v60 = vpop.f32.mrf.mxu3  ;;  %v1246_v58 = vpop.f32.mrf.mxu0 }
 0x12a   :  { %v1264_v61 = vpop.f32.mrf.mxu1  ;;  %v1247_v59 = vadd.f32 %v1246_v58, %v1229_v55 }
 0x12b   :  { %v1299_v62 = vadd.f32 %v1298_v60, %v1281_v56 }
 0x12c   :  { %v1265_v4 = vadd.f32 %v1264_v61, %v1247_v59 }
 0x12d   :  { %v1310_v1 = vmax.f32 %v1299_v62, 0.0 }
 0x12f   :  { %v1320_v3 = vpack.c.bf16 %v1310_v1, %v1309_v0 }
 0x130   :  { %v1282_v5 = vpop.f32.mrf.mxu2 }
 0x131   :  { %1326 = vst [vmem:[%s3112_s3 + $0x8] sm:$0xff] %v1320_v3  ;;  %v1283_v42 = vadd.f32 %v1282_v5, %v1265_v4  ;;  %v1300_v39 = vpop.f32.mrf.mxu3  ;;  %v1249_v8 = vpop.f32.mrf.mxu0 }
 0x132   :  { %v1267_v9 = vpop.f32.mrf.mxu1  ;;  %v1250_v53 = vadd.f32 %v1249_v8, %v1232_v57 }
 0x133   :  { %v1301_v11 = vadd.f32 %v1300_v39, %v1283_v42 }
 0x134   :  { %v1268_v54 = vadd.f32 %v1267_v9, %v1250_v53 }
 0x135   :  { %v1314_v13 = vmax.f32 %v1301_v11, 0.0 }
 0x137   :  { %v1322_v34 = vpack.c.bf16 %v1314_v13, %v1313_v12 }
 0x138   :  { %v1285_v14 = vpop.f32.mrf.mxu2 }
 0x139   :  { %1328 = vst [vmem:[%s3112_s3 + $0x18] sm:$0xff] %v1322_v34  ;;  %v1286_v15 = vadd.f32 %v1285_v14, %v1268_v54  ;;  %v1303_v16 = vpop.f32.mrf.mxu3  ;;  %v1251_v17 = vpop.f32.mrf.mxu0 }
 0x13a   :  { %v1269_v18 = vpop.f32.mrf.mxu1 }
 0x13b   :  { %v1304_v19 = vadd.f32 %v1303_v16, %v1286_v15 }
 0x13d   :  { %v1318_v21 = vmax.f32 %v1304_v19, 0.0 }
 0x13f   :  { %v1324_v22 = vpack.c.bf16 %v1318_v21, %v1317_v20 }
 0x140   :  { %v1287_v23 = vpop.f32.mrf.mxu2 }
 0x141   :  { %1330 = vst [vmem:[%s3112_s3 + $0x28] sm:$0x11] %v1324_v22  ;;  %v1305_v24 = vpop.f32.mrf.mxu3 }

// kernel: regressor_forward.43
= control target key start
LH: loop header
LB: loop body
LE: loop exit
PB: predicated region body
PF: predicated region fallthrough
CT: control target
= control target key end

     0   :  { %vm64_vm0 = vcmask 1040384   ;;  %vm121_vm1 = vcmask 850944   ;;  %vm123_vm2 = vcmask 843776   ;;  %v368_v44 = vmov 9.0   ;;  %s520_s2 = inlined_call_operand.<no memory space> [shape: f32[1,1], index: 2, kind: input, shape index: {}]   ;;  %s521_s0 = inlined_call_operand.vmem [shape: bf16[2,9,1000], index: 0, kind: input, shape index: {}]   ;;  %s522_s1 = inlined_call_operand.vmem [shape: f32[1,1000], index: 1, kind: input, shape index: {}]   ;;  %s523_s3 = inlined_call_operand.vmem [shape: f32[2,1], index: 3, kind: output, shape index: {}]  }
   0x1   :  { %v8_v0 = vstv %s520_s2  ;;  %v20_v1 = vld [vmem:[%s521_s0 + $0x20] sm:$0x11]  ;;  %v21_v2 = vld [vmem:[%s521_s0 + $0x28] sm:$0x11]  ;;  %v22_v5 = vld [vmem:[%s521_s0 + $0x30] sm:$0x11]  ;;  %362 = vrcp.f32 %v368_v44 }
   0x2   :  { %9 = vst [vmem:[#allocation2] sm:$0x1] %v8_v0  ;;  %v16_v3 = vld [vmem:[%s521_s0] sm:$0xff]  ;;  %v17_v4 = vld [vmem:[%s521_s0 + $0x8] sm:$0xff]  ;;  %v18_v6 = vld [vmem:[%s521_s0 + $0x10] sm:$0xff]  ;;  %v40_v8 = vunpack.c.l.bf16 %v20_v1  ;;  %v41_v9 = vunpack.c.h.bf16 %v20_v1  ;;  %v42_v10 = vunpack.c.l.bf16 %v21_v2  ;;  %v43_v11 = vunpack.c.h.bf16 %v21_v2 }
   0x3   :  { %v23_v7 = vld [vmem:[%s521_s0 + $0x38] sm:$0x11]  ;;  %v32_v12 = vunpack.c.l.bf16 %v16_v3  ;;  %v33_v13 = vunpack.c.h.bf16 %v16_v3  ;;  %v34_v14 = vunpack.c.l.bf16 %v17_v4  ;;  %v35_v15 = vunpack.c.h.bf16 %v17_v4  ;;  %v423_v29 = vld [vmem:[%s521_s0 + $0x40] sm:$0xff]  ;;  %v431_v38 = vld [vmem:[%s521_s0 + $0x48] sm:$0xff] }
   0x4   :  { %v44_v16 = vunpack.c.l.bf16 %v22_v5  ;;  %v19_v17 = vld [vmem:[%s521_s0 + $0x18] sm:$0xff]  ;;  %v36_v18 = vunpack.c.l.bf16 %v18_v6  ;;  %v45_v19 = vunpack.c.h.bf16 %v22_v5  ;;  %v46_v20 = vunpack.c.l.bf16 %v23_v7  ;;  %v437_v45 = vld [vmem:[%s521_s0 + $0x50] sm:$0xff]  ;;  %v28_v55 = vld [vmem:[%s521_s0 + $0x60] sm:$0x11] }
   0x5   :  { %v65_v21 = vsel %vm64_vm0, %v40_v8, 0.0  ;;  %v73_v22 = vsel %vm64_vm0, %v41_v9, 0.0  ;;  %v81_v23 = vsel %vm64_vm0, %v42_v10, 0.0  ;;  %v89_v24 = vsel %vm64_vm0, %v43_v11, 0.0  ;;  %v442_v46 = vld [vmem:[%s521_s0 + $0x58] sm:$0xff] }
   0x6   :  { %v66_v25 = vadd.f32 %v65_v21, %v32_v12  ;;  %v74_v26 = vadd.f32 %v73_v22, %v33_v13  ;;  %v82_v27 = vadd.f32 %v81_v23, %v34_v14  ;;  %v90_v28 = vadd.f32 %v89_v24, %v35_v15  ;;  %v29_v56 = vld [vmem:[%s521_s0 + $0x68] sm:$0x11]  ;;  %v30_v61 = vld [vmem:[%s521_s0 + $0x70] sm:$0x11]  ;;  %v31_v2 = vld [vmem:[%s521_s0 + $0x78] sm:$0x11] }
   0x7   :  { %v37_v30 = vunpack.c.h.bf16 %v18_v6  ;;  %v38_v31 = vunpack.c.l.bf16 %v19_v17  ;;  %v39_v32 = vunpack.c.h.bf16 %v19_v17  ;;  %v97_v33 = vsel %vm64_vm0, %v44_v16, 0.0 }
   0x8   :  { %v47_v34 = vunpack.c.h.bf16 %v23_v7  ;;  %v67_v35 = vrot.slane %v66_v25, 4  ;;  %v105_v36 = vsel %vm64_vm0, %v45_v19, 0.0  ;;  %v113_v37 = vsel %vm64_vm0, %v46_v20, 0.0  ;;  %v465_v7 = vpop.eup %362 }
   0x9   :  { %v75_v39 = vrot.slane %v74_v26, 4  ;;  %v83_v40 = vrot.slane %v82_v27, 4  ;;  %v91_v41 = vrot.slane %v90_v28, 4  ;;  %v98_v42 = vadd.f32 %v97_v33, %v36_v18 }
   0xa   :  { %v48_v43 = vunpack.c.l.bf16 %v423_v29  ;;  %v49_v47 = vunpack.c.h.bf16 %v423_v29  ;;  %v68_v48 = vadd.f32 %v67_v35, %v66_v25  ;;  %v106_v49 = vadd.f32 %v105_v36, %v37_v30 }
   0xb   :  { %v114_v50 = vadd.f32 %v113_v37, %v38_v31  ;;  %v50_v51 = vunpack.c.l.bf16 %v431_v38  ;;  %v51_v52 = vunpack.c.h.bf16 %v431_v38  ;;  %v122_v53 = vsel %vm121_vm1, %v39_v32, 0.0 }
   0xc   :  { %v124_v54 = vsel %vm123_vm2, %v47_v34, 0.0  ;;  %v76_v57 = vadd.f32 %v75_v39, %v74_v26  ;;  %v84_v58 = vadd.f32 %v83_v40, %v82_v27  ;;  %v92_v59 = vadd.f32 %v91_v41, %v90_v28 }
   0xd   :  { %v99_v60 = vrot.slane %v98_v42, 4  ;;  %v52_v62 = vunpack.c.l.bf16 %v437_v45  ;;  %v53_v63 = vunpack.c.h.bf16 %v437_v45  ;;  %v54_v0 = vunpack.c.l.bf16 %v442_v46 }
   0xe   :  { %v55_v1 = vunpack.c.h.bf16 %v442_v46  ;;  %v69_v3 = vrot.slane %v68_v48, 2  ;;  %v107_v4 = vrot.slane %v106_v49, 4  ;;  %v115_v5 = vrot.slane %v114_v50, 4 }
   0xf   :  { %v125_v6 = vadd.f32 %v124_v54, %v122_v53  ;;  %v56_v8 = vunpack.c.l.bf16 %v28_v55  ;;  %v57_v9 = vunpack.c.h.bf16 %v28_v55  ;;  %v58_v10 = vunpack.c.l.bf16 %v29_v56 }
  0x10   :  { %v59_v11 = vunpack.c.h.bf16 %v29_v56  ;;  %v77_v12 = vrot.slane %v76_v57, 2  ;;  %v85_v13 = vrot.slane %v84_v58, 2  ;;  %v93_v14 = vrot.slane %v92_v59, 2 }
  0x11   :  { %v100_v15 = vadd.f32 %v99_v60, %v98_v42  ;;  %v60_v16 = vunpack.c.l.bf16 %v30_v61  ;;  %v61_v17 = vunpack.c.h.bf16 %v30_v61  ;;  %v62_v18 = vunpack.c.l.bf16 %v31_v2 }
  0x12   :  { %v63_v19 = vunpack.c.h.bf16 %v31_v2  ;;  %v70_v20 = vadd.f32 %v69_v3, %v68_v48  ;;  %v108_v21 = vadd.f32 %v107_v4, %v106_v49  ;;  %v116_v22 = vadd.f32 %v115_v5, %v114_v50 }
  0x13   :  { %v126_v23 = vrot.slane %v125_v6, 4  ;;  %v132_v24 = vsel %vm64_vm0, %v56_v8, 0.0  ;;  %v140_v25 = vsel %vm64_vm0, %v57_v9, 0.0  ;;  %v148_v26 = vsel %vm64_vm0, %v58_v10, 0.0 }
  0x14   :  { %v156_v27 = vsel %vm64_vm0, %v59_v11, 0.0  ;;  %v78_v28 = vadd.f32 %v77_v12, %v76_v57  ;;  %v471_v29 = vadd.f32 %v85_v13, %v84_v58  ;;  %v473_v30 = vadd.f32 %v93_v14, %v92_v59 }
  0x15   :  { %v101_v31 = vrot.slane %v100_v15, 2  ;;  %v133_v32 = vadd.f32 %v132_v24, %v48_v43  ;;  %v141_v33 = vadd.f32 %v140_v25, %v49_v47  ;;  %v149_v34 = vadd.f32 %v148_v26, %v50_v51 }
  0x16   :  { %v157_v35 = vadd.f32 %v156_v27, %v51_v52  ;;  %v127_v36 = vadd.f32 %v126_v23, %v125_v6  ;;  %v164_v37 = vsel %vm64_vm0, %v60_v16, 0.0  ;;  %v172_v38 = vsel %vm64_vm0, %v61_v17, 0.0 }
  0x17   :  { %v180_v39 = vsel %vm64_vm0, %v62_v18, 0.0  ;;  %v134_v40 = vrot.slane %v133_v32, 4  ;;  %v142_v41 = vrot.slane %v141_v33, 4  ;;  %v150_v42 = vrot.slane %v149_v34, 4 }
  0x18   :  { %v158_v44 = vrot.slane %v157_v35, 4  ;;  %v165_v45 = vadd.f32 %v164_v37, %v52_v62  ;;  %v173_v46 = vadd.f32 %v172_v38, %v53_v63  ;;  %v181_v48 = vadd.f32 %v180_v39, %v54_v0 }
  0x19   :  { %v188_v49 = vsel %vm121_vm1, %v55_v1, 0.0  ;;  %v135_v43 = vadd.f32 %v134_v40, %v133_v32  ;;  %v143_v47 = vadd.f32 %v142_v41, %v141_v33  ;;  %v151_v50 = vadd.f32 %v150_v42, %v149_v34 }
  0x1a   :  { %v159_v51 = vadd.f32 %v158_v44, %v157_v35  ;;  %v166_v52 = vrot.slane %v165_v45, 4  ;;  %v174_v53 = vrot.slane %v173_v46, 4  ;;  %v182_v54 = vrot.slane %v181_v48, 4 }
  0x1b   :  { %v189_v55 = vsel %vm123_vm2, %v63_v19, 0.0  ;;  %v71_v56 = vrot.slane %v70_v20, 1  ;;  %v109_v57 = vrot.slane %v108_v21, 2  ;;  %v117_v58 = vrot.slane %v116_v22, 2 }
  0x1c   :  { %v128_v59 = vrot.slane %v127_v36, 2  ;;  %v167_v60 = vadd.f32 %v166_v52, %v165_v45  ;;  %v175_v61 = vadd.f32 %v174_v53, %v173_v46  ;;  %v183_v62 = vadd.f32 %v182_v54, %v181_v48 }
  0x1d   :  { %v190_v63 = vadd.f32 %v189_v55, %v188_v49  ;;  %v79_v0 = vrot.slane %v78_v28, 1  ;;  %v136_v2 = vrot.slane %v135_v43, 2  ;;  %v144_v1 = vrot.slane %v143_v47, 2 }
  0x1e   :  { %v152_v3 = vrot.slane %v151_v50, 2  ;;  %v102_v4 = vadd.f32 %v101_v31, %v100_v15  ;;  %v160_v5 = vrot.slane %v159_v51, 2  ;;  %v168_v6 = vrot.slane %v167_v60, 2 }
  0x1f   :  { %v191_v8 = vrot.slane %v190_v63, 4  ;;  %v87_v9 = vrot.slane %v471_v29, 1  ;;  %v95_v10 = vrot.slane %v473_v30, 1  ;;  %v176_v11 = vrot.slane %v175_v61, 2 }
  0x20   :  { %v184_v12 = vrot.slane %v183_v62, 2  ;;  %v110_v13 = vadd.f32 %v109_v57, %v108_v21  ;;  %v118_v14 = vadd.f32 %v117_v58, %v116_v22  ;;  %v129_v16 = vadd.f32 %v128_v59, %v127_v36 }
  0x21   :  { %v192_v17 = vadd.f32 %v191_v8, %v190_v63  ;;  %v72_v18 = vadd.f32 %v71_v56, %v70_v20  ;;  %v137_v19 = vadd.f32 %v136_v2, %v135_v43  ;;  %v145_v23 = vadd.f32 %v144_v1, %v143_v47 }
  0x22   :  { %v153_v24 = vadd.f32 %v152_v3, %v151_v50  ;;  %v80_v25 = vadd.f32 %v79_v0, %v78_v28  ;;  %v103_v26 = vrot.slane %v102_v4, 1  ;;  %v161_v15 = vadd.f32 %v160_v5, %v159_v51 }
  0x23   :  { %v169_v27 = vadd.f32 %v168_v6, %v167_v60  ;;  %v177_v31 = vadd.f32 %v176_v11, %v175_v61  ;;  %v185_v32 = vadd.f32 %v184_v12, %v183_v62  ;;  %v193_v33 = vrot.slane %v192_v17, 2 }
  0x24   :  { %v198_v34 = vmul.f32 9.0, %v465_v7  ;;  %v88_v35 = vadd.f32 %v87_v9, %v471_v29  ;;  %v111_v37 = vrot.slane %v110_v13, 1  ;;  %v119_v21 = vrot.slane %v118_v14, 1  ;;  %v489_v29 = vld [vmem:[%s522_s1] sm:$0xff] }
  0x25   :  { %v130_v22 = vrot.slane %v129_v16, 1  ;;  %v138_v36 = vrot.slane %v137_v19, 1  ;;  %v146_v38 = vrot.slane %v145_v23, 1  ;;  %v154_v20 = vrot.slane %v153_v24, 1 }
  0x26   :  { %v199_v39 = vsub.f32 1.0, %v198_v34  ;;  %v96_v40 = vadd.f32 %v95_v10, %v473_v30  ;;  %v104_v28 = vadd.f32 %v103_v26, %v102_v4  ;;  %v162_v41 = vrot.slane %v161_v15, 1 }
  0x27   :  { %v170_v42 = vrot.slane %v169_v27, 1  ;;  %v178_v44 = vrot.slane %v177_v31, 1  ;;  %v186_v45 = vrot.slane %v185_v32, 1  ;;  %v194_v46 = vadd.f32 %v193_v33, %v192_v17 }
  0x28   :  { %v200_v48 = vmul.f32 %v465_v7, %v199_v39  ;;  %v112_v49 = vadd.f32 %v111_v37, %v110_v13  ;;  %v120_v43 = vadd.f32 %v119_v21, %v118_v14  ;;  %v131_v47 = vadd.f32 %v130_v22, %v129_v16 }
  0x29   :  { %vm202_vm3 = vweird.f32 %v465_v7  ;;  %v139_v50 = vadd.f32 %v138_v36, %v137_v19  ;;  %v147_v30 = vadd.f32 %v146_v38, %v145_v23  ;;  %v155_v51 = vadd.f32 %v154_v20, %v153_v24 }
  0x2a   :  { %v201_v52 = vadd.f32 %v465_v7, %v200_v48  ;;  %v163_v53 = vadd.f32 %v162_v41, %v161_v15  ;;  %v171_v54 = vadd.f32 %v170_v42, %v169_v27  ;;  %v238_v55 = vperm.slane %v489_v29, 0 }
  0x2b   :  { %v239_v56 = vperm.slane %v489_v29, 1  ;;  %v179_v57 = vadd.f32 %v178_v44, %v177_v31  ;;  %v187_v58 = vadd.f32 %v186_v45, %v185_v32  ;;  %v195_v59 = vrot.slane %v194_v46, 1 }
  0x2c   :  { %v203_v60 = vsel %vm202_vm3, %v465_v7, %v201_v52  ;;  %v240_v61 = vperm.slane %v489_v29, 2  ;;  %v241_v62 = vperm.slane %v489_v29, 3  ;;  %v242_v63 = vperm.slane %v489_v29, 4 }
  0x2d   :  { %v243_v0 = vperm.slane %v489_v29, 5  ;;  %v204_v2 = vmul.f32 %v203_v60, %v72_v18  ;;  %v205_v1 = vmul.f32 %v203_v60, %v80_v25  ;;  %v206_v3 = vmul.f32 %v203_v60, %v88_v35 }
  0x2e   :  { %v244_v4 = vperm.slane %v489_v29, 6  ;;  %v212_v5 = vmul.f32 %v203_v60, %v139_v50  ;;  %v213_v6 = vmul.f32 %v203_v60, %v147_v30  ;;  %v214_v8 = vmul.f32 %v203_v60, %v155_v51 }
  0x2f   :  { %v215_v9 = vmul.f32 %v203_v60, %v163_v53  ;;  %v196_v10 = vadd.f32 %v195_v59, %v194_v46  ;;  %v207_v11 = vmul.f32 %v203_v60, %v96_v40  ;;  %v216_v7 = vmul.f32 %v203_v60, %v171_v54 }
  0x30   :  { %v217_v12 = vmul.f32 %v203_v60, %v179_v57  ;;  %v208_v13 = vmul.f32 %v203_v60, %v104_v28  ;;  %v209_v14 = vmul.f32 %v203_v60, %v112_v49  ;;  %v245_v16 = vperm.slane %v489_v29, 7 }
  0x31   :  { %vm287_vm4 = vcmask 1041409   ;;  %v218_v17 = vmul.f32 %v203_v60, %v187_v58  ;;  %v220_v19 = vmax.f32 %v204_v2, 0.0  ;;  %v221_v18 = vmax.f32 %v205_v1, 0.0 }
  0x32   :  { %v222_v23 = vmax.f32 %v206_v3, 0.0  ;;  %vm311_vm5 = vcmask 1041408   ;;  %v228_v24 = vmax.f32 %v212_v5, 0.0  ;;  %v229_v25 = vmax.f32 %v213_v6, 0.0 }
  0x33   :  { %v230_v26 = vmax.f32 %v214_v8, 0.0  ;;  %v231_v15 = vmax.f32 %v215_v9, 0.0  ;;  %v219_v27 = vmul.f32 %v203_v60, %v196_v10  ;;  %v223_v31 = vmax.f32 %v207_v11, 0.0 }
  0x34   :  { %v232_v32 = vmax.f32 %v216_v7, 0.0  ;;  %v233_v33 = vmax.f32 %v217_v12, 0.0  ;;  %v210_v34 = vmul.f32 %v203_v60, %v120_v43  ;;  %v211_v35 = vmul.f32 %v203_v60, %v131_v47 }
  0x35   :  { %v224_v37 = vmax.f32 %v208_v13, 0.0  ;;  %v225_v21 = vmax.f32 %v209_v14, 0.0  ;;  %v234_v22 = vmax.f32 %v218_v17, 0.0  ;;  %v254_v36 = vmul.f32 %v238_v55, %v220_v19 }
  0x36   :  { %v255_v38 = vmul.f32 %v239_v56, %v221_v18  ;;  %v256_v20 = vmul.f32 %v240_v61, %v222_v23  ;;  %v262_v39 = vmul.f32 %v238_v55, %v228_v24  ;;  %v263_v40 = vmul.f32 %v239_v56, %v229_v25  ;;  %v361_v23 = vld [vmem:[#allocation2] ss:$0 sm:$0xff] }
  0x37   :  { %v264_v28 = vmul.f32 %v240_v61, %v230_v26  ;;  %v265_v41 = vmul.f32 %v241_v62, %v231_v15  ;;  %v235_v42 = vmax.f32 %v219_v27, 0.0  ;;  %v257_v44 = vmul.f32 %v241_v62, %v223_v31 }
  0x38   :  { %v266_v45 = vmul.f32 %v242_v63, %v232_v32  ;;  %v267_v46 = vmul.f32 %v243_v0, %v233_v33  ;;  %v286_v48 = vrot.slane %v262_v39, 7  ;;  %v289_v29 = vrot.slane %v263_v40, 7 }
  0x39   :  { %v291_v49 = vrot.slane %v264_v28, 7  ;;  %v293_v50 = vrot.slane %v265_v41, 7  ;;  %v226_v43 = vmax.f32 %v210_v34, 0.0  ;;  %v258_v47 = vmul.f32 %v242_v63, %v224_v37 }
  0x3a   :  { %v268_v30 = vmul.f32 %v244_v4, %v234_v22  ;;  %v295_v51 = vrot.slane %v266_v45, 7  ;;  %v227_v52 = vmax.f32 %v211_v35, 0.0  ;;  %v288_v53 = vsel %vm287_vm4, %v286_v48, %v254_v36 }
  0x3b   :  { %v290_v54 = vsel %vm287_vm4, %v289_v29, %v255_v38  ;;  %v292_v55 = vsel %vm287_vm4, %v291_v49, %v256_v20  ;;  %v259_v56 = vmul.f32 %v243_v0, %v225_v21  ;;  %v269_v57 = vmul.f32 %v245_v16, %v235_v42 }
  0x3c   :  { %v294_v58 = vsel %vm287_vm4, %v293_v50, %v257_v44  ;;  %v297_v59 = vrot.slane %v267_v46, 7  ;;  %v312_v60 = vsel %vm311_vm5, %v288_v53, 0.0  ;;  %v313_v61 = vsel %vm311_vm5, %v290_v54, 0.0 }
  0x3d   :  { %v315_v62 = vsel %vm311_vm5, %v292_v55, 0.0  ;;  %v260_v63 = vmul.f32 %v244_v4, %v226_v43  ;;  %v296_v2 = vsel %vm287_vm4, %v295_v51, %v258_v47  ;;  %v299_v1 = vrot.slane %v268_v30, 7 }
  0x3e   :  { %v314_v3 = vadd.f32 %v313_v61, %v312_v60  ;;  %v317_v5 = vsel %vm311_vm5, %v294_v58, 0.0  ;;  %v261_v6 = vmul.f32 %v245_v16, %v227_v52  ;;  %v298_v0 = vsel %vm287_vm4, %v297_v59, %v259_v56 }
  0x3f   :  { %v301_v8 = vrot.slane %v269_v57, 7  ;;  %v319_v10 = vsel %vm311_vm5, %v296_v2, 0.0  ;;  %v300_v11 = vsel %vm287_vm4, %v299_v1, %v260_v63  ;;  %v321_v12 = vsel %vm311_vm5, %v298_v0, 0.0 }
  0x40   :  { %v316_v9 = vadd.f32 %v315_v62, %v314_v3  ;;  %vm325_vm6 = vcmask 844800   ;;  %v323_v14 = vsel %vm311_vm5, %v300_v11, 0.0  ;;  %vm354_vm11 = vcmask 1024  }
  0x41   :  { %v302_v4 = vsel %vm287_vm4, %v301_v8, %v261_v6 }
  0x42   :  { %v318_v7 = vadd.f32 %v317_v5, %v316_v9  ;;  %v326_v19 = vsel %vm325_vm6, %v302_v4, 0.0 }
  0x44   :  { %v320_v13 = vadd.f32 %v319_v10, %v318_v7 }
  0x46   :  { %v322_v17 = vadd.f32 %v321_v12, %v320_v13 }
  0x48   :  { %v324_v16 = vadd.f32 %v323_v14, %v322_v17 }
  0x4a   :  { %v327_v18 = vadd.f32 %v326_v19, %v324_v16 }
  0x4c   :  { %328 = vadd.xlane.f32.xlu0 %v327_v18 }
  0xbf   :  { %v329_v24 = vpop.xlane.xlu0 %328 }
  0xc0   :  { %v334_v25 = vadd.f32 %v361_v23, %v329_v24 }
  0xc2   :  { %v335_v26 = vsub.f32 %v334_v25, %v334_v25 }
  0xc4   :  { %v336_v15 = vmul.f32 1.442695, %v335_v26 }
  0xc6   :  { %364 = vpow2.f32 %v336_v15 }
  0xcc   :  { %v365_v27 = vpop.eup %364 }
  0xcd   :  { %366 = vrcp.f32 %v365_v27  ;;  %v350_v34 = vand.u32 2147483648, %v365_v27  ;;  %v348_v37 = vand.u32 2147483647, %v365_v27  ;;  %vm344_vm8 = vweird.f32 %v365_v27 }
  0xcf   :  { %v351_v22 = vor.u32 1.1754944e-38, %v350_v34  ;;  %vm349_vm10 = vcmp.eq.f32.partialorder %v348_v37, 8.507059e+37 }
  0xd3   :  { %v367_v31 = vpop.eup %366 }
  0xd4   :  { %v340_v32 = vmul.f32 %v367_v31, %v365_v27  ;;  %vm345_vm7 = vweird.f32 %v367_v31 }
  0xd5   :  { %vm346_vm9 = vmor %vm344_vm8, %vm345_vm7 }
  0xd6   :  { %v341_v33 = vsub.f32 1.0, %v340_v32 }
  0xd8   :  { %v342_v35 = vmul.f32 %v367_v31, %v341_v33 }
  0xda   :  { %v343_v21 = vadd.f32 %v367_v31, %v342_v35 }
  0xdc   :  { %v347_v36 = vsel %vm346_vm9, %v367_v31, %v343_v21 }
  0xdd   :  { %v352_v38 = vsel %vm349_vm10, %v351_v22, %v347_v36 }
  0xde   :  { %v353_v20 = vmul.f32 %v365_v27, %v352_v38 }
  0xe0   :  { %355 = vst.msk [vmem:[%s523_s3] sm:$0x3] %vm354_vm11, %v353_v20 }

// kernel: regressor_forward.42
= control target key start
LH: loop header
LB: loop body
LE: loop exit
PB: predicated region body
PF: predicated region fallthrough
CT: control target
= control target key end

     0   :  { %vm2223_vm0 = vcmask 1043456   ;;  %vm2224_vm1 = vcmask 850948   ;;  %vm2234_vm3 = vcmask 1040384   ;;  %vm2235_vm4 = vcmask 847876   ;;  %s5343_s1 = inlined_call_operand.vmem [shape: bf16[512,1000], index: 1, kind: input, shape index: {}]   ;;  %s5344_s0 = inlined_call_operand.vmem [shape: bf16[18,512], index: 0, kind: input, shape index: {}]   ;;  %s5345_s2 = inlined_call_operand.vmem [shape: f32[1,1000], index: 2, kind: input, shape index: {}]   ;;  %s5346_s3 = inlined_call_operand.vmem [shape: bf16[18,1000], index: 3, kind: output, shape index: {}]  }
   0x1   :  { %v2484_v0 = vld [vmem:[%s5343_s1 + $0x1c0] sm:$0xf]  ;;  %vm5326_vm2 = vmor %vm2224_vm1, %vm2223_vm0 }
   0x2   :  { %v3346_v1 = vld [vmem:[%s5343_s1 + $0x1dc] sm:$0xf0]  ;;  %vm2236_vm5 = vmor %vm2235_vm4, %vm2234_vm3 }
   0x3   :  { %v2740_v2 = vld [vmem:[%s5343_s1 + $0x3c0] sm:$0xf]  ;;  %v2485_v3 = vor.u32 %v3346_v1, %v2484_v0 }
   0x4   :  { %v3410_v4 = vld [vmem:[%s5343_s1 + $0x3dc] sm:$0xf0] }
   0x5   :  { %v2996_v5 = vld [vmem:[%s5343_s1 + $0x5c0] sm:$0xf]  ;;  %v2741_v7 = vor.u32 %v3410_v4, %v2740_v2  ;;  %1608 = vmatpush.bf16.msra.mxu0 %v2485_v3 }
   0x6   :  { %v3474_v6 = vld [vmem:[%s5343_s1 + $0x5dc] sm:$0xf0] }
   0x7   :  { %v2997_v8 = vor.u32 %v3474_v6, %v2996_v5  ;;  %v3252_v9 = vld [vmem:[%s5343_s1 + $0x7c0] sm:$0xf]  ;;  %1626 = vmatpush.bf16.msra.mxu1 %v2741_v7 }
   0x8   :  { %v3538_v10 = vld [vmem:[%s5343_s1 + $0x7dc] sm:$0xf0] }
   0x9   :  { %v2452_v11 = vld [vmem:[%s5343_s1 + $0x180] sm:$0xf]  ;;  %v3253_v12 = vor.u32 %v3538_v10, %v3252_v9  ;;  %1644 = vmatpush.bf16.msra.mxu2 %v2997_v8 }
   0xa   :  { %v3338_v13 = vld [vmem:[%s5343_s1 + $0x19c] sm:$0xf0] }
   0xb   :  { %v2708_v14 = vld [vmem:[%s5343_s1 + $0x380] sm:$0xf]  ;;  %v2453_v16 = vor.u32 %v3338_v13, %v2452_v11  ;;  %1662 = vmatpush.bf16.msra.mxu3 %v3253_v12 }
   0xc   :  { %v3402_v15 = vld [vmem:[%s5343_s1 + $0x39c] sm:$0xf0] }
   0xd   :  { %v2709_v17 = vor.u32 %v3402_v15, %v2708_v14  ;;  %v2964_v18 = vld [vmem:[%s5343_s1 + $0x580] sm:$0xf]  ;;  %1609 = vmatpush.bf16.msra.mxu0 %v2453_v16 }
   0xe   :  { %v3466_v19 = vld [vmem:[%s5343_s1 + $0x59c] sm:$0xf0] }
   0xf   :  { %v3220_v20 = vld [vmem:[%s5343_s1 + $0x780] sm:$0xf]  ;;  %v2965_v21 = vor.u32 %v3466_v19, %v2964_v18  ;;  %1627 = vmatpush.bf16.msra.mxu1 %v2709_v17 }
  0x10   :  { %v3530_v22 = vld [vmem:[%s5343_s1 + $0x79c] sm:$0xf0] }
  0x11   :  { %v2420_v23 = vld [vmem:[%s5343_s1 + $0x140] sm:$0xf]  ;;  %v3221_v25 = vor.u32 %v3530_v22, %v3220_v20  ;;  %1645 = vmatpush.bf16.msra.mxu2 %v2965_v21 }
  0x12   :  { %v3330_v24 = vld [vmem:[%s5343_s1 + $0x15c] sm:$0xf0] }
  0x13   :  { %v2676_v26 = vld [vmem:[%s5343_s1 + $0x340] sm:$0xf]  ;;  %v2421_v29 = vor.u32 %v3330_v24, %v2420_v23  ;;  %1663 = vmatpush.bf16.msra.mxu3 %v3221_v25 }
  0x14   :  { %v3394_v27 = vld [vmem:[%s5343_s1 + $0x35c] sm:$0xf0] }
  0x15   :  { %v2932_v28 = vld [vmem:[%s5343_s1 + $0x540] sm:$0xf]  ;;  %v2677_v33 = vor.u32 %v3394_v27, %v2676_v26  ;;  %1610 = vmatpush.bf16.msra.mxu0 %v2421_v29  ;;  %v3284_v29 = vld [vmem:[%s5344_s0 + $0xc] sm:$0xf0] }
  0x16   :  { %v3458_v30 = vld [vmem:[%s5343_s1 + $0x55c] sm:$0xf0] }
  0x17   :  { %v3188_v31 = vld [vmem:[%s5343_s1 + $0x740] sm:$0xf]  ;;  %v2933_v34 = vor.u32 %v3458_v30, %v2932_v28  ;;  %1628 = vmatpush.bf16.msra.mxu1 %v2677_v33  ;;  %v3282_v30 = vld [vmem:[%s5344_s0 + $0x4] sm:$0xf] }
  0x18   :  { %v3522_v32 = vld [vmem:[%s5343_s1 + $0x75c] sm:$0xf0]  ;;  %v2998_v33 = vld [vmem:[%s5343_s1 + $0x5e0] sm:$0xf0] }
  0x19   :  { %v2388_v35 = vld [vmem:[%s5343_s1 + $0x100] sm:$0xf]  ;;  %v3189_v38 = vor.u32 %v3522_v32, %v3188_v31  ;;  %1646 = vmatpush.bf16.msra.mxu2 %v2933_v34  ;;  %v2246_v31 = vld [vmem:[%s5344_s0 + $0x10] sm:$0xf0]  ;;  %v3470_v32 = vld [vmem:[%s5343_s1 + $0x5c4] sm:$0xf] }
  0x1a   :  { %v3322_v36 = vld [vmem:[%s5343_s1 + $0x11c] sm:$0xf0] }
  0x1b   :  { %v2644_v37 = vld [vmem:[%s5343_s1 + $0x300] sm:$0xf]  ;;  %v2389_v44 = vor.u32 %v3322_v36, %v2388_v35  ;;  %1664 = vmatpush.bf16.msra.mxu3 %v3189_v38  ;;  %v2252_v35 = vld [vmem:[%s5344_s0 + $0x8] sm:$0xf]  ;;  %v3406_v36 = vld [vmem:[%s5343_s1 + $0x3c4] sm:$0xf] }
  0x1c   :  { %v3386_v39 = vld [vmem:[%s5343_s1 + $0x31c] sm:$0xf0] }
  0x1d   :  { %v2900_v40 = vld [vmem:[%s5343_s1 + $0x500] sm:$0xf]  ;;  %v2645_v45 = vor.u32 %v3386_v39, %v2644_v37  ;;  %1611 = vmatpush.bf16.msra.mxu0 %v2389_v44  ;;  %v2742_v37 = vld [vmem:[%s5343_s1 + $0x3e0] sm:$0xf0]  ;;  %v3001_v44 = vor.u32 %v3470_v32, %v2998_v33 }
  0x1e   :  { %v3450_v41 = vld [vmem:[%s5343_s1 + $0x51c] sm:$0xf0]  ;;  %v3374_v33 = vld [vmem:[%s5343_s1 + $0x2c4] sm:$0xf] }
  0x1f   :  { %v3156_v42 = vld [vmem:[%s5343_s1 + $0x700] sm:$0xf]  ;;  %v2901_v46 = vor.u32 %v3450_v41, %v2900_v40  ;;  %1629 = vmatpush.bf16.msra.mxu1 %v2645_v45  ;;  %v3285_v40 = vld [vmem:[%s5344_s0 + $0x14] sm:$0xf0]  ;;  %v3283_v41 = vld [vmem:[%s5344_s0 + $0xc] sm:$0xf] }
  0x20   :  { %v3514_v43 = vld [vmem:[%s5343_s1 + $0x71c] sm:$0xf0]  ;;  %v3342_v45 = vld [vmem:[%s5343_s1 + $0x1c4] sm:$0xf] }
  0x21   :  { %v2356_v47 = vld [vmem:[%s5343_s1 + $0xc0] sm:$0xf]  ;;  %v3157_v50 = vor.u32 %v3514_v43, %v3156_v42  ;;  %1647 = vmatpush.bf16.msra.mxu2 %v2901_v46  ;;  %v2254_v42 = vld [vmem:[%s5344_s0 + $0x18] sm:$0xf0]  ;;  %v2486_v46 = vld [vmem:[%s5343_s1 + $0x1e0] sm:$0xf0] }
  0x22   :  { %v3314_v48 = vld [vmem:[%s5343_s1 + $0xdc] sm:$0xf0] }
  0x23   :  { %v2612_v49 = vld [vmem:[%s5343_s1 + $0x2c0] sm:$0xf]  ;;  %v2357_v56 = vor.u32 %v3314_v48, %v2356_v47  ;;  %1665 = vmatpush.bf16.msra.mxu3 %v3157_v50  ;;  %v3534_v47 = vld [vmem:[%s5343_s1 + $0x7c4] sm:$0xf] }
  0x24   :  { %v3378_v51 = vld [vmem:[%s5343_s1 + $0x2dc] sm:$0xf0]  ;;  %v3254_v50 = vld [vmem:[%s5343_s1 + $0x7e0] sm:$0xf0] }
  0x25   :  { %v2868_v52 = vld [vmem:[%s5343_s1 + $0x4c0] sm:$0xf]  ;;  %v2613_v57 = vor.u32 %v3378_v51, %v2612_v49  ;;  %1612 = vmatpush.bf16.msra.mxu0 %v2357_v56  ;;  %v2745_v49 = vor.u32 %v3406_v36, %v2742_v37  ;;  %v3462_v51 = vld [vmem:[%s5343_s1 + $0x584] sm:$0xf] }
  0x26   :  { %v3442_v53 = vld [vmem:[%s5343_s1 + $0x4dc] sm:$0xf0]  ;;  %v2710_v56 = vld [vmem:[%s5343_s1 + $0x3a0] sm:$0xf0] }
  0x27   :  { %v3124_v54 = vld [vmem:[%s5343_s1 + $0x6c0] sm:$0xf]  ;;  %v2869_v58 = vor.u32 %v3442_v53, %v2868_v52  ;;  %1630 = vmatpush.bf16.msra.mxu1 %v2613_v57  ;;  %v2966_v52 = vld [vmem:[%s5343_s1 + $0x5a0] sm:$0xf0]  ;;  %v3811_v53 = vor.u32 %v3282_v30, %v2246_v31  ;;  %v3821_v57 = vor.u32 %v3283_v41, %v2254_v42 }
  0x28   :  { %v3506_v55 = vld [vmem:[%s5343_s1 + $0x6dc] sm:$0xf0]  ;;  %v2870_v30 = vld [vmem:[%s5343_s1 + $0x4e0] sm:$0xf0] }
  0x29   :  { %v2324_v59 = vld [vmem:[%s5343_s1 + $0x80] sm:$0xf]  ;;  %v3125_v62 = vor.u32 %v3506_v55, %v3124_v54  ;;  %1648 = vmatpush.bf16.msra.mxu2 %v2869_v58  ;;  %v3813_v54 = vor.u32 %v3285_v40, %v2252_v35  ;;  %v3398_v55 = vld [vmem:[%s5343_s1 + $0x384] sm:$0xf]  ;;  %v2489_v58 = vor.u32 %v3342_v45, %v2486_v46 }
  0x2a   :  { %v3306_v60 = vld [vmem:[%s5343_s1 + $0x9c] sm:$0xf0]  ;;  %v2358_v40 = vld [vmem:[%s5343_s1 + $0xe0] sm:$0xf0] }
  0x2b   :  { %v2580_v61 = vld [vmem:[%s5343_s1 + $0x280] sm:$0xf]  ;;  %v2325_v4 = vor.u32 %v3306_v60, %v2324_v59  ;;  %1666 = vmatpush.bf16.msra.mxu3 %v3125_v62  ;;  %v3257_v59 = vor.u32 %v3534_v47, %v3254_v50  ;;  %v2969_v60 = vor.u32 %v3462_v51, %v2966_v52  ;;  %v2454_v62 = vld [vmem:[%s5343_s1 + $0x1a0] sm:$0xf0] }
  0x2c   :  { %v3370_v63 = vld [vmem:[%s5343_s1 + $0x29c] sm:$0xf0]  ;;  %v3502_v41 = vld [vmem:[%s5343_s1 + $0x6c4] sm:$0xf] }
  0x2d   :  { %v2836_v0 = vld [vmem:[%s5343_s1 + $0x480] sm:$0xf]  ;;  %v2581_v5 = vor.u32 %v3370_v63, %v2580_v61  ;;  %1613 = vmatpush.bf16.msra.mxu0 %v2325_v4  ;;  %v3334_v61 = vld [vmem:[%s5343_s1 + $0x184] sm:$0xf] }
  0x2e   :  { %v3434_v1 = vld [vmem:[%s5343_s1 + $0x49c] sm:$0xf0]  ;;  %v3526_v63 = vld [vmem:[%s5343_s1 + $0x784] sm:$0xf] }
  0x2f   :  { %v3092_v2 = vld [vmem:[%s5343_s1 + $0x680] sm:$0xf]  ;;  %v2837_v6 = vor.u32 %v3434_v1, %v2836_v0  ;;  %1631 = vmatpush.bf16.msra.mxu1 %v2581_v5  ;;  %v2713_v0 = vor.u32 %v3398_v55, %v2710_v56  ;;  %v3222_v1 = vld [vmem:[%s5343_s1 + $0x7a0] sm:$0xf0] }
  0x30   :  { %v3498_v3 = vld [vmem:[%s5343_s1 + $0x69c] sm:$0xf0]  ;;  %v3390_v4 = vld [vmem:[%s5343_s1 + $0x344] sm:$0xf] }
  0x31   :  { %v2292_v7 = vld [vmem:[%s5343_s1 + $0x40] sm:$0xf]  ;;  %v3093_v10 = vor.u32 %v3498_v3, %v3092_v2  ;;  %1649 = vmatpush.bf16.msra.mxu2 %v2837_v6  ;;  %v3454_v2 = vld [vmem:[%s5343_s1 + $0x544] sm:$0xf]  ;;  %v2457_v6 = vor.u32 %v3334_v61, %v2454_v62 }
  0x32   :  { %v3298_v8 = vld [vmem:[%s5343_s1 + $0x5c] sm:$0xf0]  ;;  %v2934_v3 = vld [vmem:[%s5343_s1 + $0x560] sm:$0xf0] }
  0x33   :  { %v2548_v9 = vld [vmem:[%s5343_s1 + $0x240] sm:$0xf]  ;;  %v2293_v17 = vor.u32 %v3298_v8, %v2292_v7  ;;  %1667 = vmatpush.bf16.msra.mxu3 %v3093_v10  ;;  %v2678_v5 = vld [vmem:[%s5343_s1 + $0x360] sm:$0xf0]  ;;  %v3225_v7 = vor.u32 %v3526_v63, %v3222_v1  ;;  %v2937_v8 = vor.u32 %v3454_v2, %v2934_v3 }
  0x34   :  { %v3362_v11 = vld [vmem:[%s5343_s1 + $0x25c] sm:$0xf0]  ;;  %v2422_v10 = vld [vmem:[%s5343_s1 + $0x160] sm:$0xf0] }
  0x35   :  { %v2804_v12 = vld [vmem:[%s5343_s1 + $0x440] sm:$0xf]  ;;  %v2549_v21 = vor.u32 %v3362_v11, %v2548_v9  ;;  %1614 = vmatpush.bf16.msra.mxu0 %v2293_v17  ;;  %v3326_v9 = vld [vmem:[%s5343_s1 + $0x144] sm:$0xf] }
  0x36   :  { %v3426_v13 = vld [vmem:[%s5343_s1 + $0x45c] sm:$0xf0]  ;;  %v3518_v11 = vld [vmem:[%s5343_s1 + $0x744] sm:$0xf] }
  0x37   :  { %v3060_v14 = vld [vmem:[%s5343_s1 + $0x640] sm:$0xf]  ;;  %v2805_v22 = vor.u32 %v3426_v13, %v2804_v12  ;;  %1632 = vmatpush.bf16.msra.mxu1 %v2549_v21  ;;  %v2681_v12 = vor.u32 %v3390_v4, %v2678_v5  ;;  %v3190_v13 = vld [vmem:[%s5343_s1 + $0x760] sm:$0xf0] }
  0x38   :  { %v3490_v15 = vld [vmem:[%s5343_s1 + $0x65c] sm:$0xf0]  ;;  %v2646_v17 = vld [vmem:[%s5343_s1 + $0x320] sm:$0xf0]  ;;  %v3193_v21 = vor.u32 %v3518_v11, %v3190_v13 }
  0x39   :  { %v2260_v16 = vld [vmem:[%s5343_s1] sm:$0xf]  ;;  %v3061_v26 = vor.u32 %v3490_v15, %v3060_v14  ;;  %1650 = vmatpush.bf16.msra.mxu2 %v2805_v22  ;;  %v3446_v14 = vld [vmem:[%s5343_s1 + $0x504] sm:$0xf] }
  0x3a   :  { %v3290_v18 = vld [vmem:[%s5343_s1 + $0x1c] sm:$0xf0]  ;;  %v2902_v15 = vld [vmem:[%s5343_s1 + $0x520] sm:$0xf0] }
  0x3b   :  { %v2516_v19 = vld [vmem:[%s5343_s1 + $0x200] sm:$0xf]  ;;  %v2261_v34 = vor.u32 %v3290_v18, %v2260_v16  ;;  %1668 = vmatpush.bf16.msra.mxu3 %v3061_v26  ;;  %v3382_v16 = vld [vmem:[%s5343_s1 + $0x304] sm:$0xf]  ;;  %v2905_v22 = vor.u32 %v3446_v14, %v2902_v15 }
  0x3c   :  { %v3354_v20 = vld [vmem:[%s5343_s1 + $0x21c] sm:$0xf0]  ;;  %v2649_v26 = vor.u32 %v3382_v16, %v2646_v17  ;;  %v3430_v45 = vld [vmem:[%s5343_s1 + $0x484] sm:$0xf]  ;;  %v3004_v16 = vld [vmem:[%s5343_s1 + $0x5c8] sm:$0xf] }
  0x3d   :  { %v2772_v23 = vld [vmem:[%s5343_s1 + $0x400] sm:$0xf]  ;;  %v2517_v38 = vor.u32 %v3354_v20, %v2516_v19  ;;  %1615 = vmatpush.bf16.msra.mxu0 %v2261_v34  ;;  %v2425_v19 = vor.u32 %v3326_v9, %v2422_v10  ;;  %v19_v20 = vld [vmem:[%s5344_s0 + $0x28] sm:$0x11]  ;;  %v2614_v34 = vld [vmem:[%s5343_s1 + $0x2e0] sm:$0xf0] }
  0x3e   :  { %v3418_v24 = vld [vmem:[%s5343_s1 + $0x41c] sm:$0xf0]  ;;  %v310_v32 = vunpack.c.l.b16 %v19_v20  ;;  %v311_v36 = vunpack.c.h.b16 %v19_v20  ;;  %v2838_v46 = vld [vmem:[%s5343_s1 + $0x4a0] sm:$0xf0]  ;;  %v3475_v17 = vld [vmem:[%s5343_s1 + $0x5e4] sm:$0xf0] }
  0x3f   :  { %v3028_v25 = vld [vmem:[%s5343_s1 + $0x600] sm:$0xf]  ;;  %v2773_v39 = vor.u32 %v3418_v24, %v2772_v23  ;;  %1633 = vmatpush.bf16.msra.mxu1 %v2517_v38  ;;  %v3318_v23 = vld [vmem:[%s5343_s1 + $0x104] sm:$0xf]  ;;  %v2748_v20 = vld [vmem:[%s5343_s1 + $0x3c8] sm:$0xf] }
  0x40   :  { %v3482_v27 = vld [vmem:[%s5343_s1 + $0x61c] sm:$0xf0]  ;;  %v2390_v24 = vld [vmem:[%s5343_s1 + $0x120] sm:$0xf0]  ;;  %v3935_v52 = vpack.c.b16 %v311_v36, %v311_v36 }
  0x41   :  { %v2244_v28 = vld [vmem:[%s5344_s0] sm:$0xf]  ;;  %v3029_v43 = vor.u32 %v3482_v27, %v3028_v25  ;;  %1651 = vmatpush.bf16.msra.mxu2 %v2773_v39  ;;  %1680 = vmatpush.bf16.msrb.mxu0 %v2489_v58  ;;  %v3510_v25 = vld [vmem:[%s5343_s1 + $0x704] sm:$0xf]  ;;  %v2393_v35 = vor.u32 %v3318_v23, %v2390_v24  ;;  %v2841_v58 = vor.u32 %v3430_v45, %v2838_v46  ;;  %v3403_v45 = vld [vmem:[%s5343_s1 + $0x3a4] sm:$0xf0] }
  0x42   :  { %v3800_v48 = vor.u32 %v3284_v29, %v2244_v28  ;;  %1634 = vmatmul.bf16.vlgmr.msra.gmra.mxu1 %v3811_v53  ;;  %v18_v18 = vld [vmem:[%s5344_s0 + $0x20] sm:$0x11]  ;;  %v3228_v46 = vld [vmem:[%s5343_s1 + $0x788] sm:$0xf] }
  0x43   :  { %1669 = vmatpush.bf16.msra.mxu3 %v3029_v43  ;;  %1698 = vmatpush.bf16.msrb.mxu1 %v2745_v49  ;;  %v3158_v27 = vld [vmem:[%s5343_s1 + $0x720] sm:$0xf0]  ;;  %v308_v28 = vunpack.c.l.b16 %v18_v18  ;;  %v309_v31 = vunpack.c.h.b16 %v18_v18  ;;  %v2617_v43 = vor.u32 %v3374_v33, %v2614_v34  ;;  %v3927_v49 = vpack.c.b16 %v310_v32, %v310_v32  ;;  %v3539_v33 = vld [vmem:[%s5343_s1 + $0x7e4] sm:$0xf0] }
  0x44   :  { %1616 = vmatmul.bf16.vlgmr.msra.gmra.mxu0 %v3800_v48  ;;  %1652 = vmatmul.bf16.vlgmr.msra.gmra.mxu2 %v3813_v54  ;;  %v3438_v29 = vld [vmem:[%s5343_s1 + $0x4c4] sm:$0xf]  ;;  %v3161_v37 = vor.u32 %v3510_v25, %v3158_v27  ;;  %v2972_v34 = vld [vmem:[%s5343_s1 + $0x588] sm:$0xf] }
  0x45   :  { %1716 = vmatpush.bf16.msrb.mxu2 %v3001_v44  ;;  %1681 = vmatpush.bf16.msrb.mxu0 %v2457_v6  ;;  %v2873_v38 = vor.u32 %v3438_v29, %v2870_v30  ;;  %v3310_v39 = vld [vmem:[%s5343_s1 + $0xc4] sm:$0xf]  ;;  %v3914_v42 = vpack.c.b16 %v308_v28, %v308_v28  ;;  %v3925_v47 = vpack.c.b16 %v309_v31, %v309_v31  ;;  %v2492_v29 = vld [vmem:[%s5343_s1 + $0x1c8] sm:$0xf] }
  0x46   :  { %1670 = vmatmul.bf16.vlgmr.msra.gmra.mxu3 %v3821_v57  ;;  %v3126_v44 = vld [vmem:[%s5343_s1 + $0x6e0] sm:$0xf0]  ;;  %v2361_v55 = vor.u32 %v3310_v39, %v2358_v40  ;;  %v3005_v28 = vor.u32 %v3475_v17, %v3004_v16  ;;  %v3347_v30 = vld [vmem:[%s5343_s1 + $0x1e4] sm:$0xf0] }
  0x47   :  { %1734 = vmatpush.bf16.msrb.mxu3 %v3257_v59  ;;  %1699 = vmatpush.bf16.msrb.mxu1 %v2713_v0  ;;  %v3366_v50 = vld [vmem:[%s5343_s1 + $0x284] sm:$0xf]  ;;  %v3129_v56 = vor.u32 %v3502_v41, %v3126_v44  ;;  %v3260_v31 = vld [vmem:[%s5343_s1 + $0x7c8] sm:$0xf] }
  0x48   :  { %v2582_v51 = vld [vmem:[%s5343_s1 + $0x2a0] sm:$0xf0]  ;;  %v2460_v39 = vld [vmem:[%s5343_s1 + $0x188] sm:$0xf]  ;;  %v3261_v41 = vor.u32 %v3539_v33, %v3260_v31 }
  0x49   :  { %1717 = vmatpush.bf16.msrb.mxu2 %v2969_v60  ;;  %1682 = vmatpush.bf16.msrb.mxu0 %v2425_v19  ;;  %v3302_v59 = vld [vmem:[%s5343_s1 + $0x84] sm:$0xf]  ;;  %v2585_v62 = vor.u32 %v3366_v50, %v2582_v51  ;;  %v3339_v40 = vld [vmem:[%s5343_s1 + $0x1a4] sm:$0xf0] }
  0x4a   :  { %v2326_v60 = vld [vmem:[%s5343_s1 + $0xa0] sm:$0xf0]  ;;  %v2716_v44 = vld [vmem:[%s5343_s1 + $0x388] sm:$0xf] }
  0x4b   :  { %1735 = vmatpush.bf16.msrb.mxu3 %v3225_v7  ;;  %1700 = vmatpush.bf16.msrb.mxu1 %v2681_v12  ;;  %v3494_v61 = vld [vmem:[%s5343_s1 + $0x684] sm:$0xf]  ;;  %v2329_v4 = vor.u32 %v3302_v59, %v2326_v60  ;;  %v3531_v50 = vld [vmem:[%s5343_s1 + $0x7a4] sm:$0xf0] }
  0x4c   :  { %v3094_v63 = vld [vmem:[%s5343_s1 + $0x6a0] sm:$0xf0]  ;;  %v2940_v51 = vld [vmem:[%s5343_s1 + $0x548] sm:$0xf] }
  0x4d   :  { %1718 = vmatpush.bf16.msrb.mxu2 %v2937_v8  ;;  %1683 = vmatpush.bf16.msrb.mxu0 %v2393_v35  ;;  %v3422_v0 = vld [vmem:[%s5343_s1 + $0x444] sm:$0xf]  ;;  %v3097_v6 = vor.u32 %v3494_v61, %v3094_v63  ;;  %v3467_v35 = vld [vmem:[%s5343_s1 + $0x5a4] sm:$0xf0]  ;;  %v3229_v61 = vor.u32 %v3531_v50, %v3228_v46 }
  0x4e   :  { %v2806_v1 = vld [vmem:[%s5343_s1 + $0x460] sm:$0xf0]  ;;  %v2428_v59 = vld [vmem:[%s5343_s1 + $0x148] sm:$0xf] }
  0x4f   :  { %1736 = vmatpush.bf16.msrb.mxu3 %v3193_v21  ;;  %1701 = vmatpush.bf16.msrb.mxu1 %v2649_v26  ;;  %v3358_v2 = vld [vmem:[%s5343_s1 + $0x244] sm:$0xf]  ;;  %v2809_v7 = vor.u32 %v3422_v0, %v2806_v1  ;;  %v3411_v21 = vld [vmem:[%s5343_s1 + $0x3e4] sm:$0xf0] }
  0x50   :  { %v2550_v3 = vld [vmem:[%s5343_s1 + $0x260] sm:$0xf0]  ;;  %v2749_v32 = vor.u32 %v3411_v21, %v2748_v20  ;;  %v3331_v60 = vld [vmem:[%s5343_s1 + $0x164] sm:$0xf0] }
  0x51   :  { %1719 = vmatpush.bf16.msrb.mxu2 %v2905_v22  ;;  %1684 = vmatpush.bf16.msrb.mxu0 %v2361_v55  ;;  %v3294_v5 = vld [vmem:[%s5343_s1 + $0x44] sm:$0xf]  ;;  %v2553_v11 = vor.u32 %v3358_v2, %v2550_v3  ;;  %v3459_v55 = vld [vmem:[%s5343_s1 + $0x564] sm:$0xf0] }
  0x52   :  { %1639 = vmatmul.bf16.gmra.mxu1 %v3925_v47  ;;  %v2294_v8 = vld [vmem:[%s5343_s1 + $0x60] sm:$0xf0]  ;;  %v2684_v63 = vld [vmem:[%s5343_s1 + $0x348] sm:$0xf] }
  0x53   :  { %1737 = vmatpush.bf16.msrb.mxu3 %v3161_v37  ;;  %1702 = vmatpush.bf16.msrb.mxu1 %v2617_v43  ;;  %v3486_v9 = vld [vmem:[%s5343_s1 + $0x644] sm:$0xf]  ;;  %v2297_v18 = vor.u32 %v3294_v5, %v2294_v8  ;;  %v2973_v43 = vor.u32 %v3467_v35, %v2972_v34  ;;  %v3395_v0 = vld [vmem:[%s5343_s1 + $0x364] sm:$0xf0]  ;;  %v2429_v5 = vor.u32 %v3331_v60, %v2428_v59 }
  0x54   :  { %1621 = vmatmul.bf16.gmra.mxu0 %v3914_v42  ;;  %1657 = vmatmul.bf16.gmra.mxu2 %v3927_v49  ;;  %v3062_v10 = vld [vmem:[%s5343_s1 + $0x660] sm:$0xf0]  ;;  %v3196_v1 = vld [vmem:[%s5343_s1 + $0x748] sm:$0xf] }
  0x55   :  { %1720 = vmatpush.bf16.msrb.mxu2 %v2873_v38  ;;  %v3414_v12 = vld [vmem:[%s5343_s1 + $0x404] sm:$0xf]  ;;  %1685 = vmatpush.bf16.msrb.mxu0 %v2329_v4  ;;  %v3065_v22 = vor.u32 %v3486_v9, %v3062_v10  ;;  %v2493_v38 = vor.u32 %v3347_v30, %v2492_v29  ;;  %v3523_v2 = vld [vmem:[%s5343_s1 + $0x764] sm:$0xf0] }
  0x56   :  { %1675 = vmatmul.bf16.gmra.mxu3 %v3935_v52  ;;  %v2774_v13 = vld [vmem:[%s5343_s1 + $0x420] sm:$0xf0]  ;;  %v2908_v3 = vld [vmem:[%s5343_s1 + $0x508] sm:$0xf]  ;;  %v3197_v9 = vor.u32 %v3523_v2, %v3196_v1 }
  0x57   :  { %1738 = vmatpush.bf16.msrb.mxu3 %v3129_v56  ;;  %1703 = vmatpush.bf16.msrb.mxu1 %v2585_v62  ;;  %v3350_v14 = vld [vmem:[%s5343_s1 + $0x204] sm:$0xf]  ;;  %v2777_v23 = vor.u32 %v3414_v12, %v2774_v13  ;;  %v2461_v56 = vor.u32 %v3339_v40, %v2460_v39  ;;  %v2941_v62 = vor.u32 %v3459_v55, %v2940_v51  ;;  %v3451_v4 = vld [vmem:[%s5343_s1 + $0x524] sm:$0xf0] }
  0x58   :  { %v2518_v15 = vld [vmem:[%s5343_s1 + $0x220] sm:$0xf0]  ;;  %v3323_v8 = vld [vmem:[%s5343_s1 + $0x124] sm:$0xf0]  ;;  %v2909_v10 = vor.u32 %v3451_v4, %v2908_v3 }
  0x59   :  { %1721 = vmatpush.bf16.msrb.mxu2 %v2841_v58  ;;  %v3286_v19 = vld [vmem:[%s5343_s1 + $0x4] sm:$0xf]  ;;  %v2521_v27 = vor.u32 %v3350_v14, %v2518_v15  ;;  %1686 = vmatpush.bf16.msrb.mxu0 %v2297_v18  ;;  %v2717_v58 = vor.u32 %v3403_v45, %v2716_v44  ;;  %v3387_v12 = vld [vmem:[%s5343_s1 + $0x324] sm:$0xf0] }
  0x5a   :  { %v2262_v24 = vld [vmem:[%s5343_s1 + $0x20] sm:$0xf0]  ;;  %v3164_v13 = vld [vmem:[%s5343_s1 + $0x708] sm:$0xf] }
  0x5b   :  { %1739 = vmatpush.bf16.msrb.mxu3 %v3097_v6  ;;  %v3478_v25 = vld [vmem:[%s5343_s1 + $0x604] sm:$0xf]  ;;  %1704 = vmatpush.bf16.msrb.mxu1 %v2553_v11  ;;  %v2265_v36 = vor.u32 %v3286_v19, %v2262_v24  ;;  %v2685_v6 = vor.u32 %v3395_v0, %v2684_v63  ;;  %v2652_v11 = vld [vmem:[%s5343_s1 + $0x308] sm:$0xf] }
  0x5c   :  { %v3030_v26 = vld [vmem:[%s5343_s1 + $0x620] sm:$0xf0]  ;;  %v3515_v14 = vld [vmem:[%s5343_s1 + $0x724] sm:$0xf0]  ;;  %v2653_v18 = vor.u32 %v3387_v12, %v2652_v11  ;;  %v2494_v11 = vld [vmem:[%s5343_s1 + $0x1e8] sm:$0xf0] }
  0x5d   :  { %1722 = vmatpush.bf16.msrb.mxu2 %v2809_v7  ;;  %v3033_v37 = vor.u32 %v3478_v25, %v3030_v26  ;;  %1687 = vmatpush.bf16.msrb.mxu0 %v2265_v36  ;;  %v2396_v7 = vld [vmem:[%s5343_s1 + $0x108] sm:$0xf]  ;;  %v3165_v21 = vor.u32 %v3515_v14, %v3164_v13  ;;  %v3407_v12 = vld [vmem:[%s5343_s1 + $0x3cc] sm:$0xf] }
  0x5e   :  { %v2876_v15 = vld [vmem:[%s5343_s1 + $0x4c8] sm:$0xf]  ;;  %v2397_v17 = vor.u32 %v3323_v8, %v2396_v7  ;;  %v2750_v13 = vld [vmem:[%s5343_s1 + $0x3e8] sm:$0xf0] }
  0x5f   :  { %1740 = vmatpush.bf16.msrb.mxu3 %v3065_v22  ;;  %1705 = vmatpush.bf16.msrb.mxu1 %v2521_v27  ;;  %v3443_v16 = vld [vmem:[%s5343_s1 + $0x4e4] sm:$0xf0]  ;;  %v3535_v14 = vld [vmem:[%s5343_s1 + $0x7cc] sm:$0xf] }
  0x60   :  { %v2364_v19 = vld [vmem:[%s5343_s1 + $0xc8] sm:$0xf]  ;;  %v2877_v22 = vor.u32 %v3443_v16, %v2876_v15  ;;  %v3262_v15 = vld [vmem:[%s5343_s1 + $0x7e8] sm:$0xf0] }
  0x61   :  { %1723 = vmatpush.bf16.msrb.mxu2 %v2777_v23  ;;  %1752 = vmatpush.bf16.msra.mxu0 %v2493_v38  ;;  %v3315_v20 = vld [vmem:[%s5343_s1 + $0xe4] sm:$0xf0] }
  0x62   :  { %1706 = vmatmul.bf16.vlgmr.msrb.gmra.mxu1 %v3811_v53  ;;  %v2620_v23 = vld [vmem:[%s5343_s1 + $0x2c8] sm:$0xf]  ;;  %v2365_v29 = vor.u32 %v3315_v20, %v2364_v19  ;;  %v2974_v19 = vld [vmem:[%s5343_s1 + $0x5a8] sm:$0xf0] }
  0x63   :  { %1770 = vmatpush.bf16.msra.mxu1 %v2749_v32  ;;  %1741 = vmatpush.bf16.msrb.mxu3 %v3033_v37  ;;  %v3379_v24 = vld [vmem:[%s5343_s1 + $0x2e4] sm:$0xf0] }
  0x64   :  { %1688 = vmatmul.bf16.vlgmr.msrb.gmra.mxu0 %v3800_v48  ;;  %1724 = vmatmul.bf16.vlgmr.msrb.gmra.mxu2 %v3813_v54  ;;  %v3132_v25 = vld [vmem:[%s5343_s1 + $0x6c8] sm:$0xf]  ;;  %v2621_v30 = vor.u32 %v3379_v24, %v2620_v23  ;;  %v3265_v23 = vor.u32 %v3535_v14, %v3262_v15  ;;  %v3335_v24 = vld [vmem:[%s5343_s1 + $0x18c] sm:$0xf] }
  0x65   :  { %1788 = vmatpush.bf16.msra.mxu2 %v3005_v28  ;;  %1753 = vmatpush.bf16.msra.mxu0 %v2461_v56  ;;  %v3507_v26 = vld [vmem:[%s5343_s1 + $0x6e4] sm:$0xf0]  ;;  %v3303_v14 = vld [vmem:[%s5343_s1 + $0x8c] sm:$0xf] }
  0x66   :  { %1742 = vmatmul.bf16.vlgmr.msrb.gmra.mxu3 %v3821_v57  ;;  %v2844_v27 = vld [vmem:[%s5343_s1 + $0x488] sm:$0xf]  ;;  %v3133_v33 = vor.u32 %v3507_v26, %v3132_v25  ;;  %v2462_v25 = vld [vmem:[%s5343_s1 + $0x1a8] sm:$0xf0] }
  0x67   :  { %1806 = vmatpush.bf16.msra.mxu3 %v3261_v41  ;;  %1771 = vmatpush.bf16.msra.mxu1 %v2717_v58  ;;  %v3435_v28 = vld [vmem:[%s5343_s1 + $0x4a4] sm:$0xf0]  ;;  %v2334_v15 = vld [vmem:[%s5343_s1 + $0xa8] sm:$0xf0] }
  0x68   :  { %v2332_v31 = vld [vmem:[%s5343_s1 + $0x88] sm:$0xf]  ;;  %v2845_v34 = vor.u32 %v3435_v28, %v2844_v27  ;;  %v3399_v27 = vld [vmem:[%s5343_s1 + $0x38c] sm:$0xf] }
  0x69   :  { %1789 = vmatpush.bf16.msra.mxu2 %v2973_v43  ;;  %1754 = vmatpush.bf16.msra.mxu0 %v2429_v5  ;;  %v3307_v32 = vld [vmem:[%s5343_s1 + $0xa4] sm:$0xf0]  ;;  %v2718_v28 = vld [vmem:[%s5343_s1 + $0x3a8] sm:$0xf0] }
  0x6a   :  { %v2588_v35 = vld [vmem:[%s5343_s1 + $0x288] sm:$0xf]  ;;  %v2333_v41 = vor.u32 %v3307_v32, %v2332_v31  ;;  %v3230_v31 = vld [vmem:[%s5343_s1 + $0x7a8] sm:$0xf0] }
  0x6b   :  { %1807 = vmatpush.bf16.msra.mxu3 %v3229_v61  ;;  %1772 = vmatpush.bf16.msra.mxu1 %v2685_v6  ;;  %v3371_v36 = vld [vmem:[%s5343_s1 + $0x2a4] sm:$0xf0]  ;;  %v3471_v61 = vld [vmem:[%s5343_s1 + $0x5cc] sm:$0xf] }
  0x6c   :  { %v3100_v37 = vld [vmem:[%s5343_s1 + $0x688] sm:$0xf]  ;;  %v2589_v43 = vor.u32 %v3371_v36, %v2588_v35  ;;  %v3455_v32 = vld [vmem:[%s5343_s1 + $0x54c] sm:$0xf]  ;;  %v2721_v36 = vor.u32 %v3399_v27, %v2718_v28 }
  0x6d   :  { %1790 = vmatpush.bf16.msra.mxu2 %v2941_v62  ;;  %1755 = vmatpush.bf16.msra.mxu0 %v2397_v17  ;;  %v3499_v38 = vld [vmem:[%s5343_s1 + $0x6a4] sm:$0xf0]  ;;  %v3006_v62 = vld [vmem:[%s5343_s1 + $0x5e8] sm:$0xf0] }
  0x6e   :  { %v2812_v39 = vld [vmem:[%s5343_s1 + $0x448] sm:$0xf]  ;;  %v3101_v46 = vor.u32 %v3499_v38, %v3100_v37  ;;  %v2430_v35 = vld [vmem:[%s5343_s1 + $0x168] sm:$0xf0] }
  0x6f   :  { %1808 = vmatpush.bf16.msra.mxu3 %v3197_v9  ;;  %1773 = vmatpush.bf16.msra.mxu1 %v2653_v18  ;;  %v3427_v40 = vld [vmem:[%s5343_s1 + $0x464] sm:$0xf0]  ;;  %v3009_v9 = vor.u32 %v3471_v61, %v3006_v62  ;;  %v3463_v18 = vld [vmem:[%s5343_s1 + $0x58c] sm:$0xf] }
  0x70   :  { %v2300_v44 = vld [vmem:[%s5343_s1 + $0x48] sm:$0xf]  ;;  %v2813_v50 = vor.u32 %v3427_v40, %v2812_v39  ;;  %v2977_v26 = vor.u32 %v3463_v18, %v2974_v19  ;;  %v3391_v38 = vld [vmem:[%s5343_s1 + $0x34c] sm:$0xf] }
  0x71   :  { %1791 = vmatpush.bf16.msra.mxu2 %v2909_v10  ;;  %1756 = vmatpush.bf16.msra.mxu0 %v2365_v29  ;;  %v3299_v45 = vld [vmem:[%s5343_s1 + $0x64] sm:$0xf0]  ;;  %v3343_v10 = vld [vmem:[%s5343_s1 + $0x1cc] sm:$0xf]  ;;  %v2465_v29 = vor.u32 %v3335_v24, %v2462_v25 }
  0x72   :  { %v2556_v51 = vld [vmem:[%s5343_s1 + $0x248] sm:$0xf]  ;;  %1711 = vmatmul.bf16.gmra.mxu1 %v3925_v47  ;;  %v2301_v63 = vor.u32 %v3299_v45, %v2300_v44  ;;  %v2686_v39 = vld [vmem:[%s5343_s1 + $0x368] sm:$0xf0] }
  0x73   :  { %1809 = vmatpush.bf16.msra.mxu3 %v3165_v21  ;;  %1774 = vmatpush.bf16.msra.mxu1 %v2621_v30  ;;  %v3363_v55 = vld [vmem:[%s5343_s1 + $0x264] sm:$0xf0]  ;;  %v2497_v21 = vor.u32 %v3343_v10, %v2494_v11  ;;  %v3527_v30 = vld [vmem:[%s5343_s1 + $0x78c] sm:$0xf] }
  0x74   :  { %v3068_v56 = vld [vmem:[%s5343_s1 + $0x648] sm:$0xf]  ;;  %1693 = vmatmul.bf16.gmra.mxu0 %v3914_v42  ;;  %1729 = vmatmul.bf16.gmra.mxu2 %v3927_v49  ;;  %v2557_v0 = vor.u32 %v3363_v55, %v2556_v51  ;;  %v3233_v37 = vor.u32 %v3527_v30, %v3230_v31  ;;  %v3198_v44 = vld [vmem:[%s5343_s1 + $0x768] sm:$0xf0]  ;;  %v2689_v55 = vor.u32 %v3391_v38, %v2686_v39 }
  0x75   :  { %1792 = vmatpush.bf16.msra.mxu2 %v2877_v22  ;;  %v3491_v58 = vld [vmem:[%s5343_s1 + $0x664] sm:$0xf0]  ;;  %1757 = vmatpush.bf16.msra.mxu0 %v2333_v41  ;;  %v2753_v22 = vor.u32 %v3407_v12, %v2750_v13  ;;  %v3447_v45 = vld [vmem:[%s5343_s1 + $0x50c] sm:$0xf] }
  0x76   :  { %v2780_v59 = vld [vmem:[%s5343_s1 + $0x408] sm:$0xf]  ;;  %1747 = vmatmul.bf16.gmra.mxu3 %v3935_v52  ;;  %v3069_v4 = vor.u32 %v3491_v58, %v3068_v56  ;;  %v2398_v51 = vld [vmem:[%s5343_s1 + $0x128] sm:$0xf0] }
  0x77   :  { %1810 = vmatpush.bf16.msra.mxu3 %v3133_v33  ;;  %v3419_v60 = vld [vmem:[%s5343_s1 + $0x424] sm:$0xf0]  ;;  %1775 = vmatpush.bf16.msra.mxu1 %v2589_v43  ;;  %v2942_v33 = vld [vmem:[%s5343_s1 + $0x568] sm:$0xf0] }
  0x78   :  { %v2268_v1 = vld [vmem:[%s5343_s1 + $0x8] sm:$0xf]  ;;  %v2781_v5 = vor.u32 %v3419_v60, %v2780_v59  ;;  %v2945_v40 = vor.u32 %v3455_v32, %v2942_v33  ;;  %v3519_v43 = vld [vmem:[%s5343_s1 + $0x74c] sm:$0xf] }
  0x79   :  { %1793 = vmatpush.bf16.msra.mxu2 %v2845_v34  ;;  %v3291_v2 = vld [vmem:[%s5343_s1 + $0x24] sm:$0xf0]  ;;  %1758 = vmatpush.bf16.msra.mxu0 %v2301_v63  ;;  %v3327_v34 = vld [vmem:[%s5343_s1 + $0x14c] sm:$0xf]  ;;  %v3201_v56 = vor.u32 %v3519_v43, %v3198_v44  ;;  %v2500_v43 = vld [vmem:[%s5343_s1 + $0x1d0] sm:$0xf] }
  0x7a   :  { %v2524_v3 = vld [vmem:[%s5343_s1 + $0x208] sm:$0xf]  ;;  %v2269_v16 = vor.u32 %v3291_v2, %v2268_v1  ;;  %v2433_v41 = vor.u32 %v3327_v34, %v2430_v35  ;;  %v3383_v58 = vld [vmem:[%s5343_s1 + $0x30c] sm:$0xf]  ;;  %v3348_v44 = vld [vmem:[%s5343_s1 + $0x1ec] sm:$0xf0] }
  0x7b   :  { %1811 = vmatpush.bf16.msra.mxu3 %v3101_v46  ;;  %v3355_v6 = vld [vmem:[%s5343_s1 + $0x224] sm:$0xf0]  ;;  %1776 = vmatpush.bf16.msra.mxu1 %v2557_v0  ;;  %v2910_v46 = vld [vmem:[%s5343_s1 + $0x528] sm:$0xf0] }
  0x7c   :  { %v3036_v7 = vld [vmem:[%s5343_s1 + $0x608] sm:$0xf]  ;;  %v2525_v17 = vor.u32 %v3355_v6, %v2524_v3  ;;  %v2654_v59 = vld [vmem:[%s5343_s1 + $0x328] sm:$0xf0]  ;;  %v2913_v60 = vor.u32 %v3447_v45, %v2910_v46 }
  0x7d   :  { %1794 = vmatpush.bf16.msra.mxu2 %v2813_v50  ;;  %v3483_v8 = vld [vmem:[%s5343_s1 + $0x624] sm:$0xf0]  ;;  %1759 = vmatpush.bf16.msra.mxu0 %v2269_v16  ;;  %v3319_v50 = vld [vmem:[%s5343_s1 + $0x10c] sm:$0xf] }
  0x7e   :  { %v3037_v20 = vor.u32 %v3483_v8, %v3036_v7  ;;  %v2401_v61 = vor.u32 %v3319_v50, %v2398_v51  ;;  %v3511_v62 = vld [vmem:[%s5343_s1 + $0x70c] sm:$0xf] }
  0x7f   :  { %1812 = vmatpush.bf16.msra.mxu3 %v3069_v4  ;;  %1777 = vmatpush.bf16.msra.mxu1 %v2525_v17  ;;  %v3166_v63 = vld [vmem:[%s5343_s1 + $0x728] sm:$0xf0]  ;;  %v2657_v4 = vor.u32 %v3383_v58, %v2654_v59 }
  0x80   :  { %v3439_v0 = vld [vmem:[%s5343_s1 + $0x4cc] sm:$0xf] }
  0x81   :  { %1795 = vmatpush.bf16.msra.mxu2 %v2781_v5  ;;  %1824 = vmatpush.bf16.msrb.mxu0 %v2497_v21  ;;  %v2878_v1 = vld [vmem:[%s5343_s1 + $0x4e8] sm:$0xf0]  ;;  %v3169_v5 = vor.u32 %v3511_v62, %v3166_v63  ;;  %v2337_v21 = vor.u32 %v3303_v14, %v2334_v15  ;;  %v2501_v63 = vor.u32 %v3348_v44, %v2500_v43  ;;  %v3236_v14 = vld [vmem:[%s5343_s1 + $0x790] sm:$0xf] }
  0x82   :  { %1778 = vmatmul.bf16.vlgmr.msra.gmra.mxu1 %v3811_v53  ;;  %v3311_v2 = vld [vmem:[%s5343_s1 + $0xcc] sm:$0xf]  ;;  %v2881_v8 = vor.u32 %v3439_v0, %v2878_v1  ;;  %v3268_v0 = vld [vmem:[%s5343_s1 + $0x7d0] sm:$0xf] }
  0x83   :  { %1813 = vmatpush.bf16.msra.mxu3 %v3037_v20  ;;  %1842 = vmatpush.bf16.msrb.mxu1 %v2753_v22  ;;  %v2366_v3 = vld [vmem:[%s5343_s1 + $0xe8] sm:$0xf0]  ;;  %v3540_v1 = vld [vmem:[%s5343_s1 + $0x7ec] sm:$0xf0] }
  0x84   :  { %1760 = vmatmul.bf16.vlgmr.msra.gmra.mxu0 %v3800_v48  ;;  %1796 = vmatmul.bf16.vlgmr.msra.gmra.mxu2 %v3813_v54  ;;  %v3375_v6 = vld [vmem:[%s5343_s1 + $0x2cc] sm:$0xf]  ;;  %v3532_v15 = vld [vmem:[%s5343_s1 + $0x7ac] sm:$0xf0] }
  0x85   :  { %1860 = vmatpush.bf16.msrb.mxu2 %v3009_v9  ;;  %1825 = vmatpush.bf16.msrb.mxu0 %v2465_v29  ;;  %v2622_v7 = vld [vmem:[%s5343_s1 + $0x2e8] sm:$0xf0]  ;;  %v2369_v9 = vor.u32 %v3311_v2, %v2366_v3  ;;  %v2980_v2 = vld [vmem:[%s5343_s1 + $0x590] sm:$0xf] }
  0x86   :  { %1814 = vmatmul.bf16.vlgmr.msra.gmra.mxu3 %v3821_v57  ;;  %v3503_v10 = vld [vmem:[%s5343_s1 + $0x6cc] sm:$0xf]  ;;  %v2625_v16 = vor.u32 %v3375_v6, %v2622_v7  ;;  %v3468_v3 = vld [vmem:[%s5343_s1 + $0x5ac] sm:$0xf0] }
  0x87   :  { %1878 = vmatpush.bf16.msrb.mxu3 %v3265_v23  ;;  %1843 = vmatpush.bf16.msrb.mxu1 %v2721_v36  ;;  %v3134_v11 = vld [vmem:[%s5343_s1 + $0x6e8] sm:$0xf0] }
  0x88   :  { %v3431_v12 = vld [vmem:[%s5343_s1 + $0x48c] sm:$0xf]  ;;  %v3137_v17 = vor.u32 %v3503_v10, %v3134_v11  ;;  %v2724_v10 = vld [vmem:[%s5343_s1 + $0x390] sm:$0xf]  ;;  %v2981_v11 = vor.u32 %v3468_v3, %v2980_v2 }
  0x89   :  { %1861 = vmatpush.bf16.msrb.mxu2 %v2977_v26  ;;  %1826 = vmatpush.bf16.msrb.mxu0 %v2433_v41  ;;  %v2846_v13 = vld [vmem:[%s5343_s1 + $0x4a8] sm:$0xf0]  ;;  %v3476_v41 = vld [vmem:[%s5343_s1 + $0x5ec] sm:$0xf0] }
  0x8a   :  { %v3367_v18 = vld [vmem:[%s5343_s1 + $0x28c] sm:$0xf]  ;;  %v2849_v20 = vor.u32 %v3431_v12, %v2846_v13  ;;  %v3404_v13 = vld [vmem:[%s5343_s1 + $0x3ac] sm:$0xf0] }
  0x8b   :  { %1879 = vmatpush.bf16.msrb.mxu3 %v3233_v37  ;;  %1844 = vmatpush.bf16.msrb.mxu1 %v2689_v55  ;;  %v2590_v19 = vld [vmem:[%s5343_s1 + $0x2a8] sm:$0xf0]  ;;  %v2596_v2 = vld [vmem:[%s5343_s1 + $0x290] sm:$0xf] }
  0x8c   :  { %v3495_v22 = vld [vmem:[%s5343_s1 + $0x68c] sm:$0xf]  ;;  %v2593_v28 = vor.u32 %v3367_v18, %v2590_v19  ;;  %v2725_v18 = vor.u32 %v3404_v13, %v2724_v10  ;;  %v3237_v19 = vor.u32 %v3532_v15, %v3236_v14  ;;  %v3372_v3 = vld [vmem:[%s5343_s1 + $0x2ac] sm:$0xf0] }
  0x8d   :  { %1862 = vmatpush.bf16.msrb.mxu2 %v2945_v40  ;;  %1827 = vmatpush.bf16.msrb.mxu0 %v2401_v61  ;;  %v3102_v23 = vld [vmem:[%s5343_s1 + $0x6a8] sm:$0xf0]  ;;  %v3012_v40 = vld [vmem:[%s5343_s1 + $0x5d0] sm:$0xf]  ;;  %v2597_v10 = vor.u32 %v3372_v3, %v2596_v2  ;;  %v3456_v2 = vld [vmem:[%s5343_s1 + $0x554] sm:$0xf] }
  0x8e   :  { %v3423_v24 = vld [vmem:[%s5343_s1 + $0x44c] sm:$0xf]  ;;  %v3105_v29 = vor.u32 %v3495_v22, %v3102_v23  ;;  %v3412_v61 = vld [vmem:[%s5343_s1 + $0x3ec] sm:$0xf0]  ;;  %v3013_v62 = vor.u32 %v3476_v41, %v3012_v40  ;;  %v2950_v3 = vld [vmem:[%s5343_s1 + $0x570] sm:$0xf0] }
  0x8f   :  { %1880 = vmatpush.bf16.msrb.mxu3 %v3201_v56  ;;  %1845 = vmatpush.bf16.msrb.mxu1 %v2657_v4  ;;  %v2814_v25 = vld [vmem:[%s5343_s1 + $0x468] sm:$0xf0]  ;;  %v2468_v4 = vld [vmem:[%s5343_s1 + $0x190] sm:$0xf] }
  0x90   :  { %v3295_v26 = vld [vmem:[%s5343_s1 + $0x4c] sm:$0xf]  ;;  %v2817_v33 = vor.u32 %v3423_v24, %v2814_v25  ;;  %v2692_v22 = vld [vmem:[%s5343_s1 + $0x350] sm:$0xf] }
  0x91   :  { %1863 = vmatpush.bf16.msrb.mxu2 %v2913_v60  ;;  %1828 = vmatpush.bf16.msrb.mxu0 %v2369_v9  ;;  %v2302_v27 = vld [vmem:[%s5343_s1 + $0x68] sm:$0xf0]  ;;  %v2756_v60 = vld [vmem:[%s5343_s1 + $0x3d0] sm:$0xf]  ;;  %v3269_v9 = vor.u32 %v3540_v1, %v3268_v0 }
  0x92   :  { %v3359_v30 = vld [vmem:[%s5343_s1 + $0x24c] sm:$0xf]  ;;  %v2305_v34 = vor.u32 %v3295_v26, %v2302_v27  ;;  %1783 = vmatmul.bf16.gmra.mxu1 %v3925_v47  ;;  %v3396_v23 = vld [vmem:[%s5343_s1 + $0x36c] sm:$0xf0] }
  0x93   :  { %1881 = vmatpush.bf16.msrb.mxu3 %v3169_v5  ;;  %1846 = vmatpush.bf16.msrb.mxu1 %v2625_v16  ;;  %v2558_v31 = vld [vmem:[%s5343_s1 + $0x268] sm:$0xf0]  ;;  %v3340_v5 = vld [vmem:[%s5343_s1 + $0x1ac] sm:$0xf0] }
  0x94   :  { %v3487_v32 = vld [vmem:[%s5343_s1 + $0x64c] sm:$0xf]  ;;  %1765 = vmatmul.bf16.gmra.mxu0 %v3914_v42  ;;  %1801 = vmatmul.bf16.gmra.mxu2 %v3927_v49  ;;  %v2561_v45 = vor.u32 %v3359_v30, %v2558_v31  ;;  %v2469_v12 = vor.u32 %v3340_v5, %v2468_v4  ;;  %v2948_v16 = vld [vmem:[%s5343_s1 + $0x550] sm:$0xf]  ;;  %v2693_v30 = vor.u32 %v3396_v23, %v2692_v22 }
  0x95   :  { %1864 = vmatpush.bf16.msrb.mxu2 %v2881_v8  ;;  %1829 = vmatpush.bf16.msrb.mxu0 %v2337_v21  ;;  %v3070_v35 = vld [vmem:[%s5343_s1 + $0x668] sm:$0xf0]  ;;  %v2757_v8 = vor.u32 %v3412_v61, %v2756_v60  ;;  %v3332_v21 = vld [vmem:[%s5343_s1 + $0x16c] sm:$0xf0] }
  0x96   :  { %v3415_v36 = vld [vmem:[%s5343_s1 + $0x40c] sm:$0xf]  ;;  %1819 = vmatmul.bf16.gmra.mxu3 %v3935_v52  ;;  %v3073_v46 = vor.u32 %v3487_v32, %v3070_v35  ;;  %v3204_v24 = vld [vmem:[%s5343_s1 + $0x750] sm:$0xf] }
  0x97   :  { %1882 = vmatpush.bf16.msrb.mxu3 %v3137_v17  ;;  %v2782_v37 = vld [vmem:[%s5343_s1 + $0x428] sm:$0xf0]  ;;  %1847 = vmatpush.bf16.msrb.mxu1 %v2593_v28  ;;  %v3460_v17 = vld [vmem:[%s5343_s1 + $0x56c] sm:$0xf0] }
  0x98   :  { %v3287_v38 = vld [vmem:[%s5343_s1 + $0xc] sm:$0xf]  ;;  %v2785_v56 = vor.u32 %v3415_v36, %v2782_v37  ;;  %v3524_v25 = vld [vmem:[%s5343_s1 + $0x76c] sm:$0xf0]  ;;  %v2949_v26 = vor.u32 %v3460_v17, %v2948_v16 }
  0x99   :  { %1865 = vmatpush.bf16.msrb.mxu2 %v2849_v20  ;;  %v2270_v39 = vld [vmem:[%s5343_s1 + $0x28] sm:$0xf0]  ;;  %1830 = vmatpush.bf16.msrb.mxu0 %v2305_v34  ;;  %v2436_v20 = vld [vmem:[%s5343_s1 + $0x150] sm:$0xf]  ;;  %v3205_v31 = vor.u32 %v3524_v25, %v3204_v24 }
  0x9a   :  { %v3351_v50 = vld [vmem:[%s5343_s1 + $0x20c] sm:$0xf]  ;;  %v2273_v58 = vor.u32 %v3287_v38, %v2270_v39  ;;  %v2437_v27 = vor.u32 %v3332_v21, %v2436_v20  ;;  %v2916_v28 = vld [vmem:[%s5343_s1 + $0x510] sm:$0xf] }
  0x9b   :  { %1883 = vmatpush.bf16.msrb.mxu3 %v3105_v29  ;;  %v2526_v51 = vld [vmem:[%s5343_s1 + $0x228] sm:$0xf0]  ;;  %1848 = vmatpush.bf16.msrb.mxu1 %v2561_v45  ;;  %v3452_v29 = vld [vmem:[%s5343_s1 + $0x52c] sm:$0xf0] }
  0x9c   :  { %v3479_v55 = vld [vmem:[%s5343_s1 + $0x60c] sm:$0xf]  ;;  %v2529_v6 = vor.u32 %v3351_v50, %v2526_v51  ;;  %v2404_v32 = vld [vmem:[%s5343_s1 + $0x110] sm:$0xf]  ;;  %v2917_v38 = vor.u32 %v3452_v29, %v2916_v28 }
  0x9d   :  { %1866 = vmatpush.bf16.msrb.mxu2 %v2817_v33  ;;  %v3038_v59 = vld [vmem:[%s5343_s1 + $0x628] sm:$0xf0]  ;;  %1831 = vmatpush.bf16.msrb.mxu0 %v2273_v58  ;;  %v3324_v33 = vld [vmem:[%s5343_s1 + $0x12c] sm:$0xf0] }
  0x9e   :  { %v3041_v7 = vor.u32 %v3479_v55, %v3038_v59  ;;  %v2660_v34 = vld [vmem:[%s5343_s1 + $0x310] sm:$0xf]  ;;  %v2405_v39 = vor.u32 %v3324_v33, %v2404_v32  ;;  %v3344_v32 = vld [vmem:[%s5343_s1 + $0x1d4] sm:$0xf] }
  0x9f   :  { %1884 = vmatpush.bf16.msrb.mxu3 %v3073_v46  ;;  %1849 = vmatpush.bf16.msrb.mxu1 %v2529_v6  ;;  %v3388_v35 = vld [vmem:[%s5343_s1 + $0x32c] sm:$0xf0]  ;;  %v2502_v33 = vld [vmem:[%s5343_s1 + $0x1f0] sm:$0xf0] }
  0xa0   :  { %v3172_v36 = vld [vmem:[%s5343_s1 + $0x710] sm:$0xf]  ;;  %v2661_v43 = vor.u32 %v3388_v35, %v2660_v34  ;;  %v3408_v34 = vld [vmem:[%s5343_s1 + $0x3d4] sm:$0xf] }
  0xa1   :  { %1867 = vmatpush.bf16.msrb.mxu2 %v2785_v56  ;;  %1896 = vmatpush.bf16.msra.mxu0 %v2501_v63  ;;  %v3516_v37 = vld [vmem:[%s5343_s1 + $0x72c] sm:$0xf0] }
  0xa2   :  { %1850 = vmatmul.bf16.vlgmr.msrb.gmra.mxu1 %v3811_v53  ;;  %v2884_v40 = vld [vmem:[%s5343_s1 + $0x4d0] sm:$0xf]  ;;  %v3173_v44 = vor.u32 %v3516_v37, %v3172_v36  ;;  %v2758_v37 = vld [vmem:[%s5343_s1 + $0x3f0] sm:$0xf0] }
  0xa3   :  { %1885 = vmatpush.bf16.msrb.mxu3 %v3041_v7  ;;  %1914 = vmatpush.bf16.msra.mxu1 %v2757_v8  ;;  %v3444_v41 = vld [vmem:[%s5343_s1 + $0x4ec] sm:$0xf0] }
  0xa4   :  { %1832 = vmatmul.bf16.vlgmr.msrb.gmra.mxu0 %v3800_v48  ;;  %1868 = vmatmul.bf16.vlgmr.msrb.gmra.mxu2 %v3813_v54  ;;  %v2372_v45 = vld [vmem:[%s5343_s1 + $0xd0] sm:$0xf]  ;;  %v2885_v58 = vor.u32 %v3444_v41, %v2884_v40 }
  0xa5   :  { %1932 = vmatpush.bf16.msra.mxu2 %v3013_v62  ;;  %1897 = vmatpush.bf16.msra.mxu0 %v2469_v12  ;;  %v3316_v46 = vld [vmem:[%s5343_s1 + $0xec] sm:$0xf0] }
  0xa6   :  { %1886 = vmatmul.bf16.vlgmr.msrb.gmra.mxu3 %v3821_v57  ;;  %v2628_v50 = vld [vmem:[%s5343_s1 + $0x2d0] sm:$0xf]  ;;  %v2373_v59 = vor.u32 %v3316_v46, %v2372_v45  ;;  %v3464_v45 = vld [vmem:[%s5343_s1 + $0x594] sm:$0xf] }
  0xa7   :  { %1950 = vmatpush.bf16.msra.mxu3 %v3269_v9  ;;  %1915 = vmatpush.bf16.msra.mxu1 %v2725_v18  ;;  %v3380_v51 = vld [vmem:[%s5343_s1 + $0x2ec] sm:$0xf0]  ;;  %v2982_v46 = vld [vmem:[%s5343_s1 + $0x5b0] sm:$0xf0] }
  0xa8   :  { %v3140_v55 = vld [vmem:[%s5343_s1 + $0x6d0] sm:$0xf]  ;;  %v2629_v62 = vor.u32 %v3380_v51, %v2628_v50  ;;  %v2761_v50 = vor.u32 %v3408_v34, %v2758_v37  ;;  %v3504_v37 = vld [vmem:[%s5343_s1 + $0x6d4] sm:$0xf] }
  0xa9   :  { %1933 = vmatpush.bf16.msra.mxu2 %v2981_v11  ;;  %1898 = vmatpush.bf16.msra.mxu0 %v2437_v27  ;;  %v3508_v56 = vld [vmem:[%s5343_s1 + $0x6ec] sm:$0xf0] }
  0xaa   :  { %v2852_v60 = vld [vmem:[%s5343_s1 + $0x490] sm:$0xf]  ;;  %v3141_v63 = vor.u32 %v3508_v56, %v3140_v55  ;;  %v3336_v55 = vld [vmem:[%s5343_s1 + $0x194] sm:$0xf] }
  0xab   :  { %1951 = vmatpush.bf16.msra.mxu3 %v3237_v19  ;;  %1916 = vmatpush.bf16.msra.mxu1 %v2693_v30  ;;  %v3436_v61 = vld [vmem:[%s5343_s1 + $0x4ac] sm:$0xf0]  ;;  %v3472_v30 = vld [vmem:[%s5343_s1 + $0x5d4] sm:$0xf] }
  0xac   :  { %v2340_v0 = vld [vmem:[%s5343_s1 + $0x90] sm:$0xf]  ;;  %v2853_v6 = vor.u32 %v3436_v61, %v2852_v60  ;;  %v2470_v56 = vld [vmem:[%s5343_s1 + $0x1b0] sm:$0xf0] }
  0xad   :  { %1934 = vmatpush.bf16.msra.mxu2 %v2949_v26  ;;  %1899 = vmatpush.bf16.msra.mxu0 %v2405_v39  ;;  %v3308_v1 = vld [vmem:[%s5343_s1 + $0xac] sm:$0xf0]  ;;  %v3270_v39 = vld [vmem:[%s5343_s1 + $0x7f0] sm:$0xf0] }
  0xae   :  { %v3108_v4 = vld [vmem:[%s5343_s1 + $0x690] sm:$0xf]  ;;  %v2341_v7 = vor.u32 %v3308_v1, %v2340_v0  ;;  %v3528_v60 = vld [vmem:[%s5343_s1 + $0x794] sm:$0xf] }
  0xaf   :  { %1952 = vmatpush.bf16.msra.mxu3 %v3205_v31  ;;  %1917 = vmatpush.bf16.msra.mxu1 %v2661_v43  ;;  %v3500_v5 = vld [vmem:[%s5343_s1 + $0x6ac] sm:$0xf0]  ;;  %v3014_v31 = vld [vmem:[%s5343_s1 + $0x5f0] sm:$0xf0] }
  0xb0   :  { %v2820_v8 = vld [vmem:[%s5343_s1 + $0x450] sm:$0xf]  ;;  %v3109_v11 = vor.u32 %v3500_v5, %v3108_v4  ;;  %v3017_v43 = vor.u32 %v3472_v30, %v3014_v31  ;;  %v3238_v61 = vld [vmem:[%s5343_s1 + $0x7b0] sm:$0xf0] }
  0xb1   :  { %1935 = vmatpush.bf16.msra.mxu2 %v2917_v38  ;;  %1900 = vmatpush.bf16.msra.mxu0 %v2373_v59  ;;  %v3428_v9 = vld [vmem:[%s5343_s1 + $0x46c] sm:$0xf0]  ;;  %v3536_v38 = vld [vmem:[%s5343_s1 + $0x7d4] sm:$0xf]  ;;  %v3241_v1 = vor.u32 %v3528_v60, %v3238_v61 }
  0xb2   :  { %v2308_v12 = vld [vmem:[%s5343_s1 + $0x50] sm:$0xf]  ;;  %v2821_v19 = vor.u32 %v3428_v9, %v2820_v8  ;;  %1855 = vmatmul.bf16.gmra.mxu1 %v3925_v47  ;;  %v3273_v51 = vor.u32 %v3536_v38, %v3270_v39  ;;  %v2726_v59 = vld [vmem:[%s5343_s1 + $0x3b0] sm:$0xf0] }
  0xb3   :  { %1953 = vmatpush.bf16.msra.mxu3 %v3173_v44  ;;  %1918 = vmatpush.bf16.msra.mxu1 %v2629_v62  ;;  %v3300_v13 = vld [vmem:[%s5343_s1 + $0x6c] sm:$0xf0]  ;;  %v2505_v44 = vor.u32 %v3344_v32, %v2502_v33  ;;  %v2985_v62 = vor.u32 %v3464_v45, %v2982_v46  ;;  %v3328_v4 = vld [vmem:[%s5343_s1 + $0x154] sm:$0xf] }
  0xb4   :  { %v2564_v14 = vld [vmem:[%s5343_s1 + $0x250] sm:$0xf]  ;;  %v2309_v20 = vor.u32 %v3300_v13, %v2308_v12  ;;  %1837 = vmatmul.bf16.gmra.mxu0 %v3914_v42  ;;  %1873 = vmatmul.bf16.gmra.mxu2 %v3927_v49  ;;  %v2438_v5 = vld [vmem:[%s5343_s1 + $0x170] sm:$0xf0]  ;;  %v2953_v12 = vor.u32 %v3456_v2, %v2950_v3 }
  0xb5   :  { %1936 = vmatpush.bf16.msra.mxu2 %v2885_v58  ;;  %v3364_v15 = vld [vmem:[%s5343_s1 + $0x26c] sm:$0xf0]  ;;  %1901 = vmatpush.bf16.msra.mxu0 %v2341_v7  ;;  %v3400_v58 = vld [vmem:[%s5343_s1 + $0x394] sm:$0xf]  ;;  %v2441_v13 = vor.u32 %v3328_v4, %v2438_v5 }
  0xb6   :  { %v3076_v16 = vld [vmem:[%s5343_s1 + $0x650] sm:$0xf]  ;;  %v2565_v24 = vor.u32 %v3364_v15, %v2564_v14  ;;  %1891 = vmatmul.bf16.gmra.mxu3 %v3935_v52  ;;  %v2729_v0 = vor.u32 %v3400_v58, %v2726_v59  ;;  %v2694_v8 = vld [vmem:[%s5343_s1 + $0x370] sm:$0xf0] }
  0xb7   :  { %1954 = vmatpush.bf16.msra.mxu3 %v3141_v63  ;;  %v3492_v17 = vld [vmem:[%s5343_s1 + $0x66c] sm:$0xf0]  ;;  %1919 = vmatpush.bf16.msra.mxu1 %v2597_v10  ;;  %v2473_v63 = vor.u32 %v3336_v55, %v2470_v56  ;;  %v3520_v9 = vld [vmem:[%s5343_s1 + $0x754] sm:$0xf] }
  0xb8   :  { %v2788_v18 = vld [vmem:[%s5343_s1 + $0x410] sm:$0xf]  ;;  %v3077_v25 = vor.u32 %v3492_v17, %v3076_v16  ;;  %v3206_v10 = vld [vmem:[%s5343_s1 + $0x770] sm:$0xf0] }
  0xb9   :  { %1937 = vmatpush.bf16.msra.mxu2 %v2853_v6  ;;  %v3420_v21 = vld [vmem:[%s5343_s1 + $0x42c] sm:$0xf0]  ;;  %1902 = vmatpush.bf16.msra.mxu0 %v2309_v20  ;;  %v3392_v6 = vld [vmem:[%s5343_s1 + $0x354] sm:$0xf]  ;;  %v3209_v17 = vor.u32 %v3520_v9, %v3206_v10 }
  0xba   :  { %v2276_v22 = vld [vmem:[%s5343_s1 + $0x10] sm:$0xf]  ;;  %v2789_v35 = vor.u32 %v3420_v21, %v2788_v18  ;;  %v3448_v14 = vld [vmem:[%s5343_s1 + $0x514] sm:$0xf]  ;;  %v2697_v16 = vor.u32 %v3392_v6, %v2694_v8 }
  0xbb   :  { %v3292_v23 = vld [vmem:[%s5343_s1 + $0x2c] sm:$0xf0]  ;;  %1955 = vmatpush.bf16.msra.mxu3 %v3109_v11  ;;  %1920 = vmatpush.bf16.msra.mxu1 %v2565_v24  ;;  %v2918_v15 = vld [vmem:[%s5343_s1 + $0x530] sm:$0xf0] }
  0xbc   :  { %v2532_v26 = vld [vmem:[%s5343_s1 + $0x210] sm:$0xf]  ;;  %v2277_v36 = vor.u32 %v3292_v23, %v2276_v22  ;;  %v3320_v18 = vld [vmem:[%s5343_s1 + $0x114] sm:$0xf]  ;;  %v2921_v24 = vor.u32 %v3448_v14, %v2918_v15 }
  0xbd   :  { %v3356_v27 = vld [vmem:[%s5343_s1 + $0x22c] sm:$0xf0]  ;;  %1938 = vmatpush.bf16.msra.mxu2 %v2821_v19  ;;  %v2406_v19 = vld [vmem:[%s5343_s1 + $0x130] sm:$0xf0] }
  0xbe   :  { %v3044_v28 = vld [vmem:[%s5343_s1 + $0x610] sm:$0xf]  ;;  %v2533_v40 = vor.u32 %v3356_v27, %v2532_v26  ;;  %1903 = vmatpush.bf16.msra.mxu0 %v2277_v36  ;;  %v3384_v20 = vld [vmem:[%s5343_s1 + $0x314] sm:$0xf] }
  0xbf   :  { %v3484_v29 = vld [vmem:[%s5343_s1 + $0x62c] sm:$0xf0]  ;;  %1956 = vmatpush.bf16.msra.mxu3 %v3077_v25  ;;  %v4675_v11 = vpop.f32.mrf.mxu1  ;;  %v2662_v21 = vld [vmem:[%s5343_s1 + $0x330] sm:$0xf0]  ;;  %v2409_v25 = vor.u32 %v3320_v18, %v2406_v19 }
  0xc0   :  { %v3045_v41 = vor.u32 %v3484_v29, %v3044_v28  ;;  %1921 = vmatpush.bf16.msra.mxu1 %v2533_v40  ;;  %v3512_v22 = vld [vmem:[%s5343_s1 + $0x714] sm:$0xf]  ;;  %v2665_v29 = vor.u32 %v3384_v20, %v2662_v21  ;;  %v4808_v20 = vld [vmem:[%s5345_s2] sm:$0xff] }
  0xc1   :  { %1939 = vmatpush.bf16.msra.mxu2 %v2789_v35  ;;  %v4664_v7 = vpop.f32.mrf.mxu0  ;;  %v3174_v23 = vld [vmem:[%s5343_s1 + $0x730] sm:$0xf0] }
  0xc2   :  { %1968 = vmatpush.bf16.msrb.mxu0 %v2505_v44  ;;  %v3440_v26 = vld [vmem:[%s5343_s1 + $0x4d4] sm:$0xf]  ;;  %v3177_v30 = vor.u32 %v3512_v22, %v3174_v23 }
  0xc3   :  { %1957 = vmatpush.bf16.msra.mxu3 %v3045_v41  ;;  %1922 = vmatmul.bf16.vlgmr.msra.gmra.mxu1 %v3811_v53  ;;  %v2886_v27 = vld [vmem:[%s5343_s1 + $0x4f0] sm:$0xf0] }
  0xc4   :  { %1986 = vmatpush.bf16.msrb.mxu1 %v2761_v50  ;;  %1904 = vmatmul.bf16.vlgmr.msra.gmra.mxu0 %v3800_v48  ;;  %v3312_v31 = vld [vmem:[%s5343_s1 + $0xd4] sm:$0xf]  ;;  %v2889_v40 = vor.u32 %v3440_v26, %v2886_v27  ;;  %v3020_v27 = vld [vmem:[%s5343_s1 + $0x5d8] sm:$0xf] }
  0xc5   :  { %2004 = vmatpush.bf16.msrb.mxu2 %v3017_v43  ;;  %v2374_v32 = vld [vmem:[%s5343_s1 + $0xf0] sm:$0xf0] }
  0xc6   :  { %1969 = vmatpush.bf16.msrb.mxu0 %v2473_v63  ;;  %1940 = vmatmul.bf16.vlgmr.msra.gmra.mxu2 %v3813_v54  ;;  %v3376_v33 = vld [vmem:[%s5343_s1 + $0x2d4] sm:$0xf]  ;;  %v2377_v41 = vor.u32 %v3312_v31, %v2374_v32  ;;  %v3349_v31 = vld [vmem:[%s5343_s1 + $0x1f4] sm:$0xf0] }
  0xc7   :  { %2022 = vmatpush.bf16.msrb.mxu3 %v3273_v51  ;;  %v4711_v28 = vpop.f32.mrf.mxu2  ;;  %v2630_v36 = vld [vmem:[%s5343_s1 + $0x2f0] sm:$0xf0]  ;;  %v4735_v39 = vpop.f32.mrf.mxu1  ;;  %v2764_v32 = vld [vmem:[%s5343_s1 + $0x3d8] sm:$0xf] }
  0xc8   :  { %1987 = vmatpush.bf16.msrb.mxu1 %v2729_v0  ;;  %1958 = vmatmul.bf16.vlgmr.msra.gmra.mxu3 %v3821_v57  ;;  %v3142_v38 = vld [vmem:[%s5343_s1 + $0x6f0] sm:$0xf0]  ;;  %v2633_v45 = vor.u32 %v3376_v33, %v2630_v36 }
  0xc9   :  { %2005 = vmatpush.bf16.msrb.mxu2 %v2985_v62  ;;  %v4722_v34 = vpop.f32.mrf.mxu3  ;;  %v4724_v35 = vpop.f32.mrf.mxu0  ;;  %v3432_v43 = vld [vmem:[%s5343_s1 + $0x494] sm:$0xf]  ;;  %v3145_v46 = vor.u32 %v3504_v37, %v3142_v38  ;;  %v3413_v37 = vld [vmem:[%s5343_s1 + $0x3f4] sm:$0xf0] }
  0xca   :  { %1970 = vmatpush.bf16.msrb.mxu0 %v2441_v13  ;;  %v2854_v44 = vld [vmem:[%s5343_s1 + $0x4b0] sm:$0xf0]  ;;  %v3276_v38 = vld [vmem:[%s5343_s1 + $0x7d8] sm:$0xf] }
  0xcb   :  { %2023 = vmatpush.bf16.msrb.mxu3 %v3241_v1  ;;  %v3304_v50 = vld [vmem:[%s5343_s1 + $0x94] sm:$0xf]  ;;  %v2857_v60 = vor.u32 %v3432_v43, %v2854_v44 }
  0xcc   :  { %1988 = vmatpush.bf16.msrb.mxu1 %v2697_v16  ;;  %v2342_v51 = vld [vmem:[%s5343_s1 + $0xb0] sm:$0xf0] }
  0xcd   :  { %2006 = vmatpush.bf16.msrb.mxu2 %v2953_v12  ;;  %v3368_v55 = vld [vmem:[%s5343_s1 + $0x294] sm:$0xf]  ;;  %v2345_v61 = vor.u32 %v3304_v50, %v2342_v51 }
  0xce   :  { %1971 = vmatpush.bf16.msrb.mxu0 %v2409_v25  ;;  %v2598_v56 = vld [vmem:[%s5343_s1 + $0x2b0] sm:$0xf0] }
  0xcf   :  { %2024 = vmatpush.bf16.msrb.mxu3 %v3209_v17  ;;  %v3496_v58 = vld [vmem:[%s5343_s1 + $0x694] sm:$0xf]  ;;  %v4767_v0 = vpop.f32.mrf.mxu2  ;;  %v2601_v1 = vor.u32 %v3368_v55, %v2598_v56  ;;  %v4791_v13 = vpop.f32.mrf.mxu1  ;;  %v2988_v56 = vld [vmem:[%s5343_s1 + $0x598] sm:$0xf] }
  0xd0   :  { %1989 = vmatpush.bf16.msrb.mxu1 %v2665_v29  ;;  %v3110_v59 = vld [vmem:[%s5343_s1 + $0x6b0] sm:$0xf0]  ;;  %v3477_v29 = vld [vmem:[%s5343_s1 + $0x5f4] sm:$0xf0] }
  0xd1   :  { %2007 = vmatpush.bf16.msrb.mxu2 %v2921_v24  ;;  %v3424_v62 = vld [vmem:[%s5343_s1 + $0x454] sm:$0xf]  ;;  %v3113_v2 = vor.u32 %v3496_v58, %v3110_v59  ;;  %v4778_v6 = vpop.f32.mrf.mxu3  ;;  %v4780_v8 = vpop.f32.mrf.mxu0  ;;  %v3021_v51 = vor.u32 %v3477_v29, %v3020_v27  ;;  %v3469_v58 = vld [vmem:[%s5343_s1 + $0x5b4] sm:$0xf0] }
  0xd2   :  { %1972 = vmatpush.bf16.msrb.mxu0 %v2377_v41  ;;  %v2822_v63 = vld [vmem:[%s5343_s1 + $0x470] sm:$0xf0] }
  0xd3   :  { %2025 = vmatpush.bf16.msrb.mxu3 %v3177_v30  ;;  %v3296_v3 = vld [vmem:[%s5343_s1 + $0x54] sm:$0xf]  ;;  %v2825_v15 = vor.u32 %v3424_v62, %v2822_v63  ;;  %1927 = vmatmul.bf16.gmra.mxu1 %v3925_v47  ;;  %v2508_v30 = vld [vmem:[%s5343_s1 + $0x1d8] sm:$0xf] }
  0xd4   :  { %1990 = vmatpush.bf16.msrb.mxu1 %v2633_v45  ;;  %v2310_v4 = vld [vmem:[%s5343_s1 + $0x70] sm:$0xf0]  ;;  %1909 = vmatmul.bf16.gmra.mxu0 %v3914_v42  ;;  %v4853_v45 = vperm.slane %v4808_v20, 0  ;;  %v2509_v55 = vor.u32 %v3349_v31, %v2508_v30  ;;  %v2476_v62 = vld [vmem:[%s5343_s1 + $0x198] sm:$0xf] }
  0xd5   :  { %2008 = vmatpush.bf16.msrb.mxu2 %v2889_v40  ;;  %v3360_v5 = vld [vmem:[%s5343_s1 + $0x254] sm:$0xf]  ;;  %v2313_v16 = vor.u32 %v3296_v3, %v2310_v4  ;;  %v3541_v40 = vld [vmem:[%s5343_s1 + $0x7f4] sm:$0xf0] }
  0xd6   :  { %v2566_v9 = vld [vmem:[%s5343_s1 + $0x270] sm:$0xf0]  ;;  %1973 = vmatpush.bf16.msrb.mxu0 %v2345_v61  ;;  %1945 = vmatmul.bf16.gmra.mxu2 %v3927_v49  ;;  %v3277_v61 = vor.u32 %v3541_v40, %v3276_v38  ;;  %v3341_v63 = vld [vmem:[%s5343_s1 + $0x1b4] sm:$0xf0] }
  0xd7   :  { %2026 = vmatpush.bf16.msrb.mxu3 %v3145_v46  ;;  %v3488_v10 = vld [vmem:[%s5343_s1 + $0x654] sm:$0xf]  ;;  %v2569_v21 = vor.u32 %v3360_v5, %v2566_v9  ;;  %v4850_v41 = vpop.f32.mrf.mxu2  ;;  %v1642_v59 = vpop.f32.mrf.mxu1  ;;  %v3244_v3 = vld [vmem:[%s5343_s1 + $0x798] sm:$0xf]  ;;  %v2989_v5 = vor.u32 %v3469_v58, %v2988_v56  ;;  %v2477_v9 = vor.u32 %v3341_v63, %v2476_v62  ;;  %v1620_v56 = vadd.f32 %v4724_v35, %v4853_v45 }
  0xd8   :  { %v3078_v12 = vld [vmem:[%s5343_s1 + $0x670] sm:$0xf0]  ;;  %1991 = vmatpush.bf16.msrb.mxu1 %v2601_v1  ;;  %1963 = vmatmul.bf16.gmra.mxu3 %v3935_v52  ;;  %v2732_v1 = vld [vmem:[%s5343_s1 + $0x398] sm:$0xf] }
  0xd9   :  { %v3416_v14 = vld [vmem:[%s5343_s1 + $0x414] sm:$0xf]  ;;  %2009 = vmatpush.bf16.msrb.mxu2 %v2857_v60  ;;  %v3081_v22 = vor.u32 %v3488_v10, %v3078_v12  ;;  %v4855_v46 = vpop.f32.mrf.mxu3  ;;  %v1624_v50 = vpop.f32.mrf.mxu0  ;;  %v2765_v60 = vor.u32 %v3413_v37, %v2764_v32  ;;  %v3533_v4 = vld [vmem:[%s5343_s1 + $0x7b4] sm:$0xf0]  ;;  %v1618_v10 = vadd.f32 %v4664_v7, %v4853_v45 }
  0xda   :  { %v2790_v17 = vld [vmem:[%s5343_s1 + $0x430] sm:$0xf0]  ;;  %1974 = vmatpush.bf16.msrb.mxu0 %v2313_v16  ;;  %v2956_v16 = vld [vmem:[%s5343_s1 + $0x558] sm:$0xf] }
  0xdb   :  { %v3288_v18 = vld [vmem:[%s5343_s1 + $0x14] sm:$0xf]  ;;  %2027 = vmatpush.bf16.msrb.mxu3 %v3113_v2  ;;  %v2793_v33 = vor.u32 %v3416_v14, %v2790_v17  ;;  %v3405_v2 = vld [vmem:[%s5343_s1 + $0x3b4] sm:$0xf0]  ;;  %v3245_v14 = vor.u32 %v3533_v4, %v3244_v3 }
  0xdc   :  { %v2278_v19 = vld [vmem:[%s5343_s1 + $0x30] sm:$0xf0]  ;;  %1992 = vmatpush.bf16.msrb.mxu1 %v2569_v21  ;;  %v2733_v12 = vor.u32 %v3405_v2, %v2732_v1  ;;  %v3461_v17 = vld [vmem:[%s5343_s1 + $0x574] sm:$0xf0] }
  0xdd   :  { %v3352_v23 = vld [vmem:[%s5343_s1 + $0x214] sm:$0xf]  ;;  %2010 = vmatpush.bf16.msrb.mxu2 %v2825_v15  ;;  %v2281_v36 = vor.u32 %v3288_v18, %v2278_v19  ;;  %v4884_v15 = vperm.slane %v4808_v20, 1  ;;  %v2444_v7 = vld [vmem:[%s5343_s1 + $0x158] sm:$0xf]  ;;  %v2957_v31 = vor.u32 %v3461_v17, %v2956_v16 }
  0xde   :  { %v2534_v24 = vld [vmem:[%s5343_s1 + $0x230] sm:$0xf0]  ;;  %v3333_v19 = vld [vmem:[%s5343_s1 + $0x174] sm:$0xf0] }
  0xdf   :  { %v3480_v25 = vld [vmem:[%s5343_s1 + $0x614] sm:$0xf]  ;;  %2028 = vmatpush.bf16.msrb.mxu3 %v3081_v22  ;;  %v2537_v43 = vor.u32 %v3352_v23, %v2534_v24  ;;  %1975 = vmatpush.bf16.msrb.mxu0 %v2281_v36  ;;  %v1660_v18 = vpop.f32.mrf.mxu2  ;;  %v2700_v21 = vld [vmem:[%s5343_s1 + $0x358] sm:$0xf]  ;;  %v1707_v29 = vpop.f32.mrf.mxu1  ;;  %v2445_v32 = vor.u32 %v3333_v19, %v2444_v7 }
  0xe0   :  { %v3046_v26 = vld [vmem:[%s5343_s1 + $0x630] sm:$0xf0]  ;;  %v3397_v23 = vld [vmem:[%s5343_s1 + $0x374] sm:$0xf0] }
  0xe1   :  { %v3049_v44 = vor.u32 %v3480_v25, %v3046_v26  ;;  %2011 = vmatpush.bf16.msrb.mxu2 %v2793_v33  ;;  %1993 = vmatpush.bf16.msrb.mxu1 %v2537_v43  ;;  %v1678_v22 = vpop.f32.mrf.mxu3  ;;  %v3212_v24 = vld [vmem:[%s5343_s1 + $0x758] sm:$0xf]  ;;  %v1636_v26 = vadd.f32 %v4675_v11, %v1618_v10  ;;  %v1689_v27 = vpop.f32.mrf.mxu0  ;;  %v2701_v37 = vor.u32 %v3397_v23, %v2700_v21 }
  0xe2   :  { %v3525_v25 = vld [vmem:[%s5343_s1 + $0x774] sm:$0xf0]  ;;  %v1690_v30 = vadd.f32 %v1689_v27, %v4884_v15 }
  0xe3   :  { %2029 = vmatpush.bf16.msrb.mxu3 %v3049_v44  ;;  %2040 = vmatpush.bf16.msra.mxu0 %v2509_v55  ;;  %v2924_v33 = vld [vmem:[%s5343_s1 + $0x518] sm:$0xf]  ;;  %v3213_v38 = vor.u32 %v3525_v25, %v3212_v24  ;;  %v1654_v55 = vadd.f32 %v4711_v28, %v1636_v26 }
  0xe4   :  { %v3453_v36 = vld [vmem:[%s5343_s1 + $0x534] sm:$0xf0]  ;;  %1976 = vmatmul.bf16.vlgmr.msrb.gmra.mxu0 %v3800_v48  ;;  %1994 = vmatmul.bf16.vlgmr.msrb.gmra.mxu1 %v3811_v53  ;;  %v1708_v58 = vadd.f32 %v1707_v29, %v1690_v30 }
  0xe5   :  { %2076 = vmatpush.bf16.msra.mxu2 %v3021_v51  ;;  %2058 = vmatpush.bf16.msra.mxu1 %v2765_v60  ;;  %v2412_v11 = vld [vmem:[%s5343_s1 + $0x118] sm:$0xf]  ;;  %v2925_v59 = vor.u32 %v3453_v36, %v2924_v33  ;;  %v1623_v36 = vadd.f32 %v4780_v8, %v4853_v45 }
  0xe6   :  { %v3325_v40 = vld [vmem:[%s5343_s1 + $0x134] sm:$0xf0]  ;;  %2012 = vmatmul.bf16.vlgmr.msrb.gmra.mxu2 %v3813_v54 }
  0xe7   :  { %2094 = vmatpush.bf16.msra.mxu3 %v3277_v61  ;;  %2041 = vmatpush.bf16.msra.mxu0 %v2477_v9  ;;  %v2668_v43 = vld [vmem:[%s5343_s1 + $0x318] sm:$0xf]  ;;  %v2413_v60 = vor.u32 %v3325_v40, %v2412_v11  ;;  %v1725_v4 = vpop.f32.mrf.mxu2  ;;  %v1709_v18 = vpop.f32.mrf.mxu1 }
  0xe8   :  { %v3389_v44 = vld [vmem:[%s5343_s1 + $0x334] sm:$0xf0]  ;;  %2030 = vmatmul.bf16.vlgmr.msrb.gmra.mxu3 %v3821_v57  ;;  %v1726_v16 = vadd.f32 %v1725_v4, %v1708_v58 }
  0xe9   :  { %2077 = vmatpush.bf16.msra.mxu2 %v2989_v5  ;;  %2059 = vmatpush.bf16.msra.mxu1 %v2733_v12  ;;  %v3180_v50 = vld [vmem:[%s5343_s1 + $0x718] sm:$0xf]  ;;  %v2669_v62 = vor.u32 %v3389_v44, %v2668_v43  ;;  %v1743_v5 = vpop.f32.mrf.mxu3  ;;  %v1672_v12 = vadd.f32 %v4722_v34, %v1654_v55  ;;  %v1691_v17 = vpop.f32.mrf.mxu0 }
  0xea   :  { %v3517_v51 = vld [vmem:[%s5343_s1 + $0x734] sm:$0xf0]  ;;  %v1692_v24 = vadd.f32 %v1691_v17, %v4884_v15 }
  0xeb   :  { %2095 = vmatpush.bf16.msra.mxu3 %v3245_v14  ;;  %2042 = vmatpush.bf16.msra.mxu0 %v2445_v32  ;;  %v2892_v61 = vld [vmem:[%s5343_s1 + $0x4d8] sm:$0xf]  ;;  %v3181_v63 = vor.u32 %v3517_v51, %v3180_v50  ;;  %v1638_v14 = vadd.f32 %v4735_v39, %v1620_v56  ;;  %v1744_v39 = vadd.f32 %v1743_v5, %v1726_v16  ;;  %v2184_v32 = vmax.f32 %v1672_v12, 0.0 }
  0xec   :  { %v3445_v28 = vld [vmem:[%s5343_s1 + $0x4f4] sm:$0xf0]  ;;  %v1710_v51 = vadd.f32 %v1709_v18, %v1692_v24  ;;  %v2510_v24 = vld [vmem:[%s5343_s1 + $0x1f8] sm:$0xf0] }
  0xed   :  { %2078 = vmatpush.bf16.msra.mxu2 %v2957_v31  ;;  %v2380_v35 = vld [vmem:[%s5343_s1 + $0xd8] sm:$0xf]  ;;  %2060 = vmatpush.bf16.msra.mxu1 %v2701_v37  ;;  %v2893_v7 = vor.u32 %v3445_v28, %v2892_v61  ;;  %v1656_v33 = vadd.f32 %v4767_v0, %v1638_v14  ;;  %v2185_v37 = vmax.f32 %v1744_v39, 0.0 }
  0xee   :  { %v3317_v1 = vld [vmem:[%s5343_s1 + $0xf4] sm:$0xf0] }
  0xef   :  { %2096 = vmatpush.bf16.msra.mxu3 %v3213_v38  ;;  %v2636_v2 = vld [vmem:[%s5343_s1 + $0x2d8] sm:$0xf]  ;;  %2043 = vmatpush.bf16.msra.mxu0 %v2413_v60  ;;  %v2381_v19 = vor.u32 %v3317_v1, %v2380_v35  ;;  %v2208_v50 = vpack.c.bf16 %v2185_v37, %v2184_v32  ;;  %v1727_v56 = vpop.f32.mrf.mxu2  ;;  %v1674_v28 = vadd.f32 %v4778_v6, %v1656_v33  ;;  %v1712_v1 = vpop.f32.mrf.mxu1 }
  0xf0   :  { %v3381_v3 = vld [vmem:[%s5343_s1 + $0x2f4] sm:$0xf0]  ;;  %v1641_v35 = vadd.f32 %v4791_v13, %v1623_v36 }
  0xf1   :  { %v3148_v9 = vld [vmem:[%s5343_s1 + $0x6d8] sm:$0xf]  ;;  %2079 = vmatpush.bf16.msra.mxu2 %v2925_v59  ;;  %v2637_v21 = vor.u32 %v3381_v3, %v2636_v2  ;;  %2061 = vmatpush.bf16.msra.mxu1 %v2669_v62  ;;  %v1745_v58 = vpop.f32.mrf.mxu3  ;;  %2220 = vst [vmem:[%s5346_s3] sm:$0xff] %v2208_v50  ;;  %v1728_v62 = vadd.f32 %v1727_v56, %v1710_v51  ;;  %v2478_v56 = vld [vmem:[%s5343_s1 + $0x1b8] sm:$0xf0] }
  0xf2   :  { %v3509_v10 = vld [vmem:[%s5343_s1 + $0x6f4] sm:$0xf0] }
  0xf3   :  { %v2860_v22 = vld [vmem:[%s5343_s1 + $0x498] sm:$0xf]  ;;  %2097 = vmatpush.bf16.msra.mxu3 %v3181_v63  ;;  %v3149_v25 = vor.u32 %v3509_v10, %v3148_v9  ;;  %2044 = vmatpush.bf16.msra.mxu0 %v2381_v19  ;;  %v1694_v63 = vpop.f32.mrf.mxu0  ;;  %v1746_v12 = vadd.f32 %v1745_v58, %v1728_v62  ;;  %v3022_v19 = vld [vmem:[%s5343_s1 + $0x5f8] sm:$0xf0] }
  0xf4   :  { %v3437_v23 = vld [vmem:[%s5343_s1 + $0x4b4] sm:$0xf0]  ;;  %v1695_v4 = vadd.f32 %v1694_v63, %v4884_v15  ;;  %1981 = vmatmul.bf16.gmra.mxu0 %v3914_v42  ;;  %1999 = vmatmul.bf16.gmra.mxu1 %v3925_v47  ;;  %v3401_v58 = vld [vmem:[%s5343_s1 + $0x39c] sm:$0xf] }
  0xf5   :  { %v2348_v34 = vld [vmem:[%s5343_s1 + $0x98] sm:$0xf]  ;;  %2080 = vmatpush.bf16.msra.mxu2 %v2893_v7  ;;  %v2861_v38 = vor.u32 %v3437_v23, %v2860_v22  ;;  %2062 = vmatpush.bf16.msra.mxu1 %v2637_v21  ;;  %v3473_v7 = vld [vmem:[%s5343_s1 + $0x5dc] sm:$0xf]  ;;  %v2192_v22 = vmax.f32 %v1674_v28, 0.0  ;;  %v1659_v23 = vadd.f32 %v4850_v41, %v1641_v35 }
  0xf6   :  { %v3309_v26 = vld [vmem:[%s5343_s1 + $0xb4] sm:$0xf0]  ;;  %v3345_v21 = vld [vmem:[%s5343_s1 + $0x1dc] sm:$0xf]  ;;  %v1713_v39 = vadd.f32 %v1712_v1, %v1695_v4  ;;  %2017 = vmatmul.bf16.gmra.mxu2 %v3927_v49 }
  0xf7   :  { %v2604_v27 = vld [vmem:[%s5343_s1 + $0x298] sm:$0xf]  ;;  %v2349_v11 = vor.u32 %v3309_v26, %v2348_v34  ;;  %2098 = vmatpush.bf16.msra.mxu3 %v3149_v25  ;;  %v2193_v34 = vmax.f32 %v1746_v12, 0.0  ;;  %v3409_v25 = vld [vmem:[%s5343_s1 + $0x3dc] sm:$0xf]  ;;  %v1730_v36 = vpop.f32.mrf.mxu2  ;;  %v1677_v50 = vadd.f32 %v4855_v46, %v1659_v23 }
  0xf8   :  { %v3373_v29 = vld [vmem:[%s5343_s1 + $0x2b4] sm:$0xf0]  ;;  %2035 = vmatmul.bf16.gmra.mxu3 %v3935_v52  ;;  %v2766_v41 = vld [vmem:[%s5343_s1 + $0x3f8] sm:$0xf0]  ;;  %v1731_v51 = vadd.f32 %v1730_v36, %v1713_v39 }
  0xf9   :  { %v3116_v30 = vld [vmem:[%s5343_s1 + $0x698] sm:$0xf]  ;;  %v2605_v40 = vor.u32 %v3373_v29, %v2604_v27  ;;  %2081 = vmatpush.bf16.msra.mxu2 %v2861_v38  ;;  %2045 = vmatpush.bf16.msra.mxu0 %v2349_v11  ;;  %v3537_v29 = vld [vmem:[%s5343_s1 + $0x7dc] sm:$0xf]  ;;  %v1748_v37 = vpop.f32.mrf.mxu3  ;;  %v3025_v38 = vor.u32 %v3473_v7, %v3022_v19  ;;  %v2513_v11 = vor.u32 %v3345_v21, %v2510_v24  ;;  %v2200_v62 = vmax.f32 %v1677_v50, 0.0 }
  0xfa   :  { %v3501_v31 = vld [vmem:[%s5343_s1 + $0x6b4] sm:$0xf0]  ;;  %v2734_v46 = vld [vmem:[%s5343_s1 + $0x3b8] sm:$0xf0] }
  0xfb   :  { %v2828_v43 = vld [vmem:[%s5343_s1 + $0x458] sm:$0xf]  ;;  %v3117_v0 = vor.u32 %v3501_v31, %v3116_v30  ;;  %2063 = vmatpush.bf16.msra.mxu1 %v2605_v40  ;;  %v3278_v30 = vld [vmem:[%s5343_s1 + $0x7f8] sm:$0xf0]  ;;  %v2212_v31 = vpack.c.bf16 %v2193_v34, %v2192_v22  ;;  %v2737_v1 = vor.u32 %v3401_v58, %v2734_v46 }
  0xfc   :  { %v3429_v44 = vld [vmem:[%s5343_s1 + $0x474] sm:$0xf0]  ;;  %v3465_v40 = vld [vmem:[%s5343_s1 + $0x59c] sm:$0xf] }
  0xfd   :  { %v2316_v8 = vld [vmem:[%s5343_s1 + $0x58] sm:$0xf]  ;;  %v2829_v6 = vor.u32 %v3429_v44, %v2828_v43  ;;  %2099 = vmatpush.bf16.msra.mxu3 %v3117_v0  ;;  %v2990_v43 = vld [vmem:[%s5343_s1 + $0x5b8] sm:$0xf0]  ;;  %2227 = vst [vmem:[%s5346_s3 + $0x20] sm:$0xff] %v2212_v31  ;;  %v1696_v0 = vpop.f32.mrf.mxu0 }
  0xfe   :  { %v3301_v45 = vld [vmem:[%s5343_s1 + $0x74] sm:$0xf0]  ;;  %v3337_v44 = vld [vmem:[%s5343_s1 + $0x19c] sm:$0xf]  ;;  %v2993_v28 = vor.u32 %v3465_v40, %v2990_v43 }
  0xff   :  { %v2572_v55 = vld [vmem:[%s5343_s1 + $0x258] sm:$0xf]  ;;  %v2317_v13 = vor.u32 %v3301_v45, %v2316_v8  ;;  %2082 = vmatpush.bf16.msra.mxu2 %v2829_v6  ;;  %v1714_v8 = vpop.f32.mrf.mxu1  ;;  %v2769_v45 = vor.u32 %v3409_v25, %v2766_v41  ;;  %v2481_v35 = vor.u32 %v3337_v44, %v2478_v56  ;;  %v2958_v4 = vld [vmem:[%s5343_s1 + $0x578] sm:$0xf0] }
 0x100   :  { %v3365_v59 = vld [vmem:[%s5343_s1 + $0x274] sm:$0xf0]  ;;  %v3449_v21 = vld [vmem:[%s5343_s1 + $0x51c] sm:$0xf] }
 0x101   :  { %v3084_v60 = vld [vmem:[%s5343_s1 + $0x658] sm:$0xf]  ;;  %v2573_v15 = vor.u32 %v3365_v59, %v2572_v55  ;;  %2046 = vmatpush.bf16.msra.mxu0 %v2317_v13  ;;  %v3281_v55 = vor.u32 %v3537_v29, %v3278_v30  ;;  %v3529_v59 = vld [vmem:[%s5343_s1 + $0x79c] sm:$0xf]  ;;  %v1750_v12 = vpop.f32.mrf.mxu3 }
 0x102   :  { %v3493_v61 = vld [vmem:[%s5343_s1 + $0x674] sm:$0xf0]  ;;  %v3329_v13 = vld [vmem:[%s5343_s1 + $0x15c] sm:$0xf] }
 0x103   :  { %v2796_v2 = vld [vmem:[%s5343_s1 + $0x418] sm:$0xf]  ;;  %v3085_v14 = vor.u32 %v3493_v61, %v3084_v60  ;;  %2064 = vmatpush.bf16.msra.mxu1 %v2573_v15  ;;  %v3246_v60 = vld [vmem:[%s5343_s1 + $0x7b8] sm:$0xf0]  ;;  %v1749_v61 = vadd.f32 %v1748_v37, %v1731_v51 }
 0x104   :  { %v3421_v3 = vld [vmem:[%s5343_s1 + $0x434] sm:$0xf0]  ;;  %v2702_v15 = vld [vmem:[%s5343_s1 + $0x378] sm:$0xf0] }
 0x105   :  { %v2284_v5 = vld [vmem:[%s5343_s1 + $0x18] sm:$0xf]  ;;  %v2797_v26 = vor.u32 %v3421_v3, %v2796_v2  ;;  %2100 = vmatpush.bf16.msra.mxu3 %v3085_v14  ;;  %v2201_v63 = vmax.f32 %v1749_v61, 0.0  ;;  %v3249_v2 = vor.u32 %v3529_v59, %v3246_v60  ;;  %v3457_v3 = vld [vmem:[%s5343_s1 + $0x55c] sm:$0xf] }
 0x106   :  { %v3293_v9 = vld [vmem:[%s5343_s1 + $0x34] sm:$0xf0]  ;;  %v3521_v14 = vld [vmem:[%s5343_s1 + $0x75c] sm:$0xf]  ;;  %v2961_v7 = vor.u32 %v3457_v3, %v2958_v4 }
 0x107   :  { %v2540_v10 = vld [vmem:[%s5343_s1 + $0x218] sm:$0xf]  ;;  %v2285_v27 = vor.u32 %v3293_v9, %v2284_v5  ;;  %2083 = vmatpush.bf16.msra.mxu2 %v2797_v26  ;;  %v2216_v6 = vpack.c.bf16 %v2201_v63, %v2200_v62  ;;  %v2446_v5 = vld [vmem:[%s5343_s1 + $0x178] sm:$0xf0] }
 0x108   :  { %v3357_v16 = vld [vmem:[%s5343_s1 + $0x234] sm:$0xf0]  ;;  %v3393_v9 = vld [vmem:[%s5343_s1 + $0x35c] sm:$0xf]  ;;  %v2449_v19 = vor.u32 %v3329_v13, %v2446_v5 }
 0x109   :  { %v3052_v17 = vld [vmem:[%s5343_s1 + $0x618] sm:$0xf]  ;;  %v2541_v32 = vor.u32 %v3357_v16, %v2540_v10  ;;  %2047 = vmatpush.bf16.msra.mxu0 %v2285_v27  ;;  %v1732_v10 = vpop.f32.mrf.mxu2  ;;  %v3214_v16 = vld [vmem:[%s5343_s1 + $0x778] sm:$0xf0]  ;;  %2231 = vst [vmem:[%s5346_s3 + $0x40] sm:$0x11] %v2216_v6  ;;  %v2705_v23 = vor.u32 %v3393_v9, %v2702_v15  ;;  %v5184_v43 = vpop.f32.mrf.mxu3 }
 0x10a   :  { %v3485_v18 = vld [vmem:[%s5343_s1 + $0x634] sm:$0xf0]  ;;  %v2926_v22 = vld [vmem:[%s5343_s1 + $0x538] sm:$0xf0]  ;;  %v3217_v34 = vor.u32 %v3521_v14, %v3214_v16  ;;  %2084 = vmatmul.bf16.vlgmr.msra.gmra.mxu2 %v3813_v54 }
 0x10b   :  { %v3053_v33 = vor.u32 %v3485_v18, %v3052_v17  ;;  %2065 = vmatpush.bf16.msra.mxu1 %v2541_v32  ;;  %2148 = vmatpush.bf16.msrb.mxu2 %v3025_v38  ;;  %v5135_v17 = vpop.f32.mrf.mxu0  ;;  %v5137_v18 = vpop.f32.mrf.mxu1  ;;  %v3321_v39 = vld [vmem:[%s5343_s1 + $0x11c] sm:$0xf]  ;;  %v2929_v29 = vor.u32 %v3449_v21, %v2926_v22 }
 0x10c   :  { %v2414_v24 = vld [vmem:[%s5343_s1 + $0x138] sm:$0xf0]  ;;  %2048 = vmatmul.bf16.vlgmr.msra.gmra.mxu0 %v3800_v48 }
 0x10d   :  { %2101 = vmatpush.bf16.msra.mxu3 %v3053_v33  ;;  %2112 = vmatpush.bf16.msrb.mxu0 %v2513_v11  ;;  %v3385_v25 = vld [vmem:[%s5343_s1 + $0x31c] sm:$0xf]  ;;  %v2417_v30 = vor.u32 %v3321_v39, %v2414_v24 }
 0x10e   :  { %2066 = vmatmul.bf16.vlgmr.msra.gmra.mxu1 %v3811_v53  ;;  %v2670_v26 = vld [vmem:[%s5343_s1 + $0x338] sm:$0xf0] }
 0x10f   :  { %2130 = vmatpush.bf16.msrb.mxu1 %v2769_v45  ;;  %2149 = vmatpush.bf16.msrb.mxu2 %v2993_v28  ;;  %v3513_v27 = vld [vmem:[%s5343_s1 + $0x71c] sm:$0xf]  ;;  %v2673_v33 = vor.u32 %v3385_v25, %v2670_v26 }
 0x110   :  { %v3182_v41 = vld [vmem:[%s5343_s1 + $0x738] sm:$0xf0]  ;;  %2102 = vmatmul.bf16.vlgmr.msra.gmra.mxu3 %v3821_v57 }
 0x111   :  { %2166 = vmatpush.bf16.msrb.mxu3 %v3281_v55  ;;  %2113 = vmatpush.bf16.msrb.mxu0 %v2481_v35  ;;  %v3441_v31 = vld [vmem:[%s5343_s1 + $0x4dc] sm:$0xf]  ;;  %v3185_v36 = vor.u32 %v3513_v27, %v3182_v41  ;;  %v5182_v40 = vpop.f32.mrf.mxu2  ;;  %v5240_v15 = vpop.f32.mrf.mxu3 }
 0x112   :  { %v2894_v32 = vld [vmem:[%s5343_s1 + $0x4f8] sm:$0xf0] }
 0x113   :  { %2131 = vmatpush.bf16.msrb.mxu1 %v2737_v1  ;;  %2150 = vmatpush.bf16.msrb.mxu2 %v2961_v7  ;;  %v3313_v37 = vld [vmem:[%s5343_s1 + $0xdc] sm:$0xf]  ;;  %v5195_v0 = vpop.f32.mrf.mxu0  ;;  %v5197_v8 = vpop.f32.mrf.mxu1  ;;  %v2897_v45 = vor.u32 %v3441_v31, %v2894_v32 }
 0x114   :  { %v2382_v38 = vld [vmem:[%s5343_s1 + $0xf8] sm:$0xf0] }
 0x115   :  { %2167 = vmatpush.bf16.msrb.mxu3 %v3249_v2  ;;  %2114 = vmatpush.bf16.msrb.mxu0 %v2449_v19  ;;  %v3377_v11 = vld [vmem:[%s5343_s1 + $0x2dc] sm:$0xf]  ;;  %v2385_v55 = vor.u32 %v3313_v37, %v2382_v38 }
 0x116   :  { %v2638_v44 = vld [vmem:[%s5343_s1 + $0x2f8] sm:$0xf0] }
 0x117   :  { %2132 = vmatpush.bf16.msrb.mxu1 %v2705_v23  ;;  %v3505_v50 = vld [vmem:[%s5343_s1 + $0x6dc] sm:$0xf]  ;;  %2151 = vmatpush.bf16.msrb.mxu2 %v2929_v29  ;;  %v2641_v46 = vor.u32 %v3377_v11, %v2638_v44  ;;  %v280_v44 = vperm.slane %v4808_v20, 2 }
 0x118   :  { %v3150_v51 = vld [vmem:[%s5343_s1 + $0x6f8] sm:$0xf0] }
 0x119   :  { %2168 = vmatpush.bf16.msrb.mxu3 %v3217_v34  ;;  %2115 = vmatpush.bf16.msrb.mxu0 %v2417_v30  ;;  %v3433_v56 = vld [vmem:[%s5343_s1 + $0x49c] sm:$0xf]  ;;  %v3153_v59 = vor.u32 %v3505_v50, %v3150_v51  ;;  %v5238_v12 = vpop.f32.mrf.mxu2  ;;  %v1820_v11 = vpop.f32.mrf.mxu3 }
 0x11a   :  { %v2862_v58 = vld [vmem:[%s5343_s1 + $0x4b8] sm:$0xf0]  ;;  %2089 = vmatmul.bf16.gmra.mxu2 %v3927_v49 }
 0x11b   :  { %2133 = vmatpush.bf16.msrb.mxu1 %v2673_v33  ;;  %v3305_v60 = vld [vmem:[%s5343_s1 + $0x9c] sm:$0xf]  ;;  %2152 = vmatpush.bf16.msrb.mxu2 %v2897_v45  ;;  %v2865_v1 = vor.u32 %v3433_v56, %v2862_v58  ;;  %v5251_v19 = vpop.f32.mrf.mxu0  ;;  %v5253_v21 = vpop.f32.mrf.mxu1  ;;  %v1762_v45 = vadd.f32 %v5135_v17, %v280_v44  ;;  %v1764_v17 = vadd.f32 %v5195_v0, %v280_v44 }
 0x11c   :  { %v2350_v61 = vld [vmem:[%s5343_s1 + $0xb8] sm:$0xf0]  ;;  %2053 = vmatmul.bf16.gmra.mxu0 %v3914_v42 }
 0x11d   :  { %2169 = vmatpush.bf16.msrb.mxu3 %v3185_v36  ;;  %v3369_v28 = vld [vmem:[%s5343_s1 + $0x29c] sm:$0xf]  ;;  %2116 = vmatpush.bf16.msrb.mxu0 %v2385_v55  ;;  %v2353_v2 = vor.u32 %v3305_v60, %v2350_v61  ;;  %v281_v55 = vperm.slane %v4808_v20, 3 }
 0x11e   :  { %v2606_v35 = vld [vmem:[%s5343_s1 + $0x2b8] sm:$0xf0]  ;;  %2071 = vmatmul.bf16.gmra.mxu1 %v3925_v47 }
 0x11f   :  { %v3497_v62 = vld [vmem:[%s5343_s1 + $0x69c] sm:$0xf]  ;;  %2134 = vmatpush.bf16.msrb.mxu1 %v2641_v46  ;;  %v2609_v6 = vor.u32 %v3369_v28, %v2606_v35  ;;  %2153 = vmatpush.bf16.msrb.mxu2 %v2865_v1  ;;  %v1780_v46 = vadd.f32 %v5137_v18, %v1762_v45 }
 0x120   :  { %v3118_v63 = vld [vmem:[%s5343_s1 + $0x6b8] sm:$0xf0]  ;;  %2107 = vmatmul.bf16.gmra.mxu3 %v3935_v52 }
 0x121   :  { %v3425_v3 = vld [vmem:[%s5343_s1 + $0x45c] sm:$0xf]  ;;  %2170 = vmatpush.bf16.msrb.mxu3 %v3153_v59  ;;  %v3121_v13 = vor.u32 %v3497_v62, %v3118_v63  ;;  %2117 = vmatpush.bf16.msrb.mxu0 %v2353_v2  ;;  %v1802_v38 = vpop.f32.mrf.mxu2  ;;  %v1822_v58 = vpop.f32.mrf.mxu3  ;;  %v1798_v28 = vadd.f32 %v5182_v40, %v1780_v46 }
 0x122   :  { %v2830_v4 = vld [vmem:[%s5343_s1 + $0x478] sm:$0xf0] }
 0x123   :  { %v3297_v5 = vld [vmem:[%s5343_s1 + $0x5c] sm:$0xf]  ;;  %v2833_v22 = vor.u32 %v3425_v3, %v2830_v4  ;;  %2135 = vmatpush.bf16.msrb.mxu1 %v2609_v6  ;;  %v1768_v50 = vpop.f32.mrf.mxu0  ;;  %v1786_v51 = vpop.f32.mrf.mxu1  ;;  %v1816_v18 = vadd.f32 %v5184_v43, %v1798_v28 }
 0x124   :  { %v2318_v9 = vld [vmem:[%s5343_s1 + $0x78] sm:$0xf0] }
 0x125   :  { %v3361_v10 = vld [vmem:[%s5343_s1 + $0x25c] sm:$0xf]  ;;  %v2321_v23 = vor.u32 %v3297_v5, %v2318_v9  ;;  %2171 = vmatpush.bf16.msrb.mxu3 %v3121_v13  ;;  %2154 = vmatpush.bf16.msrb.mxu2 %v2833_v22  ;;  %v2186_v6 = vmax.f32 %v1816_v18, 0.0 }
 0x126   :  { %v2574_v14 = vld [vmem:[%s5343_s1 + $0x278] sm:$0xf0] }
 0x127   :  { %v3489_v16 = vld [vmem:[%s5343_s1 + $0x65c] sm:$0xf]  ;;  %v2577_v24 = vor.u32 %v3361_v10, %v2574_v14  ;;  %2118 = vmatpush.bf16.msrb.mxu0 %v2321_v23 }
 0x128   :  { %v3086_v7 = vld [vmem:[%s5343_s1 + $0x678] sm:$0xf0] }
 0x129   :  { %v3417_v34 = vld [vmem:[%s5343_s1 + $0x41c] sm:$0xf]  ;;  %v3089_v25 = vor.u32 %v3489_v16, %v3086_v7  ;;  %2136 = vmatpush.bf16.msrb.mxu1 %v2577_v24  ;;  %v1804_v56 = vpop.f32.mrf.mxu2  ;;  %v1887_v63 = vpop.f32.mrf.mxu3 }
 0x12a   :  { %v2798_v39 = vld [vmem:[%s5343_s1 + $0x438] sm:$0xf0] }
 0x12b   :  { %v3289_v26 = vld [vmem:[%s5343_s1 + $0x1c] sm:$0xf]  ;;  %v2801_v32 = vor.u32 %v3417_v34, %v2798_v39  ;;  %2172 = vmatpush.bf16.msrb.mxu3 %v3089_v25  ;;  %v1833_v59 = vpop.f32.mrf.mxu0  ;;  %v1851_v60 = vpop.f32.mrf.mxu1 }
 0x12c   :  { %v2286_v27 = vld [vmem:[%s5343_s1 + $0x38] sm:$0xf0]  ;;  %v1834_v61 = vadd.f32 %v1833_v59, %v281_v55  ;;  %v283_v59 = vperm.slane %v4808_v20, 5 }
 0x12d   :  { %v3353_v41 = vld [vmem:[%s5343_s1 + $0x21c] sm:$0xf]  ;;  %v2289_v33 = vor.u32 %v3289_v26, %v2286_v27  ;;  %2155 = vmatpush.bf16.msrb.mxu2 %v2801_v32 }
 0x12e   :  { %v2542_v29 = vld [vmem:[%s5343_s1 + $0x238] sm:$0xf0]  ;;  %v1852_v35 = vadd.f32 %v1851_v60, %v1834_v61 }
 0x12f   :  { %v3481_v30 = vld [vmem:[%s5343_s1 + $0x61c] sm:$0xf]  ;;  %v2545_v36 = vor.u32 %v3353_v41, %v2542_v29  ;;  %2119 = vmatpush.bf16.msrb.mxu0 %v2289_v33 }
 0x130   :  { %v3054_v31 = vld [vmem:[%s5343_s1 + $0x638] sm:$0xf0]  ;;  %2156 = vmatmul.bf16.vlgmr.msrb.gmra.mxu2 %v3813_v54  ;;  %v1767_v54 = vadd.f32 %v5251_v19, %v280_v44 }
 0x131   :  { %v3057_v37 = vor.u32 %v3481_v30, %v3054_v31  ;;  %2137 = vmatpush.bf16.msrb.mxu1 %v2545_v36  ;;  %v1869_v62 = vpop.f32.mrf.mxu2  ;;  %v1889_v9 = vpop.f32.mrf.mxu3 }
 0x132   :  { %2120 = vmatmul.bf16.vlgmr.msrb.gmra.mxu0 %v3800_v48  ;;  %v1870_v1 = vadd.f32 %v1869_v62, %v1852_v35  ;;  %v1782_v48 = vadd.f32 %v5197_v8, %v1764_v17  ;;  %v1785_v43 = vadd.f32 %v5253_v21, %v1767_v54 }
 0x133   :  { %2173 = vmatpush.bf16.msrb.mxu3 %v3057_v37  ;;  %v1835_v2 = vpop.f32.mrf.mxu0  ;;  %v1853_v3 = vpop.f32.mrf.mxu1 }
 0x134   :  { %2138 = vmatmul.bf16.vlgmr.msrb.gmra.mxu1 %v3811_v53  ;;  %v1888_v4 = vadd.f32 %v1887_v63, %v1870_v1  ;;  %v1836_v53 = vadd.f32 %v1835_v2, %v281_v55  ;;  %v1800_v40 = vadd.f32 %v5238_v12, %v1782_v48  ;;  %v1803_v22 = vadd.f32 %v1802_v38, %v1785_v43 }
 0x136   :  { %2174 = vmatmul.bf16.vlgmr.msrb.gmra.mxu3 %v3821_v57  ;;  %v2187_v13 = vmax.f32 %v1888_v4, 0.0  ;;  %v1854_v5 = vadd.f32 %v1853_v3, %v1836_v53  ;;  %v1818_v10 = vadd.f32 %v5240_v15, %v1800_v40  ;;  %v1821_v24 = vadd.f32 %v1820_v11, %v1803_v22 }
 0x138   :  { %v2209_v57 = vpack.c.bf16 %v2187_v13, %v2186_v6  ;;  %v2194_v19 = vmax.f32 %v1818_v10, 0.0  ;;  %v2202_v27 = vmax.f32 %v1821_v24, 0.0 }
 0x139   :  { %v1871_v0 = vpop.f32.mrf.mxu2  ;;  %v1892_v39 = vpop.f32.mrf.mxu3 }
 0x13a   :  { %2221 = vst [vmem:[%s5346_s3 + $0x8] sm:$0xff] %v2209_v57  ;;  %v1872_v8 = vadd.f32 %v1871_v0, %v1854_v5 }
 0x13b   :  { %v1838_v14 = vpop.f32.mrf.mxu0  ;;  %v1856_v16 = vpop.f32.mrf.mxu1 }
 0x13c   :  { %v1839_v7 = vadd.f32 %v1838_v14, %v281_v55  ;;  %v1890_v12 = vadd.f32 %v1889_v9, %v1872_v8  ;;  %v282_v55 = vperm.slane %v4808_v20, 4 }
 0x13e   :  { %v2195_v23 = vmax.f32 %v1890_v12, 0.0  ;;  %v1857_v34 = vadd.f32 %v1856_v16, %v1839_v7 }
 0x140   :  { %2161 = vmatmul.bf16.gmra.mxu2 %v3927_v49  ;;  %v2213_v15 = vpack.c.bf16 %v2195_v23, %v2194_v19 }
 0x141   :  { %v1874_v21 = vpop.f32.mrf.mxu2  ;;  %v1894_v31 = vpop.f32.mrf.mxu3 }
 0x142   :  { %2125 = vmatmul.bf16.gmra.mxu0 %v3914_v42  ;;  %2228 = vst [vmem:[%s5346_s3 + $0x28] sm:$0xff] %v2213_v15  ;;  %v1875_v25 = vadd.f32 %v1874_v21, %v1857_v34 }
 0x143   :  { %v1840_v42 = vpop.f32.mrf.mxu0  ;;  %v1858_v26 = vpop.f32.mrf.mxu1 }
 0x144   :  { %2143 = vmatmul.bf16.gmra.mxu1 %v3925_v47  ;;  %v1893_v47 = vadd.f32 %v1892_v39, %v1875_v25 }
 0x146   :  { %2179 = vmatmul.bf16.gmra.mxu3 %v3935_v52  ;;  %v2203_v41 = vmax.f32 %v1893_v47, 0.0 }
 0x148   :  { %v2217_v29 = vpack.c.bf16 %v2203_v41, %v2202_v27 }
 0x149   :  { %v1876_v30 = vpop.f32.mrf.mxu2 }
 0x14a   :  { %2232 = vst [vmem:[%s5346_s3 + $0x48] sm:$0x11] %v2217_v29 }
 0x14b   :  { %v1905_v49 = vpop.f32.mrf.mxu0  ;;  %v1923_v52 = vpop.f32.mrf.mxu1 }
 0x14c   :  { %v1959_v33 = vpop.f32.mrf.mxu3  ;;  %v1906_v46 = vadd.f32 %v1905_v49, %v282_v55 }
 0x14e   :  { %v1924_v28 = vadd.f32 %v1923_v52, %v1906_v46  ;;  %v3542_v46 = vld [vmem:[%s5345_s2] sm:$0xff] }
 0x151   :  { %v1941_v32 = vpop.f32.mrf.mxu2 }
 0x152   :  { %v1942_v63 = vadd.f32 %v1941_v32, %v1924_v28 }
 0x153   :  { %v1907_v36 = vpop.f32.mrf.mxu0  ;;  %v1925_v37 = vpop.f32.mrf.mxu1 }
 0x154   :  { %v1961_v11 = vpop.f32.mrf.mxu3  ;;  %v1908_v1 = vadd.f32 %v1907_v36, %v282_v55  ;;  %v1960_v48 = vadd.f32 %v1959_v33, %v1942_v63 }
 0x156   :  { %v1926_v40 = vadd.f32 %v1925_v37, %v1908_v1  ;;  %v2188_v57 = vmax.f32 %v1960_v48, 0.0 }
 0x159   :  { %v1943_v38 = vpop.f32.mrf.mxu2 }
 0x15a   :  { %v1944_v20 = vadd.f32 %v1943_v38, %v1926_v40 }
 0x15b   :  { %v1910_v44 = vpop.f32.mrf.mxu0  ;;  %v1928_v50 = vpop.f32.mrf.mxu1 }
 0x15c   :  { %v1964_v45 = vpop.f32.mrf.mxu3  ;;  %v1911_v5 = vadd.f32 %v1910_v44, %v282_v55  ;;  %v1962_v14 = vadd.f32 %v1961_v11, %v1944_v20 }
 0x15e   :  { %v1929_v16 = vadd.f32 %v1928_v50, %v1911_v5  ;;  %v2196_v34 = vmax.f32 %v1962_v14, 0.0 }
 0x161   :  { %v1946_v51 = vpop.f32.mrf.mxu2 }
 0x162   :  { %v1947_v15 = vadd.f32 %v1946_v51, %v1929_v16 }
 0x163   :  { %v1912_v56 = vpop.f32.mrf.mxu0  ;;  %v1930_v58 = vpop.f32.mrf.mxu1 }
 0x164   :  { %v1966_v61 = vpop.f32.mrf.mxu3  ;;  %v1965_v26 = vadd.f32 %v1964_v45, %v1947_v15 }
 0x166   :  { %v2204_v30 = vmax.f32 %v1965_v26, 0.0 }
 0x169   :  { %v1948_v60 = vpop.f32.mrf.mxu2 }
 0x16b   :  { %v1977_v35 = vpop.f32.mrf.mxu0  ;;  %v1995_v17 = vpop.f32.mrf.mxu1 }
 0x16c   :  { %v1978_v62 = vadd.f32 %v1977_v35, %v283_v59  ;;  %v2031_v3 = vpop.f32.mrf.mxu3  ;;  %v285_v35 = vperm.slane %v3542_v46, 7 }
 0x16e   :  { %v1996_v18 = vadd.f32 %v1995_v17, %v1978_v62 }
 0x171   :  { %v2013_v2 = vpop.f32.mrf.mxu2 }
 0x172   :  { %v2014_v4 = vadd.f32 %v2013_v2, %v1996_v18 }
 0x173   :  { %v1979_v53 = vpop.f32.mrf.mxu0  ;;  %v1997_v6 = vpop.f32.mrf.mxu1 }
 0x174   :  { %v2032_v54 = vadd.f32 %v2031_v3, %v2014_v4  ;;  %v1980_v13 = vadd.f32 %v1979_v53, %v283_v59  ;;  %v2033_v8 = vpop.f32.mrf.mxu3 }
 0x176   :  { %v2189_v0 = vmax.f32 %v2032_v54, 0.0  ;;  %v1998_v10 = vadd.f32 %v1997_v6, %v1980_v13 }
 0x178   :  { %v2210_v9 = vpack.c.bf16 %v2189_v0, %v2188_v57 }
 0x179   :  { %v2015_v43 = vpop.f32.mrf.mxu2 }
 0x17a   :  { %2222 = vst [vmem:[%s5346_s3 + $0x10] sm:$0xff] %v2210_v9  ;;  %v2016_v7 = vadd.f32 %v2015_v43, %v1998_v10 }
 0x17b   :  { %v1982_v12 = vpop.f32.mrf.mxu0  ;;  %v2000_v19 = vpop.f32.mrf.mxu1 }
 0x17c   :  { %v1983_v22 = vadd.f32 %v1982_v12, %v283_v59  ;;  %v2034_v23 = vadd.f32 %v2033_v8, %v2016_v7  ;;  %v2036_v42 = vpop.f32.mrf.mxu3  ;;  %v284_v59 = vperm.slane %v3542_v46, 6 }
 0x17e   :  { %v2197_v21 = vmax.f32 %v2034_v23, 0.0  ;;  %v2001_v39 = vadd.f32 %v2000_v19, %v1983_v22 }
 0x180   :  { %v2214_v24 = vpack.c.bf16 %v2197_v21, %v2196_v34 }
 0x181   :  { %v2018_v25 = vpop.f32.mrf.mxu2 }
 0x182   :  { %2229 = vst [vmem:[%s5346_s3 + $0x30] sm:$0xff] %v2214_v24  ;;  %v2019_v47 = vadd.f32 %v2018_v25, %v2001_v39 }
 0x183   :  { %v1984_v27 = vpop.f32.mrf.mxu0  ;;  %v2002_v41 = vpop.f32.mrf.mxu1 }
 0x184   :  { %v2037_v29 = vadd.f32 %v2036_v42, %v2019_v47  ;;  %v2038_v32 = vpop.f32.mrf.mxu3 }
 0x186   :  { %v2205_v31 = vmax.f32 %v2037_v29, 0.0 }
 0x188   :  { %v2218_v49 = vpack.c.bf16 %v2205_v31, %v2204_v30 }
 0x189   :  { %v2020_v52 = vpop.f32.mrf.mxu2 }
 0x18a   :  { %2233 = vst [vmem:[%s5346_s3 + $0x50] sm:$0x11] %v2218_v49 }
 0x18b   :  { %v2049_v33 = vpop.f32.mrf.mxu0  ;;  %v2067_v36 = vpop.f32.mrf.mxu1 }
 0x18c   :  { %v2050_v28 = vadd.f32 %v2049_v33, %v284_v59 }
 0x18e   :  { %v2068_v63 = vadd.f32 %v2067_v36, %v2050_v28 }
 0x191   :  { %v2085_v37 = vpop.f32.mrf.mxu2 }
 0x192   :  { %v2086_v3 = vadd.f32 %v2085_v37, %v2068_v63 }
 0x193   :  { %v2103_v38 = vpop.f32.mrf.mxu3  ;;  %v2051_v11 = vpop.f32.mrf.mxu0 }
 0x194   :  { %v2069_v44 = vpop.f32.mrf.mxu1  ;;  %v2052_v4 = vadd.f32 %v2051_v11, %v284_v59  ;;  %v2104_v40 = vadd.f32 %v2103_v38, %v2086_v3 }
 0x196   :  { %v2070_v20 = vadd.f32 %v2069_v44, %v2052_v4  ;;  %v2190_v9 = vmax.f32 %v2104_v40, 0.0 }
 0x199   :  { %v2087_v50 = vpop.f32.mrf.mxu2 }
 0x19a   :  { %v2088_v10 = vadd.f32 %v2087_v50, %v2070_v20 }
 0x19b   :  { %v2105_v51 = vpop.f32.mrf.mxu3  ;;  %v2054_v45 = vpop.f32.mrf.mxu0 }
 0x19c   :  { %v2072_v55 = vpop.f32.mrf.mxu1  ;;  %v2055_v43 = vadd.f32 %v2054_v45, %v284_v59  ;;  %v2106_v22 = vadd.f32 %v2105_v51, %v2088_v10 }
 0x19e   :  { %v2073_v23 = vadd.f32 %v2072_v55, %v2055_v43  ;;  %v2198_v25 = vmax.f32 %v2106_v22, 0.0 }
 0x1a1   :  { %v2090_v56 = vpop.f32.mrf.mxu2 }
 0x1a2   :  { %v2091_v42 = vadd.f32 %v2090_v56, %v2073_v23 }
 0x1a3   :  { %v2108_v58 = vpop.f32.mrf.mxu3  ;;  %v2056_v60 = vpop.f32.mrf.mxu0 }
 0x1a4   :  { %v2074_v61 = vpop.f32.mrf.mxu1  ;;  %v2109_v30 = vadd.f32 %v2108_v58, %v2091_v42 }
 0x1a6   :  { %v2206_v33 = vmax.f32 %v2109_v30, 0.0 }
 0x1a9   :  { %v2092_v17 = vpop.f32.mrf.mxu2 }
 0x1ab   :  { %v2110_v62 = vpop.f32.mrf.mxu3 }
 0x1af   :  { %v2121_v18 = vpop.f32.mrf.mxu0 }
 0x1b0   :  { %v2122_v2 = vadd.f32 %v2121_v18, %v285_v35 }
 0x1b1   :  { %v2139_v1 = vpop.f32.mrf.mxu1 }
 0x1b2   :  { %v2140_v48 = vadd.f32 %v2139_v1, %v2122_v2 }
 0x1b3   :  { %v2157_v53 = vpop.f32.mrf.mxu2 }
 0x1b4   :  { %v2158_v54 = vadd.f32 %v2157_v53, %v2140_v48 }
 0x1b7   :  { %v2123_v13 = vpop.f32.mrf.mxu0 }
 0x1b8   :  { %v2124_v0 = vadd.f32 %v2123_v13, %v285_v35 }
 0x1b9   :  { %v2175_v6 = vpop.f32.mrf.mxu3  ;;  %v2141_v57 = vpop.f32.mrf.mxu1 }
 0x1ba   :  { %v2176_v5 = vadd.f32 %v2175_v6, %v2158_v54  ;;  %v2142_v7 = vadd.f32 %v2141_v57, %v2124_v0 }
 0x1bb   :  { %v2159_v12 = vpop.f32.mrf.mxu2 }
 0x1bc   :  { %v2191_v8 = vmax.f32 %v2176_v5, 0.0  ;;  %v2160_v34 = vadd.f32 %v2159_v12, %v2142_v7 }
 0x1be   :  { %v2211_v16 = vpack.c.bf16 %v2191_v8, %v2190_v9 }
 0x1bf   :  { %v2126_v15 = vpop.f32.mrf.mxu0 }
 0x1c0   :  { %2226 = vst.msk [vmem:[%s5346_s3 + $0x18] sm:$0xff] %vm5326_vm2, %v2211_v16  ;;  %v2127_v39 = vadd.f32 %v2126_v15, %v285_v35 }
 0x1c1   :  { %v2177_v19 = vpop.f32.mrf.mxu3  ;;  %v2144_v21 = vpop.f32.mrf.mxu1 }
 0x1c2   :  { %v2178_v24 = vadd.f32 %v2177_v19, %v2160_v34  ;;  %v2145_v47 = vadd.f32 %v2144_v21, %v2127_v39 }
 0x1c3   :  { %v2162_v41 = vpop.f32.mrf.mxu2 }
 0x1c4   :  { %v2199_v26 = vmax.f32 %v2178_v24, 0.0  ;;  %v2163_v31 = vadd.f32 %v2162_v41, %v2145_v47 }
 0x1c6   :  { %v2215_v27 = vpack.c.bf16 %v2199_v26, %v2198_v25 }
 0x1c7   :  { %v2128_v49 = vpop.f32.mrf.mxu0 }
 0x1c8   :  { %2230 = vst.msk [vmem:[%s5346_s3 + $0x38] sm:$0xff] %vm5326_vm2, %v2215_v27 }
 0x1c9   :  { %v2180_v29 = vpop.f32.mrf.mxu3  ;;  %v2146_v52 = vpop.f32.mrf.mxu1 }
 0x1ca   :  { %v2181_v32 = vadd.f32 %v2180_v29, %v2163_v31 }
 0x1cb   :  { %v2164_v38 = vpop.f32.mrf.mxu2 }
 0x1cc   :  { %v2207_v36 = vmax.f32 %v2181_v32, 0.0 }
 0x1ce   :  { %v2219_v37 = vpack.c.bf16 %v2207_v36, %v2206_v33 }
 0x1d0   :  { %2237 = vst.msk [vmem:[%s5346_s3 + $0x58] sm:$0x11] %vm2236_vm5, %v2219_v37 }
 0x1d1   :  { %v2182_v11 = vpop.f32.mrf.mxu3 }

</bundles_post_ra>
